<compile_context>
chip_gen: v7x
topology: tpu7x:2x2x1
jax: 0.10.0
libtpu: 0.0.40
codegen_flags: <defaults>
</compile_context>

<pallas_src>
import functools
import math

import jax
import jax.numpy as jnp
from jax import lax
from jax.experimental import pallas as pl
from jax.experimental.pallas import tpu as pltpu


# --------------------------- window glue (NHWC) ---------------------------- #

def windowize(x_nhwc, ws):
    # (B, H, W, C) -> (B*nH*nW*ws*ws, C), window-major, row-major inside window
    B, H, W, C = x_nhwc.shape
    nH, nW = H // ws, W // ws
    t = x_nhwc.reshape(B, nH, ws, nW, ws, C)
    t = jnp.transpose(t, (0, 1, 3, 2, 4, 5))          # (B, nH, nW, ws, ws, C)
    return t.reshape(B * nH * nW * ws * ws, C)


def unwindowize(rows, batch, H, W, ws):
    # inverse of windowize -> (batch, H, W, C)
    C = rows.shape[-1]
    nH, nW = H // ws, W // ws
    t = rows.reshape(batch, nH, nW, ws, ws, C)
    t = jnp.transpose(t, (0, 1, 3, 2, 4, 5))          # (B, nH, ws, nW, ws, C)
    return t.reshape(batch, H, W, C)


# ------------------------- non-local attention kernel ---------------------- #

def _nl_kernel(x_ref, wqkv_ref, bqkv_ref, wo_ref, bo_ref, o_ref, *, nwb, s, ci):
    # x_ref: (nwb*s, C) slab of window rows; projection weights shared by all
    # windows, so the projections run as single big-M matmuls.
    x = x_ref[...].astype(jnp.float32)                                     # (nwb*s, C)
    qkv = jnp.dot(x, wqkv_ref[...].astype(jnp.float32),
                  preferred_element_type=jnp.float32)
    qkv = qkv + bqkv_ref[...].astype(jnp.float32)                          # (nwb*s, 3*ci)

    qkv = qkv.reshape(nwb, s, 3 * ci)
    theta = qkv[:, :, 0 * ci:1 * ci]                                       # (nwb, s, ci)
    phi = qkv[:, :, 1 * ci:2 * ci]
    g = qkv[:, :, 2 * ci:3 * ci]

    # per-window attention; scores stay block-diagonal across the window batch
    f = jnp.einsum("bsc,btc->bst", theta, phi,
                   preferred_element_type=jnp.float32)                     # (nwb, s, s)
    f = f - jnp.max(f, axis=-1, keepdims=True)
    p = jnp.exp(f)
    p = p * pl.reciprocal(jnp.sum(p, axis=-1, keepdims=True), approx=True)

    y = jnp.einsum("bst,btc->bsc", p, g,
                   preferred_element_type=jnp.float32)                     # (nwb, s, ci)
    y = y.reshape(nwb * s, ci)
    out = jnp.dot(y, wo_ref[...].astype(jnp.float32),
                  preferred_element_type=jnp.float32)
    out = out + bo_ref[...].astype(jnp.float32)                            # (nwb*s, C)
    o_ref[...] = out.astype(o_ref.dtype)


def nl_block_windows(rows, att, ws, nwb=16):
    # rows: (n_win * S, C) window rows (both passes concatenated by the caller)
    S = ws * ws
    n_rows, C = rows.shape
    n_win = n_rows // S
    Ci = att["wo"].shape[0]

    nwb = max(1, min(nwb, n_win))
    n_pad = (-n_win) % nwb
    if n_pad:
        rows = jnp.concatenate(
            [rows, jnp.zeros((n_pad * S, C), rows.dtype)], axis=0)
    n_blocks = (n_win + n_pad) // nwb

    kernel = functools.partial(_nl_kernel, nwb=nwb, s=S, ci=Ci)
    out = pl.pallas_call(
        kernel,
        out_shape=jax.ShapeDtypeStruct((n_blocks * nwb * S, C), rows.dtype),
        grid=(n_blocks,),
        in_specs=[
            pl.BlockSpec((nwb * S, C), lambda i: (i, 0)),
            pl.BlockSpec((C, 3 * Ci), lambda i: (0, 0)),
            pl.BlockSpec((1, 3 * Ci), lambda i: (0, 0)),
            pl.BlockSpec((Ci, C), lambda i: (0, 0)),
            pl.BlockSpec((1, C), lambda i: (0, 0)),
        ],
        out_specs=pl.BlockSpec((nwb * S, C), lambda i: (i, 0)),
        compiler_params=pltpu.CompilerParams(
            dimension_semantics=("parallel",),
            vmem_limit_bytes=32 * 1024 * 1024),
    )(rows, att["wqkv"], att["bqkv"], att["wo"], att["bo"])
    return out[:n_win * S]


# ------------------ fuse (att1*att2) + LayerNorm2d + gamma ----------------- #

def _fuse_ln_kernel(a1_ref, a2_ref, x_ref, w_ref, b_ref, g_ref, o_ref):
    a = a1_ref[...].astype(jnp.float32) * a2_ref[...].astype(jnp.float32)  # (tm, C)
    mu = jnp.mean(a, axis=-1, keepdims=True)
    d = a - mu
    var = jnp.mean(d * d, axis=-1, keepdims=True)
    y = d * lax.rsqrt(var + 1e-5)
    y = y * w_ref[...].astype(jnp.float32) + b_ref[...].astype(jnp.float32)
    o_ref[...] = (y * g_ref[0] + x_ref[...].astype(jnp.float32)).astype(o_ref.dtype)


def fuse_layernorm(a1, a2, xr, ln_w, ln_b, gamma, tm=512):
    rows, C = xr.shape
    tm = min(tm, rows)
    while rows % tm:
        tm //= 2

    return pl.pallas_call(
        _fuse_ln_kernel,
        out_shape=jax.ShapeDtypeStruct((rows, C), xr.dtype),
        grid=(rows // tm,),
        in_specs=[
            pl.BlockSpec((tm, C), lambda i: (i, 0)),
            pl.BlockSpec((tm, C), lambda i: (i, 0)),
            pl.BlockSpec((tm, C), lambda i: (i, 0)),
            pl.BlockSpec((1, C), lambda i: (0, 0)),
            pl.BlockSpec((1, C), lambda i: (0, 0)),
            pl.BlockSpec(memory_space=pltpu.MemorySpace.SMEM),   # gamma scalar
        ],
        out_specs=pl.BlockSpec((tm, C), lambda i: (i, 0)),
        compiler_params=pltpu.CompilerParams(
            dimension_semantics=("parallel",),
            vmem_limit_bytes=32 * 1024 * 1024),
    )(a1, a2, xr, ln_w.reshape(1, C), ln_b.reshape(1, C),
      gamma.reshape(1).astype(jnp.float32))


# ------------------------------ CoSwin forward ----------------------------- #

def coswin_forward(x, params, window_size, nwb=16):
    B, C, H, W = x.shape
    ws = window_size
    h_ = math.ceil(H / ws) * ws
    w_ = math.ceil(W / ws) * ws
    # TODO(synk): general adaptive_avg_pool2d when H/W are not multiples of the
    # window size; with the shapes used here both adaptive pools are identity.
    assert (h_, w_) == (H, W), "choose H, W as multiples of window_size"

    xc = jnp.transpose(x, (0, 2, 3, 1))                  # single NCHW->NHWC

    # pass 1: non-shifted windows ; pass 2: reflect-padded ("shifted") windows
    left, right = ws // 2, ws - ws // 2
    top, bottom = ws // 2, ws - ws // 2
    xp = jnp.pad(xc, ((0, 0), (top, bottom), (left, right), (0, 0)), mode="reflect")
    Hp, Wp = H + top + bottom, W + left + right

    rows1 = windowize(xc, ws)                            # (NW1*S, C)
    rows2 = windowize(xp, ws)                            # (NW2*S, C)
    n1, n2 = rows1.shape[0], rows2.shape[0]

    # both passes in ONE pallas_call
    att_rows = nl_block_windows(jnp.concatenate([rows1, rows2], axis=0),
                                params["att"], ws, nwb=nwb)

    att1 = unwindowize(att_rows[:n1], B, H, W, ws)               # (B, H, W, C)
    att2 = unwindowize(att_rows[n1:n1 + n2], B, Hp, Wp, ws)      # (B, Hp, Wp, C)
    # torch reference crops with [..., left:left+h_, top:top+w_]; top == left
    # by construction, so this (axis-correct) crop matches it exactly.
    att2 = att2[:, top:top + H, left:left + W, :]

    out_rows = fuse_layernorm(
        att1.reshape(B * H * W, C), att2.reshape(B * H * W, C),
        xc.reshape(B * H * W, C),
        params["ln_w"], params["ln_b"], params["gamma"])

    return jnp.transpose(out_rows.reshape(B, H, W, C), (0, 3, 1, 2))


# ------------------------------ parameter init ----------------------------- #

def init_params(key, C, dtype=jnp.float32):
    Ci = C // 4
    ks = jax.random.split(key, 8)
    s_in = 1.0 / math.sqrt(C)
    s_out = 1.0 / math.sqrt(Ci)
    wt = jax.random.normal(ks[0], (C, Ci), dtype) * s_in
    wp = jax.random.normal(ks[1], (C, Ci), dtype) * s_in
    wg = jax.random.normal(ks[2], (C, Ci), dtype) * s_in
    bt = jax.random.normal(ks[3], (1, Ci), dtype) * 0.01
    bp = jax.random.normal(ks[4], (1, Ci), dtype) * 0.01
    bg = jax.random.normal(ks[5], (1, Ci), dtype) * 0.01
    return {
        "att": {
            # theta / phi / g 1x1-conv weights fused into one (C, 3*Ci) matmul
            "wqkv": jnp.concatenate([wt, wp, wg], axis=1),
            "bqkv": jnp.concatenate([bt, bp, bg], axis=1),
            "wo": jax.random.normal(ks[6], (Ci, C), dtype) * s_out,
            "bo": jax.random.normal(ks[7], (1, C), dtype) * 0.01,
        },
        "ln_w": jnp.ones((C,), dtype),
        "ln_b": jnp.zeros((C,), dtype),
        # Module __init__ sets gamma = 0 (output would reduce to x); use a
        # deterministic non-zero value so the kernels are actually exercised.
        "gamma": jnp.array(0.5, dtype),
    }


if __name__ == "__main__":
    key = jax.random.PRNGKey(0)
    kx, kp = jax.random.split(key)

    B, C, H, W = 2, 32, 16, 16
    window_size = 8

    x = jax.random.normal(kx, (B, C, H, W), jnp.float32)
    params = init_params(kp, C)

    fwd = jax.jit(functools.partial(coswin_forward, window_size=window_size))
    out = jax.block_until_ready(fwd(x, params))
    assert out.shape == (B, C, H, W) and out.dtype == jnp.float32
    assert bool(jnp.all(jnp.isfinite(out)))
    print("KERNEL_OK")
</pallas_src>

<mosaic_0001>
module attributes {stable_mosaic.version = 11 : i64} {
  func.func @_nl_kernel(%arg0: i32, %arg1: memref<1024x32xf32, #tpu.memory_space<vmem>>, %arg2: memref<32x24xf32, #tpu.memory_space<vmem>>, %arg3: memref<1x24xf32, #tpu.memory_space<vmem>>, %arg4: memref<8x32xf32, #tpu.memory_space<vmem>>, %arg5: memref<1x32xf32, #tpu.memory_space<vmem>>, %arg6: memref<1024x32xf32, #tpu.memory_space<vmem>>) attributes {dimension_semantics = [#tpu.dimension_semantics<parallel>], iteration_bounds = array<i64: 2>, scalar_prefetch = 0 : i64, scratch_operands = 0 : i64, tpu.core_type = #tpu.core_type<tc>, window_params = [{transform_indices = @transform_0, window_bounds = array<i64: 1024, 32>}, {pipeline_mode = #tpu.pipeline_mode<synchronous>, transform_indices = @transform_1, window_bounds = array<i64: 32, 24>}, {pipeline_mode = #tpu.pipeline_mode<synchronous>, transform_indices = @transform_2, window_bounds = array<i64: 1, 24>}, {pipeline_mode = #tpu.pipeline_mode<synchronous>, transform_indices = @transform_3, window_bounds = array<i64: 8, 32>}, {pipeline_mode = #tpu.pipeline_mode<synchronous>, transform_indices = @transform_4, window_bounds = array<i64: 1, 32>}, {transform_indices = @transform_5, window_bounds = array<i64: 1024, 32>}]} {
    %c0 = arith.constant 0 : index
    %c0_0 = arith.constant 0 : index
    %0 = vector.load %arg1[%c0, %c0_0] : memref<1024x32xf32, #tpu.memory_space<vmem>>, vector<1024x32xf32>
    %c0_1 = arith.constant 0 : index
    %c0_2 = arith.constant 0 : index
    %1 = vector.load %arg2[%c0_1, %c0_2] : memref<32x24xf32, #tpu.memory_space<vmem>>, vector<32x24xf32>
    %cst = arith.constant dense<0.000000e+00> : vector<1024x24xf32>
    %2 = tpu.matmul %0, %1, %cst {dimension_numbers = #tpu.dot_dimension_numbers<[1], [0], [0], [1], [0, 0, 1, 1], [], []>} : vector<1024x32xf32>, vector<32x24xf32>, vector<1024x24xf32> -> vector<1024x24xf32>
    %c0_3 = arith.constant 0 : index
    %c0_4 = arith.constant 0 : index
    %3 = vector.load %arg3[%c0_3, %c0_4] : memref<1x24xf32, #tpu.memory_space<vmem>>, vector<1x24xf32>
    %4 = vector.broadcast %3 : vector<1x24xf32> to vector<1024x24xf32>
    %5 = arith.addf %2, %4 : vector<1024x24xf32>
    %6 = vector.shape_cast %5 : vector<1024x24xf32> to vector<16x64x24xf32>
    %7 = vector.extract_strided_slice %6 {offsets = [0, 0, 0], sizes = [16, 64, 8], strides = [1, 1, 1]} : vector<16x64x24xf32> to vector<16x64x8xf32>
    %8 = vector.extract_strided_slice %6 {offsets = [0, 0, 8], sizes = [16, 64, 8], strides = [1, 1, 1]} : vector<16x64x24xf32> to vector<16x64x8xf32>
    %9 = vector.extract_strided_slice %6 {offsets = [0, 0, 16], sizes = [16, 64, 8], strides = [1, 1, 1]} : vector<16x64x24xf32> to vector<16x64x8xf32>
    "tpu.trace_start"() <{level = 10 : i32, message = "bsc,btc->bst"}> : () -> ()
    %cst_5 = arith.constant dense<0.000000e+00> : vector<16x64x64xf32>
    %10 = tpu.matmul %7, %8, %cst_5 {dimension_numbers = #tpu.dot_dimension_numbers<[2], [2], [1], [1], [0, 0, 0, 1, 1, 1], [0], [0]>} : vector<16x64x8xf32>, vector<16x64x8xf32>, vector<16x64x64xf32> -> vector<16x64x64xf32>
    "tpu.trace_stop"() : () -> ()
    %cst_6 = arith.constant dense<0xFF800000> : vector<16x64xf32>
    %11 = vector.multi_reduction <maximumf>, %10, %cst_6 [2] : vector<16x64x64xf32> to vector<16x64xf32>
    %12 = vector.shape_cast %11 : vector<16x64xf32> to vector<16x64x1xf32>
    %13 = vector.broadcast %12 : vector<16x64x1xf32> to vector<16x64x64xf32>
    %14 = arith.subf %10, %13 : vector<16x64x64xf32>
    %15 = math.exp %14 : vector<16x64x64xf32>
    %cst_7 = arith.constant dense<0.000000e+00> : vector<16x64xf32>
    %16 = vector.multi_reduction <add>, %15, %cst_7 [2] : vector<16x64x64xf32> to vector<16x64xf32>
    %17 = vector.shape_cast %16 : vector<16x64xf32> to vector<16x64x1xf32>
    %18 = tpu.reciprocal %17 {approx = true} : vector<16x64x1xf32> -> vector<16x64x1xf32>
    %19 = vector.broadcast %18 : vector<16x64x1xf32> to vector<16x64x64xf32>
    %20 = arith.mulf %15, %19 : vector<16x64x64xf32>
    "tpu.trace_start"() <{level = 10 : i32, message = "bst,btc->bsc"}> : () -> ()
    %cst_8 = arith.constant dense<0.000000e+00> : vector<16x64x8xf32>
    %21 = tpu.matmul %20, %9, %cst_8 {dimension_numbers = #tpu.dot_dimension_numbers<[2], [1], [1], [2], [0, 0, 0, 1, 1, 2], [0], [0]>} : vector<16x64x64xf32>, vector<16x64x8xf32>, vector<16x64x8xf32> -> vector<16x64x8xf32>
    "tpu.trace_stop"() : () -> ()
    %22 = vector.shape_cast %21 : vector<16x64x8xf32> to vector<1024x8xf32>
    %c0_9 = arith.constant 0 : index
    %c0_10 = arith.constant 0 : index
    %23 = vector.load %arg4[%c0_9, %c0_10] : memref<8x32xf32, #tpu.memory_space<vmem>>, vector<8x32xf32>
    %cst_11 = arith.constant dense<0.000000e+00> : vector<1024x32xf32>
    %24 = tpu.matmul %22, %23, %cst_11 {dimension_numbers = #tpu.dot_dimension_numbers<[1], [0], [0], [1], [0, 0, 1, 1], [], []>} : vector<1024x8xf32>, vector<8x32xf32>, vector<1024x32xf32> -> vector<1024x32xf32>
    %c0_12 = arith.constant 0 : index
    %c0_13 = arith.constant 0 : index
    %25 = vector.load %arg5[%c0_12, %c0_13] : memref<1x32xf32, #tpu.memory_space<vmem>>, vector<1x32xf32>
    %26 = vector.broadcast %25 : vector<1x32xf32> to vector<1024x32xf32>
    %27 = arith.addf %24, %26 : vector<1024x32xf32>
    %c0_14 = arith.constant 0 : index
    %c0_15 = arith.constant 0 : index
    %28 = vector.load %arg6[%c0_14, %c0_15] : memref<1024x32xf32, #tpu.memory_space<vmem>>, vector<1024x32xf32>
    tpu.vector_store %arg6[%c0_14, %c0_15], %27 {strides = array<i32>} : memref<1024x32xf32, #tpu.memory_space<vmem>>, vector<1024x32xf32>,
    return
  }
  func.func @transform_0(%arg0: i32) -> (i32, i32) {
    %c0_i32 = arith.constant 0 : i32
    %c0_i32_0 = arith.constant 0 : i32
    return %arg0, %c0_i32 : i32, i32
  }
  func.func @transform_1(%arg0: i32) -> (i32, i32) {
    %c0_i32 = arith.constant 0 : i32
    %c0_i32_0 = arith.constant 0 : i32
    %c0_i32_1 = arith.constant 0 : i32
    return %c0_i32, %c0_i32_0 : i32, i32
  }
  func.func @transform_2(%arg0: i32) -> (i32, i32) {
    %c0_i32 = arith.constant 0 : i32
    %c0_i32_0 = arith.constant 0 : i32
    %c0_i32_1 = arith.constant 0 : i32
    return %c0_i32, %c0_i32_0 : i32, i32
  }
  func.func @transform_3(%arg0: i32) -> (i32, i32) {
    %c0_i32 = arith.constant 0 : i32
    %c0_i32_0 = arith.constant 0 : i32
    %c0_i32_1 = arith.constant 0 : i32
    return %c0_i32, %c0_i32_0 : i32, i32
  }
  func.func @transform_4(%arg0: i32) -> (i32, i32) {
    %c0_i32 = arith.constant 0 : i32
    %c0_i32_0 = arith.constant 0 : i32
    %c0_i32_1 = arith.constant 0 : i32
    return %c0_i32, %c0_i32_0 : i32, i32
  }
  func.func @transform_5(%arg0: i32) -> (i32, i32) {
    %c0_i32 = arith.constant 0 : i32
    %c0_i32_0 = arith.constant 0 : i32
    return %arg0, %c0_i32 : i32, i32
  }
}

module attributes {stable_mosaic.version = 11 : i64} {
  func.func @_fuse_ln_kernel(%arg0: i32, %arg1: memref<512x32xf32, #tpu.memory_space<vmem>>, %arg2: memref<512x32xf32, #tpu.memory_space<vmem>>, %arg3: memref<512x32xf32, #tpu.memory_space<vmem>>, %arg4: memref<1x32xf32, #tpu.memory_space<vmem>>, %arg5: memref<1x32xf32, #tpu.memory_space<vmem>>, %arg6: memref<1xf32, #tpu.memory_space<smem>>, %arg7: memref<512x32xf32, #tpu.memory_space<vmem>>) attributes {dimension_semantics = [#tpu.dimension_semantics<parallel>], iteration_bounds = array<i64: 1>, scalar_prefetch = 0 : i64, scratch_operands = 0 : i64, tpu.core_type = #tpu.core_type<tc>, window_params = [{transform_indices = @transform_0, window_bounds = array<i64: 512, 32>}, {transform_indices = @transform_1, window_bounds = array<i64: 512, 32>}, {transform_indices = @transform_2, window_bounds = array<i64: 512, 32>}, {pipeline_mode = #tpu.pipeline_mode<synchronous>, transform_indices = @transform_3, window_bounds = array<i64: 1, 32>}, {pipeline_mode = #tpu.pipeline_mode<synchronous>, transform_indices = @transform_4, window_bounds = array<i64: 1, 32>}, {transform_indices = @transform_5, window_bounds = array<i64: 1>}, {transform_indices = @transform_6, window_bounds = array<i64: 512, 32>}]} {
    %c0 = arith.constant 0 : index
    %c0_0 = arith.constant 0 : index
    %0 = vector.load %arg1[%c0, %c0_0] : memref<512x32xf32, #tpu.memory_space<vmem>>, vector<512x32xf32>
    %c0_1 = arith.constant 0 : index
    %c0_2 = arith.constant 0 : index
    %1 = vector.load %arg2[%c0_1, %c0_2] : memref<512x32xf32, #tpu.memory_space<vmem>>, vector<512x32xf32>
    %2 = arith.mulf %0, %1 : vector<512x32xf32>
    %cst = arith.constant dense<0.000000e+00> : vector<512xf32>
    %3 = vector.multi_reduction <add>, %2, %cst [1] : vector<512x32xf32> to vector<512xf32>
    %4 = vector.shape_cast %3 : vector<512xf32> to vector<512x1xf32>
    %cst_3 = arith.constant 3.200000e+01 : f32
    %5 = vector.broadcast %cst_3 : f32 to vector<512x1xf32>
    %6 = arith.divf %4, %5 : vector<512x1xf32>
    %7 = vector.broadcast %6 : vector<512x1xf32> to vector<512x32xf32>
    %8 = arith.subf %2, %7 : vector<512x32xf32>
    %9 = arith.mulf %8, %8 : vector<512x32xf32>
    %cst_4 = arith.constant dense<0.000000e+00> : vector<512xf32>
    %10 = vector.multi_reduction <add>, %9, %cst_4 [1] : vector<512x32xf32> to vector<512xf32>
    %11 = vector.shape_cast %10 : vector<512xf32> to vector<512x1xf32>
    %cst_5 = arith.constant 3.200000e+01 : f32
    %12 = vector.broadcast %cst_5 : f32 to vector<512x1xf32>
    %13 = arith.divf %11, %12 : vector<512x1xf32>
    %cst_6 = arith.constant 9.99999974E-6 : f32
    %14 = vector.broadcast %cst_6 : f32 to vector<512x1xf32>
    %15 = arith.addf %13, %14 : vector<512x1xf32>
    %16 = math.rsqrt %15 : vector<512x1xf32>
    %17 = vector.broadcast %16 : vector<512x1xf32> to vector<512x32xf32>
    %18 = arith.mulf %8, %17 : vector<512x32xf32>
    %c0_7 = arith.constant 0 : index
    %c0_8 = arith.constant 0 : index
    %19 = vector.load %arg4[%c0_7, %c0_8] : memref<1x32xf32, #tpu.memory_space<vmem>>, vector<1x32xf32>
    %20 = vector.broadcast %19 : vector<1x32xf32> to vector<512x32xf32>
    %21 = arith.mulf %18, %20 : vector<512x32xf32>
    %c0_9 = arith.constant 0 : index
    %c0_10 = arith.constant 0 : index
    %22 = vector.load %arg5[%c0_9, %c0_10] : memref<1x32xf32, #tpu.memory_space<vmem>>, vector<1x32xf32>
    %23 = vector.broadcast %22 : vector<1x32xf32> to vector<512x32xf32>
    %24 = arith.addf %21, %23 : vector<512x32xf32>
    %c0_11 = arith.constant 0 : index
    %25 = memref.load %arg6[%c0_11] : memref<1xf32, #tpu.memory_space<smem>>
    %26 = vector.broadcast %25 : f32 to vector<512x32xf32>
    %27 = arith.mulf %24, %26 : vector<512x32xf32>
    %c0_12 = arith.constant 0 : index
    %c0_13 = arith.constant 0 : index
    %28 = vector.load %arg3[%c0_12, %c0_13] : memref<512x32xf32, #tpu.memory_space<vmem>>, vector<512x32xf32>
    %29 = arith.addf %27, %28 : vector<512x32xf32>
    %c0_14 = arith.constant 0 : index
    %c0_15 = arith.constant 0 : index
    %30 = vector.load %arg7[%c0_14, %c0_15] : memref<512x32xf32, #tpu.memory_space<vmem>>, vector<512x32xf32>
    tpu.vector_store %arg7[%c0_14, %c0_15], %29 {strides = array<i32>} : memref<512x32xf32, #tpu.memory_space<vmem>>, vector<512x32xf32>,
    return
  }
  func.func @transform_0(%arg0: i32) -> (i32, i32) {
    %c0_i32 = arith.constant 0 : i32
    %c0_i32_0 = arith.constant 0 : i32
    return %arg0, %c0_i32 : i32, i32
  }
  func.func @transform_1(%arg0: i32) -> (i32, i32) {
    %c0_i32 = arith.constant 0 : i32
    %c0_i32_0 = arith.constant 0 : i32
    return %arg0, %c0_i32 : i32, i32
  }
  func.func @transform_2(%arg0: i32) -> (i32, i32) {
    %c0_i32 = arith.constant 0 : i32
    %c0_i32_0 = arith.constant 0 : i32
    return %arg0, %c0_i32 : i32, i32
  }
  func.func @transform_3(%arg0: i32) -> (i32, i32) {
    %c0_i32 = arith.constant 0 : i32
    %c0_i32_0 = arith.constant 0 : i32
    %c0_i32_1 = arith.constant 0 : i32
    return %c0_i32, %c0_i32_0 : i32, i32
  }
  func.func @transform_4(%arg0: i32) -> (i32, i32) {
    %c0_i32 = arith.constant 0 : i32
    %c0_i32_0 = arith.constant 0 : i32
    %c0_i32_1 = arith.constant 0 : i32
    return %c0_i32, %c0_i32_0 : i32, i32
  }
  func.func @transform_5(%arg0: i32) -> i32 {
    %c0_i32 = arith.constant 0 : i32
    %c0_i32_0 = arith.constant 0 : i32
    return %c0_i32 : i32
  }
  func.func @transform_6(%arg0: i32) -> (i32, i32) {
    %c0_i32 = arith.constant 0 : i32
    %c0_i32_0 = arith.constant 0 : i32
    return %arg0, %c0_i32 : i32, i32
  }
}

</mosaic_0001>

<bundles_post_ra>
// kernel: coswin_forward.3
= control target key start
LH: loop header
LB: loop body
LE: loop exit
PB: predicated region body
PF: predicated region fallthrough
CT: control target
= control target key end

     0   :  { %vm217_vm0 = vcmask 261120   ;;  %s3237_s0 = inlined_call_operand.vmem [shape: f32[512,32], index: 0, kind: input, shape index: {}]   ;;  %s3238_s1 = inlined_call_operand.vmem [shape: f32[512,32], index: 1, kind: input, shape index: {}]   ;;  %s3239_s2 = inlined_call_operand.vmem [shape: f32[512,32], index: 2, kind: input, shape index: {}]   ;;  %s3240_s3 = inlined_call_operand.vmem [shape: f32[1,32], index: 3, kind: input, shape index: {}]   ;;  %s3241_s4 = inlined_call_operand.vmem [shape: f32[1,32], index: 4, kind: input, shape index: {}]   ;;  %s3242_s5 = inlined_call_operand.<no memory space> [shape: f32[1], index: 5, kind: input, shape index: {}]   ;;  %s3243_s6 = inlined_call_operand.hbm [shape: f32[512,32], index: 6, kind: output, shape index: {}]  }
   0x1   :  { %v25_v0 = vld [vmem:[%s3237_s0] sm:$0xff]  ;;  %v27_v2 = vld [vmem:[%s3237_s0 + $0x10] sm:$0xff]  ;;  %v26_v5 = vld [vmem:[%s3237_s0 + $0x8] sm:$0xff] }
   0x2   :  { %v89_v1 = vld [vmem:[%s3238_s1] sm:$0xff]  ;;  %v91_v4 = vld [vmem:[%s3238_s1 + $0x10] sm:$0xff]  ;;  %v90_v6 = vld [vmem:[%s3238_s1 + $0x8] sm:$0xff] }
   0x3   :  { %v1673_v3 = vmul.f32 %v89_v1, %v25_v0  ;;  %v1684_v7 = vmul.f32 %v91_v4, %v27_v2  ;;  %v1686_v8 = vmul.f32 %v90_v6, %v26_v5  ;;  %v28_v9 = vld [vmem:[%s3237_s0 + $0x18] sm:$0xff]  ;;  %v29_v11 = vld [vmem:[%s3237_s0 + $0x20] sm:$0xff]  ;;  %v30_v15 = vld [vmem:[%s3237_s0 + $0x28] sm:$0xff] }
   0x4   :  { %v92_v10 = vld [vmem:[%s3238_s1 + $0x18] sm:$0xff]  ;;  %v93_v14 = vld [vmem:[%s3238_s1 + $0x20] sm:$0xff]  ;;  %v94_v16 = vld [vmem:[%s3238_s1 + $0x28] sm:$0xff] }
   0x5   :  { %v218_v12 = vsel %vm217_vm0, %v1673_v3, 0.0  ;;  %v1699_v13 = vmul.f32 %v92_v10, %v28_v9  ;;  %v224_v17 = vsel %vm217_vm0, %v1684_v7, 0.0  ;;  %v221_v18 = vsel %vm217_vm0, %v1686_v8, 0.0  ;;  %v31_v22 = vld [vmem:[%s3237_s0 + $0x30] sm:$0xff]  ;;  %v32_v24 = vld [vmem:[%s3237_s0 + $0x38] sm:$0xff]  ;;  %v33_v30 = vld [vmem:[%s3237_s0 + $0x40] sm:$0xff] }
   0x6   :  { %219 = vadd.xlane.f32.xlu0 %v218_v12  ;;  %225 = vadd.xlane.f32.xlu1 %v224_v17  ;;  %v1714_v19 = vmul.f32 %v93_v14, %v29_v11  ;;  %v1718_v21 = vmul.f32 %v94_v16, %v30_v15  ;;  %v95_v23 = vld [vmem:[%s3238_s1 + $0x30] sm:$0xff]  ;;  %v96_v25 = vld [vmem:[%s3238_s1 + $0x38] sm:$0xff]  ;;  %v97_v31 = vld [vmem:[%s3238_s1 + $0x40] sm:$0xff] }
   0x7   :  { %v227_v20 = vsel %vm217_vm0, %v1699_v13, 0.0  ;;  %v1734_v27 = vmul.f32 %v95_v23, %v31_v22  ;;  %v1738_v29 = vmul.f32 %v96_v25, %v32_v24  ;;  %v34_v32 = vld [vmem:[%s3237_s0 + $0x48] sm:$0xff]  ;;  %v1754_v35 = vmul.f32 %v97_v31, %v33_v30  ;;  %v35_v38 = vld [vmem:[%s3237_s0 + $0x50] sm:$0xff]  ;;  %v36_v40 = vld [vmem:[%s3237_s0 + $0x58] sm:$0xff] }
   0x8   :  { %v230_v26 = vsel %vm217_vm0, %v1714_v19, 0.0  ;;  %v233_v28 = vsel %vm217_vm0, %v1718_v21, 0.0  ;;  %v98_v33 = vld [vmem:[%s3238_s1 + $0x48] sm:$0xff]  ;;  %v99_v39 = vld [vmem:[%s3238_s1 + $0x50] sm:$0xff]  ;;  %v100_v41 = vld [vmem:[%s3238_s1 + $0x58] sm:$0xff] }
   0x9   :  { %v236_v34 = vsel %vm217_vm0, %v1734_v27, 0.0  ;;  %v239_v36 = vsel %vm217_vm0, %v1738_v29, 0.0  ;;  %v1758_v37 = vmul.f32 %v98_v33, %v34_v32  ;;  %v242_v42 = vsel %vm217_vm0, %v1754_v35, 0.0  ;;  %v37_v46 = vld [vmem:[%s3237_s0 + $0x60] sm:$0xff]  ;;  %v38_v48 = vld [vmem:[%s3237_s0 + $0x68] sm:$0xff]  ;;  %v39_v54 = vld [vmem:[%s3237_s0 + $0x70] sm:$0xff] }
   0xa   :  { %222 = vadd.xlane.f32.xlu0 %v221_v18  ;;  %228 = vadd.xlane.f32.xlu1 %v227_v20  ;;  %v1774_v43 = vmul.f32 %v99_v39, %v35_v38  ;;  %v1778_v45 = vmul.f32 %v100_v41, %v36_v40  ;;  %v101_v47 = vld [vmem:[%s3238_s1 + $0x60] sm:$0xff]  ;;  %v102_v49 = vld [vmem:[%s3238_s1 + $0x68] sm:$0xff]  ;;  %v103_v55 = vld [vmem:[%s3238_s1 + $0x70] sm:$0xff] }
   0xb   :  { %v245_v44 = vsel %vm217_vm0, %v1758_v37, 0.0  ;;  %v1794_v51 = vmul.f32 %v101_v47, %v37_v46  ;;  %v1798_v53 = vmul.f32 %v102_v49, %v38_v48  ;;  %v40_v56 = vld [vmem:[%s3237_s0 + $0x78] sm:$0xff]  ;;  %v1814_v59 = vmul.f32 %v103_v55, %v39_v54  ;;  %v41_v62 = vld [vmem:[%s3237_s0 + $0x80] sm:$0xff]  ;;  %v42_v0 = vld [vmem:[%s3237_s0 + $0x88] sm:$0xff] }
   0xc   :  { %v248_v50 = vsel %vm217_vm0, %v1774_v43, 0.0  ;;  %v251_v52 = vsel %vm217_vm0, %v1778_v45, 0.0  ;;  %v104_v57 = vld [vmem:[%s3238_s1 + $0x78] sm:$0xff]  ;;  %v105_v63 = vld [vmem:[%s3238_s1 + $0x80] sm:$0xff]  ;;  %v106_v1 = vld [vmem:[%s3238_s1 + $0x88] sm:$0xff] }
   0xd   :  { %v254_v58 = vsel %vm217_vm0, %v1794_v51, 0.0  ;;  %v257_v60 = vsel %vm217_vm0, %v1798_v53, 0.0  ;;  %v1818_v61 = vmul.f32 %v104_v57, %v40_v56  ;;  %v260_v2 = vsel %vm217_vm0, %v1814_v59, 0.0  ;;  %v43_v9 = vld [vmem:[%s3237_s0 + $0x90] sm:$0xff]  ;;  %v44_v11 = vld [vmem:[%s3237_s0 + $0x98] sm:$0xff]  ;;  %v45_v18 = vld [vmem:[%s3237_s0 + $0xa0] sm:$0xff] }
   0xe   :  { %231 = vadd.xlane.f32.xlu0 %v230_v26  ;;  %234 = vadd.xlane.f32.xlu1 %v233_v28  ;;  %v1834_v4 = vmul.f32 %v105_v63, %v41_v62  ;;  %v1838_v6 = vmul.f32 %v106_v1, %v42_v0  ;;  %v107_v10 = vld [vmem:[%s3238_s1 + $0x90] sm:$0xff]  ;;  %v108_v12 = vld [vmem:[%s3238_s1 + $0x98] sm:$0xff]  ;;  %v109_v20 = vld [vmem:[%s3238_s1 + $0xa0] sm:$0xff] }
   0xf   :  { %v263_v5 = vsel %vm217_vm0, %v1818_v61, 0.0  ;;  %v1854_v15 = vmul.f32 %v107_v10, %v43_v9  ;;  %v1858_v17 = vmul.f32 %v108_v12, %v44_v11  ;;  %v46_v22 = vld [vmem:[%s3237_s0 + $0xa8] sm:$0xff]  ;;  %v1874_v25 = vmul.f32 %v109_v20, %v45_v18  ;;  %v47_v30 = vld [vmem:[%s3237_s0 + $0xb0] sm:$0xff]  ;;  %v48_v32 = vld [vmem:[%s3237_s0 + $0xb8] sm:$0xff] }
  0x10   :  { %v266_v14 = vsel %vm217_vm0, %v1834_v4, 0.0  ;;  %v269_v16 = vsel %vm217_vm0, %v1838_v6, 0.0  ;;  %v110_v23 = vld [vmem:[%s3238_s1 + $0xa8] sm:$0xff]  ;;  %v111_v31 = vld [vmem:[%s3238_s1 + $0xb0] sm:$0xff]  ;;  %v112_v33 = vld [vmem:[%s3238_s1 + $0xb8] sm:$0xff] }
  0x11   :  { %v272_v24 = vsel %vm217_vm0, %v1854_v15, 0.0  ;;  %v275_v26 = vsel %vm217_vm0, %v1858_v17, 0.0  ;;  %v1878_v28 = vmul.f32 %v110_v23, %v46_v22  ;;  %v1898_v39 = vmul.f32 %v112_v33, %v48_v32  ;;  %v49_v40 = vld [vmem:[%s3237_s0 + $0xc0] sm:$0xff] }
  0x12   :  { %237 = vadd.xlane.f32.xlu0 %v236_v34  ;;  %240 = vadd.xlane.f32.xlu1 %v239_v36  ;;  %v278_v34 = vsel %vm217_vm0, %v1874_v25, 0.0  ;;  %v1894_v36 = vmul.f32 %v111_v31, %v47_v30  ;;  %v113_v41 = vld [vmem:[%s3238_s1 + $0xc0] sm:$0xff] }
  0x13   :  { %v281_v38 = vsel %vm217_vm0, %v1878_v28, 0.0 }
  0x16   :  { %243 = vadd.xlane.f32.xlu0 %v242_v42  ;;  %246 = vadd.xlane.f32.xlu1 %v245_v44 }
  0x1a   :  { %249 = vadd.xlane.f32.xlu0 %v248_v50  ;;  %252 = vadd.xlane.f32.xlu1 %v251_v52 }
  0x1e   :  { %255 = vadd.xlane.f32.xlu0 %v254_v58  ;;  %258 = vadd.xlane.f32.xlu1 %v257_v60 }
  0x22   :  { %261 = vadd.xlane.f32.xlu0 %v260_v2  ;;  %264 = vadd.xlane.f32.xlu1 %v263_v5 }
  0x26   :  { %267 = vadd.xlane.f32.xlu0 %v266_v14  ;;  %270 = vadd.xlane.f32.xlu1 %v269_v16 }
  0x2a   :  { %273 = vadd.xlane.f32.xlu0 %v272_v24  ;;  %276 = vadd.xlane.f32.xlu1 %v275_v26 }
  0x2b   :  { %12 = vsyncpa [#allocation4], 0  ;;  %v50_v42 = vld [vmem:[%s3237_s0 + $0xc8] sm:$0xff]  ;;  %v284_v46 = vsel %vm217_vm0, %v1894_v36, 0.0  ;;  %v1914_v47 = vmul.f32 %v113_v41, %v49_v40  ;;  %v287_v48 = vsel %vm217_vm0, %v1898_v39, 0.0  ;;  %v51_v50 = vld [vmem:[%s3237_s0 + $0xd0] sm:$0xff] }
  0x2c   :  { %v114_v44 = vld [vmem:[%s3238_s1 + $0xc8] sm:$0xff]  ;;  %v115_v52 = vld [vmem:[%s3238_s1 + $0xd0] sm:$0xff]  ;;  %v52_v54 = vld [vmem:[%s3237_s0 + $0xd8] sm:$0xff]  ;;  %s1626_s12 = smov [#allocation3]  }
  0x2d   :  { %v1918_v49 = vmul.f32 %v114_v44, %v50_v42  ;;  %v116_v55 = vld [vmem:[%s3238_s1 + $0xd8] sm:$0xff]  ;;  %v290_v56 = vsel %vm217_vm0, %v1914_v47, 0.0  ;;  %v1934_v57 = vmul.f32 %v115_v52, %v51_v50  ;;  %v53_v62 = vld [vmem:[%s3237_s0 + $0xe0] sm:$0xff]  ;;  %v54_v0 = vld [vmem:[%s3237_s0 + $0xe8] sm:$0xff] }
  0x2e   :  { %279 = vadd.xlane.f32.xlu0 %v278_v34  ;;  %282 = vadd.xlane.f32.xlu1 %v281_v38  ;;  %v1938_v60 = vmul.f32 %v116_v55, %v52_v54  ;;  %v117_v63 = vld [vmem:[%s3238_s1 + $0xe0] sm:$0xff]  ;;  %v118_v1 = vld [vmem:[%s3238_s1 + $0xe8] sm:$0xff]  ;;  %v55_v11 = vld [vmem:[%s3237_s0 + $0xf0] sm:$0xff] }
  0x2f   :  { %v293_v58 = vsel %vm217_vm0, %v1918_v49, 0.0  ;;  %v296_v2 = vsel %vm217_vm0, %v1934_v57, 0.0  ;;  %v1954_v5 = vmul.f32 %v117_v63, %v53_v62  ;;  %v1958_v10 = vmul.f32 %v118_v1, %v54_v0  ;;  %v119_v12 = vld [vmem:[%s3238_s1 + $0xf0] sm:$0xff]  ;;  %v56_v14 = vld [vmem:[%s3237_s0 + $0xf8] sm:$0xff]  ;;  %v57_v24 = vld [vmem:[%s3237_s0 + $0x100] sm:$0xff] }
  0x30   :  { %v299_v9 = vsel %vm217_vm0, %v1938_v60, 0.0  ;;  %v120_v16 = vld [vmem:[%s3238_s1 + $0xf8] sm:$0xff]  ;;  %v1974_v20 = vmul.f32 %v119_v12, %v55_v11  ;;  %v121_v26 = vld [vmem:[%s3238_s1 + $0x100] sm:$0xff]  ;;  %v58_v30 = vld [vmem:[%s3237_s0 + $0x108] sm:$0xff] }
  0x31   :  { %v302_v18 = vsel %vm217_vm0, %v1954_v5, 0.0  ;;  %v305_v22 = vsel %vm217_vm0, %v1958_v10, 0.0  ;;  %v1978_v23 = vmul.f32 %v120_v16, %v56_v14  ;;  %v122_v31 = vld [vmem:[%s3238_s1 + $0x108] sm:$0xff]  ;;  %v1994_v33 = vmul.f32 %v121_v26, %v57_v24  ;;  %v59_v40 = vld [vmem:[%s3237_s0 + $0x110] sm:$0xff]  ;;  %v60_v42 = vld [vmem:[%s3237_s0 + $0x118] sm:$0xff] }
  0x32   :  { %285 = vadd.xlane.f32.xlu0 %v284_v46  ;;  %288 = vadd.xlane.f32.xlu1 %v287_v48  ;;  %v308_v32 = vsel %vm217_vm0, %v1974_v20, 0.0  ;;  %v1998_v38 = vmul.f32 %v122_v31, %v58_v30  ;;  %v123_v41 = vld [vmem:[%s3238_s1 + $0x110] sm:$0xff]  ;;  %v124_v44 = vld [vmem:[%s3238_s1 + $0x118] sm:$0xff]  ;;  %v61_v54 = vld [vmem:[%s3237_s0 + $0x120] sm:$0xff] }
  0x33   :  { %v311_v34 = vsel %vm217_vm0, %v1978_v23, 0.0  ;;  %v314_v46 = vsel %vm217_vm0, %v1994_v33, 0.0  ;;  %v2014_v48 = vmul.f32 %v123_v41, %v59_v40  ;;  %v2018_v52 = vmul.f32 %v124_v44, %v60_v42  ;;  %v125_v55 = vld [vmem:[%s3238_s1 + $0x120] sm:$0xff]  ;;  %v64_v11 = vld [vmem:[%s3237_s0 + $0x138] sm:$0xff]  ;;  %v66_v30 = vld [vmem:[%s3237_s0 + $0x148] sm:$0xff] }
  0x34   :  { %v317_v50 = vsel %vm217_vm0, %v1998_v38, 0.0  ;;  %v2034_v63 = vmul.f32 %v125_v55, %v61_v54  ;;  %v128_v12 = vld [vmem:[%s3238_s1 + $0x138] sm:$0xff]  ;;  %v65_v24 = vld [vmem:[%s3237_s0 + $0x140] sm:$0xff]  ;;  %v130_v31 = vld [vmem:[%s3238_s1 + $0x148] sm:$0xff] }
  0x35   :  { %v320_v62 = vsel %vm217_vm0, %v2014_v48, 0.0  ;;  %v323_v0 = vsel %vm217_vm0, %v2018_v52, 0.0  ;;  %v129_v26 = vld [vmem:[%s3238_s1 + $0x140] sm:$0xff]  ;;  %v2078_v41 = vmul.f32 %v130_v31, %v66_v30  ;;  %v67_v42 = vld [vmem:[%s3237_s0 + $0x150] sm:$0xff]  ;;  %v72_v30 = vld [vmem:[%s3237_s0 + $0x178] sm:$0xff] }
  0x36   :  { %291 = vadd.xlane.f32.xlu0 %v290_v56  ;;  %294 = vadd.xlane.f32.xlu1 %v293_v58  ;;  %v62_v56 = vld [vmem:[%s3237_s0 + $0x128] sm:$0xff]  ;;  %v326_v14 = vsel %vm217_vm0, %v2034_v63, 0.0  ;;  %v131_v44 = vld [vmem:[%s3238_s1 + $0x150] sm:$0xff]  ;;  %v136_v31 = vld [vmem:[%s3238_s1 + $0x178] sm:$0xff] }
  0x37   :  { %v126_v58 = vld [vmem:[%s3238_s1 + $0x128] sm:$0xff]  ;;  %v2094_v55 = vmul.f32 %v131_v44, %v67_v42  ;;  %v2138_v44 = vmul.f32 %v136_v31, %v72_v30 }
  0x38   :  { %v2038_v1 = vmul.f32 %v126_v58, %v62_v56  ;;  %v341_v56 = vsel %vm217_vm0, %v2078_v41, 0.0 }
  0x3a   :  { %297 = vadd.xlane.f32.xlu0 %v296_v2  ;;  %300 = vadd.xlane.f32.xlu1 %v299_v9  ;;  %v63_v2 = vld [vmem:[%s3237_s0 + $0x130] sm:$0xff] }
  0x3b   :  { %v127_v9 = vld [vmem:[%s3238_s1 + $0x130] sm:$0xff] }
  0x3c   :  { %v2054_v16 = vmul.f32 %v127_v9, %v63_v2  ;;  %v70_v2 = vld [vmem:[%s3237_s0 + $0x168] sm:$0xff] }
  0x3d   :  { %v134_v9 = vld [vmem:[%s3238_s1 + $0x168] sm:$0xff] }
  0x3e   :  { %303 = vadd.xlane.f32.xlu0 %v302_v18  ;;  %306 = vadd.xlane.f32.xlu1 %v305_v22  ;;  %v329_v18 = vsel %vm217_vm0, %v2038_v1, 0.0  ;;  %v2058_v22 = vmul.f32 %v128_v12, %v64_v11  ;;  %v344_v11 = vsel %vm217_vm0, %v2094_v55, 0.0 }
  0x40   :  { %v335_v40 = vsel %vm217_vm0, %v2058_v22, 0.0 }
  0x42   :  { %309 = vadd.xlane.f32.xlu0 %v308_v32  ;;  %312 = vadd.xlane.f32.xlu1 %v311_v34  ;;  %v332_v32 = vsel %vm217_vm0, %v2054_v16, 0.0  ;;  %v2074_v34 = vmul.f32 %v129_v26, %v65_v24  ;;  %v71_v24 = vld [vmem:[%s3237_s0 + $0x170] sm:$0xff] }
  0x43   :  { %v135_v26 = vld [vmem:[%s3238_s1 + $0x170] sm:$0xff] }
  0x44   :  { %v338_v54 = vsel %vm217_vm0, %v2074_v34, 0.0 }
  0x46   :  { %315 = vadd.xlane.f32.xlu0 %v314_v46  ;;  %318 = vadd.xlane.f32.xlu1 %v317_v50  ;;  %v68_v46 = vld [vmem:[%s3237_s0 + $0x158] sm:$0xff] }
  0x47   :  { %v132_v50 = vld [vmem:[%s3238_s1 + $0x158] sm:$0xff] }
  0x48   :  { %v2098_v58 = vmul.f32 %v132_v50, %v68_v46  ;;  %v73_v46 = vld [vmem:[%s3237_s0 + $0x180] sm:$0xff] }
  0x49   :  { %v137_v50 = vld [vmem:[%s3238_s1 + $0x180] sm:$0xff] }
  0x4a   :  { %321 = vadd.xlane.f32.xlu0 %v320_v62  ;;  %324 = vadd.xlane.f32.xlu1 %v323_v0  ;;  %v69_v62 = vld [vmem:[%s3237_s0 + $0x160] sm:$0xff] }
  0x4b   :  { %v133_v0 = vld [vmem:[%s3238_s1 + $0x160] sm:$0xff] }
  0x4c   :  { %v2114_v12 = vmul.f32 %v133_v0, %v69_v62  ;;  %v2154_v0 = vmul.f32 %v137_v50, %v73_v46  ;;  %v77_v46 = vld [vmem:[%s3237_s0 + $0x1a0] sm:$0xff] }
  0x4d   :  { %v141_v50 = vld [vmem:[%s3238_s1 + $0x1a0] sm:$0xff] }
  0x4e   :  { %327 = vadd.xlane.f32.xlu0 %v326_v14  ;;  %330 = vadd.xlane.f32.xlu1 %v329_v18  ;;  %v347_v14 = vsel %vm217_vm0, %v2098_v58, 0.0  ;;  %v2118_v18 = vmul.f32 %v134_v9, %v70_v2  ;;  %v359_v2 = vsel %vm217_vm0, %v2138_v44, 0.0  ;;  %v362_v30 = vsel %vm217_vm0, %v2154_v0, 0.0 }
  0x50   :  { %v353_v42 = vsel %vm217_vm0, %v2118_v18, 0.0 }
  0x52   :  { %333 = vadd.xlane.f32.xlu0 %v332_v32  ;;  %336 = vadd.xlane.f32.xlu1 %v335_v40  ;;  %v350_v32 = vsel %vm217_vm0, %v2114_v12, 0.0  ;;  %v2134_v40 = vmul.f32 %v135_v26, %v71_v24  ;;  %v76_v24 = vld [vmem:[%s3237_s0 + $0x198] sm:$0xff] }
  0x53   :  { %v140_v26 = vld [vmem:[%s3238_s1 + $0x198] sm:$0xff] }
  0x54   :  { %v356_v62 = vsel %vm217_vm0, %v2134_v40, 0.0 }
  0x56   :  { %339 = vadd.xlane.f32.xlu0 %v338_v54  ;;  %342 = vadd.xlane.f32.xlu1 %v341_v56  ;;  %v74_v54 = vld [vmem:[%s3237_s0 + $0x188] sm:$0xff] }
  0x57   :  { %v138_v56 = vld [vmem:[%s3238_s1 + $0x188] sm:$0xff] }
  0x58   :  { %v2158_v9 = vmul.f32 %v138_v56, %v74_v54  ;;  %v78_v54 = vld [vmem:[%s3237_s0 + $0x1a8] sm:$0xff] }
  0x59   :  { %v142_v56 = vld [vmem:[%s3238_s1 + $0x1a8] sm:$0xff] }
  0x5a   :  { %345 = vadd.xlane.f32.xlu0 %v344_v11  ;;  %348 = vadd.xlane.f32.xlu1 %v347_v14  ;;  %v75_v11 = vld [vmem:[%s3237_s0 + $0x190] sm:$0xff] }
  0x5b   :  { %v139_v14 = vld [vmem:[%s3238_s1 + $0x190] sm:$0xff] }
  0x5c   :  { %v2174_v31 = vmul.f32 %v139_v14, %v75_v11  ;;  %v2198_v14 = vmul.f32 %v142_v56, %v78_v54 }
  0x5e   :  { %351 = vadd.xlane.f32.xlu0 %v350_v32  ;;  %354 = vadd.xlane.f32.xlu1 %v353_v42  ;;  %3280 = vst [vmem:[#allocation6_spill] sm:$0xff] %v2174_v31  ;;  %v365_v32 = vsel %vm217_vm0, %v2158_v9, 0.0  ;;  %v2178_v42 = vmul.f32 %v140_v26, %v76_v24  ;;  %3283 = vst [vmem:[#allocation9_spill] sm:$0xff] %v2198_v14  ;;  %v79_v24 = vld [vmem:[%s3237_s0 + $0x1b0] sm:$0xff]  ;;  %v377_v54 = vsel %vm217_vm0, %v2198_v14, 0.0 }
  0x5f   :  { %v143_v26 = vld [vmem:[%s3238_s1 + $0x1b0] sm:$0xff] }
  0x60   :  { %3281 = vst [vmem:[#allocation7_spill] sm:$0xff] %v2178_v42  ;;  %v371_v11 = vsel %vm217_vm0, %v2178_v42, 0.0  ;;  %v81_v42 = vld [vmem:[%s3237_s0 + $0x1c0] sm:$0xff]  ;;  %v83_v14 = vld [vmem:[%s3237_s0 + $0x1d0] sm:$0xff] }
  0x62   :  { %357 = vadd.xlane.f32.xlu0 %v356_v62  ;;  %360 = vadd.xlane.f32.xlu1 %v359_v2  ;;  %v368_v62 = vsel %vm217_vm0, %v2174_v31, 0.0  ;;  %v2194_v2 = vmul.f32 %v141_v50, %v77_v46  ;;  %v2214_v50 = vmul.f32 %v143_v26, %v79_v24  ;;  %v145_v31 = vld [vmem:[%s3238_s1 + $0x1c0] sm:$0xff] }
  0x63   :  { %v2234_v26 = vmul.f32 %v145_v31, %v81_v42  ;;  %v148_v31 = vld [vmem:[%s3238_s1 + $0x1d8] sm:$0xff] }
  0x64   :  { %3282 = vst [vmem:[#allocation8_spill] sm:$0xff] %v2194_v2  ;;  %v374_v46 = vsel %vm217_vm0, %v2194_v2, 0.0  ;;  %3284 = vst [vmem:[#allocation10_spill] sm:$0xff] %v2214_v50  ;;  %v380_v24 = vsel %vm217_vm0, %v2214_v50, 0.0  ;;  %v147_v2 = vld [vmem:[%s3238_s1 + $0x1d0] sm:$0xff]  ;;  %v149_v50 = vld [vmem:[%s3238_s1 + $0x1e0] sm:$0xff] }
  0x65   :  { %3286 = vst [vmem:[#allocation12_spill] sm:$0xff] %v2234_v26  ;;  %v386_v42 = vsel %vm217_vm0, %v2234_v26, 0.0  ;;  %v151_v26 = vld [vmem:[%s3238_s1 + $0x1f0] sm:$0xff] }
  0x66   :  { %363 = vadd.xlane.f32.xlu0 %v362_v30  ;;  %366 = vadd.xlane.f32.xlu1 %v365_v32  ;;  %v80_v30 = vld [vmem:[%s3237_s0 + $0x1b8] sm:$0xff] }
  0x67   :  { %v144_v32 = vld [vmem:[%s3238_s1 + $0x1b8] sm:$0xff] }
  0x68   :  { %v2218_v56 = vmul.f32 %v144_v32, %v80_v30 }
  0x6a   :  { %369 = vadd.xlane.f32.xlu0 %v368_v62  ;;  %372 = vadd.xlane.f32.xlu1 %v371_v11  ;;  %3285 = vst [vmem:[#allocation11_spill] sm:$0xff] %v2218_v56  ;;  %v82_v62 = vld [vmem:[%s3237_s0 + $0x1c8] sm:$0xff]  ;;  %v383_v30 = vsel %vm217_vm0, %v2218_v56, 0.0  ;;  %v85_v56 = vld [vmem:[%s3237_s0 + $0x1e0] sm:$0xff] }
  0x6b   :  { %v146_v11 = vld [vmem:[%s3238_s1 + $0x1c8] sm:$0xff] }
  0x6c   :  { %v2238_v32 = vmul.f32 %v146_v11, %v82_v62 }
  0x6e   :  { %375 = vadd.xlane.f32.xlu0 %v374_v46  ;;  %378 = vadd.xlane.f32.xlu1 %v377_v54  ;;  %3287 = vst [vmem:[#allocation13_spill] sm:$0xff] %v2238_v32  ;;  %v84_v46 = vld [vmem:[%s3237_s0 + $0x1d8] sm:$0xff]  ;;  %v2254_v54 = vmul.f32 %v147_v2, %v83_v14  ;;  %v389_v62 = vsel %vm217_vm0, %v2238_v32, 0.0  ;;  %v150_v2 = vld [vmem:[%s3238_s1 + $0x1e8] sm:$0xff]  ;;  %v87_v32 = vld [vmem:[%s3237_s0 + $0x1f0] sm:$0xff] }
  0x6f   :  { %v2258_v11 = vmul.f32 %v148_v31, %v84_v46 }
  0x70   :  { %3288 = vst [vmem:[#allocation14_spill] sm:$0xff] %v2254_v54  ;;  %v392_v14 = vsel %vm217_vm0, %v2254_v54, 0.0 }
  0x71   :  { %3289 = vst [vmem:[#allocation15_spill] sm:$0xff] %v2258_v11  ;;  %v395_v46 = vsel %vm217_vm0, %v2258_v11, 0.0 }
  0x72   :  { %381 = vadd.xlane.f32.xlu0 %v380_v24  ;;  %384 = vadd.xlane.f32.xlu1 %v383_v30  ;;  %v86_v24 = vld [vmem:[%s3237_s0 + $0x1e8] sm:$0xff]  ;;  %v2274_v30 = vmul.f32 %v149_v50, %v85_v56  ;;  %v152_v50 = vld [vmem:[%s3238_s1 + $0x1f8] sm:$0xff] }
  0x73   :  { %v2278_v31 = vmul.f32 %v150_v2, %v86_v24 }
  0x74   :  { %3290 = vst [vmem:[#allocation16_spill] sm:$0xff] %v2274_v30  ;;  %v398_v56 = vsel %vm217_vm0, %v2274_v30, 0.0 }
  0x75   :  { %3291 = vst [vmem:[#allocation17_spill] sm:$0xff] %v2278_v31  ;;  %v401_v24 = vsel %vm217_vm0, %v2278_v31, 0.0 }
  0x76   :  { %387 = vadd.xlane.f32.xlu0 %v386_v42  ;;  %390 = vadd.xlane.f32.xlu1 %v389_v62  ;;  %v88_v42 = vld [vmem:[%s3237_s0 + $0x1f8] sm:$0xff]  ;;  %v2294_v62 = vmul.f32 %v151_v26, %v87_v32  ;;  %s1456_s0 = sshll.u32 %s1626_s12, 4  ;;  %s1457_s0 = int_to_ptr.vmem [resolvable:$true] %s1456_s0 }
  0x77   :  { %v2298_v2 = vmul.f32 %v152_v50, %v88_v42  ;;  %s1602_s1 = scalar_lea.vmem %s1457_s0, 8192  ;;  %p1607_p1 = scmp.lt.s32.totalorder %s1457_s0, %s1457_s0 }
  0x78   :  { %3292 = vst [vmem:[#allocation18_spill] sm:$0xff] %v2294_v62  ;;  %v404_v11 = vsel %vm217_vm0, %v2294_v62, 0.0  ;;  %p1603_p0 = scmp.ne.s32.totalorder %s1457_s0, %s1602_s1  ;;  %p1608_p2 = scmp.lt.s32.totalorder %s1602_s1, %s1602_s1 }
  0x79   :  { %v407_v54 = vsel %vm217_vm0, %v2298_v2, 0.0 }
  0x7a   :  { %393 = vadd.xlane.f32.xlu0 %v392_v14  ;;  %396 = vadd.xlane.f32.xlu1 %v395_v46  ;;  %p1609_p3 = por %p1608_p2, %p1607_p1 }
  0x7c   :  { %p1610_p4 = pnand %p1609_p3, %p1603_p0 }
  0x7e   :  { %399 = vadd.xlane.f32.xlu0 %v398_v56  ;;  %402 = vadd.xlane.f32.xlu1 %v401_v24 }
  0x82   :  { %405 = vadd.xlane.f32.xlu0 %v404_v11  ;;  %408 = vadd.xlane.f32.xlu1 %v407_v54 }
  0x93   :  { %v220_v14 = vpop.xlane.xlu0 %219  ;;  %v226_v30 = vpop.xlane.xlu1 %225 }
  0x94   :  { %v411_v46 = vmul.f32 0.03125, %v220_v14  ;;  %v413_v26 = vmul.f32 0.03125, %v226_v30 }
  0x96   :  { %v2305_v32 = vsub.f32 %v1673_v3, %v411_v46  ;;  %v2308_v42 = vsub.f32 %v1684_v7, %v413_v26 }
  0x97   :  { %v223_v50 = vpop.xlane.xlu0 %222  ;;  %v229_v24 = vpop.xlane.xlu1 %228 }
  0x98   :  { %3293 = vst [vmem:[#allocation19_spill] sm:$0xff] %v2308_v42  ;;  %v412_v56 = vmul.f32 0.03125, %v223_v50  ;;  %v539_v62 = vmul.f32 %v2305_v32, %v2305_v32  ;;  %v414_v31 = vmul.f32 0.03125, %v229_v24  ;;  %v541_v54 = vmul.f32 %v2308_v42, %v2308_v42 }
  0x9a   :  { %v2315_v11 = vsub.f32 %v1686_v8, %v412_v56  ;;  %v603_v30 = vsel %vm217_vm0, %v539_v62, 0.0  ;;  %v2319_v3 = vsub.f32 %v1699_v13, %v414_v31  ;;  %v609_v26 = vsel %vm217_vm0, %v541_v54, 0.0 }
  0x9b   :  { %604 = vadd.xlane.f32.xlu0 %v603_v30  ;;  %v232_v7 = vpop.xlane.xlu0 %231  ;;  %v235_v46 = vpop.xlane.xlu1 %234 }
  0x9c   :  { %v415_v14 = vmul.f32 0.03125, %v232_v7  ;;  %v540_v50 = vmul.f32 %v2315_v11, %v2315_v11  ;;  %v416_v24 = vmul.f32 0.03125, %v235_v46  ;;  %v542_v42 = vmul.f32 %v2319_v3, %v2319_v3 }
  0x9e   :  { %v2327_v8 = vsub.f32 %v1714_v19, %v415_v14  ;;  %v606_v62 = vsel %vm217_vm0, %v540_v50, 0.0  ;;  %v2331_v13 = vsub.f32 %v1718_v21, %v416_v24  ;;  %v612_v30 = vsel %vm217_vm0, %v542_v42, 0.0 }
  0x9f   :  { %610 = vadd.xlane.f32.xlu0 %v609_v26  ;;  %607 = vadd.xlane.f32.xlu1 %v606_v62  ;;  %v238_v31 = vpop.xlane.xlu0 %237  ;;  %v241_v54 = vpop.xlane.xlu1 %240 }
  0xa0   :  { %v417_v56 = vmul.f32 0.03125, %v238_v31  ;;  %v543_v7 = vmul.f32 %v2327_v8, %v2327_v8  ;;  %v418_v46 = vmul.f32 0.03125, %v241_v54  ;;  %v544_v19 = vmul.f32 %v2331_v13, %v2331_v13 }
  0xa2   :  { %v2339_v14 = vsub.f32 %v1734_v27, %v417_v56  ;;  %v615_v21 = vsel %vm217_vm0, %v543_v7, 0.0  ;;  %v2343_v26 = vsub.f32 %v1738_v29, %v418_v46  ;;  %v618_v62 = vsel %vm217_vm0, %v544_v19, 0.0 }
  0xa3   :  { %613 = vadd.xlane.f32.xlu1 %v612_v30  ;;  %616 = vadd.xlane.f32.xlu0 %v615_v21  ;;  %v244_v50 = vpop.xlane.xlu0 %243  ;;  %v247_v42 = vpop.xlane.xlu1 %246 }
  0xa4   :  { %v419_v24 = vmul.f32 0.03125, %v244_v50  ;;  %v545_v31 = vmul.f32 %v2339_v14, %v2339_v14  ;;  %v420_v54 = vmul.f32 0.03125, %v247_v42  ;;  %v546_v27 = vmul.f32 %v2343_v26, %v2343_v26 }
  0xa6   :  { %v2351_v56 = vsub.f32 %v1754_v35, %v419_v24  ;;  %v621_v29 = vsel %vm217_vm0, %v545_v31, 0.0  ;;  %v2355_v30 = vsub.f32 %v1758_v37, %v420_v54  ;;  %v624_v21 = vsel %vm217_vm0, %v546_v27, 0.0 }
  0xa7   :  { %619 = vadd.xlane.f32.xlu1 %v618_v62  ;;  %622 = vadd.xlane.f32.xlu0 %v621_v29  ;;  %v250_v7 = vpop.xlane.xlu0 %249  ;;  %v253_v19 = vpop.xlane.xlu1 %252 }
  0xa8   :  { %v421_v46 = vmul.f32 0.03125, %v250_v7  ;;  %v547_v50 = vmul.f32 %v2351_v56, %v2351_v56  ;;  %v422_v42 = vmul.f32 0.03125, %v253_v19  ;;  %v548_v35 = vmul.f32 %v2355_v30, %v2355_v30 }
  0xaa   :  { %v2363_v24 = vsub.f32 %v1774_v43, %v421_v46  ;;  %v627_v37 = vsel %vm217_vm0, %v547_v50, 0.0  ;;  %v2367_v62 = vsub.f32 %v1778_v45, %v422_v42  ;;  %v630_v29 = vsel %vm217_vm0, %v548_v35, 0.0 }
  0xab   :  { %625 = vadd.xlane.f32.xlu1 %v624_v21  ;;  %628 = vadd.xlane.f32.xlu0 %v627_v37  ;;  %v256_v31 = vpop.xlane.xlu0 %255  ;;  %v259_v27 = vpop.xlane.xlu1 %258 }
  0xac   :  { %v423_v54 = vmul.f32 0.03125, %v256_v31  ;;  %v549_v7 = vmul.f32 %v2363_v24, %v2363_v24  ;;  %v424_v19 = vmul.f32 0.03125, %v259_v27  ;;  %v550_v43 = vmul.f32 %v2367_v62, %v2367_v62 }
  0xae   :  { %v2375_v46 = vsub.f32 %v1794_v51, %v423_v54  ;;  %v633_v45 = vsel %vm217_vm0, %v549_v7, 0.0  ;;  %v2379_v21 = vsub.f32 %v1798_v53, %v424_v19  ;;  %v636_v37 = vsel %vm217_vm0, %v550_v43, 0.0 }
  0xaf   :  { %631 = vadd.xlane.f32.xlu1 %v630_v29  ;;  %634 = vadd.xlane.f32.xlu0 %v633_v45  ;;  %v262_v50 = vpop.xlane.xlu0 %261  ;;  %v265_v35 = vpop.xlane.xlu1 %264 }
  0xb0   :  { %v425_v42 = vmul.f32 0.03125, %v262_v50  ;;  %v551_v31 = vmul.f32 %v2375_v46, %v2375_v46  ;;  %v426_v27 = vmul.f32 0.03125, %v265_v35  ;;  %v552_v51 = vmul.f32 %v2379_v21, %v2379_v21 }
  0xb2   :  { %v2387_v54 = vsub.f32 %v1814_v59, %v425_v42  ;;  %v639_v53 = vsel %vm217_vm0, %v551_v31, 0.0  ;;  %v2391_v29 = vsub.f32 %v1818_v61, %v426_v27  ;;  %v642_v45 = vsel %vm217_vm0, %v552_v51, 0.0 }
  0xb3   :  { %637 = vadd.xlane.f32.xlu1 %v636_v37  ;;  %640 = vadd.xlane.f32.xlu0 %v639_v53  ;;  %v268_v7 = vpop.xlane.xlu0 %267  ;;  %v271_v43 = vpop.xlane.xlu1 %270 }
  0xb4   :  { %v427_v19 = vmul.f32 0.03125, %v268_v7  ;;  %v553_v50 = vmul.f32 %v2387_v54, %v2387_v54  ;;  %v428_v35 = vmul.f32 0.03125, %v271_v43  ;;  %v554_v59 = vmul.f32 %v2391_v29, %v2391_v29 }
  0xb6   :  { %v2399_v42 = vsub.f32 %v1834_v4, %v427_v19  ;;  %v645_v61 = vsel %vm217_vm0, %v553_v50, 0.0  ;;  %v2403_v37 = vsub.f32 %v1838_v6, %v428_v35  ;;  %v648_v53 = vsel %vm217_vm0, %v554_v59, 0.0 }
  0xb7   :  { %643 = vadd.xlane.f32.xlu1 %v642_v45  ;;  %646 = vadd.xlane.f32.xlu0 %v645_v61  ;;  %v274_v31 = vpop.xlane.xlu0 %273  ;;  %v277_v51 = vpop.xlane.xlu1 %276 }
  0xb8   :  { %v429_v27 = vmul.f32 0.03125, %v274_v31  ;;  %v555_v7 = vmul.f32 %v2399_v42, %v2399_v42  ;;  %v430_v43 = vmul.f32 0.03125, %v277_v51  ;;  %v556_v4 = vmul.f32 %v2403_v37, %v2403_v37 }
  0xba   :  { %v2411_v19 = vsub.f32 %v1854_v15, %v429_v27  ;;  %v651_v6 = vsel %vm217_vm0, %v555_v7, 0.0  ;;  %v2415_v45 = vsub.f32 %v1858_v17, %v430_v43  ;;  %v654_v61 = vsel %vm217_vm0, %v556_v4, 0.0 }
  0xbb   :  { %649 = vadd.xlane.f32.xlu1 %v648_v53  ;;  %652 = vadd.xlane.f32.xlu0 %v651_v6  ;;  %v280_v50 = vpop.xlane.xlu0 %279  ;;  %v283_v59 = vpop.xlane.xlu1 %282 }
  0xbc   :  { %v431_v35 = vmul.f32 0.03125, %v280_v50  ;;  %v557_v31 = vmul.f32 %v2411_v19, %v2411_v19  ;;  %v432_v51 = vmul.f32 0.03125, %v283_v59  ;;  %v558_v15 = vmul.f32 %v2415_v45, %v2415_v45 }
  0xbe   :  { %v2423_v27 = vsub.f32 %v1874_v25, %v431_v35  ;;  %v657_v17 = vsel %vm217_vm0, %v557_v31, 0.0  ;;  %v2427_v53 = vsub.f32 %v1878_v28, %v432_v51  ;;  %v660_v6 = vsel %vm217_vm0, %v558_v15, 0.0 }
  0xbf   :  { %655 = vadd.xlane.f32.xlu1 %v654_v61  ;;  %658 = vadd.xlane.f32.xlu0 %v657_v17  ;;  %v286_v7 = vpop.xlane.xlu0 %285  ;;  %v289_v4 = vpop.xlane.xlu1 %288 }
  0xc0   :  { %v433_v43 = vmul.f32 0.03125, %v286_v7  ;;  %v559_v50 = vmul.f32 %v2423_v27, %v2423_v27  ;;  %v434_v59 = vmul.f32 0.03125, %v289_v4  ;;  %v560_v25 = vmul.f32 %v2427_v53, %v2427_v53 }
  0xc2   :  { %v2435_v35 = vsub.f32 %v1894_v36, %v433_v43  ;;  %v663_v28 = vsel %vm217_vm0, %v559_v50, 0.0  ;;  %v2439_v61 = vsub.f32 %v1898_v39, %v434_v59  ;;  %v666_v17 = vsel %vm217_vm0, %v560_v25, 0.0 }
  0xc3   :  { %661 = vadd.xlane.f32.xlu1 %v660_v6  ;;  %664 = vadd.xlane.f32.xlu0 %v663_v28  ;;  %v292_v31 = vpop.xlane.xlu0 %291  ;;  %v295_v15 = vpop.xlane.xlu1 %294 }
  0xc4   :  { %v435_v51 = vmul.f32 0.03125, %v292_v31  ;;  %v561_v7 = vmul.f32 %v2435_v35, %v2435_v35  ;;  %v436_v4 = vmul.f32 0.03125, %v295_v15  ;;  %v562_v36 = vmul.f32 %v2439_v61, %v2439_v61 }
  0xc6   :  { %v2447_v43 = vsub.f32 %v1914_v47, %v435_v51  ;;  %v669_v39 = vsel %vm217_vm0, %v561_v7, 0.0  ;;  %v2451_v6 = vsub.f32 %v1918_v49, %v436_v4  ;;  %v672_v28 = vsel %vm217_vm0, %v562_v36, 0.0 }
  0xc7   :  { %667 = vadd.xlane.f32.xlu1 %v666_v17  ;;  %670 = vadd.xlane.f32.xlu0 %v669_v39  ;;  %v298_v50 = vpop.xlane.xlu0 %297  ;;  %v301_v25 = vpop.xlane.xlu1 %300 }
  0xc8   :  { %v437_v59 = vmul.f32 0.03125, %v298_v50  ;;  %v563_v31 = vmul.f32 %v2447_v43, %v2447_v43  ;;  %v438_v15 = vmul.f32 0.03125, %v301_v25  ;;  %v564_v47 = vmul.f32 %v2451_v6, %v2451_v6 }
  0xca   :  { %v2459_v51 = vsub.f32 %v1934_v57, %v437_v59  ;;  %v675_v49 = vsel %vm217_vm0, %v563_v31, 0.0  ;;  %v2463_v17 = vsub.f32 %v1938_v60, %v438_v15  ;;  %v678_v39 = vsel %vm217_vm0, %v564_v47, 0.0 }
  0xcb   :  { %673 = vadd.xlane.f32.xlu1 %v672_v28  ;;  %676 = vadd.xlane.f32.xlu0 %v675_v49  ;;  %v304_v7 = vpop.xlane.xlu0 %303  ;;  %v307_v36 = vpop.xlane.xlu1 %306 }
  0xcc   :  { %v439_v4 = vmul.f32 0.03125, %v304_v7  ;;  %v565_v50 = vmul.f32 %v2459_v51, %v2459_v51  ;;  %v440_v25 = vmul.f32 0.03125, %v307_v36  ;;  %v566_v57 = vmul.f32 %v2463_v17, %v2463_v17 }
  0xce   :  { %v2471_v59 = vsub.f32 %v1954_v5, %v439_v4  ;;  %v681_v60 = vsel %vm217_vm0, %v565_v50, 0.0  ;;  %v2475_v28 = vsub.f32 %v1958_v10, %v440_v25  ;;  %v684_v49 = vsel %vm217_vm0, %v566_v57, 0.0 }
  0xcf   :  { %679 = vadd.xlane.f32.xlu1 %v678_v39  ;;  %682 = vadd.xlane.f32.xlu0 %v681_v60  ;;  %v310_v31 = vpop.xlane.xlu0 %309  ;;  %v313_v47 = vpop.xlane.xlu1 %312 }
  0xd0   :  { %v441_v15 = vmul.f32 0.03125, %v310_v31  ;;  %v567_v7 = vmul.f32 %v2471_v59, %v2471_v59  ;;  %v442_v36 = vmul.f32 0.03125, %v313_v47  ;;  %v568_v5 = vmul.f32 %v2475_v28, %v2475_v28 }
  0xd2   :  { %v2483_v4 = vsub.f32 %v1974_v20, %v441_v15  ;;  %v687_v10 = vsel %vm217_vm0, %v567_v7, 0.0  ;;  %v2487_v39 = vsub.f32 %v1978_v23, %v442_v36  ;;  %v690_v60 = vsel %vm217_vm0, %v568_v5, 0.0 }
  0xd3   :  { %685 = vadd.xlane.f32.xlu1 %v684_v49  ;;  %688 = vadd.xlane.f32.xlu0 %v687_v10  ;;  %v316_v50 = vpop.xlane.xlu0 %315  ;;  %v319_v57 = vpop.xlane.xlu1 %318 }
  0xd4   :  { %v443_v25 = vmul.f32 0.03125, %v316_v50  ;;  %v569_v31 = vmul.f32 %v2483_v4, %v2483_v4  ;;  %v444_v47 = vmul.f32 0.03125, %v319_v57  ;;  %v570_v20 = vmul.f32 %v2487_v39, %v2487_v39 }
  0xd6   :  { %v2495_v15 = vsub.f32 %v1994_v33, %v443_v25  ;;  %v693_v23 = vsel %vm217_vm0, %v569_v31, 0.0  ;;  %v2499_v49 = vsub.f32 %v1998_v38, %v444_v47  ;;  %v696_v10 = vsel %vm217_vm0, %v570_v20, 0.0 }
  0xd7   :  { %691 = vadd.xlane.f32.xlu1 %v690_v60  ;;  %694 = vadd.xlane.f32.xlu0 %v693_v23  ;;  %v322_v7 = vpop.xlane.xlu0 %321  ;;  %v325_v5 = vpop.xlane.xlu1 %324 }
  0xd8   :  { %v445_v36 = vmul.f32 0.03125, %v322_v7  ;;  %v571_v50 = vmul.f32 %v2495_v15, %v2495_v15  ;;  %v446_v57 = vmul.f32 0.03125, %v325_v5  ;;  %v572_v33 = vmul.f32 %v2499_v49, %v2499_v49 }
  0xda   :  { %v2507_v25 = vsub.f32 %v2014_v48, %v445_v36  ;;  %v699_v38 = vsel %vm217_vm0, %v571_v50, 0.0  ;;  %v2511_v60 = vsub.f32 %v2018_v52, %v446_v57  ;;  %v702_v23 = vsel %vm217_vm0, %v572_v33, 0.0 }
  0xdb   :  { %697 = vadd.xlane.f32.xlu1 %v696_v10  ;;  %700 = vadd.xlane.f32.xlu0 %v699_v38  ;;  %v328_v31 = vpop.xlane.xlu0 %327  ;;  %v331_v20 = vpop.xlane.xlu1 %330 }
  0xdc   :  { %v447_v47 = vmul.f32 0.03125, %v328_v31  ;;  %v573_v7 = vmul.f32 %v2507_v25, %v2507_v25  ;;  %v448_v5 = vmul.f32 0.03125, %v331_v20  ;;  %v574_v48 = vmul.f32 %v2511_v60, %v2511_v60 }
  0xde   :  { %v2519_v36 = vsub.f32 %v2034_v63, %v447_v47  ;;  %v705_v52 = vsel %vm217_vm0, %v573_v7, 0.0  ;;  %v2523_v10 = vsub.f32 %v2038_v1, %v448_v5  ;;  %v708_v38 = vsel %vm217_vm0, %v574_v48, 0.0 }
  0xdf   :  { %703 = vadd.xlane.f32.xlu1 %v702_v23  ;;  %706 = vadd.xlane.f32.xlu0 %v705_v52  ;;  %v334_v50 = vpop.xlane.xlu0 %333  ;;  %v337_v33 = vpop.xlane.xlu1 %336 }
  0xe0   :  { %v449_v57 = vmul.f32 0.03125, %v334_v50  ;;  %v575_v31 = vmul.f32 %v2519_v36, %v2519_v36  ;;  %v450_v20 = vmul.f32 0.03125, %v337_v33  ;;  %v576_v63 = vmul.f32 %v2523_v10, %v2523_v10 }
  0xe2   :  { %v2531_v47 = vsub.f32 %v2054_v16, %v449_v57  ;;  %v711_v1 = vsel %vm217_vm0, %v575_v31, 0.0  ;;  %v2535_v23 = vsub.f32 %v2058_v22, %v450_v20  ;;  %v714_v52 = vsel %vm217_vm0, %v576_v63, 0.0 }
  0xe3   :  { %709 = vadd.xlane.f32.xlu1 %v708_v38  ;;  %712 = vadd.xlane.f32.xlu0 %v711_v1  ;;  %v340_v7 = vpop.xlane.xlu0 %339  ;;  %v343_v48 = vpop.xlane.xlu1 %342 }
  0xe4   :  { %v451_v5 = vmul.f32 0.03125, %v340_v7  ;;  %v577_v50 = vmul.f32 %v2531_v47, %v2531_v47  ;;  %v452_v33 = vmul.f32 0.03125, %v343_v48  ;;  %v578_v16 = vmul.f32 %v2535_v23, %v2535_v23 }
  0xe6   :  { %v2543_v57 = vsub.f32 %v2074_v34, %v451_v5  ;;  %v717_v22 = vsel %vm217_vm0, %v577_v50, 0.0  ;;  %v2547_v38 = vsub.f32 %v2078_v41, %v452_v33  ;;  %v720_v1 = vsel %vm217_vm0, %v578_v16, 0.0 }
  0xe7   :  { %715 = vadd.xlane.f32.xlu1 %v714_v52  ;;  %718 = vadd.xlane.f32.xlu0 %v717_v22  ;;  %v346_v31 = vpop.xlane.xlu0 %345  ;;  %v349_v63 = vpop.xlane.xlu1 %348 }
  0xe8   :  { %v453_v20 = vmul.f32 0.03125, %v346_v31  ;;  %v579_v7 = vmul.f32 %v2543_v57, %v2543_v57  ;;  %v454_v48 = vmul.f32 0.03125, %v349_v63  ;;  %v580_v34 = vmul.f32 %v2547_v38, %v2547_v38 }
  0xea   :  { %v2555_v5 = vsub.f32 %v2094_v55, %v453_v20  ;;  %v723_v41 = vsel %vm217_vm0, %v579_v7, 0.0  ;;  %v2559_v52 = vsub.f32 %v2098_v58, %v454_v48  ;;  %v726_v22 = vsel %vm217_vm0, %v580_v34, 0.0 }
  0xeb   :  { %721 = vadd.xlane.f32.xlu1 %v720_v1  ;;  %724 = vadd.xlane.f32.xlu0 %v723_v41  ;;  %v352_v50 = vpop.xlane.xlu0 %351  ;;  %v355_v16 = vpop.xlane.xlu1 %354 }
  0xec   :  { %3294 = vst [vmem:[#allocation20_spill] sm:$0xff] %v2555_v5  ;;  %3295 = vst [vmem:[#allocation21_spill] sm:$0xff] %v2559_v52  ;;  %v455_v33 = vmul.f32 0.03125, %v352_v50  ;;  %v581_v31 = vmul.f32 %v2555_v5, %v2555_v5  ;;  %v456_v63 = vmul.f32 0.03125, %v355_v16  ;;  %v582_v55 = vmul.f32 %v2559_v52, %v2559_v52 }
  0xee   :  { %v2567_v20 = vsub.f32 %v2114_v12, %v455_v33  ;;  %v729_v58 = vsel %vm217_vm0, %v581_v31, 0.0  ;;  %v2571_v1 = vsub.f32 %v2118_v18, %v456_v63  ;;  %v732_v41 = vsel %vm217_vm0, %v582_v55, 0.0 }
  0xef   :  { %727 = vadd.xlane.f32.xlu1 %v726_v22  ;;  %730 = vadd.xlane.f32.xlu0 %v729_v58  ;;  %v358_v7 = vpop.xlane.xlu0 %357  ;;  %v361_v34 = vpop.xlane.xlu1 %360 }
  0xf0   :  { %3296 = vst [vmem:[#allocation22_spill] sm:$0xff] %v2567_v20  ;;  %3297 = vst [vmem:[#allocation23_spill] sm:$0xff] %v2571_v1  ;;  %v457_v48 = vmul.f32 0.03125, %v358_v7  ;;  %v583_v50 = vmul.f32 %v2567_v20, %v2567_v20  ;;  %v458_v16 = vmul.f32 0.03125, %v361_v34  ;;  %v584_v12 = vmul.f32 %v2571_v1, %v2571_v1 }
  0xf2   :  { %v2579_v33 = vsub.f32 %v2134_v40, %v457_v48  ;;  %v735_v18 = vsel %vm217_vm0, %v583_v50, 0.0  ;;  %v2583_v22 = vsub.f32 %v2138_v44, %v458_v16  ;;  %v738_v58 = vsel %vm217_vm0, %v584_v12, 0.0 }
  0xf3   :  { %733 = vadd.xlane.f32.xlu1 %v732_v41  ;;  %736 = vadd.xlane.f32.xlu0 %v735_v18  ;;  %v364_v31 = vpop.xlane.xlu0 %363  ;;  %v367_v55 = vpop.xlane.xlu1 %366 }
  0xf4   :  { %3298 = vst [vmem:[#allocation24_spill] sm:$0xff] %v2579_v33  ;;  %3299 = vst [vmem:[#allocation25_spill] sm:$0xff] %v2583_v22  ;;  %v459_v63 = vmul.f32 0.03125, %v364_v31  ;;  %v585_v7 = vmul.f32 %v2579_v33, %v2579_v33  ;;  %v460_v34 = vmul.f32 0.03125, %v367_v55  ;;  %v586_v40 = vmul.f32 %v2583_v22, %v2583_v22 }
  0xf6   :  { %v2591_v48 = vsub.f32 %v2154_v0, %v459_v63  ;;  %v741_v44 = vsel %vm217_vm0, %v585_v7, 0.0  ;;  %v2595_v41 = vsub.f32 %v2158_v9, %v460_v34  ;;  %v744_v18 = vsel %vm217_vm0, %v586_v40, 0.0  ;;  %v3302_v63 = vld [vmem:[#allocation6_spill] sm:$0xff]  ;;  %v3304_v7 = vld [vmem:[#allocation7_spill] sm:$0xff] }
  0xf7   :  { %739 = vadd.xlane.f32.xlu1 %v738_v58  ;;  %742 = vadd.xlane.f32.xlu0 %v741_v44  ;;  %v370_v50 = vpop.xlane.xlu0 %369  ;;  %v373_v12 = vpop.xlane.xlu1 %372 }
  0xf8   :  { %3300 = vst [vmem:[#allocation26_spill] sm:$0xff] %v2591_v48  ;;  %3301 = vst [vmem:[#allocation27_spill] sm:$0xff] %v2595_v41  ;;  %v461_v16 = vmul.f32 0.03125, %v370_v50  ;;  %v587_v31 = vmul.f32 %v2591_v48, %v2591_v48  ;;  %v462_v55 = vmul.f32 0.03125, %v373_v12  ;;  %v588_v0 = vmul.f32 %v2595_v41, %v2595_v41 }
  0xfa   :  { %v2603_v22 = vsub.f32 %v3302_v63, %v461_v16  ;;  %v747_v9 = vsel %vm217_vm0, %v587_v31, 0.0  ;;  %v2607_v58 = vsub.f32 %v3304_v7, %v462_v55  ;;  %v750_v50 = vsel %vm217_vm0, %v588_v0, 0.0  ;;  %v3306_v63 = vld [vmem:[#allocation8_spill] sm:$0xff]  ;;  %v3308_v55 = vld [vmem:[#allocation9_spill] sm:$0xff] }
  0xfb   :  { %745 = vadd.xlane.f32.xlu1 %v744_v18  ;;  %748 = vadd.xlane.f32.xlu0 %v747_v9  ;;  %v376_v34 = vpop.xlane.xlu0 %375  ;;  %v379_v40 = vpop.xlane.xlu1 %378 }
  0xfc   :  { %3303 = vst [vmem:[#allocation6_spill] sm:$0xff] %v2603_v22  ;;  %3305 = vst [vmem:[#allocation7_spill] sm:$0xff] %v2607_v58  ;;  %v463_v44 = vmul.f32 0.03125, %v376_v34  ;;  %v589_v12 = vmul.f32 %v2603_v22, %v2603_v22  ;;  %v464_v48 = vmul.f32 0.03125, %v379_v40  ;;  %v590_v16 = vmul.f32 %v2607_v58, %v2607_v58 }
  0xfe   :  { %v2615_v41 = vsub.f32 %v3306_v63, %v463_v44  ;;  %v753_v31 = vsel %vm217_vm0, %v589_v12, 0.0  ;;  %v2619_v18 = vsub.f32 %v3308_v55, %v464_v48  ;;  %v756_v34 = vsel %vm217_vm0, %v590_v16, 0.0  ;;  %v3310_v63 = vld [vmem:[#allocation10_spill] sm:$0xff]  ;;  %v3312_v12 = vld [vmem:[#allocation11_spill] sm:$0xff] }
  0xff   :  { %751 = vadd.xlane.f32.xlu1 %v750_v50  ;;  %754 = vadd.xlane.f32.xlu0 %v753_v31  ;;  %v382_v9 = vpop.xlane.xlu0 %381  ;;  %v385_v0 = vpop.xlane.xlu1 %384 }
 0x100   :  { %3307 = vst [vmem:[#allocation8_spill] sm:$0xff] %v2615_v41  ;;  %3309 = vst [vmem:[#allocation9_spill] sm:$0xff] %v2619_v18  ;;  %v465_v7 = vmul.f32 0.03125, %v382_v9  ;;  %v591_v40 = vmul.f32 %v2615_v41, %v2615_v41  ;;  %v466_v22 = vmul.f32 0.03125, %v385_v0  ;;  %v592_v44 = vmul.f32 %v2619_v18, %v2619_v18 }
 0x102   :  { %v2627_v58 = vsub.f32 %v3310_v63, %v465_v7  ;;  %v759_v48 = vsel %vm217_vm0, %v591_v40, 0.0  ;;  %v2631_v50 = vsub.f32 %v3312_v12, %v466_v22  ;;  %v762_v9 = vsel %vm217_vm0, %v592_v44, 0.0  ;;  %v3314_v63 = vld [vmem:[#allocation12_spill] sm:$0xff]  ;;  %v3316_v40 = vld [vmem:[#allocation13_spill] sm:$0xff] }
 0x103   :  { %757 = vadd.xlane.f32.xlu1 %v756_v34  ;;  %760 = vadd.xlane.f32.xlu0 %v759_v48  ;;  %v388_v31 = vpop.xlane.xlu0 %387  ;;  %v391_v16 = vpop.xlane.xlu1 %390 }
 0x104   :  { %3311 = vst [vmem:[#allocation10_spill] sm:$0xff] %v2627_v58  ;;  %3313 = vst [vmem:[#allocation11_spill] sm:$0xff] %v2631_v50  ;;  %v467_v55 = vmul.f32 0.03125, %v388_v31  ;;  %v593_v0 = vmul.f32 %v2627_v58, %v2627_v58  ;;  %v468_v41 = vmul.f32 0.03125, %v391_v16  ;;  %v594_v7 = vmul.f32 %v2631_v50, %v2631_v50 }
 0x106   :  { %v2639_v18 = vsub.f32 %v3314_v63, %v467_v55  ;;  %v765_v22 = vsel %vm217_vm0, %v593_v0, 0.0  ;;  %v2643_v34 = vsub.f32 %v3316_v40, %v468_v41  ;;  %v768_v31 = vsel %vm217_vm0, %v594_v7, 0.0  ;;  %v3318_v63 = vld [vmem:[#allocation14_spill] sm:$0xff]  ;;  %v3320_v0 = vld [vmem:[#allocation15_spill] sm:$0xff] }
 0x107   :  { %763 = vadd.xlane.f32.xlu1 %v762_v9  ;;  %766 = vadd.xlane.f32.xlu0 %v765_v22  ;;  %v394_v48 = vpop.xlane.xlu0 %393  ;;  %v397_v44 = vpop.xlane.xlu1 %396 }
 0x108   :  { %3315 = vst [vmem:[#allocation12_spill] sm:$0xff] %v2639_v18  ;;  %3317 = vst [vmem:[#allocation13_spill] sm:$0xff] %v2643_v34  ;;  %v469_v12 = vmul.f32 0.03125, %v394_v48  ;;  %v595_v16 = vmul.f32 %v2639_v18, %v2639_v18  ;;  %v470_v58 = vmul.f32 0.03125, %v397_v44  ;;  %v596_v55 = vmul.f32 %v2643_v34, %v2643_v34 }
 0x10a   :  { %v2651_v50 = vsub.f32 %v3318_v63, %v469_v12  ;;  %v771_v41 = vsel %vm217_vm0, %v595_v16, 0.0  ;;  %v2655_v9 = vsub.f32 %v3320_v0, %v470_v58  ;;  %v774_v48 = vsel %vm217_vm0, %v596_v55, 0.0  ;;  %v3322_v63 = vld [vmem:[#allocation16_spill] sm:$0xff]  ;;  %v3324_v16 = vld [vmem:[#allocation17_spill] sm:$0xff] }
 0x10b   :  { %769 = vadd.xlane.f32.xlu1 %v768_v31  ;;  %772 = vadd.xlane.f32.xlu0 %v771_v41  ;;  %v400_v22 = vpop.xlane.xlu0 %399  ;;  %v403_v7 = vpop.xlane.xlu1 %402 }
 0x10c   :  { %3319 = vst [vmem:[#allocation14_spill] sm:$0xff] %v2651_v50  ;;  %3321 = vst [vmem:[#allocation15_spill] sm:$0xff] %v2655_v9  ;;  %v471_v40 = vmul.f32 0.03125, %v400_v22  ;;  %v597_v44 = vmul.f32 %v2651_v50, %v2651_v50  ;;  %v472_v18 = vmul.f32 0.03125, %v403_v7  ;;  %v598_v12 = vmul.f32 %v2655_v9, %v2655_v9 }
 0x10e   :  { %v2663_v34 = vsub.f32 %v3322_v63, %v471_v40  ;;  %v777_v58 = vsel %vm217_vm0, %v597_v44, 0.0  ;;  %v2667_v31 = vsub.f32 %v3324_v16, %v472_v18  ;;  %v780_v22 = vsel %vm217_vm0, %v598_v12, 0.0  ;;  %v3326_v63 = vld [vmem:[#allocation18_spill] sm:$0xff] }
 0x10f   :  { %775 = vadd.xlane.f32.xlu1 %v774_v48  ;;  %778 = vadd.xlane.f32.xlu0 %v777_v58  ;;  %v406_v41 = vpop.xlane.xlu0 %405  ;;  %v409_v55 = vpop.xlane.xlu1 %408 }
 0x110   :  { %3323 = vst [vmem:[#allocation16_spill] sm:$0xff] %v2663_v34  ;;  %3325 = vst [vmem:[#allocation17_spill] sm:$0xff] %v2667_v31  ;;  %v473_v0 = vmul.f32 0.03125, %v406_v41  ;;  %v599_v7 = vmul.f32 %v2663_v34, %v2663_v34  ;;  %v474_v50 = vmul.f32 0.03125, %v409_v55  ;;  %v600_v40 = vmul.f32 %v2667_v31, %v2667_v31 }
 0x112   :  { %v2675_v9 = vsub.f32 %v3326_v63, %v473_v0  ;;  %v783_v18 = vsel %vm217_vm0, %v599_v7, 0.0  ;;  %v2679_v48 = vsub.f32 %v2298_v2, %v474_v50  ;;  %v786_v44 = vsel %vm217_vm0, %v600_v40, 0.0 }
 0x113   :  { %781 = vadd.xlane.f32.xlu1 %v780_v22  ;;  %784 = vadd.xlane.f32.xlu0 %v783_v18 }
 0x114   :  { %3327 = vst [vmem:[#allocation18_spill] sm:$0xff] %v2675_v9  ;;  %3328 = vst [vmem:[#allocation28_spill] sm:$0xff] %v2679_v48  ;;  %v601_v12 = vmul.f32 %v2675_v9, %v2675_v9  ;;  %v602_v58 = vmul.f32 %v2679_v48, %v2679_v48 }
 0x116   :  { %v789_v16 = vsel %vm217_vm0, %v601_v12, 0.0  ;;  %v792_v41 = vsel %vm217_vm0, %v602_v58, 0.0 }
 0x117   :  { %787 = vadd.xlane.f32.xlu1 %v786_v44  ;;  %790 = vadd.xlane.f32.xlu0 %v789_v16 }
 0x11b   :  { %793 = vadd.xlane.f32.xlu1 %v792_v41 }
 0x128   :  { %v605_v0 = vpop.xlane.xlu0 %604 }
 0x129   :  { %v795_v2 = vmul.f32 0.03125, %v605_v0 }
 0x12b   :  { %v859_v50 = vadd.f32 1e-05, %v795_v2 }
 0x12c   :  { %v608_v55 = vpop.xlane.xlu1 %607  ;;  %v611_v22 = vpop.xlane.xlu0 %610 }
 0x12d   :  { %1472 = vrsqrt.f32 %v859_v50  ;;  %v796_v7 = vmul.f32 0.03125, %v608_v55  ;;  %v797_v40 = vmul.f32 0.03125, %v611_v22  ;;  %v2691_v50 = vld [vmem:[%s3240_s3] ss:$0 sm:$0xff] }
 0x12f   :  { %v860_v63 = vadd.f32 1e-05, %v796_v7  ;;  %v861_v18 = vadd.f32 1e-05, %v797_v40 }
 0x130   :  { %v614_v9 = vpop.xlane.xlu1 %613  ;;  %v617_v31 = vpop.xlane.xlu0 %616 }
 0x131   :  { %1474 = vrsqrt.f32 %v860_v63  ;;  %v798_v48 = vmul.f32 0.03125, %v614_v9  ;;  %v799_v12 = vmul.f32 0.03125, %v617_v31 }
 0x132   :  { %1476 = vrsqrt.f32 %v861_v18 }
 0x133   :  { %v862_v44 = vadd.f32 1e-05, %v798_v48  ;;  %v863_v16 = vadd.f32 1e-05, %v799_v12  ;;  %v2697_v48 = vld [vmem:[%s3241_s4] ss:$0 sm:$0xff] }
 0x134   :  { %v620_v58 = vpop.xlane.xlu1 %619  ;;  %v623_v41 = vpop.xlane.xlu0 %622 }
 0x135   :  { %1478 = vrsqrt.f32 %v862_v44  ;;  %v800_v0 = vmul.f32 0.03125, %v620_v58  ;;  %v801_v2 = vmul.f32 0.03125, %v623_v41  ;;  %v2703_v44 = vstv %s3242_s5 }
 0x136   :  { %1480 = vrsqrt.f32 %v863_v16 }
 0x137   :  { %v1473_v34 = vpop.eup %1472  ;;  %v864_v55 = vadd.f32 1e-05, %v800_v0  ;;  %v865_v22 = vadd.f32 1e-05, %v801_v2 }
 0x138   :  { %v987_v9 = vmul.f32 %v1473_v34, %v2305_v32  ;;  %v626_v31 = vpop.xlane.xlu1 %625  ;;  %v629_v7 = vpop.xlane.xlu0 %628 }
 0x139   :  { %1482 = vrsqrt.f32 %v864_v55  ;;  %v802_v40 = vmul.f32 0.03125, %v626_v31  ;;  %v803_v63 = vmul.f32 0.03125, %v629_v7  ;;  %v1259_v55 = vld [vmem:[%s3239_s2] sm:$0xff] }
 0x13a   :  { %v1058_v18 = vmul.f32 %v2691_v50, %v987_v9  ;;  %1484 = vrsqrt.f32 %v865_v22  ;;  %v3329_v22 = vld [vmem:[#allocation19_spill] sm:$0xff] }
 0x13b   :  { %v1475_v12 = vpop.eup %1474  ;;  %v866_v32 = vadd.f32 1e-05, %v802_v40  ;;  %v867_v34 = vadd.f32 1e-05, %v803_v63 }
 0x13c   :  { %v1477_v16 = vpop.eup %1476  ;;  %v1129_v58 = vadd.f32 %v2697_v48, %v1058_v18  ;;  %v988_v41 = vmul.f32 %v1475_v12, %v2315_v11  ;;  %v632_v0 = vpop.xlane.xlu1 %631 }
 0x13d   :  { %v635_v2 = vpop.xlane.xlu0 %634  ;;  %v989_v9 = vmul.f32 %v1477_v16, %v3329_v22  ;;  %1486 = vrsqrt.f32 %v866_v32  ;;  %v804_v31 = vmul.f32 0.03125, %v632_v0 }
 0x13e   :  { %v805_v7 = vmul.f32 0.03125, %v635_v2  ;;  %v1195_v33 = vmul.f32 %v2703_v44, %v1129_v58  ;;  %v1059_v40 = vmul.f32 %v2691_v50, %v988_v41  ;;  %1488 = vrsqrt.f32 %v867_v34  ;;  %v1260_v58 = vld [vmem:[%s3239_s2 + $0x8] sm:$0xff] }
 0x13f   :  { %v1479_v63 = vpop.eup %1478  ;;  %v1060_v18 = vmul.f32 %v2691_v50, %v989_v9  ;;  %v868_v11 = vadd.f32 1e-05, %v804_v31 }
 0x140   :  { %v869_v12 = vadd.f32 1e-05, %v805_v7  ;;  %v1481_v1 = vpop.eup %1480  ;;  %v1323_v20 = vadd.f32 %v1259_v55, %v1195_v33  ;;  %v1130_v52 = vadd.f32 %v2697_v48, %v1059_v40  ;;  %v990_v5 = vmul.f32 %v1479_v63, %v2319_v3  ;;  %v638_v16 = vpop.xlane.xlu1 %637  ;;  %v1261_v3 = vld [vmem:[%s3239_s2 + $0x10] sm:$0xff] }
 0x141   :  { %v641_v32 = vpop.xlane.xlu0 %640  ;;  %v1131_v41 = vadd.f32 %v2697_v48, %v1060_v18  ;;  %v991_v34 = vmul.f32 %v1481_v1, %v2327_v8  ;;  %1490 = vrsqrt.f32 %v868_v11  ;;  %v806_v0 = vmul.f32 0.03125, %v638_v16 }
 0x142   :  { %1387 = vst.msk [vmem:[#allocation3] sm:$0xff] %vm217_vm0, %v1323_v20  ;;  %v1196_v33 = vmul.f32 %v2703_v44, %v1130_v52  ;;  %v1061_v2 = vmul.f32 %v2691_v50, %v990_v5  ;;  %1492 = vrsqrt.f32 %v869_v12  ;;  %v807_v55 = vmul.f32 0.03125, %v641_v32  ;;  %v1262_v5 = vld [vmem:[%s3239_s2 + $0x18] sm:$0xff] }
 0x143   :  { %v1483_v22 = vpop.eup %1482  ;;  %v1197_v9 = vmul.f32 %v2703_v44, %v1131_v41  ;;  %v1062_v31 = vmul.f32 %v2691_v50, %v991_v34  ;;  %v870_v8 = vadd.f32 1e-05, %v806_v0 }
 0x144   :  { %v1485_v1 = vpop.eup %1484  ;;  %v1324_v7 = vadd.f32 %v1260_v58, %v1196_v33  ;;  %v1132_v20 = vadd.f32 %v2697_v48, %v1061_v2  ;;  %v992_v52 = vmul.f32 %v1483_v22, %v2331_v13  ;;  %v871_v40 = vadd.f32 1e-05, %v807_v55  ;;  %v644_v63 = vpop.xlane.xlu1 %643  ;;  %v1263_v13 = vld [vmem:[%s3239_s2 + $0x20] sm:$0xff] }
 0x145   :  { %v647_v18 = vpop.xlane.xlu0 %646  ;;  %v1325_v11 = vadd.f32 %v1261_v3, %v1197_v9  ;;  %v1133_v12 = vadd.f32 %v2697_v48, %v1062_v31  ;;  %v993_v16 = vmul.f32 %v1485_v1, %v2339_v14  ;;  %1494 = vrsqrt.f32 %v870_v8 }
 0x146   :  { %1388 = vst.msk [vmem:[#allocation3 + $0x8] sm:$0xff] %vm217_vm0, %v1324_v7  ;;  %v1198_v32 = vmul.f32 %v2703_v44, %v1132_v20  ;;  %v1063_v58 = vmul.f32 %v2691_v50, %v992_v52  ;;  %1496 = vrsqrt.f32 %v871_v40  ;;  %v808_v41 = vmul.f32 0.03125, %v644_v63  ;;  %v1264_v7 = vld [vmem:[%s3239_s2 + $0x28] sm:$0xff] }
 0x147   :  { %v1487_v34 = vpop.eup %1486  ;;  %1389 = vst.msk [vmem:[#allocation3 + $0x10] sm:$0xff] %vm217_vm0, %v1325_v11  ;;  %v1199_v0 = vmul.f32 %v2703_v44, %v1133_v12  ;;  %v1064_v14 = vmul.f32 %v2691_v50, %v993_v16  ;;  %v809_v33 = vmul.f32 0.03125, %v647_v18 }
 0x148   :  { %v1489_v3 = vpop.eup %1488  ;;  %v1326_v2 = vadd.f32 %v1262_v5, %v1198_v32  ;;  %v1134_v55 = vadd.f32 %v2697_v48, %v1063_v58  ;;  %v994_v22 = vmul.f32 %v1487_v34, %v2343_v26  ;;  %v872_v9 = vadd.f32 1e-05, %v808_v41  ;;  %v650_v31 = vpop.xlane.xlu1 %649  ;;  %v1265_v26 = vld [vmem:[%s3239_s2 + $0x30] sm:$0xff] }
 0x149   :  { %v653_v8 = vpop.xlane.xlu0 %652  ;;  %v1327_v1 = vadd.f32 %v1263_v13, %v1199_v0  ;;  %v1135_v20 = vadd.f32 %v2697_v48, %v1064_v14  ;;  %v995_v52 = vmul.f32 %v1489_v3, %v2351_v56  ;;  %v873_v40 = vadd.f32 1e-05, %v809_v33  ;;  %v1266_v3 = vld [vmem:[%s3239_s2 + $0x38] sm:$0xff] }
 0x14a   :  { %1390 = vst.msk [vmem:[#allocation3 + $0x18] sm:$0xff] %vm217_vm0, %v1326_v2  ;;  %v1200_v63 = vmul.f32 %v2703_v44, %v1134_v55  ;;  %v1065_v18 = vmul.f32 %v2691_v50, %v994_v22  ;;  %1498 = vrsqrt.f32 %v872_v9  ;;  %v810_v11 = vmul.f32 0.03125, %v650_v31 }
 0x14b   :  { %v1491_v5 = vpop.eup %1490  ;;  %1391 = vst.msk [vmem:[#allocation3 + $0x20] sm:$0xff] %vm217_vm0, %v1327_v1  ;;  %v1201_v12 = vmul.f32 %v2703_v44, %v1135_v20  ;;  %v1066_v56 = vmul.f32 %v2691_v50, %v995_v52  ;;  %1500 = vrsqrt.f32 %v873_v40  ;;  %v811_v16 = vmul.f32 0.03125, %v653_v8 }
 0x14c   :  { %v1493_v32 = vpop.eup %1492  ;;  %v1328_v13 = vadd.f32 %v1264_v7, %v1200_v63  ;;  %v1136_v58 = vadd.f32 %v2697_v48, %v1065_v18  ;;  %v996_v41 = vmul.f32 %v1491_v5, %v2355_v30  ;;  %v874_v34 = vadd.f32 1e-05, %v810_v11  ;;  %v656_v0 = vpop.xlane.xlu1 %655  ;;  %v1267_v30 = vld [vmem:[%s3239_s2 + $0x40] sm:$0xff] }
 0x14d   :  { %v659_v14 = vpop.xlane.xlu0 %658  ;;  %v1329_v33 = vadd.f32 %v1265_v26, %v1201_v12  ;;  %v1137_v2 = vadd.f32 %v2697_v48, %v1066_v56  ;;  %v997_v55 = vmul.f32 %v1493_v32, %v2363_v24  ;;  %v875_v22 = vadd.f32 1e-05, %v811_v16  ;;  %v1268_v56 = vld [vmem:[%s3239_s2 + $0x48] sm:$0xff] }
 0x14e   :  { %1392 = vst.msk [vmem:[#allocation3 + $0x28] sm:$0xff] %vm217_vm0, %v1328_v13  ;;  %v1202_v9 = vmul.f32 %v2703_v44, %v1136_v58  ;;  %v1067_v31 = vmul.f32 %v2691_v50, %v996_v41  ;;  %1502 = vrsqrt.f32 %v874_v34  ;;  %v812_v8 = vmul.f32 0.03125, %v656_v0 }
 0x14f   :  { %v1495_v1 = vpop.eup %1494  ;;  %1393 = vst.msk [vmem:[#allocation3 + $0x30] sm:$0xff] %vm217_vm0, %v1329_v33  ;;  %v1203_v7 = vmul.f32 %v2703_v44, %v1137_v2  ;;  %v1068_v24 = vmul.f32 %v2691_v50, %v997_v55  ;;  %1504 = vrsqrt.f32 %v875_v22  ;;  %v813_v20 = vmul.f32 0.03125, %v659_v14 }
 0x150   :  { %v1497_v52 = vpop.eup %1496  ;;  %v1330_v40 = vadd.f32 %v1266_v3, %v1202_v9  ;;  %v1138_v63 = vadd.f32 %v2697_v48, %v1067_v31  ;;  %v998_v26 = vmul.f32 %v1495_v1, %v2367_v62  ;;  %v876_v18 = vadd.f32 1e-05, %v812_v8  ;;  %v662_v11 = vpop.xlane.xlu1 %661  ;;  %v1269_v62 = vld [vmem:[%s3239_s2 + $0x50] sm:$0xff]  ;;  %v1270_v8 = vld [vmem:[%s3239_s2 + $0x58] sm:$0xff] }
 0x151   :  { %v665_v5 = vpop.xlane.xlu0 %664  ;;  %v1331_v12 = vadd.f32 %v1267_v30, %v1203_v7  ;;  %v1139_v16 = vadd.f32 %v2697_v48, %v1068_v24  ;;  %v999_v32 = vmul.f32 %v1497_v52, %v2375_v46  ;;  %v877_v13 = vadd.f32 1e-05, %v813_v20  ;;  %v1271_v52 = vld [vmem:[%s3239_s2 + $0x60] sm:$0xff] }
 0x152   :  { %1394 = vst.msk [vmem:[#allocation3 + $0x38] sm:$0xff] %vm217_vm0, %v1330_v40  ;;  %v1204_v58 = vmul.f32 %v2703_v44, %v1138_v63  ;;  %v1069_v41 = vmul.f32 %v2691_v50, %v998_v26  ;;  %1506 = vrsqrt.f32 %v876_v18  ;;  %v814_v34 = vmul.f32 0.03125, %v662_v11 }
 0x153   :  { %1395 = vst.msk [vmem:[#allocation3 + $0x40] sm:$0xff] %vm217_vm0, %v1331_v12  ;;  %v1205_v0 = vmul.f32 %v2703_v44, %v1139_v16  ;;  %v1070_v14 = vmul.f32 %v2691_v50, %v999_v32  ;;  %1508 = vrsqrt.f32 %v877_v13  ;;  %v815_v46 = vmul.f32 0.03125, %v665_v5 }
 0x154   :  { %v1499_v33 = vpop.eup %1498  ;;  %v1332_v3 = vadd.f32 %v1268_v56, %v1204_v58  ;;  %v1140_v2 = vadd.f32 %v2697_v48, %v1069_v41  ;;  %v878_v55 = vadd.f32 1e-05, %v814_v34  ;;  %v668_v22 = vpop.xlane.xlu1 %667  ;;  %v1272_v34 = vld [vmem:[%s3239_s2 + $0x68] sm:$0xff] }
 0x155   :  { %v671_v9 = vpop.xlane.xlu0 %670  ;;  %v1501_v30 = vpop.eup %1500  ;;  %v1333_v31 = vadd.f32 %v1269_v62, %v1205_v0  ;;  %v1141_v1 = vadd.f32 %v2697_v48, %v1070_v14  ;;  %v1000_v7 = vmul.f32 %v1499_v33, %v2379_v21  ;;  %v879_v24 = vadd.f32 1e-05, %v815_v46 }
 0x156   :  { %1396 = vst.msk [vmem:[#allocation3 + $0x48] sm:$0xff] %vm217_vm0, %v1332_v3  ;;  %v1206_v20 = vmul.f32 %v2703_v44, %v1140_v2  ;;  %v1001_v40 = vmul.f32 %v1501_v30, %v2387_v54  ;;  %1510 = vrsqrt.f32 %v878_v55  ;;  %v816_v63 = vmul.f32 0.03125, %v668_v22 }
 0x157   :  { %1397 = vst.msk [vmem:[#allocation3 + $0x50] sm:$0xff] %vm217_vm0, %v1333_v31  ;;  %v1207_v26 = vmul.f32 %v2703_v44, %v1141_v1  ;;  %v1071_v18 = vmul.f32 %v2691_v50, %v1000_v7  ;;  %1512 = vrsqrt.f32 %v879_v24  ;;  %v817_v21 = vmul.f32 0.03125, %v671_v9 }
 0x158   :  { %v1503_v11 = vpop.eup %1502  ;;  %v1334_v5 = vadd.f32 %v1270_v8, %v1206_v20  ;;  %v1072_v12 = vmul.f32 %v2691_v50, %v1001_v40  ;;  %v880_v56 = vadd.f32 1e-05, %v816_v63  ;;  %v674_v16 = vpop.xlane.xlu1 %673  ;;  %v1274_v40 = vld [vmem:[%s3239_s2 + $0x78] sm:$0xff] }
 0x159   :  { %v677_v32 = vpop.xlane.xlu0 %676  ;;  %v1505_v13 = vpop.eup %1504  ;;  %v1335_v58 = vadd.f32 %v1271_v52, %v1207_v26  ;;  %v1142_v54 = vadd.f32 %v2697_v48, %v1071_v18  ;;  %v1002_v62 = vmul.f32 %v1503_v11, %v2391_v29  ;;  %v881_v41 = vadd.f32 1e-05, %v817_v21  ;;  %v1273_v29 = vld [vmem:[%s3239_s2 + $0x70] sm:$0xff]  ;;  %v1275_v21 = vld [vmem:[%s3239_s2 + $0x80] sm:$0xff] }
 0x15a   :  { %1398 = vst.msk [vmem:[#allocation3 + $0x58] sm:$0xff] %vm217_vm0, %v1334_v5  ;;  %v1143_v0 = vadd.f32 %v2697_v48, %v1072_v12  ;;  %v1003_v14 = vmul.f32 %v1505_v13, %v2399_v42  ;;  %1514 = vrsqrt.f32 %v880_v56  ;;  %v818_v46 = vmul.f32 0.03125, %v674_v16 }
 0x15b   :  { %1399 = vst.msk [vmem:[#allocation3 + $0x60] sm:$0xff] %vm217_vm0, %v1335_v58  ;;  %v1208_v33 = vmul.f32 %v2703_v44, %v1142_v54  ;;  %v1073_v3 = vmul.f32 %v2691_v50, %v1002_v62  ;;  %1516 = vrsqrt.f32 %v881_v41  ;;  %v819_v2 = vmul.f32 0.03125, %v677_v32 }
 0x15c   :  { %v1507_v55 = vpop.eup %1506  ;;  %v1209_v22 = vmul.f32 %v2703_v44, %v1143_v0  ;;  %v1074_v9 = vmul.f32 %v2691_v50, %v1003_v14  ;;  %v882_v42 = vadd.f32 1e-05, %v818_v46  ;;  %v680_v30 = vpop.xlane.xlu1 %679  ;;  %v1276_v0 = vld [vmem:[%s3239_s2 + $0x88] sm:$0xff] }
 0x15d   :  { %v683_v31 = vpop.xlane.xlu0 %682  ;;  %v1509_v8 = vpop.eup %1508  ;;  %v1336_v1 = vadd.f32 %v1272_v34, %v1208_v33  ;;  %v1144_v7 = vadd.f32 %v2697_v48, %v1073_v3  ;;  %v1004_v24 = vmul.f32 %v1507_v55, %v2403_v37  ;;  %v883_v20 = vadd.f32 1e-05, %v819_v2  ;;  %v1277_v3 = vld [vmem:[%s3239_s2 + $0x90] sm:$0xff] }
 0x15e   :  { %v1337_v52 = vadd.f32 %v1273_v29, %v1209_v22  ;;  %v1145_v63 = vadd.f32 %v2697_v48, %v1074_v9  ;;  %v1005_v26 = vmul.f32 %v1509_v8, %v2411_v19  ;;  %1518 = vrsqrt.f32 %v882_v42 }
 0x15f   :  { %1400 = vst.msk [vmem:[#allocation3 + $0x68] sm:$0xff] %vm217_vm0, %v1336_v1  ;;  %v1210_v18 = vmul.f32 %v2703_v44, %v1144_v7  ;;  %v1075_v37 = vmul.f32 %v2691_v50, %v1004_v24  ;;  %1520 = vrsqrt.f32 %v883_v20  ;;  %v820_v11 = vmul.f32 0.03125, %v680_v30 }
 0x160   :  { %v1511_v5 = vpop.eup %1510  ;;  %1401 = vst.msk [vmem:[#allocation3 + $0x70] sm:$0xff] %vm217_vm0, %v1337_v52  ;;  %v1211_v12 = vmul.f32 %v2703_v44, %v1145_v63  ;;  %v1076_v19 = vmul.f32 %v2691_v50, %v1005_v26  ;;  %v821_v56 = vmul.f32 0.03125, %v683_v31  ;;  %v686_v16 = vpop.xlane.xlu1 %685  ;;  %v1278_v52 = vld [vmem:[%s3239_s2 + $0x98] sm:$0xff] }
 0x161   :  { %v689_v32 = vpop.xlane.xlu0 %688  ;;  %v1513_v13 = vpop.eup %1512  ;;  %v1338_v58 = vadd.f32 %v1274_v40, %v1210_v18  ;;  %v1146_v54 = vadd.f32 %v2697_v48, %v1075_v37  ;;  %v1006_v62 = vmul.f32 %v1511_v5, %v2415_v45  ;;  %v884_v41 = vadd.f32 1e-05, %v820_v11 }
 0x162   :  { %v1339_v34 = vadd.f32 %v1275_v21, %v1211_v12  ;;  %v1147_v14 = vadd.f32 %v2697_v48, %v1076_v19  ;;  %v1007_v46 = vmul.f32 %v1513_v13, %v2423_v27  ;;  %v885_v33 = vadd.f32 1e-05, %v821_v56  ;;  %v1279_v21 = vld [vmem:[%s3239_s2 + $0xa0] sm:$0xff] }
 0x163   :  { %1402 = vst.msk [vmem:[#allocation3 + $0x78] sm:$0xff] %vm217_vm0, %v1338_v58  ;;  %v1212_v29 = vmul.f32 %v2703_v44, %v1146_v54  ;;  %v1077_v45 = vmul.f32 %v2691_v50, %v1006_v62  ;;  %1522 = vrsqrt.f32 %v884_v41  ;;  %v822_v2 = vmul.f32 0.03125, %v686_v16  ;;  %v1280_v41 = vld [vmem:[%s3239_s2 + $0xa8] sm:$0xff] }
 0x164   :  { %v1515_v55 = vpop.eup %1514  ;;  %1403 = vst.msk [vmem:[#allocation3 + $0x80] sm:$0xff] %vm217_vm0, %v1339_v34  ;;  %v1213_v22 = vmul.f32 %v2703_v44, %v1147_v14  ;;  %v1078_v27 = vmul.f32 %v2691_v50, %v1007_v46  ;;  %1524 = vrsqrt.f32 %v885_v33  ;;  %v823_v9 = vmul.f32 0.03125, %v689_v32  ;;  %v692_v42 = vpop.xlane.xlu1 %691  ;;  %v1281_v33 = vld [vmem:[%s3239_s2 + $0xb0] sm:$0xff] }
 0x165   :  { %v695_v30 = vpop.xlane.xlu0 %694  ;;  %v1517_v31 = vpop.eup %1516  ;;  %v1340_v8 = vadd.f32 %v1276_v0, %v1212_v29  ;;  %v1148_v1 = vadd.f32 %v2697_v48, %v1077_v45  ;;  %v1008_v7 = vmul.f32 %v1515_v55, %v2427_v53  ;;  %v886_v24 = vadd.f32 1e-05, %v822_v2 }
 0x166   :  { %v1341_v20 = vadd.f32 %v1277_v3, %v1213_v22  ;;  %v1149_v40 = vadd.f32 %v2697_v48, %v1078_v27  ;;  %v1009_v63 = vmul.f32 %v1517_v31, %v2435_v35  ;;  %v887_v26 = vadd.f32 1e-05, %v823_v9 }
 0x167   :  { %1404 = vst.msk [vmem:[#allocation3 + $0x88] sm:$0xff] %vm217_vm0, %v1340_v8  ;;  %v1214_v18 = vmul.f32 %v2703_v44, %v1148_v1  ;;  %v1079_v53 = vmul.f32 %v2691_v50, %v1008_v7  ;;  %1526 = vrsqrt.f32 %v886_v24  ;;  %v824_v37 = vmul.f32 0.03125, %v692_v42  ;;  %v1282_v1 = vld [vmem:[%s3239_s2 + $0xb8] sm:$0xff] }
 0x168   :  { %v1519_v11 = vpop.eup %1518  ;;  %1405 = vst.msk [vmem:[#allocation3 + $0x90] sm:$0xff] %vm217_vm0, %v1341_v20  ;;  %v1215_v5 = vmul.f32 %v2703_v44, %v1149_v40  ;;  %v1080_v35 = vmul.f32 %v2691_v50, %v1009_v63  ;;  %1528 = vrsqrt.f32 %v887_v26  ;;  %v825_v12 = vmul.f32 0.03125, %v695_v30  ;;  %v698_v19 = vpop.xlane.xlu1 %697  ;;  %v1283_v40 = vld [vmem:[%s3239_s2 + $0xc0] sm:$0xff] }
 0x169   :  { %v701_v56 = vpop.xlane.xlu0 %700  ;;  %v1521_v16 = vpop.eup %1520  ;;  %v1342_v32 = vadd.f32 %v1278_v52, %v1214_v18  ;;  %v1150_v13 = vadd.f32 %v2697_v48, %v1079_v53  ;;  %v1010_v58 = vmul.f32 %v1519_v11, %v2439_v61  ;;  %v888_v54 = vadd.f32 1e-05, %v824_v37 }
 0x16a   :  { %v1343_v62 = vadd.f32 %v1279_v21, %v1215_v5  ;;  %v1151_v34 = vadd.f32 %v2697_v48, %v1080_v35  ;;  %v1011_v0 = vmul.f32 %v1521_v16, %v2447_v43  ;;  %v889_v14 = vadd.f32 1e-05, %v825_v12 }
 0x16b   :  { %1406 = vst.msk [vmem:[#allocation3 + $0x98] sm:$0xff] %vm217_vm0, %v1342_v32  ;;  %v1216_v46 = vmul.f32 %v2703_v44, %v1150_v13  ;;  %v1081_v61 = vmul.f32 %v2691_v50, %v1010_v58  ;;  %1530 = vrsqrt.f32 %v888_v54  ;;  %v826_v29 = vmul.f32 0.03125, %v698_v19  ;;  %v1284_v13 = vld [vmem:[%s3239_s2 + $0xc8] sm:$0xff] }
 0x16c   :  { %1407 = vst.msk [vmem:[#allocation3 + $0xa0] sm:$0xff] %vm217_vm0, %v1343_v62  ;;  %v1217_v3 = vmul.f32 %v2703_v44, %v1151_v34  ;;  %v1082_v45 = vmul.f32 %v2691_v50, %v1011_v0  ;;  %1532 = vrsqrt.f32 %v889_v14  ;;  %v827_v43 = vmul.f32 0.03125, %v701_v56  ;;  %v704_v2 = vpop.xlane.xlu1 %703 }
 0x16d   :  { %v707_v55 = vpop.xlane.xlu0 %706  ;;  %v1523_v22 = vpop.eup %1522  ;;  %v1344_v27 = vadd.f32 %v1280_v41, %v1216_v46  ;;  %v1152_v9 = vadd.f32 %v2697_v48, %v1081_v61  ;;  %v890_v42 = vadd.f32 1e-05, %v826_v29  ;;  %v828_v30 = vmul.f32 0.03125, %v704_v2 }
 0x16e   :  { %v1525_v31 = vpop.eup %1524  ;;  %v1345_v8 = vadd.f32 %v1281_v33, %v1217_v3  ;;  %v1153_v7 = vadd.f32 %v2697_v48, %v1082_v45  ;;  %v1012_v24 = vmul.f32 %v1523_v22, %v2451_v6  ;;  %v891_v20 = vadd.f32 1e-05, %v827_v43 }
 0x16f   :  { %1408 = vst.msk [vmem:[#allocation3 + $0xa8] sm:$0xff] %vm217_vm0, %v1344_v27  ;;  %v1218_v52 = vmul.f32 %v2703_v44, %v1152_v9  ;;  %v1013_v63 = vmul.f32 %v1525_v31, %v2459_v51  ;;  %1534 = vrsqrt.f32 %v890_v42  ;;  %v892_v26 = vadd.f32 1e-05, %v828_v30  ;;  %v1286_v27 = vld [vmem:[%s3239_s2 + $0xd8] sm:$0xff]  ;;  %v1287_v31 = vld [vmem:[%s3239_s2 + $0xe0] sm:$0xff] }
 0x170   :  { %1409 = vst.msk [vmem:[#allocation3 + $0xb0] sm:$0xff] %vm217_vm0, %v1345_v8  ;;  %v1219_v18 = vmul.f32 %v2703_v44, %v1153_v7  ;;  %v1083_v21 = vmul.f32 %v2691_v50, %v1012_v24  ;;  %1536 = vrsqrt.f32 %v891_v20  ;;  %v829_v6 = vmul.f32 0.03125, %v707_v55  ;;  %v710_v53 = vpop.xlane.xlu1 %709 }
 0x171   :  { %v713_v37 = vpop.xlane.xlu0 %712  ;;  %v1527_v11 = vpop.eup %1526  ;;  %v1346_v5 = vadd.f32 %v1282_v1, %v1218_v52  ;;  %v1084_v35 = vmul.f32 %v2691_v50, %v1013_v63  ;;  %1538 = vrsqrt.f32 %v892_v26  ;;  %v830_v12 = vmul.f32 0.03125, %v710_v53 }
 0x172   :  { %v1529_v19 = vpop.eup %1528  ;;  %v1347_v51 = vadd.f32 %v1283_v40, %v1219_v18  ;;  %v1154_v56 = vadd.f32 %v2697_v48, %v1083_v21  ;;  %v1014_v16 = vmul.f32 %v1527_v11, %v2463_v17  ;;  %v893_v32 = vadd.f32 1e-05, %v829_v6  ;;  %v1285_v17 = vld [vmem:[%s3239_s2 + $0xd0] sm:$0xff]  ;;  %v1288_v11 = vld [vmem:[%s3239_s2 + $0xe8] sm:$0xff] }
 0x173   :  { %1410 = vst.msk [vmem:[#allocation3 + $0xb8] sm:$0xff] %vm217_vm0, %v1346_v5  ;;  %v1155_v58 = vadd.f32 %v2697_v48, %v1084_v35  ;;  %v1015_v54 = vmul.f32 %v1529_v19, %v2471_v59  ;;  %v894_v62 = vadd.f32 1e-05, %v830_v12  ;;  %v831_v41 = vmul.f32 0.03125, %v713_v37 }
 0x174   :  { %1411 = vst.msk [vmem:[#allocation3 + $0xc0] sm:$0xff] %vm217_vm0, %v1347_v51  ;;  %v1220_v34 = vmul.f32 %v2703_v44, %v1154_v56  ;;  %v1085_v0 = vmul.f32 %v2691_v50, %v1014_v16  ;;  %1540 = vrsqrt.f32 %v893_v32  ;;  %v716_v14 = vpop.xlane.xlu1 %715 }
 0x175   :  { %v719_v46 = vpop.xlane.xlu0 %718  ;;  %v1531_v33 = vpop.eup %1530  ;;  %v1221_v61 = vmul.f32 %v2703_v44, %v1155_v58  ;;  %v1086_v59 = vmul.f32 %v2691_v50, %v1015_v54  ;;  %1542 = vrsqrt.f32 %v894_v62  ;;  %v895_v29 = vadd.f32 1e-05, %v831_v41 }
 0x176   :  { %v1533_v3 = vpop.eup %1532  ;;  %v1348_v45 = vadd.f32 %v1284_v13, %v1220_v34  ;;  %v1156_v43 = vadd.f32 %v2697_v48, %v1085_v0  ;;  %v1016_v2 = vmul.f32 %v1531_v33, %v2475_v28  ;;  %v832_v55 = vmul.f32 0.03125, %v716_v14  ;;  %v1290_v14 = vld [vmem:[%s3239_s2 + $0xf8] sm:$0xff] }
 0x177   :  { %v1349_v22 = vadd.f32 %v1285_v17, %v1221_v61  ;;  %v1157_v9 = vadd.f32 %v2697_v48, %v1086_v59  ;;  %v1017_v42 = vmul.f32 %v1533_v3, %v2483_v4  ;;  %1544 = vrsqrt.f32 %v895_v29  ;;  %v1291_v59 = vld [vmem:[%s3239_s2 + $0x100] sm:$0xff] }
 0x178   :  { %1412 = vst.msk [vmem:[#allocation3 + $0xc8] sm:$0xff] %vm217_vm0, %v1348_v45  ;;  %v1222_v30 = vmul.f32 %v2703_v44, %v1156_v43  ;;  %v1087_v28 = vmul.f32 %v2691_v50, %v1016_v2  ;;  %v896_v8 = vadd.f32 1e-05, %v832_v55  ;;  %v833_v1 = vmul.f32 0.03125, %v719_v46  ;;  %v722_v7 = vpop.xlane.xlu1 %721 }
 0x179   :  { %v725_v24 = vpop.xlane.xlu0 %724  ;;  %v1535_v20 = vpop.eup %1534  ;;  %1413 = vst.msk [vmem:[#allocation3 + $0xd0] sm:$0xff] %vm217_vm0, %v1349_v22  ;;  %v1223_v4 = vmul.f32 %v2703_v44, %v1157_v9  ;;  %v1088_v52 = vmul.f32 %v2691_v50, %v1017_v42  ;;  %v834_v40 = vmul.f32 0.03125, %v722_v7  ;;  %v1292_v22 = vld [vmem:[%s3239_s2 + $0x108] sm:$0xff] }
 0x17a   :  { %v835_v63 = vmul.f32 0.03125, %v725_v24  ;;  %v1537_v26 = vpop.eup %1536  ;;  %v1350_v18 = vadd.f32 %v1286_v27, %v1222_v30  ;;  %v1158_v21 = vadd.f32 %v2697_v48, %v1087_v28  ;;  %v1018_v6 = vmul.f32 %v1535_v20, %v2487_v39  ;;  %v1289_v39 = vld [vmem:[%s3239_s2 + $0xf0] sm:$0xff] }
 0x17b   :  { %1546 = vrsqrt.f32 %v896_v8  ;;  %v1539_v53 = vpop.eup %1538  ;;  %v1351_v37 = vadd.f32 %v1287_v31, %v1223_v4  ;;  %v1159_v5 = vadd.f32 %v2697_v48, %v1088_v52  ;;  %v1019_v35 = vmul.f32 %v1537_v26, %v2495_v15  ;;  %v1293_v52 = vld [vmem:[%s3239_s2 + $0x110] sm:$0xff] }
 0x17c   :  { %v897_v12 = vadd.f32 1e-05, %v833_v1  ;;  %1414 = vst.msk [vmem:[#allocation3 + $0xd8] sm:$0xff] %vm217_vm0, %v1350_v18  ;;  %v1224_v19 = vmul.f32 %v2703_v44, %v1158_v21  ;;  %v1089_v51 = vmul.f32 %v2691_v50, %v1018_v6  ;;  %v1020_v56 = vmul.f32 %v1539_v53, %v2499_v49  ;;  %v728_v32 = vpop.xlane.xlu1 %727  ;;  %v1294_v6 = vld [vmem:[%s3239_s2 + $0x118] sm:$0xff] }
 0x17d   :  { %v898_v16 = vadd.f32 1e-05, %v834_v40  ;;  %v731_v13 = vpop.xlane.xlu0 %730  ;;  %1415 = vst.msk [vmem:[#allocation3 + $0xe0] sm:$0xff] %vm217_vm0, %v1351_v37  ;;  %v1225_v15 = vmul.f32 %v2703_v44, %v1159_v5  ;;  %v1090_v58 = vmul.f32 %v2691_v50, %v1019_v35  ;;  %v899_v54 = vadd.f32 1e-05, %v835_v63 }
 0x17e   :  { %1548 = vrsqrt.f32 %v897_v12  ;;  %v1541_v62 = vpop.eup %1540  ;;  %v1352_v41 = vadd.f32 %v1288_v11, %v1224_v19  ;;  %v1160_v34 = vadd.f32 %v2697_v48, %v1089_v51  ;;  %v1091_v17 = vmul.f32 %v2691_v50, %v1020_v56 }
 0x17f   :  { %1550 = vrsqrt.f32 %v898_v16  ;;  %v1543_v0 = vpop.eup %1542  ;;  %v1353_v49 = vadd.f32 %v1289_v39, %v1225_v15  ;;  %v1161_v46 = vadd.f32 %v2697_v48, %v1090_v58  ;;  %v1021_v33 = vmul.f32 %v1541_v62, %v2507_v25  ;;  %v1295_v39 = vld [vmem:[%s3239_s2 + $0x120] sm:$0xff] }
 0x180   :  { %1552 = vrsqrt.f32 %v899_v54  ;;  %1416 = vst.msk [vmem:[#allocation3 + $0xe8] sm:$0xff] %vm217_vm0, %v1352_v41  ;;  %v1226_v61 = vmul.f32 %v2703_v44, %v1160_v34  ;;  %v1162_v29 = vadd.f32 %v2697_v48, %v1091_v17  ;;  %v1022_v3 = vmul.f32 %v1543_v0, %v2511_v60  ;;  %v734_v43 = vpop.xlane.xlu1 %733 }
 0x181   :  { %v836_v45 = vmul.f32 0.03125, %v728_v32  ;;  %v737_v2 = vpop.xlane.xlu0 %736  ;;  %v1545_v55 = vpop.eup %1544  ;;  %1417 = vst.msk [vmem:[#allocation3 + $0xf0] sm:$0xff] %vm217_vm0, %v1353_v49  ;;  %v1227_v25 = vmul.f32 %v2703_v44, %v1161_v46  ;;  %v1092_v27 = vmul.f32 %v2691_v50, %v1021_v33  ;;  %v837_v9 = vmul.f32 0.03125, %v731_v13  ;;  %v1296_v49 = vld [vmem:[%s3239_s2 + $0x128] sm:$0xff] }
 0x182   :  { %v838_v42 = vmul.f32 0.03125, %v734_v43  ;;  %v1354_v30 = vadd.f32 %v1290_v14, %v1226_v61  ;;  %v1228_v31 = vmul.f32 %v2703_v44, %v1162_v29  ;;  %v1093_v60 = vmul.f32 %v2691_v50, %v1022_v3 }
 0x183   :  { %v1023_v28 = vmul.f32 %v1545_v55, %v2519_v36  ;;  %v1355_v8 = vadd.f32 %v1291_v59, %v1227_v25  ;;  %v1163_v1 = vadd.f32 %v2697_v48, %v1092_v27  ;;  %v900_v7 = vadd.f32 1e-05, %v836_v45  ;;  %v1298_v27 = vld [vmem:[%s3239_s2 + $0x138] sm:$0xff] }
 0x184   :  { %v901_v24 = vadd.f32 1e-05, %v837_v9  ;;  %1418 = vst.msk [vmem:[#allocation3 + $0xf8] sm:$0xff] %vm217_vm0, %v1354_v30  ;;  %v1356_v4 = vadd.f32 %v1292_v22, %v1228_v31  ;;  %v1164_v40 = vadd.f32 %v2697_v48, %v1093_v60  ;;  %v902_v26 = vadd.f32 1e-05, %v838_v42  ;;  %v740_v18 = vpop.xlane.xlu1 %739  ;;  %v1299_v60 = vld [vmem:[%s3239_s2 + $0x140] sm:$0xff] }
 0x185   :  { %v1547_v20 = vpop.eup %1546  ;;  %v1094_v63 = vmul.f32 %v2691_v50, %v1023_v28  ;;  %v743_v36 = vpop.xlane.xlu0 %742  ;;  %1419 = vst.msk [vmem:[#allocation3 + $0x100] sm:$0xff] %vm217_vm0, %v1355_v8  ;;  %v1229_v21 = vmul.f32 %v2703_v44, %v1163_v1  ;;  %1554 = vrsqrt.f32 %v900_v7  ;;  %v839_v37 = vmul.f32 0.03125, %v737_v2 }
 0x186   :  { %v1024_v53 = vmul.f32 %v1547_v20, %v2523_v10  ;;  %1420 = vst.msk [vmem:[#allocation3 + $0x108] sm:$0xff] %vm217_vm0, %v1356_v4  ;;  %v1230_v11 = vmul.f32 %v2703_v44, %v1164_v40  ;;  %1556 = vrsqrt.f32 %v901_v24  ;;  %v840_v35 = vmul.f32 0.03125, %v740_v18  ;;  %v3330_v40 = vld [vmem:[#allocation20_spill] sm:$0xff] }
 0x187   :  { %v1165_v5 = vadd.f32 %v2697_v48, %v1094_v63  ;;  %v1357_v19 = vadd.f32 %v1293_v52, %v1229_v21  ;;  %1558 = vrsqrt.f32 %v902_v26  ;;  %v903_v10 = vadd.f32 1e-05, %v839_v37  ;;  %v3034_v21 = vld [vmem:[%s3240_s3] ss:$0 sm:$0xff] }
 0x188   :  { %v1549_v12 = vpop.eup %1548  ;;  %v1095_v51 = vmul.f32 %v2691_v50, %v1024_v53  ;;  %v1358_v16 = vadd.f32 %v1294_v6, %v1230_v11  ;;  %v904_v15 = vadd.f32 1e-05, %v840_v35  ;;  %v746_v58 = vpop.xlane.xlu1 %745  ;;  %v841_v17 = vmul.f32 0.03125, %v743_v36 }
 0x189   :  { %v1551_v56 = vpop.eup %1550  ;;  %v1231_v32 = vmul.f32 %v2703_v44, %v1165_v5  ;;  %v1025_v13 = vmul.f32 %v1549_v12, %v2531_v47  ;;  %v749_v54 = vpop.xlane.xlu0 %748  ;;  %1421 = vst.msk [vmem:[#allocation3 + $0x110] sm:$0xff] %vm217_vm0, %v1357_v19  ;;  %1560 = vrsqrt.f32 %v903_v10  ;;  %v3044_v19 = vld [vmem:[%s3241_s4] ss:$0 sm:$0xff] }
 0x18a   :  { %v1553_v62 = vpop.eup %1552  ;;  %v1166_v41 = vadd.f32 %v2697_v48, %v1095_v51  ;;  %v1026_v34 = vmul.f32 %v1551_v56, %v2535_v23  ;;  %1422 = vst.msk [vmem:[#allocation3 + $0x118] sm:$0xff] %vm217_vm0, %v1358_v16  ;;  %1562 = vrsqrt.f32 %v904_v15  ;;  %v905_v61 = vadd.f32 1e-05, %v841_v17  ;;  %v3332_v10 = vld [vmem:[#allocation22_spill] sm:$0xff]  ;;  %v1301_v17 = vld [vmem:[%s3239_s2 + $0x150] sm:$0xff] }
 0x18b   :  { %v1359_v0 = vadd.f32 %v1295_v39, %v1231_v32  ;;  %v1096_v47 = vmul.f32 %v2691_v50, %v1025_v13  ;;  %v1027_v14 = vmul.f32 %v1553_v62, %v2543_v57  ;;  %v842_v23 = vmul.f32 0.03125, %v746_v58  ;;  %v1297_v57 = vld [vmem:[%s3239_s2 + $0x130] sm:$0xff]  ;;  %v1300_v13 = vld [vmem:[%s3239_s2 + $0x148] sm:$0xff] }
 0x18c   :  { %v1232_v46 = vmul.f32 %v2703_v44, %v1166_v41  ;;  %v1097_v33 = vmul.f32 %v2691_v50, %v1026_v34  ;;  %v843_v3 = vmul.f32 0.03125, %v749_v54  ;;  %v752_v45 = vpop.xlane.xlu1 %751  ;;  %1564 = vrsqrt.f32 %v905_v61  ;;  %v3333_v58 = vld [vmem:[#allocation23_spill] sm:$0xff] }
 0x18d   :  { %1423 = vst.msk [vmem:[#allocation3 + $0x120] sm:$0xff] %vm217_vm0, %v1359_v0  ;;  %v1167_v59 = vadd.f32 %v2697_v48, %v1096_v47  ;;  %v1098_v29 = vmul.f32 %v2691_v50, %v1027_v14  ;;  %v755_v43 = vpop.xlane.xlu0 %754  ;;  %v906_v25 = vadd.f32 1e-05, %v842_v23  ;;  %v844_v42 = vmul.f32 0.03125, %v752_v45  ;;  %v3334_v45 = vld [vmem:[#allocation24_spill] sm:$0xff] }
 0x18e   :  { %v1360_v2 = vadd.f32 %v1296_v49, %v1232_v46  ;;  %v1168_v55 = vadd.f32 %v2697_v48, %v1097_v33  ;;  %v907_v9 = vadd.f32 1e-05, %v843_v3  ;;  %v845_v28 = vmul.f32 0.03125, %v755_v43  ;;  %v1302_v33 = vld [vmem:[%s3239_s2 + $0x158] sm:$0xff] }
 0x18f   :  { %v1233_v22 = vmul.f32 %v2703_v44, %v1167_v59  ;;  %v1169_v50 = vadd.f32 %v2697_v48, %v1098_v29  ;;  %v1555_v30 = vpop.eup %1554  ;;  %1566 = vrsqrt.f32 %v906_v25  ;;  %v908_v26 = vadd.f32 1e-05, %v844_v42 }
 0x190   :  { %1424 = vst.msk [vmem:[#allocation3 + $0x128] sm:$0xff] %vm217_vm0, %v1360_v2  ;;  %v1234_v31 = vmul.f32 %v2703_v44, %v1168_v55  ;;  %v1557_v8 = vpop.eup %1556  ;;  %v1028_v24 = vmul.f32 %v1555_v30, %v2547_v38  ;;  %1568 = vrsqrt.f32 %v907_v9  ;;  %v758_v48 = vpop.xlane.xlu1 %757  ;;  %v909_v18 = vadd.f32 1e-05, %v845_v28  ;;  %v3331_v38 = vld [vmem:[#allocation21_spill] sm:$0xff] }
 0x191   :  { %v1361_v1 = vadd.f32 %v1297_v57, %v1233_v22  ;;  %v1235_v7 = vmul.f32 %v2703_v44, %v1169_v50  ;;  %v761_v20 = vpop.xlane.xlu0 %760  ;;  %v1559_v4 = vpop.eup %1558  ;;  %v1029_v63 = vmul.f32 %v1557_v8, %v3330_v40  ;;  %v846_v37 = vmul.f32 0.03125, %v758_v48  ;;  %v1303_v22 = vld [vmem:[%s3239_s2 + $0x160] sm:$0xff]  ;;  %v3335_v28 = vld [vmem:[#allocation25_spill] sm:$0xff] }
 0x192   :  { %v1362_v52 = vadd.f32 %v1298_v27, %v1234_v31  ;;  %v1099_v6 = vmul.f32 %v3034_v21, %v1028_v24  ;;  %v1030_v53 = vmul.f32 %v1559_v4, %v3331_v38  ;;  %1570 = vrsqrt.f32 %v908_v26  ;;  %v1304_v31 = vld [vmem:[%s3239_s2 + $0x168] sm:$0xff] }
 0x193   :  { %1425 = vst.msk [vmem:[#allocation3 + $0x130] sm:$0xff] %vm217_vm0, %v1361_v1  ;;  %v1363_v36 = vadd.f32 %v1299_v60, %v1235_v7  ;;  %v1561_v11 = vpop.eup %1560  ;;  %v1100_v5 = vmul.f32 %v3034_v21, %v1029_v63  ;;  %v847_v35 = vmul.f32 0.03125, %v761_v20  ;;  %1572 = vrsqrt.f32 %v909_v18  ;;  %v3336_v7 = vld [vmem:[#allocation26_spill] sm:$0xff] }
 0x194   :  { %1426 = vst.msk [vmem:[#allocation3 + $0x138] sm:$0xff] %vm217_vm0, %v1362_v52  ;;  %v1563_v12 = vpop.eup %1562  ;;  %v1170_v39 = vadd.f32 %v3044_v19, %v1099_v6  ;;  %v1101_v51 = vmul.f32 %v3034_v21, %v1030_v53  ;;  %v1031_v56 = vmul.f32 %v1561_v11, %v3332_v10  ;;  %v764_v16 = vpop.xlane.xlu1 %763  ;;  %v910_v62 = vadd.f32 1e-05, %v846_v37  ;;  %v1305_v6 = vld [vmem:[%s3239_s2 + $0x170] sm:$0xff] }
 0x195   :  { %1427 = vst.msk [vmem:[#allocation3 + $0x140] sm:$0xff] %vm217_vm0, %v1363_v36  ;;  %v767_v32 = vpop.xlane.xlu0 %766  ;;  %v1171_v15 = vadd.f32 %v3044_v19, %v1100_v5  ;;  %v1032_v54 = vmul.f32 %v1563_v12, %v3333_v58  ;;  %v911_v41 = vadd.f32 1e-05, %v847_v35  ;;  %v848_v47 = vmul.f32 0.03125, %v764_v16  ;;  %v3337_v35 = vld [vmem:[#allocation27_spill] sm:$0xff] }
 0x196   :  { %v1236_v34 = vmul.f32 %v2703_v44, %v1170_v39  ;;  %v1172_v0 = vadd.f32 %v3044_v19, %v1101_v51  ;;  %v1102_v49 = vmul.f32 %v3034_v21, %v1031_v56  ;;  %v1565_v14 = vpop.eup %1564  ;;  %1574 = vrsqrt.f32 %v910_v62  ;;  %v1306_v51 = vld [vmem:[%s3239_s2 + $0x178] sm:$0xff]  ;;  %v3338_v56 = vld [vmem:[#allocation6_spill] sm:$0xff] }
 0x197   :  { %v1237_v46 = vmul.f32 %v2703_v44, %v1171_v15  ;;  %v1103_v61 = vmul.f32 %v3034_v21, %v1032_v54  ;;  %v849_v23 = vmul.f32 0.03125, %v767_v32  ;;  %v1033_v43 = vmul.f32 %v1565_v14, %v3334_v45  ;;  %v1307_v54 = vld [vmem:[%s3239_s2 + $0x180] sm:$0xff] }
 0x198   :  { %v1364_v59 = vadd.f32 %v1300_v13, %v1236_v34  ;;  %v1238_v29 = vmul.f32 %v2703_v44, %v1172_v0  ;;  %v1173_v3 = vadd.f32 %v3044_v19, %v1102_v49  ;;  %v770_v2 = vpop.xlane.xlu1 %769  ;;  %1576 = vrsqrt.f32 %v911_v41 }
 0x199   :  { %v773_v57 = vpop.xlane.xlu0 %772  ;;  %v1567_v55 = vpop.eup %1566  ;;  %v1365_v25 = vadd.f32 %v1301_v17, %v1237_v46  ;;  %v1174_v27 = vadd.f32 %v3044_v19, %v1103_v61  ;;  %v912_v50 = vadd.f32 1e-05, %v848_v47  ;;  %v1104_v60 = vmul.f32 %v3034_v21, %v1033_v43 }
 0x19a   :  { %v1569_v9 = vpop.eup %1568  ;;  %1428 = vst.msk [vmem:[#allocation3 + $0x148] sm:$0xff] %vm217_vm0, %v1364_v59  ;;  %v1366_v42 = vadd.f32 %v1302_v33, %v1238_v29  ;;  %v1239_v30 = vmul.f32 %v2703_v44, %v1173_v3  ;;  %v1034_v8 = vmul.f32 %v1567_v55, %v3335_v28  ;;  %v913_v48 = vadd.f32 1e-05, %v849_v23  ;;  %v3339_v33 = vld [vmem:[#allocation7_spill] sm:$0xff] }
 0x19b   :  { %1429 = vst.msk [vmem:[#allocation3 + $0x150] sm:$0xff] %vm217_vm0, %v1365_v25  ;;  %v1240_v1 = vmul.f32 %v2703_v44, %v1174_v27  ;;  %v1035_v24 = vmul.f32 %v1569_v9, %v3336_v7  ;;  %1578 = vrsqrt.f32 %v912_v50  ;;  %v1175_v4 = vadd.f32 %v3044_v19, %v1104_v60  ;;  %v1308_v3 = vld [vmem:[%s3239_s2 + $0x188] sm:$0xff]  ;;  %v3340_v25 = vld [vmem:[#allocation8_spill] sm:$0xff]  ;;  %v3341_v7 = vld [vmem:[#allocation9_spill] sm:$0xff] }
 0x19c   :  { %1430 = vst.msk [vmem:[#allocation3 + $0x158] sm:$0xff] %vm217_vm0, %v1366_v42  ;;  %v1367_v20 = vadd.f32 %v1303_v22, %v1239_v30  ;;  %v1105_v52 = vmul.f32 %v3034_v21, %v1034_v8  ;;  %v850_v40 = vmul.f32 0.03125, %v770_v2  ;;  %v776_v63 = vpop.xlane.xlu1 %775  ;;  %v1571_v18 = vpop.eup %1570  ;;  %1580 = vrsqrt.f32 %v913_v48 }
 0x19d   :  { %v779_v26 = vpop.xlane.xlu0 %778  ;;  %v1368_v36 = vadd.f32 %v1304_v31, %v1240_v1  ;;  %v1106_v38 = vmul.f32 %v3034_v21, %v1035_v24  ;;  %v851_v53 = vmul.f32 0.03125, %v773_v57  ;;  %v1573_v37 = vpop.eup %1572  ;;  %v1241_v11 = vmul.f32 %v2703_v44, %v1175_v4  ;;  %v1309_v57 = vld [vmem:[%s3239_s2 + $0x190] sm:$0xff] }
 0x19e   :  { %1431 = vst.msk [vmem:[#allocation3 + $0x160] sm:$0xff] %vm217_vm0, %v1367_v20  ;;  %v1176_v5 = vadd.f32 %v3044_v19, %v1105_v52  ;;  %v1036_v12 = vmul.f32 %v1571_v18, %v3337_v35  ;;  %v914_v39 = vadd.f32 1e-05, %v850_v40  ;;  %v1037_v16 = vmul.f32 %v1573_v37, %v3338_v56  ;;  %v1310_v52 = vld [vmem:[%s3239_s2 + $0x198] sm:$0xff] }
 0x19f   :  { %1432 = vst.msk [vmem:[#allocation3 + $0x168] sm:$0xff] %vm217_vm0, %v1368_v36  ;;  %v1177_v10 = vadd.f32 %v3044_v19, %v1106_v38  ;;  %v915_v32 = vadd.f32 1e-05, %v851_v53  ;;  %v852_v13 = vmul.f32 0.03125, %v776_v63  ;;  %v1369_v15 = vadd.f32 %v1305_v6, %v1241_v11  ;;  %v3342_v36 = vld [vmem:[#allocation10_spill] sm:$0xff] }
 0x1a0   :  { %v1242_v58 = vmul.f32 %v2703_v44, %v1176_v5  ;;  %v1107_v62 = vmul.f32 %v3034_v21, %v1036_v12  ;;  %1582 = vrsqrt.f32 %v914_v39  ;;  %v782_v41 = vpop.xlane.xlu1 %781  ;;  %v1575_v17 = vpop.eup %1574  ;;  %v1108_v49 = vmul.f32 %v3034_v21, %v1037_v16  ;;  %v1311_v53 = vld [vmem:[%s3239_s2 + $0x1a0] sm:$0xff]  ;;  %v1312_v16 = vld [vmem:[%s3239_s2 + $0x1a8] sm:$0xff] }
 0x1a1   :  { %v785_v34 = vpop.xlane.xlu0 %784  ;;  %v1243_v0 = vmul.f32 %v2703_v44, %v1177_v10  ;;  %1584 = vrsqrt.f32 %v915_v32  ;;  %v916_v47 = vadd.f32 1e-05, %v852_v13  ;;  %1433 = vst.msk [vmem:[#allocation3 + $0x170] sm:$0xff] %vm217_vm0, %v1369_v15  ;;  %v1038_v61 = vmul.f32 %v1575_v17, %v3339_v33  ;;  %v3343_v32 = vld [vmem:[#allocation11_spill] sm:$0xff] }
 0x1a2   :  { %v1370_v14 = vadd.f32 %v1306_v51, %v1242_v58  ;;  %v1178_v46 = vadd.f32 %v3044_v19, %v1107_v62  ;;  %v853_v23 = vmul.f32 0.03125, %v779_v26  ;;  %v1577_v59 = vpop.eup %1576  ;;  %v1179_v45 = vadd.f32 %v3044_v19, %v1108_v49  ;;  %v1313_v49 = vld [vmem:[%s3239_s2 + $0x1b0] sm:$0xff] }
 0x1a3   :  { %v1371_v29 = vadd.f32 %v1307_v54, %v1243_v0  ;;  %1586 = vrsqrt.f32 %v916_v47  ;;  %v854_v43 = vmul.f32 0.03125, %v782_v41  ;;  %v1109_v55 = vmul.f32 %v3034_v21, %v1038_v61  ;;  %v3345_v61 = vld [vmem:[#allocation13_spill] sm:$0xff] }
 0x1a4   :  { %1434 = vst.msk [vmem:[#allocation3 + $0x178] sm:$0xff] %vm217_vm0, %v1370_v14  ;;  %v1244_v2 = vmul.f32 %v2703_v44, %v1178_v46  ;;  %v1039_v22 = vmul.f32 %v1577_v59, %v3340_v25  ;;  %v917_v27 = vadd.f32 1e-05, %v853_v23  ;;  %v788_v50 = vpop.xlane.xlu1 %787  ;;  %v1245_v42 = vmul.f32 %v2703_v44, %v1179_v45 }
 0x1a5   :  { %v1579_v9 = vpop.eup %1578  ;;  %1435 = vst.msk [vmem:[#allocation3 + $0x180] sm:$0xff] %vm217_vm0, %v1371_v29  ;;  %v918_v30 = vadd.f32 1e-05, %v854_v43  ;;  %v855_v31 = vmul.f32 0.03125, %v785_v34  ;;  %v856_v60 = vmul.f32 0.03125, %v788_v50  ;;  %v1180_v8 = vadd.f32 %v3044_v19, %v1109_v55  ;;  %v791_v48 = vpop.xlane.xlu0 %790  ;;  %v3344_v34 = vld [vmem:[#allocation12_spill] sm:$0xff] }
 0x1a6   :  { %v1372_v28 = vadd.f32 %v1308_v3, %v1244_v2  ;;  %v1110_v1 = vmul.f32 %v3034_v21, %v1039_v22  ;;  %v1040_v24 = vmul.f32 %v1579_v9, %v3341_v7  ;;  %v1581_v20 = vpop.eup %1580  ;;  %v1373_v4 = vadd.f32 %v1309_v57, %v1245_v42  ;;  %v1314_v3 = vld [vmem:[%s3239_s2 + $0x1b8] sm:$0xff]  ;;  %v1315_v55 = vld [vmem:[%s3239_s2 + $0x1c0] sm:$0xff] }
 0x1a7   :  { %1588 = vrsqrt.f32 %v917_v27  ;;  %v919_v40 = vadd.f32 1e-05, %v855_v31  ;;  %v1246_v63 = vmul.f32 %v2703_v44, %v1180_v8  ;;  %v1041_v6 = vmul.f32 %v1581_v20, %v3342_v36  ;;  %v3346_v27 = vld [vmem:[#allocation14_spill] sm:$0xff]  ;;  %v3347_v8 = vld [vmem:[#allocation15_spill] sm:$0xff] }
 0x1a8   :  { %1436 = vst.msk [vmem:[#allocation3 + $0x188] sm:$0xff] %vm217_vm0, %v1372_v28  ;;  %v1181_v26 = vadd.f32 %v3044_v19, %v1110_v1  ;;  %v1111_v18 = vmul.f32 %v3034_v21, %v1040_v24  ;;  %v794_v38 = vpop.xlane.xlu1 %793  ;;  %1437 = vst.msk [vmem:[#allocation3 + $0x190] sm:$0xff] %vm217_vm0, %v1373_v4  ;;  %1590 = vrsqrt.f32 %v918_v30  ;;  %v920_v37 = vadd.f32 1e-05, %v856_v60  ;;  %v1316_v30 = vld [vmem:[%s3239_s2 + $0x1c8] sm:$0xff]  ;;  %v3348_v4 = vld [vmem:[#allocation16_spill] sm:$0xff] }
 0x1a9   :  { %v857_v11 = vmul.f32 0.03125, %v791_v48  ;;  %v858_v5 = vmul.f32 0.03125, %v794_v38  ;;  %v1374_v12 = vadd.f32 %v1310_v52, %v1246_v63  ;;  %v1112_v10 = vmul.f32 %v3034_v21, %v1041_v6  ;;  %v1317_v63 = vld [vmem:[%s3239_s2 + $0x1d0] sm:$0xff]  ;;  %v3349_v6 = vld [vmem:[#allocation17_spill] sm:$0xff] }
 0x1aa   :  { %v1583_v35 = vpop.eup %1582  ;;  %v1247_v39 = vmul.f32 %v2703_v44, %v1181_v26  ;;  %v1182_v51 = vadd.f32 %v3044_v19, %v1111_v18  ;;  %1592 = vrsqrt.f32 %v919_v40 }
 0x1ab   :  { %v1585_v56 = vpop.eup %1584  ;;  %v1042_v13 = vmul.f32 %v1583_v35, %v3343_v32  ;;  %v921_v15 = vadd.f32 1e-05, %v857_v11  ;;  %v922_v58 = vadd.f32 1e-05, %v858_v5  ;;  %1438 = vst.msk [vmem:[#allocation3 + $0x198] sm:$0xff] %vm217_vm0, %v1374_v12  ;;  %v1183_v41 = vadd.f32 %v3044_v19, %v1112_v10  ;;  %v3350_v10 = vld [vmem:[#allocation18_spill] sm:$0xff] }
 0x1ac   :  { %v1375_v54 = vadd.f32 %v1311_v53, %v1247_v39  ;;  %v1248_v62 = vmul.f32 %v2703_v44, %v1182_v51  ;;  %v1043_v17 = vmul.f32 %v1585_v56, %v3344_v34  ;;  %1594 = vrsqrt.f32 %v920_v37  ;;  %v1318_v37 = vld [vmem:[%s3239_s2 + $0x1d8] sm:$0xff]  ;;  %v1319_v51 = vld [vmem:[%s3239_s2 + $0x1e0] sm:$0xff] }
 0x1ad   :  { %v1587_v0 = vpop.eup %1586  ;;  %v1113_v47 = vmul.f32 %v3034_v21, %v1042_v13  ;;  %v1249_v46 = vmul.f32 %v2703_v44, %v1183_v41  ;;  %1596 = vrsqrt.f32 %v921_v15 }
 0x1ae   :  { %1439 = vst.msk [vmem:[#allocation3 + $0x1a0] sm:$0xff] %vm217_vm0, %v1375_v54  ;;  %v1376_v14 = vadd.f32 %v1312_v16, %v1248_v62  ;;  %v1114_v33 = vmul.f32 %v3034_v21, %v1043_v17  ;;  %v1044_v23 = vmul.f32 %v1587_v0, %v3345_v61  ;;  %1598 = vrsqrt.f32 %v922_v58  ;;  %v3351_v16 = vld [vmem:[#allocation28_spill] sm:$0xff]  ;;  %v1320_v54 = vld [vmem:[%s3239_s2 + $0x1e8] sm:$0xff] }
 0x1af   :  { %v1184_v59 = vadd.f32 %v3044_v19, %v1113_v47  ;;  %v1377_v29 = vadd.f32 %v1313_v49, %v1249_v46 }
 0x1b0   :  { %1440 = vst.msk [vmem:[#allocation3 + $0x1a8] sm:$0xff] %vm217_vm0, %v1376_v14  ;;  %v1185_v45 = vadd.f32 %v3044_v19, %v1114_v33  ;;  %v1115_v43 = vmul.f32 %v3034_v21, %v1044_v23  ;;  %v1321_v14 = vld [vmem:[%s3239_s2 + $0x1f0] sm:$0xff] }
 0x1b1   :  { %v1589_v2 = vpop.eup %1588  ;;  %v1250_v57 = vmul.f32 %v2703_v44, %v1184_v59  ;;  %1441 = vst.msk [vmem:[#allocation3 + $0x1b0] sm:$0xff] %vm217_vm0, %v1377_v29 }
 0x1b2   :  { %v1251_v25 = vmul.f32 %v2703_v44, %v1185_v45  ;;  %v1186_v22 = vadd.f32 %v3044_v19, %v1115_v43  ;;  %v1045_v50 = vmul.f32 %v1589_v2, %v3346_v27  ;;  %v1591_v9 = vpop.eup %1590 }
 0x1b3   :  { %v1378_v42 = vadd.f32 %v1314_v3, %v1250_v57  ;;  %v1046_v1 = vmul.f32 %v1591_v9, %v3347_v8 }
 0x1b4   :  { %v1379_v31 = vadd.f32 %v1315_v55, %v1251_v25  ;;  %v1252_v60 = vmul.f32 %v2703_v44, %v1186_v22  ;;  %v1116_v28 = vmul.f32 %v3034_v21, %v1045_v50  ;;  %v1593_v7 = vpop.eup %1592 }
 0x1b5   :  { %1442 = vst.msk [vmem:[#allocation3 + $0x1b8] sm:$0xff] %vm217_vm0, %v1378_v42  ;;  %v1117_v20 = vmul.f32 %v3034_v21, %v1046_v1  ;;  %v1047_v52 = vmul.f32 %v1593_v7, %v3348_v4 }
 0x1b6   :  { %1443 = vst.msk [vmem:[#allocation3 + $0x1c0] sm:$0xff] %vm217_vm0, %v1379_v31  ;;  %v1380_v24 = vadd.f32 %v1316_v30, %v1252_v60  ;;  %v1187_v48 = vadd.f32 %v3044_v19, %v1116_v28  ;;  %v1595_v40 = vpop.eup %1594 }
 0x1b7   :  { %v1188_v18 = vadd.f32 %v3044_v19, %v1117_v20  ;;  %v1118_v36 = vmul.f32 %v3034_v21, %v1047_v52  ;;  %v1048_v38 = vmul.f32 %v1595_v40, %v3349_v6  ;;  %v1597_v53 = vpop.eup %1596 }
 0x1b8   :  { %1444 = vst.msk [vmem:[#allocation3 + $0x1c8] sm:$0xff] %vm217_vm0, %v1380_v24  ;;  %v1253_v26 = vmul.f32 %v2703_v44, %v1187_v48  ;;  %v1599_v11 = vpop.eup %1598  ;;  %v1049_v56 = vmul.f32 %v1597_v53, %v3350_v10 }
 0x1b9   :  { %v1254_v35 = vmul.f32 %v2703_v44, %v1188_v18  ;;  %v1189_v12 = vadd.f32 %v3044_v19, %v1118_v36  ;;  %v1119_v39 = vmul.f32 %v3034_v21, %v1048_v38  ;;  %v1050_v32 = vmul.f32 %v1599_v11, %v3351_v16 }
 0x1ba   :  { %v1381_v5 = vadd.f32 %v1317_v63, %v1253_v26  ;;  %v1120_v62 = vmul.f32 %v3034_v21, %v1049_v56 }
 0x1bb   :  { %v1382_v13 = vadd.f32 %v1318_v37, %v1254_v35  ;;  %v1255_v15 = vmul.f32 %v2703_v44, %v1189_v12  ;;  %v1190_v58 = vadd.f32 %v3044_v19, %v1119_v39  ;;  %v1121_v41 = vmul.f32 %v3034_v21, %v1050_v32  ;;  %v1322_v21 = vld [vmem:[%s3239_s2 + $0x1f8] sm:$0xff] }
 0x1bc   :  { %1445 = vst.msk [vmem:[#allocation3 + $0x1d0] sm:$0xff] %vm217_vm0, %v1381_v5  ;;  %v1191_v0 = vadd.f32 %v3044_v19, %v1120_v62 }
 0x1bd   :  { %1446 = vst.msk [vmem:[#allocation3 + $0x1d8] sm:$0xff] %vm217_vm0, %v1382_v13  ;;  %v1383_v34 = vadd.f32 %v1319_v51, %v1255_v15  ;;  %v1256_v17 = vmul.f32 %v2703_v44, %v1190_v58  ;;  %v1192_v49 = vadd.f32 %v3044_v19, %v1121_v41 }
 0x1be   :  { %v1257_v46 = vmul.f32 %v2703_v44, %v1191_v0 }
 0x1bf   :  { %1447 = vst.msk [vmem:[#allocation3 + $0x1e0] sm:$0xff] %vm217_vm0, %v1383_v34  ;;  %v1384_v47 = vadd.f32 %v1320_v54, %v1256_v17  ;;  %v1258_v33 = vmul.f32 %v2703_v44, %v1192_v49 }
 0x1c0   :  { %v1385_v19 = vadd.f32 %v1321_v14, %v1257_v46 }
 0x1c1   :  { %1448 = vst.msk [vmem:[#allocation3 + $0x1e8] sm:$0xff] %vm217_vm0, %v1384_v47  ;;  %v1386_v61 = vadd.f32 %v1322_v21, %v1258_v33 }
 0x1c2   :  { %1449 = vst.msk [vmem:[#allocation3 + $0x1f0] sm:$0xff] %vm217_vm0, %v1385_v19 }
 0x1c3   :  { %1450 = vst.msk [vmem:[#allocation3 + $0x1f8] sm:$0xff] %vm217_vm0, %v1386_v61 }
 0x1c4   :  { %1613 = shalt.err (!%p1610_p4)
}
 0x1c5   :  { %s1614_s14 = scalar_lea.hbm %s3243_s6, 8192 }
 0x1c6   :  { %p1615_p5 = scmp.ne.s32.totalorder %s3243_s6, %s1614_s14  ;;  %p1618_p6 = scmp.lt.u32.totalorder %s1614_s14, %s3243_s6 }
 0x1c8   :  { %p1620_p7 = pnand %p1618_p6, %p1615_p5 }
 0x1ca   :  { %1623 = shalt.err (!%p1620_p7)
}
 0x1cb   :  { %s1627_s5 = smov 128   ;;  %s1628_s19 = smov 8  }
 0x1cc   :  { %1462 = dma.vmem_to_hbm [thread:$0]  %s1457_s0, 8192, %s3243_s6, [#allocation4], %s1627_s5, %s1627_s5, %s1628_s19  }
 0x1cd   :  { %1624 = dma.done.wait [#allocation4], 8192  }
 0x1ce   :  { %1625 = vsyncadd [#allocation4], 4294959104 }
 0x1cf   :  { %1466 = vsyncpa [#allocation4], 1 }

// kernel: coswin_forward.2
= control target key start
LH: loop header
LB: loop body
LE: loop exit
PB: predicated region body
PF: predicated region fallthrough
CT: control target
= control target key end

     0   :  { %s13741_s18 = smov 0   ;;  %s18410_s0 = inlined_call_operand.vmem [shape: f32[2048,32], index: 0, kind: input, shape index: {}]   ;;  %s18411_s1 = inlined_call_operand.vmem [shape: f32[32,24], index: 1, kind: input, shape index: {}]   ;;  %s18412_s2 = inlined_call_operand.vmem [shape: f32[1,24], index: 2, kind: input, shape index: {}]   ;;  %s18413_s3 = inlined_call_operand.vmem [shape: f32[8,32], index: 3, kind: input, shape index: {}]   ;;  %s18414_s4 = inlined_call_operand.vmem [shape: f32[1,32], index: 4, kind: input, shape index: {}]   ;;  %s18415_s5 = inlined_call_operand.vmem [shape: f32[2048,32], index: 5, kind: output, shape index: {}]  }
   0x1 LB: > { %s9172_s19 = sadd.s32 4294967295, %s13707_s18   ;;  %p9176_p0 = scmp.ge.s32.totalorder %s13707_s18, 1  ;;  %s13707_s18 = sphi %s13741_s18, %s15_s18  }
   0x2   : > { %p188_p1 = scmp.lt.s32.totalorder %s13707_s18, 3 }
   0x4   : > { %p189_p2 = pnand %p9176_p0, %p188_p1 }
   0x6   : > { %192 = sbr.rel (%p189_p2) target bundleno = 2830 (0xb0e), region = 40 }
   0xd   : > { %v356_v0 = vld [vmem:[%s18411_s1] sm:$0xff]  ;;  %v357_v1 = vld [vmem:[%s18411_s1 + $0x8] sm:$0xff]  ;;  %v358_v2 = vld [vmem:[%s18411_s1 + $0x10] sm:$0xff]  ;;  %s9177_s26 = sshll.u32 %s9172_s19, 7  ;;  %vm367_vm0 = vcmask 261120   ;;  %vm1481_vm1 = vcmask 64512  }
   0xe   : > { %v11888_v3 = vpack.c.bf16 %v357_v1, %v356_v0  ;;  %v359_v4 = vld [vmem:[%s18411_s1 + $0x18] sm:$0xff]  ;;  %p217_p3 = scmp.lt.s32.totalorder %s9177_s26, 255  ;;  %s13709_s10 = smov 112   ;;  %vm14360_vm2 = vmpackc.low %vm1481_vm1, %vm1481_vm1  ;;  %vm4034_vm3 = vcmask 523264  }
   0xf   : > { %v11892_v5 = vpack.c.bf16 %v359_v4, %v358_v2  ;;  %s13710_s11 = smov 120  }
  0x10   : > { %11889 = vmatprep.subr.bf16.mxu0 %v11888_v3  ;;  %s19394_s26 = smov (!%p217_p3, %s9177_s26), 255 }
  0x11   : > { %11891 = vmatpush3.bf16.msra.mxu0 %v11888_v3  ;;  %s9178_s29 = sshll.u32 %s19394_s26, 3 }
  0x12   : > { %11893 = vmatprep.subr.bf16.mxu0 %v11892_v5  ;;  %s13769_s7 = scalar_lea.vmem %s18410_s0, %s9178_s29  ;;  %s18013_s21 = scalar_lea.vmem %s18415_s5, %s9178_s29 }
  0x13   : > { %v228_v6 = vld [vmem:[%s13769_s7] sm:$0xff]  ;;  %v229_v7 = vld [vmem:[%s13769_s7 + $0x8] sm:$0xff]  ;;  %v230_v8 = vld [vmem:[%s13769_s7 + $0x10] sm:$0xff] }
  0x14   : > { %10606 = vmatprep.mubr.msk.f32.mxu0 %vm367_vm0, %v228_v6  ;;  %v231_v9 = vld [vmem:[%s13769_s7 + $0x18] sm:$0xff]  ;;  %v232_v10 = vld [vmem:[%s13769_s7 + $0x20] sm:$0xff]  ;;  %v233_v11 = vld [vmem:[%s13769_s7 + $0x28] sm:$0xff] }
  0x15   : > { %11895 = vmatpush3.bf16.msra.mxu0 %v11892_v5  ;;  %v234_v12 = vld [vmem:[%s13769_s7 + $0x30] sm:$0xff]  ;;  %v235_v13 = vld [vmem:[%s13769_s7 + $0x38] sm:$0xff]  ;;  %v236_v14 = vld [vmem:[%s13769_s7 + $0x40] sm:$0xff] }
  0x16   : > { %v237_v15 = vld [vmem:[%s13769_s7 + $0x48] sm:$0xff]  ;;  %v238_v16 = vld [vmem:[%s13769_s7 + $0x50] sm:$0xff]  ;;  %v239_v17 = vld [vmem:[%s13769_s7 + $0x58] sm:$0xff] }
  0x17   : > { %v240_v18 = vld [vmem:[%s13769_s7 + $0x60] sm:$0xff]  ;;  %v241_v19 = vld [vmem:[%s13769_s7 + $0x68] sm:$0xff]  ;;  %v242_v20 = vld [vmem:[%s13769_s7 + $0x70] sm:$0xff] }
  0x18   : > { %10607 = vmatmul.mubr.msk.f32.vlgmr.msra.gmra.mrb[0].mxu0 %vm367_vm0, %v229_v7  ;;  %v243_v21 = vld [vmem:[%s13769_s7 + $0x78] sm:$0xff]  ;;  %v244_v22 = vld [vmem:[%s13769_s7 + $0x80] sm:$0xff]  ;;  %v245_v23 = vld [vmem:[%s13769_s7 + $0x88] sm:$0xff] }
  0x19   : > { %10609 = vmatprep.mubr.msk.f32.mxu0 %vm367_vm0, %v230_v8  ;;  %v246_v24 = vld [vmem:[%s13769_s7 + $0x90] sm:$0xff]  ;;  %v247_v25 = vld [vmem:[%s13769_s7 + $0x98] sm:$0xff]  ;;  %v248_v26 = vld [vmem:[%s13769_s7 + $0xa0] sm:$0xff] }
  0x1a   : > { %v249_v27 = vld [vmem:[%s13769_s7 + $0xa8] sm:$0xff]  ;;  %v250_v28 = vld [vmem:[%s13769_s7 + $0xb0] sm:$0xff]  ;;  %v251_v29 = vld [vmem:[%s13769_s7 + $0xb8] sm:$0xff] }
  0x1b   : > { %v252_v30 = vld [vmem:[%s13769_s7 + $0xc0] sm:$0xff]  ;;  %v253_v31 = vld [vmem:[%s13769_s7 + $0xc8] sm:$0xff]  ;;  %v254_v32 = vld [vmem:[%s13769_s7 + $0xd0] sm:$0xff] }
  0x1c   : > { %10610 = vmatmul.mubr.msk.f32.gmra.mrb[2].mxu0 %vm367_vm0, %v231_v9  ;;  %v255_v33 = vld [vmem:[%s13769_s7 + $0xd8] sm:$0xff]  ;;  %v256_v34 = vld [vmem:[%s13769_s7 + $0xe0] sm:$0xff]  ;;  %v257_v35 = vld [vmem:[%s13769_s7 + $0xe8] sm:$0xff] }
  0x1d   : > { %10612 = vmatprep.mubr.msk.f32.mxu0 %vm367_vm0, %v232_v10  ;;  %v258_v36 = vld [vmem:[%s13769_s7 + $0xf0] sm:$0xff]  ;;  %v259_v37 = vld [vmem:[%s13769_s7 + $0xf8] sm:$0xff]  ;;  %v260_v38 = vld [vmem:[%s13769_s7 + $0x100] sm:$0xff] }
  0x1e   : > { %v261_v39 = vld [vmem:[%s13769_s7 + $0x108] sm:$0xff]  ;;  %v262_v40 = vld [vmem:[%s13769_s7 + $0x110] sm:$0xff]  ;;  %v263_v41 = vld [vmem:[%s13769_s7 + $0x118] sm:$0xff] }
  0x1f   : > { %v264_v42 = vld [vmem:[%s13769_s7 + $0x120] sm:$0xff]  ;;  %v265_v43 = vld [vmem:[%s13769_s7 + $0x128] sm:$0xff]  ;;  %v266_v44 = vld [vmem:[%s13769_s7 + $0x130] sm:$0xff] }
  0x20   : > { %10613 = vmatmul.mubr.msk.f32.gmra.mrb[4].mxu0 %vm367_vm0, %v233_v11  ;;  %v267_v45 = vld [vmem:[%s13769_s7 + $0x138] sm:$0xff]  ;;  %v268_v46 = vld [vmem:[%s13769_s7 + $0x140] sm:$0xff]  ;;  %v269_v47 = vld [vmem:[%s13769_s7 + $0x148] sm:$0xff] }
  0x21   : > { %10615 = vmatprep.mubr.msk.f32.mxu0 %vm367_vm0, %v234_v12  ;;  %v270_v48 = vld [vmem:[%s13769_s7 + $0x150] sm:$0xff]  ;;  %v271_v49 = vld [vmem:[%s13769_s7 + $0x158] sm:$0xff]  ;;  %v272_v50 = vld [vmem:[%s13769_s7 + $0x160] sm:$0xff] }
  0x22   : > { %v273_v51 = vld [vmem:[%s13769_s7 + $0x168] sm:$0xff]  ;;  %v274_v52 = vld [vmem:[%s13769_s7 + $0x170] sm:$0xff]  ;;  %v275_v53 = vld [vmem:[%s13769_s7 + $0x178] sm:$0xff] }
  0x23   : > { %v276_v54 = vld [vmem:[%s13769_s7 + $0x180] sm:$0xff]  ;;  %v277_v55 = vld [vmem:[%s13769_s7 + $0x188] sm:$0xff]  ;;  %v278_v56 = vld [vmem:[%s13769_s7 + $0x190] sm:$0xff] }
  0x24   : > { %10616 = vmatmul.mubr.msk.f32.gmra.mrb[6].mxu0 %vm367_vm0, %v235_v13  ;;  %v279_v57 = vld [vmem:[%s13769_s7 + $0x198] sm:$0xff]  ;;  %v280_v58 = vld [vmem:[%s13769_s7 + $0x1a0] sm:$0xff]  ;;  %v281_v59 = vld [vmem:[%s13769_s7 + $0x1a8] sm:$0xff] }
  0x25   : > { %10618 = vmatprep.mubr.msk.f32.mxu0 %vm367_vm0, %v236_v14  ;;  %v282_v60 = vld [vmem:[%s13769_s7 + $0x1b0] sm:$0xff]  ;;  %v283_v61 = vld [vmem:[%s13769_s7 + $0x1b8] sm:$0xff]  ;;  %v284_v62 = vld [vmem:[%s13769_s7 + $0x1c0] sm:$0xff] }
  0x26   : > { %v285_v63 = vld [vmem:[%s13769_s7 + $0x1c8] sm:$0xff]  ;;  %v286_v0 = vld [vmem:[%s13769_s7 + $0x1d0] sm:$0xff]  ;;  %v287_v1 = vld [vmem:[%s13769_s7 + $0x1d8] sm:$0xff] }
  0x27   : > { %v288_v2 = vld [vmem:[%s13769_s7 + $0x1e0] sm:$0xff]  ;;  %v289_v3 = vld [vmem:[%s13769_s7 + $0x1e8] sm:$0xff]  ;;  %v290_v4 = vld [vmem:[%s13769_s7 + $0x1f0] sm:$0xff] }
  0x28   : > { %10619 = vmatmul.mubr.msk.f32.gmra.mrb[8].mxu0 %vm367_vm0, %v237_v15  ;;  %v291_v5 = vld [vmem:[%s13769_s7 + $0x1f8] sm:$0xff]  ;;  %v292_v6 = vld [vmem:[%s13769_s7 + $0x200] sm:$0xff]  ;;  %v293_v7 = vld [vmem:[%s13769_s7 + $0x208] sm:$0xff] }
  0x29   : > { %10621 = vmatprep.mubr.msk.f32.mxu0 %vm367_vm0, %v238_v16  ;;  %v294_v8 = vld [vmem:[%s13769_s7 + $0x210] sm:$0xff]  ;;  %v295_v9 = vld [vmem:[%s13769_s7 + $0x218] sm:$0xff]  ;;  %v296_v10 = vld [vmem:[%s13769_s7 + $0x220] sm:$0xff] }
  0x2a   : > { %v297_v11 = vld [vmem:[%s13769_s7 + $0x228] sm:$0xff]  ;;  %v298_v12 = vld [vmem:[%s13769_s7 + $0x230] sm:$0xff]  ;;  %v299_v13 = vld [vmem:[%s13769_s7 + $0x238] sm:$0xff] }
  0x2b   : > { %v300_v14 = vld [vmem:[%s13769_s7 + $0x240] sm:$0xff]  ;;  %v301_v15 = vld [vmem:[%s13769_s7 + $0x248] sm:$0xff]  ;;  %v302_v16 = vld [vmem:[%s13769_s7 + $0x250] sm:$0xff] }
  0x2c   : > { %10622 = vmatmul.mubr.msk.f32.gmra.mrb[10].mxu0 %vm367_vm0, %v239_v17  ;;  %v303_v17 = vld [vmem:[%s13769_s7 + $0x258] sm:$0xff] }
  0x2d   : > { %10624 = vmatprep.mubr.msk.f32.mxu0 %vm367_vm0, %v240_v18  ;;  %v304_v18 = vld [vmem:[%s13769_s7 + $0x260] sm:$0xff] }
  0x30   : > { %10625 = vmatmul.mubr.msk.f32.gmra.mrb[12].mxu0 %vm367_vm0, %v241_v19  ;;  %v305_v19 = vld [vmem:[%s13769_s7 + $0x268] sm:$0xff] }
  0x31   : > { %10627 = vmatprep.mubr.msk.f32.mxu0 %vm367_vm0, %v242_v20  ;;  %v306_v20 = vld [vmem:[%s13769_s7 + $0x270] sm:$0xff] }
  0x34   : > { %10628 = vmatmul.mubr.msk.f32.gmra.mrb[14].mxu0 %vm367_vm0, %v243_v21  ;;  %v307_v21 = vld [vmem:[%s13769_s7 + $0x278] sm:$0xff] }
  0x35   : > { %10630 = vmatprep.mubr.msk.f32.mxu0 %vm367_vm0, %v244_v22  ;;  %v308_v22 = vld [vmem:[%s13769_s7 + $0x280] sm:$0xff] }
  0x38   : > { %10631 = vmatmul.mubr.msk.f32.gmra.mrb[16].mxu0 %vm367_vm0, %v245_v23  ;;  %v309_v23 = vld [vmem:[%s13769_s7 + $0x288] sm:$0xff] }
  0x39   : > { %10633 = vmatprep.mubr.msk.f32.mxu0 %vm367_vm0, %v246_v24  ;;  %v310_v24 = vld [vmem:[%s13769_s7 + $0x290] sm:$0xff] }
  0x3c   : > { %10634 = vmatmul.mubr.msk.f32.gmra.mrb[18].mxu0 %vm367_vm0, %v247_v25  ;;  %v311_v25 = vld [vmem:[%s13769_s7 + $0x298] sm:$0xff] }
  0x3d   : > { %10636 = vmatprep.mubr.msk.f32.mxu0 %vm367_vm0, %v248_v26  ;;  %v312_v26 = vld [vmem:[%s13769_s7 + $0x2a0] sm:$0xff] }
  0x40   : > { %10637 = vmatmul.mubr.msk.f32.gmra.mrb[20].mxu0 %vm367_vm0, %v249_v27  ;;  %v313_v27 = vld [vmem:[%s13769_s7 + $0x2a8] sm:$0xff] }
  0x41   : > { %10639 = vmatprep.mubr.msk.f32.mxu0 %vm367_vm0, %v250_v28  ;;  %v314_v28 = vld [vmem:[%s13769_s7 + $0x2b0] sm:$0xff] }
  0x44   : > { %10640 = vmatmul.mubr.msk.f32.gmra.mrb[22].mxu0 %vm367_vm0, %v251_v29  ;;  %v315_v29 = vld [vmem:[%s13769_s7 + $0x2b8] sm:$0xff] }
  0x45   : > { %10642 = vmatprep.mubr.msk.f32.mxu0 %vm367_vm0, %v252_v30  ;;  %v316_v30 = vld [vmem:[%s13769_s7 + $0x2c0] sm:$0xff] }
  0x48   : > { %10643 = vmatmul.mubr.msk.f32.gmra.mrb[24].mxu0 %vm367_vm0, %v253_v31  ;;  %v317_v31 = vld [vmem:[%s13769_s7 + $0x2c8] sm:$0xff] }
  0x49   : > { %10645 = vmatprep.mubr.msk.f32.mxu0 %vm367_vm0, %v254_v32  ;;  %v318_v32 = vld [vmem:[%s13769_s7 + $0x2d0] sm:$0xff] }
  0x4c   : > { %10646 = vmatmul.mubr.msk.f32.gmra.mrb[26].mxu0 %vm367_vm0, %v255_v33  ;;  %v319_v33 = vld [vmem:[%s13769_s7 + $0x2d8] sm:$0xff] }
  0x4d   : > { %10648 = vmatprep.mubr.msk.f32.mxu0 %vm367_vm0, %v256_v34  ;;  %v320_v34 = vld [vmem:[%s13769_s7 + $0x2e0] sm:$0xff] }
  0x50   : > { %10649 = vmatmul.mubr.msk.f32.gmra.mrb[28].mxu0 %vm367_vm0, %v257_v35  ;;  %v321_v35 = vld [vmem:[%s13769_s7 + $0x2e8] sm:$0xff] }
  0x51   : > { %10651 = vmatprep.mubr.msk.f32.mxu0 %vm367_vm0, %v258_v36  ;;  %v322_v36 = vld [vmem:[%s13769_s7 + $0x2f0] sm:$0xff] }
  0x54   : > { %10652 = vmatmul.mubr.msk.f32.gmra.mrb[30].mxu0 %vm367_vm0, %v259_v37  ;;  %v323_v37 = vld [vmem:[%s13769_s7 + $0x2f8] sm:$0xff] }
  0x55   : > { %10654 = vmatprep.mubr.msk.f32.mxu0 %vm367_vm0, %v260_v38  ;;  %v324_v38 = vld [vmem:[%s13769_s7 + $0x300] sm:$0xff] }
  0x58   : > { %10655 = vmatmul.mubr.msk.f32.gmra.mrb[32].mxu0 %vm367_vm0, %v261_v39  ;;  %v325_v39 = vld [vmem:[%s13769_s7 + $0x308] sm:$0xff] }
  0x59   : > { %10657 = vmatprep.mubr.msk.f32.mxu0 %vm367_vm0, %v262_v40  ;;  %v326_v40 = vld [vmem:[%s13769_s7 + $0x310] sm:$0xff] }
  0x5c   : > { %10658 = vmatmul.mubr.msk.f32.gmra.mrb[34].mxu0 %vm367_vm0, %v263_v41  ;;  %v327_v41 = vld [vmem:[%s13769_s7 + $0x318] sm:$0xff] }
  0x5d   : > { %10660 = vmatprep.mubr.msk.f32.mxu0 %vm367_vm0, %v264_v42  ;;  %v328_v42 = vld [vmem:[%s13769_s7 + $0x320] sm:$0xff] }
  0x60   : > { %10661 = vmatmul.mubr.msk.f32.gmra.mrb[36].mxu0 %vm367_vm0, %v265_v43  ;;  %v329_v43 = vld [vmem:[%s13769_s7 + $0x328] sm:$0xff] }
  0x61   : > { %10663 = vmatprep.mubr.msk.f32.mxu0 %vm367_vm0, %v266_v44  ;;  %v330_v44 = vld [vmem:[%s13769_s7 + $0x330] sm:$0xff] }
  0x64   : > { %10664 = vmatmul.mubr.msk.f32.gmra.mrb[38].mxu0 %vm367_vm0, %v267_v45  ;;  %v331_v45 = vld [vmem:[%s13769_s7 + $0x338] sm:$0xff] }
  0x65   : > { %10666 = vmatprep.mubr.msk.f32.mxu0 %vm367_vm0, %v268_v46  ;;  %v332_v46 = vld [vmem:[%s13769_s7 + $0x340] sm:$0xff] }
  0x68   : > { %10667 = vmatmul.mubr.msk.f32.gmra.mrb[40].mxu0 %vm367_vm0, %v269_v47  ;;  %v333_v47 = vld [vmem:[%s13769_s7 + $0x348] sm:$0xff] }
  0x69   : > { %10669 = vmatprep.mubr.msk.f32.mxu0 %vm367_vm0, %v270_v48  ;;  %v334_v48 = vld [vmem:[%s13769_s7 + $0x350] sm:$0xff] }
  0x6c   : > { %10670 = vmatmul.mubr.msk.f32.gmra.mrb[42].mxu0 %vm367_vm0, %v271_v49  ;;  %v13987_v49 = vld [vmem:[%s18412_s2] ss:$0 sm:$0xff] }
  0x6d   : > { %10672 = vmatprep.mubr.msk.f32.mxu0 %vm367_vm0, %v272_v50  ;;  %v335_v50 = vld [vmem:[%s13769_s7 + $0x358] sm:$0xff] }
  0x70   : > { %10673 = vmatmul.mubr.msk.f32.gmra.mrb[44].mxu0 %vm367_vm0, %v273_v51  ;;  %v336_v51 = vld [vmem:[%s13769_s7 + $0x360] sm:$0xff] }
  0x71   : > { %10675 = vmatprep.mubr.msk.f32.mxu0 %vm367_vm0, %v274_v52 }
  0x74   : > { %10676 = vmatmul.mubr.msk.f32.gmra.mrb[46].mxu0 %vm367_vm0, %v275_v53 }
  0x75   : > { %10678 = vmatprep.mubr.msk.f32.mxu0 %vm367_vm0, %v276_v54 }
  0x78   : > { %10679 = vmatmul.mubr.msk.f32.gmra.mrb[48].mxu0 %vm367_vm0, %v277_v55 }
  0x79   : > { %10681 = vmatprep.mubr.msk.f32.mxu0 %vm367_vm0, %v278_v56  ;;  %v337_v56 = vld [vmem:[%s13769_s7 + $0x368] sm:$0xff] }
  0x7c   : > { %10682 = vmatmul.mubr.msk.f32.gmra.mrb[50].mxu0 %vm367_vm0, %v279_v57 }
  0x7d   : > { %10684 = vmatprep.mubr.msk.f32.mxu0 %vm367_vm0, %v280_v58 }
  0x80   : > { %10685 = vmatmul.mubr.msk.f32.gmra.mrb[52].mxu0 %vm367_vm0, %v281_v59  ;;  %v338_v59 = vld [vmem:[%s13769_s7 + $0x370] sm:$0xff] }
  0x81   : > { %10687 = vmatprep.mubr.msk.f32.mxu0 %vm367_vm0, %v282_v60 }
  0x84   : > { %10688 = vmatmul.mubr.msk.f32.gmra.mrb[54].mxu0 %vm367_vm0, %v283_v61 }
  0x85   : > { %10690 = vmatprep.mubr.msk.f32.mxu0 %vm367_vm0, %v284_v62 }
  0x88   : > { %10691 = vmatmul.mubr.msk.f32.gmra.mrb[56].mxu0 %vm367_vm0, %v285_v63  ;;  %v339_v63 = vld [vmem:[%s13769_s7 + $0x378] sm:$0xff] }
  0x89   : > { %10693 = vmatprep.mubr.msk.f32.mxu0 %vm367_vm0, %v286_v0 }
  0x8c   : > { %10694 = vmatmul.mubr.msk.f32.gmra.mrb[58].mxu0 %vm367_vm0, %v287_v1 }
  0x8d   : > { %10696 = vmatprep.mubr.msk.f32.mxu0 %vm367_vm0, %v288_v2  ;;  %v340_v2 = vld [vmem:[%s13769_s7 + $0x380] sm:$0xff] }
  0x90   : > { %10697 = vmatmul.mubr.msk.f32.gmra.mrb[60].mxu0 %vm367_vm0, %v289_v3 }
  0x91   : > { %10699 = vmatprep.mubr.msk.f32.mxu0 %vm367_vm0, %v290_v4 }
  0x94   : > { %10700 = vmatmul.mubr.msk.f32.gmra.mrb[62].mxu0 %vm367_vm0, %v291_v5 }
  0x95   : > { %10702 = vmatprep.mubr.msk.f32.mxu0 %vm367_vm0, %v292_v6  ;;  %v341_v6 = vld [vmem:[%s13769_s7 + $0x388] sm:$0xff] }
  0x98   : > { %10703 = vmatmul.mubr.msk.f32.gmra.mrb[64].mxu0 %vm367_vm0, %v293_v7 }
  0x99   : > { %10705 = vmatprep.mubr.msk.f32.mxu0 %vm367_vm0, %v294_v8 }
  0x9c   : > { %10706 = vmatmul.mubr.msk.f32.gmra.mrb[66].mxu0 %vm367_vm0, %v295_v9  ;;  %v342_v9 = vld [vmem:[%s13769_s7 + $0x390] sm:$0xff] }
  0x9d   : > { %10708 = vmatprep.mubr.msk.f32.mxu0 %vm367_vm0, %v296_v10 }
  0xa0   : > { %10709 = vmatmul.mubr.msk.f32.gmra.mrb[68].mxu0 %vm367_vm0, %v297_v11 }
  0xa1   : > { %10711 = vmatprep.mubr.msk.f32.mxu0 %vm367_vm0, %v298_v12 }
  0xa4   : > { %10712 = vmatmul.mubr.msk.f32.gmra.mrb[70].mxu0 %vm367_vm0, %v299_v13  ;;  %v343_v13 = vld [vmem:[%s13769_s7 + $0x398] sm:$0xff] }
  0xa5   : > { %10714 = vmatprep.mubr.msk.f32.mxu0 %vm367_vm0, %v300_v14  ;;  %v344_v14 = vld [vmem:[%s13769_s7 + $0x3a0] sm:$0xff] }
  0xa8   : > { %10715 = vmatmul.mubr.msk.f32.gmra.mrb[72].mxu0 %vm367_vm0, %v301_v15 }
  0xa9   : > { %10717 = vmatprep.mubr.msk.f32.mxu0 %vm367_vm0, %v302_v16 }
  0xac   : > { %10718 = vmatmul.mubr.msk.f32.gmra.mrb[74].mxu0 %vm367_vm0, %v303_v17 }
  0xad   : > { %10720 = vmatprep.mubr.msk.f32.mxu0 %vm367_vm0, %v304_v18 }
  0xb0   : > { %10721 = vmatmul.mubr.msk.f32.gmra.mrb[76].mxu0 %vm367_vm0, %v305_v19 }
  0xb1   : > { %10723 = vmatprep.mubr.msk.f32.mxu0 %vm367_vm0, %v306_v20  ;;  %v345_v20 = vld [vmem:[%s13769_s7 + $0x3a8] sm:$0xff] }
  0xb4   : > { %10724 = vmatmul.mubr.msk.f32.gmra.mrb[78].mxu0 %vm367_vm0, %v307_v21 }
  0xb5   : > { %10726 = vmatprep.mubr.msk.f32.mxu0 %vm367_vm0, %v308_v22 }
  0xb8   : > { %10727 = vmatmul.mubr.msk.f32.gmra.mrb[80].mxu0 %vm367_vm0, %v309_v23  ;;  %v346_v23 = vld [vmem:[%s13769_s7 + $0x3b0] sm:$0xff] }
  0xb9   : > { %10729 = vmatprep.mubr.msk.f32.mxu0 %vm367_vm0, %v310_v24 }
  0xbc   : > { %10730 = vmatmul.mubr.msk.f32.gmra.mrb[82].mxu0 %vm367_vm0, %v311_v25 }
  0xbd   : > { %10732 = vmatprep.mubr.msk.f32.mxu0 %vm367_vm0, %v312_v26 }
  0xc0   : > { %10733 = vmatmul.mubr.msk.f32.gmra.mrb[84].mxu0 %vm367_vm0, %v313_v27  ;;  %v347_v27 = vld [vmem:[%s13769_s7 + $0x3b8] sm:$0xff] }
  0xc1   : > { %10735 = vmatprep.mubr.msk.f32.mxu0 %vm367_vm0, %v314_v28 }
  0xc4   : > { %10736 = vmatmul.mubr.msk.f32.gmra.mrb[86].mxu0 %vm367_vm0, %v315_v29 }
  0xc5   : > { %10738 = vmatprep.mubr.msk.f32.mxu0 %vm367_vm0, %v316_v30  ;;  %v348_v30 = vld [vmem:[%s13769_s7 + $0x3c0] sm:$0xff] }
  0xc8   : > { %10739 = vmatmul.mubr.msk.f32.gmra.mrb[88].mxu0 %vm367_vm0, %v317_v31 }
  0xc9   : > { %10741 = vmatprep.mubr.msk.f32.mxu0 %vm367_vm0, %v318_v32 }
  0xcc   : > { %10742 = vmatmul.mubr.msk.f32.gmra.mrb[90].mxu0 %vm367_vm0, %v319_v33 }
  0xcd   : > { %10744 = vmatprep.mubr.msk.f32.mxu0 %vm367_vm0, %v320_v34  ;;  %v349_v34 = vld [vmem:[%s13769_s7 + $0x3c8] sm:$0xff] }
  0xd0   : > { %10745 = vmatmul.mubr.msk.f32.gmra.mrb[92].mxu0 %vm367_vm0, %v321_v35 }
  0xd1   : > { %10747 = vmatprep.mubr.msk.f32.mxu0 %vm367_vm0, %v322_v36 }
  0xd4   : > { %10748 = vmatmul.mubr.msk.f32.gmra.mrb[94].mxu0 %vm367_vm0, %v323_v37  ;;  %v350_v37 = vld [vmem:[%s13769_s7 + $0x3d0] sm:$0xff] }
  0xd5   : > { %10750 = vmatprep.mubr.msk.f32.mxu0 %vm367_vm0, %v324_v38 }
  0xd8   : > { %10751 = vmatmul.mubr.msk.f32.gmra.mrb[96].mxu0 %vm367_vm0, %v325_v39 }
  0xd9   : > { %10753 = vmatprep.mubr.msk.f32.mxu0 %vm367_vm0, %v326_v40 }
  0xdc   : > { %10754 = vmatmul.mubr.msk.f32.gmra.mrb[98].mxu0 %vm367_vm0, %v327_v41  ;;  %v351_v41 = vld [vmem:[%s13769_s7 + $0x3d8] sm:$0xff] }
  0xdd   : > { %10756 = vmatprep.mubr.msk.f32.mxu0 %vm367_vm0, %v328_v42 }
  0xe0   : > { %10757 = vmatmul.mubr.msk.f32.gmra.mrb[100].mxu0 %vm367_vm0, %v329_v43 }
  0xe1   : > { %10759 = vmatprep.mubr.msk.f32.mxu0 %vm367_vm0, %v330_v44  ;;  %v352_v44 = vld [vmem:[%s13769_s7 + $0x3e0] sm:$0xff] }
  0xe4   : > { %10760 = vmatmul.mubr.msk.f32.gmra.mrb[102].mxu0 %vm367_vm0, %v331_v45 }
  0xe5   : > { %10762 = vmatprep.mubr.msk.f32.mxu0 %vm367_vm0, %v332_v46 }
  0xe8   : > { %10763 = vmatmul.mubr.msk.f32.gmra.mrb[104].mxu0 %vm367_vm0, %v333_v47 }
  0xe9   : > { %10765 = vmatprep.mubr.msk.f32.mxu0 %vm367_vm0, %v334_v48  ;;  %v353_v48 = vld [vmem:[%s13769_s7 + $0x3e8] sm:$0xff] }
  0xeb   : > { %v10608_v52 = vpop.f32.mrb[0].mxu0 }
  0xec   : > { %v13993_v53 = vadd.f32 %v10608_v52, %v13987_v49  ;;  %v818_v54 = vpop.f32.mrb[1].mxu0  ;;  %10766 = vmatmul.mubr.msk.f32.gmra.mrb[106].mxu0 %vm367_vm0, %v335_v50  ;;  %v354_v52 = vld [vmem:[%s13769_s7 + $0x3f0] sm:$0xff] }
  0xed   : > { %v819_v55 = vadd.f32 %v13987_v49, %v818_v54  ;;  %10768 = vmatprep.mubr.msk.f32.mxu0 %vm367_vm0, %v336_v51 }
  0xef   : > { %v10611_v57 = vpop.f32.mrb[2].mxu0  ;;  %10814 = vmatprep.mubr.msk.f32.mxu1 %vm1481_vm1, %v819_v55  ;;  %v12553_v58 = vpack.i.bf16 %v13993_v53, %v819_v55 }
  0xf0   : > { %v14003_v60 = vadd.f32 %v10611_v57, %v13987_v49  ;;  %v828_v61 = vpop.f32.mrb[3].mxu0  ;;  %10769 = vmatmul.mubr.msk.f32.gmra.mrb[108].mxu0 %vm367_vm0, %v337_v56  ;;  %v355_v57 = vld [vmem:[%s13769_s7 + $0x3f8] sm:$0xff] }
  0xf1   : > { %v14007_v62 = vadd.f32 %v13987_v49, %v828_v61  ;;  %12554 = vrot.lane.b32.xlu1 %v12553_v58, %s13709_s10  ;;  %12549 = vrot.lane.b32.xlu0 %v12553_v58, %s13710_s11 }
  0xf2   : > { %10771 = vmatprep.mubr.msk.f32.mxu0 %vm367_vm0, %v338_v59 }
  0xf3   : > { %v10614_v0 = vpop.f32.mrb[4].mxu0  ;;  %v12563_v1 = vpack.i.bf16 %v14003_v60, %v14007_v62 }
  0xf4   : > { %v14017_v3 = vadd.f32 %v10614_v0, %v13987_v49  ;;  %v838_v4 = vpop.f32.mrb[5].mxu0  ;;  %10772 = vmatmul.mubr.msk.f32.gmra.mrb[110].mxu0 %vm367_vm0, %v339_v63 }
  0xf5   : > { %v14021_v5 = vadd.f32 %v13987_v49, %v838_v4  ;;  %12564 = vrot.lane.b32.xlu1 %v12563_v1, %s13709_s10  ;;  %12559 = vrot.lane.b32.xlu0 %v12563_v1, %s13710_s11 }
  0xf6   : > { %10774 = vmatprep.mubr.msk.f32.mxu0 %vm367_vm0, %v340_v2 }
  0xf7   : > { %v10617_v7 = vpop.f32.mrb[6].mxu0  ;;  %v12568_v8 = vpack.i.bf16 %v14017_v3, %v14021_v5 }
  0xf8   : > { %v14031_v10 = vadd.f32 %v10617_v7, %v13987_v49  ;;  %v848_v11 = vpop.f32.mrb[7].mxu0  ;;  %10775 = vmatmul.mubr.msk.f32.gmra.mrb[112].mxu0 %vm367_vm0, %v341_v6 }
  0xf9   : > { %v14035_v12 = vadd.f32 %v13987_v49, %v848_v11  ;;  %12569 = vrot.lane.b32.xlu1 %v12568_v8, %s13710_s11  ;;  %12574 = vrot.lane.b32.xlu0 %v12568_v8, %s13709_s10 }
  0xfa   : > { %10777 = vmatprep.mubr.msk.f32.mxu0 %vm367_vm0, %v342_v9 }
  0xfb   : > { %v10620_v15 = vpop.f32.mrb[8].mxu0  ;;  %v12578_v16 = vpack.i.bf16 %v14031_v10, %v14035_v12 }
  0xfc   : > { %v14045_v17 = vadd.f32 %v10620_v15, %v13987_v49  ;;  %v858_v18 = vpop.f32.mrb[9].mxu0  ;;  %10778 = vmatmul.mubr.msk.f32.gmra.mrb[114].mxu0 %vm367_vm0, %v343_v13 }
  0xfd   : > { %v14049_v19 = vadd.f32 %v13987_v49, %v858_v18  ;;  %12579 = vrot.lane.b32.xlu1 %v12578_v16, %s13710_s11  ;;  %10780 = vmatprep.mubr.msk.f32.mxu0 %vm367_vm0, %v344_v14 }
  0xff   : > { %v10623_v21 = vpop.f32.mrb[10].mxu0  ;;  %v12588_v22 = vpack.i.bf16 %v14045_v17, %v14049_v19 }
 0x100   : > { %v14058_v24 = vadd.f32 %v10623_v21, %v13987_v49  ;;  %v868_v25 = vpop.f32.mrb[11].mxu0  ;;  %10781 = vmatmul.mubr.msk.f32.gmra.mrb[116].mxu0 %vm367_vm0, %v345_v20 }
 0x101   : > { %v14062_v26 = vadd.f32 %v13987_v49, %v868_v25  ;;  %12584 = vrot.lane.b32.xlu1 %v12578_v16, %s13709_s10  ;;  %12589 = vrot.lane.b32.xlu0 %v12588_v22, %s13710_s11 }
 0x102   : > { %10783 = vmatprep.mubr.msk.f32.mxu0 %vm367_vm0, %v346_v23 }
 0x103   : > { %v10626_v28 = vpop.f32.mrb[12].mxu0  ;;  %v12598_v29 = vpack.i.bf16 %v14058_v24, %v14062_v26 }
 0x104   : > { %v14072_v31 = vadd.f32 %v10626_v28, %v13987_v49  ;;  %v878_v32 = vpop.f32.mrb[13].mxu0  ;;  %10784 = vmatmul.mubr.msk.f32.gmra.mrb[118].mxu0 %vm367_vm0, %v347_v27 }
 0x105   : > { %v14076_v33 = vadd.f32 %v13987_v49, %v878_v32  ;;  %12599 = vrot.lane.b32.xlu1 %v12598_v29, %s13710_s11  ;;  %12594 = vrot.lane.b32.xlu0 %v12588_v22, %s13709_s10 }
 0x106   : > { %10786 = vmatprep.mubr.msk.f32.mxu0 %vm367_vm0, %v348_v30 }
 0x107   : > { %v10629_v35 = vpop.f32.mrb[14].mxu0  ;;  %v12608_v36 = vpack.i.bf16 %v14072_v31, %v14076_v33 }
 0x108   : > { %v14086_v38 = vadd.f32 %v10629_v35, %v13987_v49  ;;  %v888_v39 = vpop.f32.mrb[15].mxu0  ;;  %10787 = vmatmul.mubr.msk.f32.gmra.mrb[120].mxu0 %vm367_vm0, %v349_v34 }
 0x109   : > { %v14090_v40 = vadd.f32 %v13987_v49, %v888_v39  ;;  %12604 = vrot.lane.b32.xlu1 %v12598_v29, %s13709_s10  ;;  %12609 = vrot.lane.b32.xlu0 %v12608_v36, %s13710_s11 }
 0x10a   : > { %10789 = vmatprep.mubr.msk.f32.mxu0 %vm367_vm0, %v350_v37 }
 0x10b   : > { %v10632_v42 = vpop.f32.mrb[16].mxu0  ;;  %v12618_v43 = vpack.i.bf16 %v14086_v38, %v14090_v40 }
 0x10c   : > { %v14100_v45 = vadd.f32 %v10632_v42, %v13987_v49  ;;  %v898_v46 = vpop.f32.mrb[17].mxu0  ;;  %10790 = vmatmul.mubr.msk.f32.gmra.mrb[122].mxu0 %vm367_vm0, %v351_v41 }
 0x10d   : > { %v14104_v47 = vadd.f32 %v13987_v49, %v898_v46  ;;  %12619 = vrot.lane.b32.xlu1 %v12618_v43, %s13710_s11  ;;  %12614 = vrot.lane.b32.xlu0 %v12608_v36, %s13709_s10 }
 0x10e   : > { %10792 = vmatprep.mubr.msk.f32.mxu0 %vm367_vm0, %v352_v44 }
 0x10f   : > { %v10635_v50 = vpop.f32.mrb[18].mxu0  ;;  %v12628_v51 = vpack.i.bf16 %v14100_v45, %v14104_v47 }
 0x110   : > { %v14114_v54 = vadd.f32 %v10635_v50, %v13987_v49  ;;  %v908_v55 = vpop.f32.mrb[19].mxu0  ;;  %10793 = vmatmul.mubr.msk.f32.gmra.mrb[124].mxu0 %vm367_vm0, %v353_v48 }
 0x111   : > { %v14118_v56 = vadd.f32 %v13987_v49, %v908_v55  ;;  %12624 = vrot.lane.b32.xlu1 %v12618_v43, %s13709_s10  ;;  %12629 = vrot.lane.b32.xlu0 %v12628_v51, %s13710_s11 }
 0x112   : > { %10795 = vmatprep.mubr.msk.f32.mxu0 %vm367_vm0, %v354_v52 }
 0x113   : > { %v10638_v58 = vpop.f32.mrb[20].mxu0  ;;  %v12638_v59 = vpack.i.bf16 %v14114_v54, %v14118_v56 }
 0x114   : > { %v918_v61 = vpop.f32.mrb[21].mxu0  ;;  %10796 = vmatmul.mubr.msk.f32.gmra.mrb[126].mxu0 %vm367_vm0, %v355_v57  ;;  %v14128_v63 = vadd.f32 %v10638_v58, %v13987_v49 }
 0x115   : > { %v14131_v0 = vadd.f32 %v13987_v49, %v918_v61  ;;  %12639 = vrot.lane.b32.xlu1 %v12638_v59, %s13710_s11  ;;  %12634 = vrot.lane.b32.xlu0 %v12628_v51, %s13709_s10 }
 0x117   : > { %v10641_v1 = vpop.f32.mrb[22].mxu0  ;;  %v12648_v7 = vpack.i.bf16 %v14128_v63, %v14131_v0 }
 0x118   : > { %v14136_v2 = vadd.f32 %v10641_v1, %v13987_v49  ;;  %v928_v4 = vpop.f32.mrb[23].mxu0 }
 0x119   : > { %v14139_v6 = vadd.f32 %v13987_v49, %v928_v4  ;;  %12644 = vrot.lane.b32.xlu0 %v12638_v59, %s13709_s10 }
 0x11b   : > { %v10644_v8 = vpop.f32.mrb[24].mxu0  ;;  %v12658_v9 = vpack.i.bf16 %v14136_v2, %v14139_v6 }
 0x11c   : > { %v14147_v11 = vadd.f32 %v10644_v8, %v13987_v49  ;;  %v938_v13 = vpop.f32.mrb[25].mxu0 }
 0x11d   : > { %v14150_v14 = vadd.f32 %v13987_v49, %v938_v13  ;;  %12659 = vrot.lane.b32.xlu1 %v12658_v9, %s13710_s11  ;;  %12649 = vrot.lane.b32.xlu0 %v12648_v7, %s13710_s11 }
 0x11f   : > { %v10647_v15 = vpop.f32.mrb[26].mxu0  ;;  %v12673_v16 = vpack.i.bf16 %v14147_v11, %v14150_v14 }
 0x120   : > { %v14157_v18 = vadd.f32 %v10647_v15, %v13987_v49  ;;  %v948_v20 = vpop.f32.mrb[27].mxu0 }
 0x121   : > { %v14160_v21 = vadd.f32 %v13987_v49, %v948_v20  ;;  %12674 = vrot.lane.b32.xlu1 %v12673_v16, %s13709_s10  ;;  %12654 = vrot.lane.b32.xlu0 %v12648_v7, %s13709_s10 }
 0x123   : > { %v10650_v22 = vpop.f32.mrb[28].mxu0  ;;  %v12678_v23 = vpack.i.bf16 %v14157_v18, %v14160_v21 }
 0x124   : > { %v14167_v25 = vadd.f32 %v10650_v22, %v13987_v49  ;;  %v958_v27 = vpop.f32.mrb[29].mxu0 }
 0x125   : > { %v14170_v28 = vadd.f32 %v13987_v49, %v958_v27  ;;  %12679 = vrot.lane.b32.xlu1 %v12678_v23, %s13710_s11  ;;  %12664 = vrot.lane.b32.xlu0 %v12658_v9, %s13709_s10 }
 0x127   : > { %v10653_v29 = vpop.f32.mrb[30].mxu0  ;;  %v12693_v32 = vpack.i.bf16 %v14167_v25, %v14170_v28 }
 0x128   : > { %v968_v30 = vpop.f32.mrb[31].mxu0  ;;  %v14177_v34 = vadd.f32 %v10653_v29, %v13987_v49 }
 0x129   : > { %v14180_v35 = vadd.f32 %v13987_v49, %v968_v30  ;;  %12684 = vrot.lane.b32.xlu1 %v12678_v23, %s13709_s10  ;;  %12669 = vrot.lane.b32.xlu0 %v12673_v16, %s13710_s11 }
 0x12b   : > { %v10656_v36 = vpop.f32.mrb[32].mxu0  ;;  %v12698_v42 = vpack.i.bf16 %v14177_v34, %v14180_v35 }
 0x12c   : > { %v14185_v37 = vadd.f32 %v10656_v36, %v13987_v49  ;;  %v978_v39 = vpop.f32.mrb[33].mxu0 }
 0x12d   : > { %v14188_v41 = vadd.f32 %v13987_v49, %v978_v39  ;;  %12694 = vrot.lane.b32.xlu1 %v12693_v32, %s13709_s10  ;;  %12689 = vrot.lane.b32.xlu0 %v12693_v32, %s13710_s11 }
 0x12f   : > { %v10659_v43 = vpop.f32.mrb[34].mxu0  ;;  %v12708_v44 = vpack.i.bf16 %v14185_v37, %v14188_v41 }
 0x130   : > { %v14197_v46 = vadd.f32 %v10659_v43, %v13987_v49  ;;  %v988_v48 = vpop.f32.mrb[35].mxu0 }
 0x131   : > { %v14200_v50 = vadd.f32 %v13987_v49, %v988_v48  ;;  %12699 = vrot.lane.b32.xlu1 %v12698_v42, %s13710_s11  ;;  %12709 = vrot.lane.b32.xlu0 %v12708_v44, %s13710_s11 }
 0x133   : > { %v10662_v51 = vpop.f32.mrb[36].mxu0  ;;  %v12718_v55 = vpack.i.bf16 %v14197_v46, %v14200_v50 }
 0x134   : > { %v998_v52 = vpop.f32.mrb[37].mxu0  ;;  %v14207_v57 = vadd.f32 %v10662_v51, %v13987_v49 }
 0x135   : > { %v14210_v58 = vadd.f32 %v13987_v49, %v998_v52  ;;  %12704 = vrot.lane.b32.xlu1 %v12698_v42, %s13709_s10  ;;  %12714 = vrot.lane.b32.xlu0 %v12708_v44, %s13709_s10 }
 0x137   : > { %v10665_v59 = vpop.f32.mrb[38].mxu0  ;;  %v14224_v7 = vpack.i.bf16 %v14207_v57, %v14210_v58 }
 0x138   : > { %v14215_v61 = vadd.f32 %v10665_v59, %v13987_v49  ;;  %v1008_v1 = vpop.f32.mrb[39].mxu0 }
 0x139   : > { %v14218_v4 = vadd.f32 %v13987_v49, %v1008_v1  ;;  %12719 = vrot.lane.b32.xlu1 %v12718_v55, %s13710_s11  ;;  %12724 = vrot.lane.b32.xlu0 %v12718_v55, %s13709_s10  ;;  %18666 = vst [vmem:[#allocation2_spill] sm:$0xff] %v14224_v7 }
 0x13b   : > { %v10668_v8 = vpop.f32.mrb[40].mxu0  ;;  %v14228_v9 = vpack.i.bf16 %v14215_v61, %v14218_v4 }
 0x13c   : > { %v14231_v13 = vadd.f32 %v10668_v8, %v13987_v49  ;;  %v1018_v15 = vpop.f32.mrb[41].mxu0 }
 0x13d   : > { %18667 = vst [vmem:[#allocation3_spill] sm:$0xff] %v14228_v9  ;;  %v14234_v16 = vadd.f32 %v13987_v49, %v1018_v15  ;;  %12734 = vrot.lane.b32.xlu1 %v14228_v9, %s13710_s11  ;;  %12729 = vrot.lane.b32.xlu0 %v14224_v7, %s13710_s11 }
 0x13e   : > { %18668 = vst [vmem:[#allocation4_spill] sm:$0xff] %v14231_v13 }
 0x13f   : > { %18669 = vst [vmem:[#allocation5_spill] sm:$0xff] %v14234_v16  ;;  %v10671_v20 = vpop.f32.mrb[42].mxu0  ;;  %v12743_v22 = vpack.i.bf16 %v14231_v13, %v14234_v16 }
 0x140   : > { %v14243_v23 = vadd.f32 %v10671_v20, %v13987_v49  ;;  %v1028_v27 = vpop.f32.mrb[43].mxu0 }
 0x141   : > { %v14246_v29 = vadd.f32 %v13987_v49, %v1028_v27  ;;  %12744 = vrot.lane.b32.xlu1 %v12743_v22, %s13709_s10  ;;  %12739 = vrot.lane.b32.xlu0 %v12743_v22, %s13710_s11 }
 0x142   : > { %18670 = vst [vmem:[#allocation6_spill] sm:$0xff] %v14243_v23 }
 0x143   : > { %18671 = vst [vmem:[#allocation7_spill] sm:$0xff] %v14246_v29  ;;  %v10674_v30 = vpop.f32.mrb[44].mxu0  ;;  %v12748_v32 = vpack.i.bf16 %v14243_v23, %v14246_v29 }
 0x144   : > { %v14253_v36 = vadd.f32 %v10674_v30, %v13987_v49  ;;  %v1038_v39 = vpop.f32.mrb[45].mxu0 }
 0x145   : > { %v14256_v42 = vadd.f32 %v13987_v49, %v1038_v39  ;;  %12749 = vrot.lane.b32.xlu1 %v12748_v32, %s13710_s11 }
 0x146   : > { %18672 = vst [vmem:[#allocation8_spill] sm:$0xff] %v14253_v36 }
 0x147   : > { %18673 = vst [vmem:[#allocation9_spill] sm:$0xff] %v14256_v42  ;;  %v10677_v43 = vpop.f32.mrb[46].mxu0  ;;  %v14261_v44 = vpack.i.bf16 %v14253_v36, %v14256_v42 }
 0x148   : > { %v14264_v48 = vadd.f32 %v10677_v43, %v13987_v49  ;;  %v1048_v51 = vpop.f32.mrb[47].mxu0 }
 0x149   : > { %18674 = vst [vmem:[#allocation10_spill] sm:$0xff] %v14261_v44  ;;  %v14267_v52 = vadd.f32 %v13987_v49, %v1048_v51  ;;  %12754 = vrot.lane.b32.xlu1 %v12748_v32, %s13709_s10  ;;  %12759 = vrot.lane.b32.xlu0 %v14261_v44, %s13710_s11 }
 0x14a   : > { %18675 = vst [vmem:[#allocation11_spill] sm:$0xff] %v14264_v48 }
 0x14b   : > { %18676 = vst [vmem:[#allocation12_spill] sm:$0xff] %v14267_v52  ;;  %v10680_v55 = vpop.f32.mrb[48].mxu0  ;;  %v14274_v59 = vpack.i.bf16 %v14264_v48, %v14267_v52 }
 0x14c   : > { %v14277_v1 = vadd.f32 %v10680_v55, %v13987_v49  ;;  %v1058_v8 = vpop.f32.mrb[49].mxu0 }
 0x14d   : > { %18677 = vst [vmem:[#allocation13_spill] sm:$0xff] %v14274_v59  ;;  %v14280_v15 = vadd.f32 %v13987_v49, %v1058_v8  ;;  %12764 = vrot.lane.b32.xlu1 %v14274_v59, %s13710_s11 }
 0x14e   : > { %18678 = vst [vmem:[#allocation14_spill] sm:$0xff] %v14277_v1 }
 0x14f   : > { %18679 = vst [vmem:[#allocation15_spill] sm:$0xff] %v14280_v15  ;;  %v10683_v20 = vpop.f32.mrb[50].mxu0  ;;  %v14286_v22 = vpack.i.bf16 %v14277_v1, %v14280_v15 }
 0x150   : > { %v14289_v27 = vadd.f32 %v10683_v20, %v13987_v49  ;;  %v1068_v30 = vpop.f32.mrb[51].mxu0 }
 0x151   : > { %18680 = vst [vmem:[#allocation16_spill] sm:$0xff] %v14286_v22  ;;  %v14292_v32 = vadd.f32 %v13987_v49, %v1068_v30  ;;  %12769 = vrot.lane.b32.xlu0 %v14286_v22, %s13710_s11 }
 0x152   : > { %18681 = vst [vmem:[#allocation17_spill] sm:$0xff] %v14289_v27 }
 0x153   : > { %18682 = vst [vmem:[#allocation18_spill] sm:$0xff] %v14292_v32  ;;  %v10686_v39 = vpop.f32.mrb[52].mxu0  ;;  %v14298_v43 = vpack.i.bf16 %v14289_v27, %v14292_v32 }
 0x154   : > { %v14301_v51 = vadd.f32 %v10686_v39, %v13987_v49  ;;  %v1078_v55 = vpop.f32.mrb[53].mxu0 }
 0x155   : > { %18683 = vst [vmem:[#allocation19_spill] sm:$0xff] %v14298_v43  ;;  %v14304_v8 = vadd.f32 %v13987_v49, %v1078_v55  ;;  %12774 = vrot.lane.b32.xlu1 %v14298_v43, %s13710_s11 }
 0x156   : > { %18684 = vst [vmem:[#allocation20_spill] sm:$0xff] %v14301_v51 }
 0x157   : > { %18685 = vst [vmem:[#allocation21_spill] sm:$0xff] %v14304_v8  ;;  %v10689_v20 = vpop.f32.mrb[54].mxu0  ;;  %v14310_v30 = vpack.i.bf16 %v14301_v51, %v14304_v8 }
 0x158   : > { %v14313_v22 = vadd.f32 %v10689_v20, %v13987_v49  ;;  %v1088_v9 = vpop.f32.mrb[55].mxu0 }
 0x159   : > { %18686 = vst [vmem:[#allocation22_spill] sm:$0xff] %v14310_v30  ;;  %v14316_v59 = vadd.f32 %v13987_v49, %v1088_v9  ;;  %12779 = vrot.lane.b32.xlu0 %v14310_v30, %s13710_s11 }
 0x15a   : > { %18687 = vst [vmem:[#allocation23_spill] sm:$0xff] %v14313_v22 }
 0x15b   : > { %18688 = vst [vmem:[#allocation24_spill] sm:$0xff] %v14316_v59  ;;  %v10692_v39 = vpop.f32.mrb[56].mxu0  ;;  %v14322_v55 = vpack.i.bf16 %v14313_v22, %v14316_v59 }
 0x15c   : > { %v14325_v43 = vadd.f32 %v10692_v39, %v13987_v49  ;;  %v1098_v7 = vpop.f32.mrb[57].mxu0 }
 0x15d   : > { %18689 = vst [vmem:[#allocation25_spill] sm:$0xff] %v14322_v55  ;;  %v14328_v44 = vadd.f32 %v13987_v49, %v1098_v7  ;;  %12784 = vrot.lane.b32.xlu1 %v14322_v55, %s13710_s11 }
 0x15e   : > { %18690 = vst [vmem:[#allocation26_spill] sm:$0xff] %v14325_v43 }
 0x15f   : > { %18691 = vst [vmem:[#allocation27_spill] sm:$0xff] %v14328_v44  ;;  %v10695_v9 = vpop.f32.mrb[58].mxu0  ;;  %v14334_v20 = vpack.i.bf16 %v14325_v43, %v14328_v44 }
 0x160   : > { %v14337_v30 = vadd.f32 %v10695_v9, %v13987_v49  ;;  %v1108_v22 = vpop.f32.mrb[59].mxu0 }
 0x161   : > { %18692 = vst [vmem:[#allocation28_spill] sm:$0xff] %v14334_v20  ;;  %v14340_v59 = vadd.f32 %v13987_v49, %v1108_v22  ;;  %12789 = vrot.lane.b32.xlu0 %v14334_v20, %s13710_s11 }
 0x162   : > { %18693 = vst [vmem:[#allocation29_spill] sm:$0xff] %v14337_v30 }
 0x163   : > { %18694 = vst [vmem:[#allocation30_spill] sm:$0xff] %v14340_v59  ;;  %v10698_v7 = vpop.f32.mrb[60].mxu0  ;;  %v14344_v39 = vpop.permute.xlu1 %12554  ;;  %v14348_v55 = vpack.i.bf16 %v14337_v30, %v14340_v59 }
 0x164   : > { %18695 = vst [vmem:[#allocation31_spill] sm:$0xff] %v14344_v39  ;;  %v14351_v43 = vadd.f32 %v10698_v7, %v13987_v49  ;;  %v12550_v44 = vpop.permute.xlu0 %12549  ;;  %v1118_v9 = vpop.f32.mrb[61].mxu0 }
 0x165   : > { %18696 = vst [vmem:[#allocation32_spill] sm:$0xff] %v14348_v55  ;;  %v14354_v51 = vadd.f32 %v13987_v49, %v1118_v9  ;;  %12794 = vrot.lane.b32.xlu1 %v14348_v55, %s13710_s11  ;;  %v12552_v22 = vunpack.i.h.bf16 %v12550_v44  ;;  %v12551_v20 = vunpack.i.l.bf16 %v12550_v44 }
 0x166   : > { %18697 = vst [vmem:[#allocation33_spill] sm:$0xff] %v14351_v43 }
 0x167   : > { %18698 = vst [vmem:[#allocation34_spill] sm:$0xff] %v14354_v51  ;;  %v10701_v30 = vpop.f32.mrb[62].mxu0  ;;  %v14364_v59 = vpop.permute.xlu1 %12564  ;;  %v11896_v7 = vpack.c.bf16 %v12552_v22, %v12551_v20  ;;  %v14368_v8 = vpack.i.bf16 %v14351_v43, %v14354_v51 }
 0x168   : > { %18701 = vst [vmem:[#allocation35_spill] sm:$0xff] %v14364_v59  ;;  %v14371_v9 = vadd.f32 %v10701_v30, %v13987_v49  ;;  %v12560_v55 = vpop.permute.xlu0 %12559  ;;  %v1128_v27 = vpop.f32.mrb[63].mxu0 }
 0x169   : > { %18702 = vst [vmem:[#allocation36_spill] sm:$0xff] %v14368_v8  ;;  %v12562_v44 = vunpack.i.h.bf16 %v12560_v55  ;;  %v12561_v32 = vunpack.i.l.bf16 %v12560_v55  ;;  %v14374_v1 = vadd.f32 %v13987_v49, %v1128_v27  ;;  %11898 = vmatprep.subr.msk.bf16.mxu1 %vm14360_vm2, %v11896_v7  ;;  %12799 = vrot.lane.b32.xlu0 %v14368_v8, %s13710_s11 }
 0x16a   : > { %18703 = vst [vmem:[#allocation37_spill] sm:$0xff] %v14371_v9  ;;  %11901 = vmatpush3.bf16.xpose.msk.msra.mxu1 %vm14360_vm2, %v11896_v7 }
 0x16b   : > { %18704 = vst [vmem:[#allocation38_spill] sm:$0xff] %v14374_v1  ;;  %v11902_v20 = vpack.c.bf16 %v12562_v44, %v12561_v32  ;;  %v10704_v22 = vpop.f32.mrb[64].mxu0  ;;  %v12570_v30 = vpop.permute.xlu1 %12569  ;;  %v14384_v43 = vpack.i.bf16 %v14371_v9, %v14374_v1 }
 0x16c   : > { %v14387_v55 = vadd.f32 %v10704_v22, %v13987_v49  ;;  %v12572_v27 = vunpack.i.h.bf16 %v12570_v30  ;;  %v12571_v51 = vunpack.i.l.bf16 %v12570_v30  ;;  %v1138_v59 = vpop.f32.mrb[65].mxu0  ;;  %v14389_v15 = vpop.permute.xlu0 %12574 }
 0x16d   : > { %18705 = vst [vmem:[#allocation39_spill] sm:$0xff] %v14384_v43  ;;  %18706 = vst [vmem:[#allocation40_spill] sm:$0xff] %v14389_v15  ;;  %v1139_v8 = vadd.f32 %v13987_v49, %v1138_v59  ;;  %11904 = vmatprep.subr.msk.bf16.mxu1 %vm14360_vm2, %v11902_v20  ;;  %12804 = vrot.lane.b32.xlu0 %v14384_v43, %s13710_s11 }
 0x16e   : > { %v11908_v32 = vpack.c.bf16 %v12572_v27, %v12571_v51 }
 0x16f   : > { %11038 = vmatprep.mubr.msk.f32.mxu0 %vm1481_vm1, %v1139_v8  ;;  %v12580_v7 = vpop.permute.xlu1 %12579  ;;  %v14398_v44 = vpack.i.bf16 %v14387_v55, %v1139_v8  ;;  %v10707_v22 = vpop.f32.mrb[66].mxu0 }
 0x170   : > { %v14401_v30 = vadd.f32 %v10707_v22, %v13987_v49  ;;  %v1148_v9 = vpop.f32.mrb[67].mxu0  ;;  %v12582_v51 = vunpack.i.h.bf16 %v12580_v7  ;;  %v12581_v27 = vunpack.i.l.bf16 %v12580_v7 }
 0x171   : > { %18707 = vst [vmem:[#allocation41_spill] sm:$0xff] %v14398_v44  ;;  %12809 = vrot.lane.b32.xlu1 %v14398_v44, %s13710_s11  ;;  %v14406_v59 = vadd.f32 %v13987_v49, %v1148_v9 }
 0x172   : > { %11907 = vmatpush3.bf16.xpose.msk.msra.mxu1 %vm14360_vm2, %v11902_v20  ;;  %v11914_v44 = vpack.c.bf16 %v12582_v51, %v12581_v27 }
 0x173   : > { %11910 = vmatprep.subr.msk.bf16.mxu1 %vm14360_vm2, %v11908_v32  ;;  %v14412_v8 = vpop.permute.xlu1 %12584  ;;  %v12590_v43 = vpop.permute.xlu0 %12589  ;;  %v14416_v22 = vpack.i.bf16 %v14401_v30, %v14406_v59 }
 0x174   : > { %18708 = vst [vmem:[#allocation42_spill] sm:$0xff] %v14412_v8  ;;  %v10710_v1 = vpop.f32.mrb[68].mxu0  ;;  %v12591_v51 = vunpack.i.l.bf16 %v12590_v43 }
 0x175   : > { %18709 = vst [vmem:[#allocation43_spill] sm:$0xff] %v14416_v22  ;;  %12814 = vrot.lane.b32.xlu1 %v14416_v22, %s13710_s11  ;;  %v14421_v9 = vadd.f32 %v10710_v1, %v13987_v49  ;;  %v1158_v20 = vpop.f32.mrb[69].mxu0 }
 0x176   : > { %v14424_v7 = vadd.f32 %v13987_v49, %v1158_v20  ;;  %v12592_v20 = vunpack.i.h.bf16 %v12590_v43 }
 0x177   : > { %v12600_v15 = vpop.permute.xlu1 %12599  ;;  %v14426_v48 = vpop.permute.xlu0 %12594 }
 0x178   : > { %18710 = vst [vmem:[#allocation44_spill] sm:$0xff] %v14426_v48  ;;  %v10713_v8 = vpop.f32.mrb[70].mxu0  ;;  %v14433_v36 = vpack.i.bf16 %v14421_v9, %v14424_v7  ;;  %v11920_v23 = vpack.c.bf16 %v12592_v20, %v12591_v51 }
 0x179   : > { %v14429_v52 = vadd.f32 %v10713_v8, %v13987_v49  ;;  %v1168_v22 = vpop.f32.mrb[71].mxu0 }
 0x17a   : > { %18711 = vst [vmem:[#allocation45_spill] sm:$0xff] %v14433_v36  ;;  %11913 = vmatpush3.bf16.xpose.msk.msra.mxu1 %vm14360_vm2, %v11908_v32  ;;  %v14438_v1 = vadd.f32 %v13987_v49, %v1168_v22  ;;  %12819 = vrot.lane.b32.xlu0 %v14433_v36, %s13710_s11 }
 0x17b   : > { %11916 = vmatprep.subr.msk.bf16.mxu1 %vm14360_vm2, %v11914_v44  ;;  %v14442_v27 = vpop.permute.xlu1 %12604  ;;  %v10716_v8 = vpop.f32.mrb[72].mxu0 }
 0x17c   : > { %18712 = vst [vmem:[#allocation46_spill] sm:$0xff] %v14442_v27  ;;  %v14447_v48 = vadd.f32 %v10716_v8, %v13987_v49  ;;  %v1178_v42 = vpop.f32.mrb[73].mxu0  ;;  %v14451_v32 = vpack.i.bf16 %v14429_v52, %v14438_v1  ;;  %v12610_v22 = vpop.permute.xlu0 %12609 }
 0x17d   : > { %v14454_v43 = vadd.f32 %v13987_v49, %v1178_v42 }
 0x17e   : > { %18713 = vst [vmem:[#allocation47_spill] sm:$0xff] %v14447_v48  ;;  %18714 = vst [vmem:[#allocation48_spill] sm:$0xff] %v14451_v32  ;;  %12824 = vrot.lane.b32.xlu0 %v14451_v32, %s13710_s11  ;;  %v12602_v32 = vunpack.i.h.bf16 %v12600_v15 }
 0x17f   : > { %18715 = vst [vmem:[#allocation49_spill] sm:$0xff] %v14454_v43  ;;  %v14456_v29 = vpop.permute.xlu1 %12619  ;;  %v10719_v36 = vpop.f32.mrb[74].mxu0  ;;  %v14465_v13 = vpack.i.bf16 %v14447_v48, %v14454_v43  ;;  %v12601_v48 = vunpack.i.l.bf16 %v12600_v15 }
 0x180   : > { %v14461_v27 = vadd.f32 %v10719_v36, %v13987_v49  ;;  %v1188_v8 = vpop.f32.mrb[75].mxu0  ;;  %v14478_v36 = vpop.permute.xlu0 %12614 }
 0x181   : > { %18717 = vst [vmem:[#allocation51_spill] sm:$0xff] %v14465_v13  ;;  %v14470_v42 = vadd.f32 %v13987_v49, %v1188_v8  ;;  %12829 = vrot.lane.b32.xlu1 %v14465_v13, %s13710_s11  ;;  %18720 = vst [vmem:[#allocation54_spill] sm:$0xff] %v14478_v36 }
 0x182   : > { %18716 = vst [vmem:[#allocation50_spill] sm:$0xff] %v14461_v27  ;;  %11919 = vmatpush3.bf16.xpose.msk.msra.mxu1 %vm14360_vm2, %v11914_v44 }
 0x183   : > { %18718 = vst [vmem:[#allocation52_spill] sm:$0xff] %v14470_v42  ;;  %11922 = vmatprep.subr.msk.bf16.mxu1 %vm14360_vm2, %v11920_v23  ;;  %v14474_v20 = vpop.permute.xlu1 %12624  ;;  %v10722_v51 = vpop.f32.mrb[76].mxu0  ;;  %v14485_v8 = vpack.i.bf16 %v14461_v27, %v14470_v42 }
 0x184   : > { %18719 = vst [vmem:[#allocation53_spill] sm:$0xff] %v14474_v20  ;;  %v14481_v43 = vadd.f32 %v10722_v51, %v13987_v49  ;;  %v1198_v44 = vpop.f32.mrb[77].mxu0  ;;  %v11926_v20 = vpack.c.bf16 %v12602_v32, %v12601_v48 }
 0x185   : > { %18722 = vst [vmem:[#allocation56_spill] sm:$0xff] %v14485_v8  ;;  %v14488_v16 = vadd.f32 %v13987_v49, %v1198_v44  ;;  %12834 = vrot.lane.b32.xlu1 %v14485_v8, %s13710_s11  ;;  %v14503_v44 = vpop.permute.xlu0 %12629  ;;  %v12612_v8 = vunpack.i.h.bf16 %v12610_v22 }
 0x186   : > { %18721 = vst [vmem:[#allocation55_spill] sm:$0xff] %v14481_v43 }
 0x187   : > { %18723 = vst [vmem:[#allocation57_spill] sm:$0xff] %v14488_v16  ;;  %v10725_v13 = vpop.f32.mrb[78].mxu0  ;;  %v14492_v36 = vpop.permute.xlu1 %12639  ;;  %v14501_v27 = vpack.i.bf16 %v14481_v43, %v14488_v16  ;;  %v12611_v43 = vunpack.i.l.bf16 %v12610_v22 }
 0x188   : > { %v14497_v15 = vadd.f32 %v10725_v13, %v13987_v49  ;;  %v1208_v51 = vpop.f32.mrb[79].mxu0 }
 0x189   : > { %10815 = vmatmul.mubr.msk.f32.vlgmr.msra.gmra.mrb[0].mxu1 %vm1481_vm1, %v13993_v53  ;;  %18725 = vst [vmem:[#allocation59_spill] sm:$0xff] %v14501_v27  ;;  %v14510_v48 = vadd.f32 %v13987_v49, %v1208_v51  ;;  %12839 = vrot.lane.b32.xlu0 %v14501_v27, %s13710_s11  ;;  %v14538_v22 = vpop.permute.xlu0 %12634 }
 0x18a   : > { %18724 = vst [vmem:[#allocation58_spill] sm:$0xff] %v14497_v15  ;;  %10817 = vmatprep.mubr.msk.f32.mxu1 %vm1481_vm1, %v14007_v62  ;;  %11925 = vmatpush3.bf16.xpose.msk.msra.mxu1 %vm14360_vm2, %v11920_v23  ;;  %18729 = vst [vmem:[#allocation63_spill] sm:$0xff] %v14538_v22 }
 0x18b   : > { %18726 = vst [vmem:[#allocation60_spill] sm:$0xff] %v14510_v48  ;;  %11928 = vmatprep.subr.msk.bf16.mxu1 %vm14360_vm2, %v11926_v20  ;;  %v10728_v53 = vpop.f32.mrb[80].mxu0  ;;  %v14526_v23 = vpack.i.bf16 %v14497_v15, %v14510_v48 }
 0x18c   : > { %v14517_v13 = vadd.f32 %v10728_v53, %v13987_v49  ;;  %v1218_v32 = vpop.f32.mrb[81].mxu0 }
 0x18d   : > { %v14520_v62 = vadd.f32 %v13987_v49, %v1218_v32  ;;  %10818 = vmatmul.mubr.msk.f32.gmra.mrb[2].mxu1 %vm1481_vm1, %v14003_v60  ;;  %18727 = vst [vmem:[#allocation61_spill] sm:$0xff] %v14526_v23  ;;  %12844 = vrot.lane.b32.xlu0 %v14526_v23, %s13710_s11  ;;  %v11932_v60 = vpack.c.bf16 %v12612_v8, %v12611_v43  ;;  %v12622_v8 = vunpack.i.h.bf16 %v14456_v29 }
 0x18e   : > { %10820 = vmatprep.mubr.msk.f32.mxu1 %vm1481_vm1, %v14021_v5 }
 0x18f   : > { %v14530_v51 = vpop.permute.xlu1 %12659  ;;  %v14534_v53 = vpack.i.bf16 %v14517_v13, %v14520_v62  ;;  %v10731_v32 = vpop.f32.mrb[82].mxu0 }
 0x190   : > { %v14545_v5 = vadd.f32 %v10731_v32, %v13987_v49  ;;  %v1228_v27 = vpop.f32.mrb[83].mxu0  ;;  %v12621_v32 = vunpack.i.l.bf16 %v14456_v29 }
 0x191   : > { %18728 = vst [vmem:[#allocation62_spill] sm:$0xff] %v14534_v53  ;;  %10821 = vmatmul.mubr.msk.f32.gmra.mrb[4].mxu1 %vm1481_vm1, %v14017_v3  ;;  %12849 = vrot.lane.b32.xlu1 %v14534_v53, %s13710_s11  ;;  %v14552_v23 = vadd.f32 %v13987_v49, %v1228_v27  ;;  %v14569_v53 = vpop.permute.xlu0 %12644 }
 0x192   : > { %10823 = vmatprep.mubr.msk.f32.mxu1 %vm1481_vm1, %v14035_v12  ;;  %11931 = vmatpush3.bf16.xpose.msk.msra.mxu1 %vm14360_vm2, %v11926_v20  ;;  %18733 = vst [vmem:[#allocation67_spill] sm:$0xff] %v14569_v53  ;;  %v11938_v29 = vpack.c.bf16 %v12622_v8, %v12621_v32 }
 0x193   : > { %11934 = vmatprep.subr.msk.bf16.mxu1 %vm14360_vm2, %v11932_v60  ;;  %v14556_v3 = vpop.permute.xlu1 %12674  ;;  %v10734_v43 = vpop.f32.mrb[84].mxu0  ;;  %v14564_v12 = vpack.i.bf16 %v14545_v5, %v14552_v23 }
 0x194   : > { %18730 = vst [vmem:[#allocation64_spill] sm:$0xff] %v14556_v3  ;;  %v14567_v27 = vadd.f32 %v10734_v43, %v13987_v49  ;;  %v1238_v20 = vpop.f32.mrb[85].mxu0 }
 0x195   : > { %10824 = vmatmul.mubr.msk.f32.gmra.mrb[6].mxu1 %vm1481_vm1, %v14031_v10  ;;  %18731 = vst [vmem:[#allocation65_spill] sm:$0xff] %v14564_v12  ;;  %v14574_v3 = vadd.f32 %v13987_v49, %v1238_v20  ;;  %12854 = vrot.lane.b32.xlu1 %v14564_v12, %s13710_s11  ;;  %v12650_v8 = vpop.permute.xlu0 %12649  ;;  %v12632_v20 = vunpack.i.h.bf16 %v14503_v44 }
 0x196   : > { %18732 = vst [vmem:[#allocation66_spill] sm:$0xff] %v14567_v27  ;;  %10842 = vmatprep.mubr.msk.f32.mxu1 %vm1481_vm1, %v14049_v19 }
 0x197   : > { %v10737_v10 = vpop.f32.mrb[86].mxu0  ;;  %v14578_v22 = vpop.permute.xlu1 %12679  ;;  %v14585_v43 = vpack.i.bf16 %v14567_v27, %v14574_v3 }
 0x198   : > { %v14581_v15 = vadd.f32 %v10737_v10, %v13987_v49  ;;  %v1248_v53 = vpop.f32.mrb[87].mxu0  ;;  %v12631_v10 = vunpack.i.l.bf16 %v14503_v44 }
 0x199   : > { %18735 = vst [vmem:[#allocation69_spill] sm:$0xff] %v14585_v43  ;;  %v14590_v19 = vadd.f32 %v13987_v49, %v1248_v53  ;;  %12859 = vrot.lane.b32.xlu0 %v14585_v43, %s13710_s11 }
 0x19a   : > { %18734 = vst [vmem:[#allocation68_spill] sm:$0xff] %v14581_v15  ;;  %11937 = vmatpush3.bf16.xpose.msk.msra.mxu1 %vm14360_vm2, %v11932_v60  ;;  %v11944_v42 = vpack.c.bf16 %v12632_v20, %v12631_v10  ;;  %v12642_v20 = vunpack.i.h.bf16 %v14492_v36  ;;  %v12641_v10 = vunpack.i.l.bf16 %v14492_v36 }
 0x19b   : > { %11940 = vmatprep.subr.msk.bf16.mxu1 %vm14360_vm2, %v11938_v29  ;;  %v10740_v32 = vpop.f32.mrb[88].mxu0  ;;  %v14603_v53 = vpack.i.bf16 %v14581_v15, %v14590_v19  ;;  %v14608_v16 = vpop.permute.xlu1 %12684 }
 0x19c   : > { %v14599_v12 = vadd.f32 %v10740_v32, %v13987_v49  ;;  %v1258_v48 = vpop.f32.mrb[89].mxu0  ;;  %18739 = vst [vmem:[#allocation73_spill] sm:$0xff] %v14608_v16  ;;  %v14619_v15 = vpop.permute.xlu0 %12654  ;;  %v11950_v36 = vpack.c.bf16 %v12642_v20, %v12641_v10 }
 0x19d   : > { %18737 = vst [vmem:[#allocation71_spill] sm:$0xff] %v14603_v53  ;;  %v14606_v60 = vadd.f32 %v13987_v49, %v1258_v48  ;;  %12864 = vrot.lane.b32.xlu0 %v14603_v53, %s13710_s11  ;;  %18742 = vst [vmem:[#allocation76_spill] sm:$0xff] %v14619_v15 }
 0x19e   : > { %18736 = vst [vmem:[#allocation70_spill] sm:$0xff] %v14599_v12 }
 0x19f   : > { %18738 = vst [vmem:[#allocation72_spill] sm:$0xff] %v14606_v60  ;;  %v10743_v43 = vpop.f32.mrb[90].mxu0  ;;  %v14617_v27 = vpack.i.bf16 %v14599_v12, %v14606_v60  ;;  %v14632_v53 = vpop.permute.xlu1 %12694 }
 0x1a0   : > { %v14613_v44 = vadd.f32 %v10743_v43, %v13987_v49  ;;  %v1268_v32 = vpop.f32.mrb[91].mxu0  ;;  %18744 = vst [vmem:[#allocation78_spill] sm:$0xff] %v14632_v53 }
 0x1a1   : > { %18741 = vst [vmem:[#allocation75_spill] sm:$0xff] %v14617_v27  ;;  %v14624_v48 = vadd.f32 %v13987_v49, %v1268_v32  ;;  %12869 = vrot.lane.b32.xlu1 %v14617_v27, %s13710_s11  ;;  %v14646_v27 = vpop.permute.xlu0 %12664 }
 0x1a2   : > { %18740 = vst [vmem:[#allocation74_spill] sm:$0xff] %v14613_v44  ;;  %11943 = vmatpush3.bf16.xpose.msk.msra.mxu1 %vm14360_vm2, %v11938_v29  ;;  %18748 = vst [vmem:[#allocation82_spill] sm:$0xff] %v14646_v27 }
 0x1a3   : > { %18743 = vst [vmem:[#allocation77_spill] sm:$0xff] %v14624_v48  ;;  %11946 = vmatprep.subr.msk.bf16.mxu1 %vm14360_vm2, %v11944_v42  ;;  %v10746_v43 = vpop.f32.mrb[92].mxu0  ;;  %v14639_v32 = vpack.i.bf16 %v14613_v44, %v14624_v48  ;;  %v14664_v20 = vpop.permute.xlu1 %12699 }
 0x1a4   : > { %v14635_v16 = vadd.f32 %v10746_v43, %v13987_v49  ;;  %v1278_v29 = vpop.f32.mrb[93].mxu0 }
 0x1a5   : > { %18746 = vst [vmem:[#allocation80_spill] sm:$0xff] %v14639_v32  ;;  %v14642_v15 = vadd.f32 %v13987_v49, %v1278_v29  ;;  %12874 = vrot.lane.b32.xlu1 %v14639_v32, %s13710_s11  ;;  %v12651_v32 = vunpack.i.l.bf16 %v12650_v8  ;;  %v12670_v27 = vpop.permute.xlu0 %12669 }
 0x1a6   : > { %18745 = vst [vmem:[#allocation79_spill] sm:$0xff] %v14635_v16 }
 0x1a7   : > { %18747 = vst [vmem:[#allocation81_spill] sm:$0xff] %v14642_v15  ;;  %v10749_v12 = vpop.f32.mrb[94].mxu0  ;;  %v14655_v44 = vpack.i.bf16 %v14635_v16, %v14642_v15  ;;  %v14693_v16 = vpop.permute.xlu1 %12704 }
 0x1a8   : > { %v14651_v43 = vadd.f32 %v10749_v12, %v13987_v49  ;;  %v1288_v53 = vpop.f32.mrb[95].mxu0  ;;  %18755 = vst [vmem:[#allocation89_spill] sm:$0xff] %v14693_v16 }
 0x1a9   : > { %10843 = vmatmul.mubr.msk.f32.vlgmr.msra.gmra.mrb[8].mxu1 %vm1481_vm1, %v14045_v17  ;;  %18750 = vst [vmem:[#allocation84_spill] sm:$0xff] %v14655_v44  ;;  %v14662_v29 = vadd.f32 %v13987_v49, %v1288_v53  ;;  %12879 = vrot.lane.b32.xlu0 %v14655_v44, %s13710_s11 }
 0x1aa   : > { %18749 = vst [vmem:[#allocation83_spill] sm:$0xff] %v14651_v43  ;;  %10845 = vmatprep.mubr.msk.f32.mxu1 %vm1481_vm1, %v14062_v26  ;;  %11949 = vmatpush3.bf16.xpose.msk.msra.mxu1 %vm14360_vm2, %v11944_v42  ;;  %v12652_v26 = vunpack.i.h.bf16 %v12650_v8 }
 0x1ab   : > { %18751 = vst [vmem:[#allocation85_spill] sm:$0xff] %v14662_v29  ;;  %11952 = vmatprep.subr.msk.bf16.mxu1 %vm14360_vm2, %v11950_v36  ;;  %v10752_v17 = vpop.f32.mrb[96].mxu0  ;;  %v14680_v53 = vpack.i.bf16 %v14651_v43, %v14662_v29  ;;  %v14702_v43 = vpop.permute.xlu0 %12689 }
 0x1ac   : > { %v14671_v12 = vadd.f32 %v10752_v17, %v13987_v49  ;;  %v1298_v10 = vpop.f32.mrb[97].mxu0 }
 0x1ad   : > { %v14674_v42 = vadd.f32 %v13987_v49, %v1298_v10  ;;  %10846 = vmatmul.mubr.msk.f32.gmra.mrb[10].mxu1 %vm1481_vm1, %v14058_v24  ;;  %18752 = vst [vmem:[#allocation86_spill] sm:$0xff] %v14680_v53  ;;  %12884 = vrot.lane.b32.xlu0 %v14680_v53, %s13710_s11  ;;  %v11956_v10 = vpack.c.bf16 %v12652_v26, %v12651_v32 }
 0x1ae   : > { %10848 = vmatprep.mubr.msk.f32.mxu1 %vm1481_vm1, %v14076_v33 }
 0x1af   : > { %v14686_v17 = vpack.i.bf16 %v14671_v12, %v14674_v42  ;;  %v10755_v44 = vpop.f32.mrb[98].mxu0 }
 0x1b0   : > { %v14691_v8 = vadd.f32 %v10755_v44, %v13987_v49  ;;  %v1308_v24 = vpop.f32.mrb[99].mxu0 }
 0x1b1   : > { %18753 = vst [vmem:[#allocation87_spill] sm:$0xff] %v14686_v17  ;;  %10849 = vmatmul.mubr.msk.f32.gmra.mrb[12].mxu1 %vm1481_vm1, %v14072_v31  ;;  %12889 = vrot.lane.b32.xlu1 %v14686_v17, %s13710_s11  ;;  %v14700_v33 = vadd.f32 %v13987_v49, %v1308_v24  ;;  %v12662_v24 = vunpack.i.h.bf16 %v14530_v51  ;;  %v12661_v17 = vunpack.i.l.bf16 %v14530_v51  ;;  %v14734_v51 = vpop.permute.xlu0 %12709 }
 0x1b2   : > { %18754 = vst [vmem:[#allocation88_spill] sm:$0xff] %v14691_v8  ;;  %10851 = vmatprep.mubr.msk.f32.mxu1 %vm1481_vm1, %v14090_v40  ;;  %11955 = vmatpush3.bf16.xpose.msk.msra.mxu1 %vm14360_vm2, %v11950_v36  ;;  %v14719_v40 = vpop.permute.xlu1 %12719 }
 0x1b3   : > { %11958 = vmatprep.subr.msk.bf16.mxu1 %vm14360_vm2, %v11956_v10  ;;  %v14712_v31 = vpack.i.bf16 %v14691_v8, %v14700_v33  ;;  %v10758_v44 = vpop.f32.mrb[100].mxu0  ;;  %v11962_v29 = vpack.c.bf16 %v12662_v24, %v12661_v17  ;;  %v12672_v17 = vunpack.i.h.bf16 %v12670_v27  ;;  %v12671_v24 = vunpack.i.l.bf16 %v12670_v27 }
 0x1b4   : > { %v14715_v32 = vadd.f32 %v10758_v44, %v13987_v49  ;;  %v1318_v26 = vpop.f32.mrb[101].mxu0 }
 0x1b5   : > { %18756 = vst [vmem:[#allocation90_spill] sm:$0xff] %v14712_v31  ;;  %10852 = vmatmul.mubr.msk.f32.gmra.mrb[14].mxu1 %vm1481_vm1, %v14086_v38  ;;  %12894 = vrot.lane.b32.xlu1 %v14712_v31, %s13710_s11  ;;  %v14726_v36 = vadd.f32 %v13987_v49, %v1318_v26 }
 0x1b6   : > { %18757 = vst [vmem:[#allocation91_spill] sm:$0xff] %v14715_v32  ;;  %10870 = vmatprep.mubr.msk.f32.mxu1 %vm1481_vm1, %v14104_v47  ;;  %v14746_v47 = vpop.permute.xlu1 %12734 }
 0x1b7   : > { %18758 = vst [vmem:[#allocation92_spill] sm:$0xff] %v14726_v36  ;;  %v10761_v44 = vpop.f32.mrb[102].mxu0  ;;  %v14732_v53 = vpack.i.bf16 %v14715_v32, %v14726_v36 }
 0x1b8   : > { %v14737_v16 = vadd.f32 %v10761_v44, %v13987_v49  ;;  %v1328_v38 = vpop.f32.mrb[103].mxu0 }
 0x1b9   : > { %18759 = vst [vmem:[#allocation93_spill] sm:$0xff] %v14732_v53  ;;  %12899 = vrot.lane.b32.xlu0 %v14732_v53, %s13710_s11  ;;  %v14742_v26 = vadd.f32 %v13987_v49, %v1328_v38  ;;  %v14757_v49 = vld [vmem:[%s18412_s2] ss:$0 sm:$0xff]  ;;  %v14764_v53 = vpop.permute.xlu0 %12714 }
 0x1ba   : > { %18760 = vst [vmem:[#allocation94_spill] sm:$0xff] %v14737_v16  ;;  %11961 = vmatpush3.bf16.xpose.msk.msra.mxu1 %vm14360_vm2, %v11956_v10  ;;  %18764 = vst [vmem:[#allocation98_spill] sm:$0xff] %v14764_v53 }
 0x1bb   : > { %18761 = vst [vmem:[#allocation95_spill] sm:$0xff] %v14742_v26  ;;  %11964 = vmatprep.subr.msk.bf16.mxu1 %vm14360_vm2, %v11962_v29  ;;  %v14752_v44 = vpack.i.bf16 %v14737_v16, %v14742_v26  ;;  %v10764_v31 = vpop.f32.mrb[104].mxu0  ;;  %v11968_v16 = vpack.c.bf16 %v12672_v17, %v12671_v24  ;;  %v14772_v26 = vpop.permute.xlu1 %12744 }
 0x1bc   : > { %v14760_v38 = vadd.f32 %v14757_v49, %v10764_v31  ;;  %v1338_v10 = vpop.f32.mrb[105].mxu0  ;;  %18767 = vst [vmem:[#allocation101_spill] sm:$0xff] %v14772_v26 }
 0x1bd   : > { %18762 = vst [vmem:[#allocation96_spill] sm:$0xff] %v14752_v44  ;;  %12904 = vrot.lane.b32.xlu0 %v14752_v44, %s13710_s11  ;;  %v14767_v15 = vadd.f32 %v14757_v49, %v1338_v10  ;;  %v12682_v44 = vunpack.i.h.bf16 %v14578_v22 }
 0x1be   : > { %18763 = vst [vmem:[#allocation97_spill] sm:$0xff] %v14760_v38 }
 0x1bf   : > { %18765 = vst [vmem:[#allocation99_spill] sm:$0xff] %v14767_v15  ;;  %v10767_v48 = vpop.f32.mrb[106].mxu0  ;;  %v14779_v32 = vpack.i.bf16 %v14760_v38, %v14767_v15  ;;  %v14801_v53 = vpop.permute.xlu1 %12749 }
 0x1c0   : > { %v14770_v27 = vadd.f32 %v14757_v49, %v10767_v48  ;;  %v1348_v60 = vpop.f32.mrb[107].mxu0 }
 0x1c1   : > { %v14775_v31 = vadd.f32 %v14757_v49, %v1348_v60  ;;  %18769 = vst [vmem:[#allocation103_spill] sm:$0xff] %v14779_v32  ;;  %12909 = vrot.lane.b32.xlu1 %v14779_v32, %s13710_s11  ;;  %v14791_v60 = vpop.permute.xlu0 %12724 }
 0x1c2   : > { %18766 = vst [vmem:[#allocation100_spill] sm:$0xff] %v14770_v27  ;;  %11967 = vmatpush3.bf16.xpose.msk.msra.mxu1 %vm14360_vm2, %v11962_v29  ;;  %18771 = vst [vmem:[#allocation105_spill] sm:$0xff] %v14791_v60  ;;  %v12681_v29 = vunpack.i.l.bf16 %v14578_v22 }
 0x1c3   : > { %18768 = vst [vmem:[#allocation102_spill] sm:$0xff] %v14775_v31  ;;  %11970 = vmatprep.subr.msk.bf16.mxu1 %vm14360_vm2, %v11968_v16  ;;  %v10770_v10 = vpop.f32.mrb[108].mxu0  ;;  %v14789_v48 = vpack.i.bf16 %v14770_v27, %v14775_v31 }
 0x1c4   : > { %v14794_v17 = vadd.f32 %v14757_v49, %v10770_v10  ;;  %v1358_v24 = vpop.f32.mrb[109].mxu0  ;;  %v11974_v31 = vpack.c.bf16 %v12682_v44, %v12681_v29  ;;  %v12692_v29 = vunpack.i.h.bf16 %v14702_v43 }
 0x1c5   : > { %18770 = vst [vmem:[#allocation104_spill] sm:$0xff] %v14789_v48  ;;  %v14799_v26 = vadd.f32 %v14757_v49, %v1358_v24  ;;  %12914 = vrot.lane.b32.xlu1 %v14789_v48, %s13710_s11  ;;  %v14819_v24 = vpop.permute.xlu0 %12729 }
 0x1c6   : > { %18772 = vst [vmem:[#allocation106_spill] sm:$0xff] %v14794_v17 }
 0x1c7   : > { %18773 = vst [vmem:[#allocation107_spill] sm:$0xff] %v14799_v26  ;;  %v10773_v32 = vpop.f32.mrb[110].mxu0  ;;  %v14807_v60 = vpack.i.bf16 %v14794_v17, %v14799_v26 }
 0x1c8   : > { %v14810_v10 = vadd.f32 %v14757_v49, %v10773_v32  ;;  %v1368_v27 = vpop.f32.mrb[111].mxu0 }
 0x1c9   : > { %18774 = vst [vmem:[#allocation108_spill] sm:$0xff] %v14807_v60  ;;  %10871 = vmatmul.mubr.msk.f32.vlgmr.msra.gmra.mrb[16].mxu1 %vm1481_vm1, %v14100_v45  ;;  %v14815_v22 = vadd.f32 %v14757_v49, %v1368_v27  ;;  %12919 = vrot.lane.b32.xlu0 %v14807_v60, %s13710_s11  ;;  %v12691_v60 = vunpack.i.l.bf16 %v14702_v43  ;;  %v14845_v48 = vpop.permute.xlu0 %12739 }
 0x1ca   : > { %18775 = vst [vmem:[#allocation109_spill] sm:$0xff] %v14810_v10  ;;  %10873 = vmatprep.mubr.msk.f32.mxu1 %vm1481_vm1, %v14118_v56  ;;  %11973 = vmatpush3.bf16.xpose.msk.msra.mxu1 %vm14360_vm2, %v11968_v16  ;;  %v14836_v56 = vpop.permute.xlu1 %12754 }
 0x1cb   : > { %18776 = vst [vmem:[#allocation110_spill] sm:$0xff] %v14815_v22  ;;  %11976 = vmatprep.subr.msk.bf16.mxu1 %vm14360_vm2, %v11974_v31  ;;  %v10776_v32 = vpop.f32.mrb[112].mxu0  ;;  %v14829_v45 = vpack.i.bf16 %v14810_v10, %v14815_v22  ;;  %18779 = vst [vmem:[#allocation113_spill] sm:$0xff] %v14836_v56  ;;  %v11980_v10 = vpack.c.bf16 %v12692_v29, %v12691_v60 }
 0x1cc   : > { %v14832_v44 = vadd.f32 %v14757_v49, %v10776_v32  ;;  %v1378_v27 = vpop.f32.mrb[113].mxu0 }
 0x1cd   : > { %18777 = vst [vmem:[#allocation111_spill] sm:$0xff] %v14829_v45  ;;  %v14839_v16 = vadd.f32 %v14757_v49, %v1378_v27  ;;  %10874 = vmatmul.mubr.msk.f32.gmra.mrb[18].mxu1 %vm1481_vm1, %v14114_v54  ;;  %12924 = vrot.lane.b32.xlu0 %v14829_v45, %s13710_s11 }
 0x1ce   : > { %18778 = vst [vmem:[#allocation112_spill] sm:$0xff] %v14832_v44  ;;  %10876 = vmatprep.mubr.msk.f32.mxu1 %vm1481_vm1, %v14131_v0  ;;  %v14856_v22 = vpop.permute.xlu1 %12764  ;;  %v14865_v0 = vpop.permute.xlu0 %12759 }
 0x1cf   : > { %18780 = vst [vmem:[#allocation114_spill] sm:$0xff] %v14839_v16  ;;  %v14851_v32 = vpack.i.bf16 %v14832_v44, %v14839_v16  ;;  %v10779_v43 = vpop.f32.mrb[114].mxu0 }
 0x1d0   : > { %v14854_v56 = vadd.f32 %v14757_v49, %v10779_v43  ;;  %v1388_v27 = vpop.f32.mrb[115].mxu0 }
 0x1d1   : > { %18781 = vst [vmem:[#allocation115_spill] sm:$0xff] %v14851_v32  ;;  %10877 = vmatmul.mubr.msk.f32.gmra.mrb[20].mxu1 %vm1481_vm1, %v14128_v63  ;;  %12929 = vrot.lane.b32.xlu1 %v14851_v32, %s13710_s11  ;;  %v14863_v54 = vadd.f32 %v14757_v49, %v1388_v27  ;;  %v12702_v27 = vunpack.i.h.bf16 %v14664_v20  ;;  %v12701_v32 = vunpack.i.l.bf16 %v14664_v20 }
 0x1d2   : > { %18782 = vst [vmem:[#allocation116_spill] sm:$0xff] %v14854_v56  ;;  %10879 = vmatprep.mubr.msk.f32.mxu1 %vm1481_vm1, %v14139_v6  ;;  %11979 = vmatpush3.bf16.xpose.msk.msra.mxu1 %vm14360_vm2, %v11974_v31  ;;  %v14882_v6 = vpop.permute.xlu1 %12774  ;;  %v14891_v45 = vpop.permute.xlu0 %12769 }
 0x1d3   : > { %18783 = vst [vmem:[#allocation117_spill] sm:$0xff] %v14863_v54  ;;  %11982 = vmatprep.subr.msk.bf16.mxu1 %vm14360_vm2, %v11980_v10  ;;  %v14875_v63 = vpack.i.bf16 %v14854_v56, %v14863_v54  ;;  %v10782_v60 = vpop.f32.mrb[116].mxu0  ;;  %v11986_v26 = vpack.c.bf16 %v12702_v27, %v12701_v32  ;;  %v12721_v54 = vunpack.i.l.bf16 %v14719_v40 }
 0x1d4   : > { %v14878_v29 = vadd.f32 %v14757_v49, %v10782_v60  ;;  %v1398_v43 = vpop.f32.mrb[117].mxu0 }
 0x1d5   : > { %18784 = vst [vmem:[#allocation118_spill] sm:$0xff] %v14875_v63  ;;  %10880 = vmatmul.mubr.msk.f32.gmra.mrb[22].mxu1 %vm1481_vm1, %v14136_v2  ;;  %12934 = vrot.lane.b32.xlu1 %v14875_v63, %s13710_s11  ;;  %v14889_v31 = vadd.f32 %v14757_v49, %v1398_v43 }
 0x1d6   : > { %18785 = vst [vmem:[#allocation119_spill] sm:$0xff] %v14878_v29  ;;  %10898 = vmatprep.mubr.msk.f32.mxu1 %vm1481_vm1, %v14150_v14  ;;  %v14902_v38 = vpop.permute.xlu1 %12784  ;;  %v14909_v63 = vpop.permute.xlu0 %12779 }
 0x1d7   : > { %18786 = vst [vmem:[#allocation120_spill] sm:$0xff] %v14889_v31  ;;  %v14897_v60 = vpack.i.bf16 %v14878_v29, %v14889_v31  ;;  %v10785_v20 = vpop.f32.mrb[118].mxu0 }
 0x1d8   : > { %v14900_v17 = vadd.f32 %v14757_v49, %v10785_v20  ;;  %v1408_v2 = vpop.f32.mrb[119].mxu0 }
 0x1d9   : > { %18787 = vst [vmem:[#allocation121_spill] sm:$0xff] %v14897_v60  ;;  %12939 = vrot.lane.b32.xlu0 %v14897_v60, %s13710_s11  ;;  %v14907_v43 = vadd.f32 %v14757_v49, %v1408_v2  ;;  %v12712_v2 = vunpack.i.h.bf16 %v14734_v51  ;;  %v12711_v60 = vunpack.i.l.bf16 %v14734_v51 }
 0x1da   : > { %18788 = vst [vmem:[#allocation122_spill] sm:$0xff] %v14900_v17  ;;  %11985 = vmatpush3.bf16.xpose.msk.msra.mxu1 %vm14360_vm2, %v11980_v10  ;;  %v14924_v15 = vpop.permute.xlu1 %12794  ;;  %v14931_v29 = vpop.permute.xlu0 %12789 }
 0x1db   : > { %18789 = vst [vmem:[#allocation123_spill] sm:$0xff] %v14907_v43  ;;  %11988 = vmatprep.subr.msk.bf16.mxu1 %vm14360_vm2, %v11986_v26  ;;  %v14917_v14 = vpack.i.bf16 %v14900_v17, %v14907_v43  ;;  %v10788_v32 = vpop.f32.mrb[120].mxu0  ;;  %v11992_v51 = vpack.c.bf16 %v12712_v2, %v12711_v60 }
 0x1dc   : > { %v14920_v27 = vadd.f32 %v14757_v49, %v10788_v32  ;;  %v1418_v20 = vpop.f32.mrb[121].mxu0 }
 0x1dd   : > { %18790 = vst [vmem:[#allocation124_spill] sm:$0xff] %v14917_v14  ;;  %12944 = vrot.lane.b32.xlu0 %v14917_v14, %s13710_s11  ;;  %v14929_v10 = vadd.f32 %v14757_v49, %v1418_v20 }
 0x1de   : > { %18791 = vst [vmem:[#allocation125_spill] sm:$0xff] %v14920_v27  ;;  %v14945_v20 = vpop.permute.xlu0 %12799 }
 0x1df   : > { %18792 = vst [vmem:[#allocation126_spill] sm:$0xff] %v14929_v10  ;;  %v10791_v17 = vpop.f32.mrb[122].mxu0  ;;  %v14935_v32 = vpack.i.bf16 %v14920_v27, %v14929_v10  ;;  %v12722_v10 = vunpack.i.h.bf16 %v14719_v40 }
 0x1e0   : > { %v14938_v43 = vadd.f32 %v14757_v49, %v10791_v17  ;;  %v1428_v31 = vpop.f32.mrb[123].mxu0 }
 0x1e1   : > { %18793 = vst [vmem:[#allocation127_spill] sm:$0xff] %v14935_v32  ;;  %v14941_v56 = vadd.f32 %v14757_v49, %v1428_v31  ;;  %12949 = vrot.lane.b32.xlu1 %v14935_v32, %s13710_s11  ;;  %v11998_v36 = vpack.c.bf16 %v12722_v10, %v12721_v54 }
 0x1e2   : > { %18794 = vst [vmem:[#allocation128_spill] sm:$0xff] %v14938_v43  ;;  %11991 = vmatpush3.bf16.xpose.msk.msra.mxu1 %vm14360_vm2, %v11986_v26  ;;  %v14974_v8 = vpop.permute.xlu0 %12804 }
 0x1e3   : > { %18795 = vst [vmem:[#allocation129_spill] sm:$0xff] %v14941_v56  ;;  %11994 = vmatprep.subr.msk.bf16.mxu1 %vm14360_vm2, %v11992_v51  ;;  %v12810_v14 = vpop.permute.xlu1 %12809  ;;  %v10794_v27 = vpop.f32.mrb[124].mxu0  ;;  %v14953_v17 = vpack.i.bf16 %v14938_v43, %v14941_v56 }
 0x1e4   : > { %v12812_v60 = vunpack.i.h.bf16 %v12810_v14  ;;  %v12811_v31 = vunpack.i.l.bf16 %v12810_v14  ;;  %v14956_v2 = vadd.f32 %v14757_v49, %v10794_v27  ;;  %v1438_v32 = vpop.f32.mrb[125].mxu0 }
 0x1e5   : > { %18796 = vst [vmem:[#allocation130_spill] sm:$0xff] %v14953_v17  ;;  %v14961_v26 = vadd.f32 %v14757_v49, %v1438_v32  ;;  %12954 = vrot.lane.b32.xlu1 %v14953_v17, %s13710_s11 }
 0x1e6   : > { %v12088_v44 = vpack.c.bf16 %v12812_v60, %v12811_v31 }
 0x1e7   : > { %v12815_v16 = vpop.permute.xlu1 %12814  ;;  %v10797_v43 = vpop.f32.mrb[126].mxu0  ;;  %v14967_v14 = vpack.i.bf16 %v14956_v2, %v14961_v26 }
 0x1e8   : > { %12090 = vmatprep.subr.msk.bf16.mxu0 %vm14360_vm2, %v12088_v44  ;;  %v12817_v27 = vunpack.i.h.bf16 %v12815_v16  ;;  %v12816_v56 = vunpack.i.l.bf16 %v12815_v16  ;;  %v14972_v40 = vadd.f32 %v14757_v49, %v10797_v43  ;;  %v1448_v32 = vpop.f32.mrb[127].mxu0 }
 0x1e9   : > { %18797 = vst [vmem:[#allocation131_spill] sm:$0xff] %v14967_v14  ;;  %10899 = vmatmul.mubr.msk.f32.vlgmr.msra.gmra.mrb[24].mxu1 %vm1481_vm1, %v14147_v11  ;;  %12093 = vmatpush3.bf16.xpose.msk.msra.mxu0 %vm14360_vm2, %v12088_v44  ;;  %v14981_v60 = vadd.f32 %v14757_v49, %v1448_v32  ;;  %v12732_v11 = vunpack.i.h.bf16 %v14819_v24 }
 0x1ea   : > { %10901 = vmatprep.mubr.msk.f32.mxu1 %vm1481_vm1, %v14160_v21  ;;  %11997 = vmatpush3.bf16.xpose.msk.msra.mxu1 %vm14360_vm2, %v11992_v51  ;;  %v12094_v16 = vpack.c.bf16 %v12817_v27, %v12816_v56  ;;  %v12731_v21 = vunpack.i.l.bf16 %v14819_v24 }
 0x1eb   : > { %12000 = vmatprep.subr.msk.bf16.mxu1 %vm14360_vm2, %v11998_v36  ;;  %v14991_v54 = vpack.i.bf16 %v14972_v40, %v14981_v60  ;;  %12959 = vrot.lane.b32.xlu0 %v14967_v14, %s13710_s11  ;;  %v18885_v14 = vld [vmem:[#allocation129_spill] sm:$0xff] }
 0x1ec   : > { %12096 = vmatprep.subr.msk.bf16.mxu0 %vm14360_vm2, %v12094_v16  ;;  %v12820_v49 = vpop.permute.xlu0 %12819  ;;  %v12004_v10 = vpack.c.bf16 %v12732_v11, %v12731_v21 }
 0x1ed   : > { %18798 = vst [vmem:[#allocation132_spill] sm:$0xff] %v14991_v54  ;;  %10902 = vmatmul.mubr.msk.f32.gmra.mrb[26].mxu1 %vm1481_vm1, %v14157_v18  ;;  %12964 = vrot.lane.b32.xlu1 %v14991_v54, %s13710_s11  ;;  %v12822_v44 = vunpack.i.h.bf16 %v12820_v49  ;;  %v12821_v56 = vunpack.i.l.bf16 %v12820_v49  ;;  %v12752_v49 = vunpack.i.h.bf16 %v14801_v53  ;;  %v18884_v54 = vld [vmem:[#allocation125_spill] sm:$0xff] }
 0x1ee   : > { %10904 = vmatprep.mubr.msk.f32.mxu1 %vm1481_vm1, %v14170_v28  ;;  %v12736_v28 = vunpack.i.l.bf16 %v14746_v47 }
 0x1ef   : > { %v12100_v43 = vpack.c.bf16 %v12822_v44, %v12821_v56 }
 0x1f0   : > { %v12825_v24 = vpop.permute.xlu0 %12824 }
 0x1f1   : > { %10905 = vmatmul.mubr.msk.f32.gmra.mrb[28].mxu1 %vm1481_vm1, %v14167_v25  ;;  %12099 = vmatpush3.bf16.xpose.msk.msra.mxu0 %vm14360_vm2, %v12094_v16  ;;  %v12827_v18 = vunpack.i.h.bf16 %v12825_v24  ;;  %v12826_v51 = vunpack.i.l.bf16 %v12825_v24  ;;  %v12737_v25 = vunpack.i.h.bf16 %v14746_v47  ;;  %v12761_v24 = vunpack.i.l.bf16 %v14865_v0 }
 0x1f2   : > { %10907 = vmatprep.mubr.msk.f32.mxu1 %vm1481_vm1, %v14180_v35  ;;  %12003 = vmatpush3.bf16.xpose.msk.msra.mxu1 %vm14360_vm2, %v11998_v36 }
 0x1f3   : > { %12006 = vmatprep.subr.msk.bf16.mxu1 %vm14360_vm2, %v12004_v10  ;;  %12102 = vmatprep.subr.msk.bf16.mxu0 %vm14360_vm2, %v12100_v43  ;;  %v12106_v35 = vpack.c.bf16 %v12827_v18, %v12826_v51  ;;  %v15023_v36 = vpop.permute.xlu1 %12829  ;;  %v12010_v31 = vpack.c.bf16 %v12737_v25, %v12736_v28 }
 0x1f5   : > { %10908 = vmatmul.mubr.msk.f32.gmra.mrb[30].mxu1 %vm1481_vm1, %v14177_v34  ;;  %v12742_v34 = vunpack.i.h.bf16 %v14845_v48 }
 0x1f6   : > { %10926 = vmatprep.mubr.msk.f32.mxu1 %vm1481_vm1, %v14188_v41  ;;  %v12741_v41 = vunpack.i.l.bf16 %v14845_v48  ;;  %v12751_v48 = vunpack.i.l.bf16 %v14801_v53 }
 0x1f7   : > { %v15035_v47 = vpop.permute.xlu1 %12834 }
 0x1f8   : > { %v12016_v27 = vpack.c.bf16 %v12742_v34, %v12741_v41  ;;  %v12022_v56 = vpack.c.bf16 %v12752_v49, %v12751_v48 }
 0x1f9   : > { %12105 = vmatpush3.bf16.xpose.msk.msra.mxu0 %vm14360_vm2, %v12100_v43 }
 0x1fa   : > { %12009 = vmatpush3.bf16.xpose.msk.msra.mxu1 %vm14360_vm2, %v12004_v10  ;;  %12108 = vmatprep.subr.msk.bf16.mxu0 %vm14360_vm2, %v12106_v35 }
 0x1fb   : > { %12012 = vmatprep.subr.msk.bf16.mxu1 %vm14360_vm2, %v12010_v31  ;;  %v15043_v16 = vpop.permute.xlu0 %12839 }
 0x1ff   : > { %v15055_v10 = vpop.permute.xlu0 %12844 }
 0x201   : > { %12111 = vmatpush3.bf16.xpose.msk.msra.mxu0 %vm14360_vm2, %v12106_v35 }
 0x202   : > { %12015 = vmatpush3.bf16.xpose.msk.msra.mxu1 %vm14360_vm2, %v12010_v31 }
 0x203   : > { %12018 = vmatprep.subr.msk.bf16.mxu1 %vm14360_vm2, %v12016_v27  ;;  %v12850_v32 = vpop.permute.xlu1 %12849 }
 0x204   : > { %v12852_v11 = vunpack.i.h.bf16 %v12850_v32  ;;  %v12851_v21 = vunpack.i.l.bf16 %v12850_v32 }
 0x206   : > { %v12136_v44 = vpack.c.bf16 %v12852_v11, %v12851_v21 }
 0x207   : > { %v12855_v43 = vpop.permute.xlu1 %12854 }
 0x208   : > { %11039 = vmatmul.mubr.msk.f32.vlgmr.msra.gmra.mrb[128].mxu0 %vm1481_vm1, %v14387_v55  ;;  %12138 = vmatprep.subr.msk.bf16.mxu0 %vm14360_vm2, %v12136_v44  ;;  %v12857_v55 = vunpack.i.h.bf16 %v12855_v43  ;;  %v12856_v53 = vunpack.i.l.bf16 %v12855_v43  ;;  %v18801_v43 = vld [vmem:[#allocation7_spill] sm:$0xff] }
 0x209   : > { %10927 = vmatmul.mubr.msk.f32.vlgmr.msra.gmra.mrb[32].mxu1 %vm1481_vm1, %v14185_v37  ;;  %11041 = vmatprep.mubr.msk.f32.mxu0 %vm1481_vm1, %v14406_v59  ;;  %v12762_v59 = vunpack.i.h.bf16 %v14865_v0 }
 0x20a   : > { %10929 = vmatprep.mubr.msk.f32.mxu1 %vm1481_vm1, %v14200_v50  ;;  %12021 = vmatpush3.bf16.xpose.msk.msra.mxu1 %vm14360_vm2, %v12016_v27  ;;  %v12142_v37 = vpack.c.bf16 %v12857_v55, %v12856_v53  ;;  %v12777_v27 = vunpack.i.h.bf16 %v14882_v6  ;;  %v12782_v53 = vunpack.i.h.bf16 %v14909_v63 }
 0x20b   : > { %12141 = vmatpush3.bf16.xpose.msk.msra.mxu0 %vm14360_vm2, %v12136_v44  ;;  %12024 = vmatprep.subr.msk.bf16.mxu1 %vm14360_vm2, %v12022_v56  ;;  %v12860_v50 = vpop.permute.xlu0 %12859  ;;  %v12028_v0 = vpack.c.bf16 %v12762_v59, %v12761_v24  ;;  %v18802_v59 = vld [vmem:[#allocation6_spill] sm:$0xff] }
 0x20c   : > { %11042 = vmatmul.mubr.msk.f32.gmra.mrb[130].mxu0 %vm1481_vm1, %v14401_v30  ;;  %12144 = vmatprep.subr.msk.bf16.mxu0 %vm14360_vm2, %v12142_v37  ;;  %v12862_v18 = vunpack.i.h.bf16 %v12860_v50  ;;  %v12861_v51 = vunpack.i.l.bf16 %v12860_v50  ;;  %v18803_v50 = vld [vmem:[#allocation9_spill] sm:$0xff] }
 0x20d   : > { %10930 = vmatmul.mubr.msk.f32.gmra.mrb[34].mxu1 %vm1481_vm1, %v14197_v46  ;;  %11044 = vmatprep.mubr.msk.f32.mxu0 %vm1481_vm1, %v14424_v7  ;;  %v18799_v7 = vld [vmem:[#allocation5_spill] sm:$0xff] }
 0x20e   : > { %10932 = vmatprep.mubr.msk.f32.mxu1 %vm1481_vm1, %v14210_v58  ;;  %v12148_v30 = vpack.c.bf16 %v12862_v18, %v12861_v51  ;;  %v18804_v18 = vld [vmem:[#allocation8_spill] sm:$0xff] }
 0x20f   : > { %v12865_v46 = vpop.permute.xlu0 %12864  ;;  %v18805_v51 = vld [vmem:[#allocation12_spill] sm:$0xff] }
 0x210   : > { %11045 = vmatmul.mubr.msk.f32.gmra.mrb[132].mxu0 %vm1481_vm1, %v14421_v9  ;;  %v12866_v58 = vunpack.i.l.bf16 %v12865_v46  ;;  %v12767_v9 = vunpack.i.h.bf16 %v14856_v22 }
 0x211   : > { %10933 = vmatmul.mubr.msk.f32.gmra.mrb[36].mxu1 %vm1481_vm1, %v14207_v57  ;;  %11047 = vmatprep.mubr.msk.f32.mxu0 %vm1481_vm1, %v14438_v1  ;;  %v12867_v57 = vunpack.i.h.bf16 %v12865_v46  ;;  %v18807_v46 = vld [vmem:[#allocation11_spill] sm:$0xff] }
 0x212   : > { %10935 = vmatprep.mubr.msk.f32.mxu1 %vm1481_vm1, %v14218_v4  ;;  %12027 = vmatpush3.bf16.xpose.msk.msra.mxu1 %vm14360_vm2, %v12022_v56  ;;  %v12766_v4 = vunpack.i.l.bf16 %v14856_v22  ;;  %v18800_v56 = vld [vmem:[#allocation4_spill] sm:$0xff] }
 0x213   : > { %12147 = vmatpush3.bf16.xpose.msk.msra.mxu0 %vm14360_vm2, %v12142_v37  ;;  %12030 = vmatprep.subr.msk.bf16.mxu1 %vm14360_vm2, %v12028_v0  ;;  %v15103_v1 = vpop.permute.xlu1 %12869  ;;  %v12154_v25 = vpack.c.bf16 %v12867_v57, %v12866_v58  ;;  %v12781_v37 = vunpack.i.l.bf16 %v14909_v63 }
 0x214   : > { %12150 = vmatprep.subr.msk.bf16.mxu0 %vm14360_vm2, %v12148_v30  ;;  %11048 = vmatmul.mubr.msk.f32.gmra.mrb[134].mxu0 %vm1481_vm1, %v14429_v52  ;;  %v12034_v28 = vpack.c.bf16 %v12767_v9, %v12766_v4  ;;  %v12771_v52 = vunpack.i.l.bf16 %v14891_v45  ;;  %v18808_v9 = vld [vmem:[#allocation15_spill] sm:$0xff] }
 0x215   : > { %10936 = vmatmul.mubr.msk.f32.gmra.mrb[38].mxu1 %vm1481_vm1, %v14215_v61  ;;  %11094 = vmatprep.mubr.msk.f32.mxu0 %vm1481_vm1, %v14520_v62  ;;  %v12772_v61 = vunpack.i.h.bf16 %v14891_v45  ;;  %v12776_v45 = vunpack.i.l.bf16 %v14882_v6 }
 0x216   : > { %10954 = vmatprep.mubr.msk.f32.mxu1 %vm1481_vm1, %v18799_v7  ;;  %v18809_v7 = vld [vmem:[#allocation68_spill] sm:$0xff] }
 0x217   : > { %v15115_v62 = vpop.permute.xlu1 %12874  ;;  %v12040_v35 = vpack.c.bf16 %v12772_v61, %v12771_v52  ;;  %v12046_v44 = vpack.c.bf16 %v12777_v27, %v12776_v45 }
 0x21a   : > { %12033 = vmatpush3.bf16.xpose.msk.msra.mxu1 %vm14360_vm2, %v12028_v0  ;;  %v18806_v0 = vld [vmem:[#allocation66_spill] sm:$0xff] }
 0x21b   : > { %12153 = vmatpush3.bf16.xpose.msk.msra.mxu0 %vm14360_vm2, %v12148_v30  ;;  %12036 = vmatprep.subr.msk.bf16.mxu1 %vm14360_vm2, %v12034_v28  ;;  %v15117_v22 = vpop.permute.xlu0 %12879 }
 0x21c   : > { %12156 = vmatprep.subr.msk.bf16.mxu0 %vm14360_vm2, %v12154_v25 }
 0x21f   : > { %v15127_v32 = vpop.permute.xlu0 %12884 }
 0x222   : > { %12039 = vmatpush3.bf16.xpose.msk.msra.mxu1 %vm14360_vm2, %v12034_v28  ;;  %v12791_v28 = vunpack.i.l.bf16 %v14931_v29 }
 0x223   : > { %12159 = vmatpush3.bf16.xpose.msk.msra.mxu0 %vm14360_vm2, %v12154_v25  ;;  %12042 = vmatprep.subr.msk.bf16.mxu1 %vm14360_vm2, %v12040_v35  ;;  %v12890_v31 = vpop.permute.xlu1 %12889  ;;  %v12792_v25 = vunpack.i.h.bf16 %v14931_v29 }
 0x224   : > { %v12892_v34 = vunpack.i.h.bf16 %v12890_v31  ;;  %v12891_v41 = vunpack.i.l.bf16 %v12890_v31 }
 0x225   : > { %v12064_v52 = vpack.c.bf16 %v12792_v25, %v12791_v28  ;;  %v12831_v25 = vunpack.i.l.bf16 %v15023_v36 }
 0x226   : > { %v12184_v11 = vpack.c.bf16 %v12892_v34, %v12891_v41  ;;  %v12797_v34 = vunpack.i.h.bf16 %v14924_v15  ;;  %v12796_v41 = vunpack.i.l.bf16 %v14924_v15 }
 0x227   : > { %v12895_v21 = vpop.permute.xlu1 %12894 }
 0x228   : > { %12186 = vmatprep.subr.msk.bf16.mxu0 %vm14360_vm2, %v12184_v11  ;;  %v12897_v49 = vunpack.i.h.bf16 %v12895_v21  ;;  %v12896_v48 = vunpack.i.l.bf16 %v12895_v21 }
 0x229   : > { %10955 = vmatmul.mubr.msk.f32.vlgmr.msra.gmra.mrb[40].mxu1 %vm1481_vm1, %v18800_v56  ;;  %v18811_v56 = vld [vmem:[#allocation18_spill] sm:$0xff] }
 0x22a   : > { %10957 = vmatprep.mubr.msk.f32.mxu1 %vm1481_vm1, %v18801_v43  ;;  %12045 = vmatpush3.bf16.xpose.msk.msra.mxu1 %vm14360_vm2, %v12040_v35  ;;  %v12190_v6 = vpack.c.bf16 %v12897_v49, %v12896_v48  ;;  %v12070_v48 = vpack.c.bf16 %v12797_v34, %v12796_v41 }
 0x22b   : > { %11095 = vmatmul.mubr.msk.f32.vlgmr.msra.gmra.mrb[136].mxu0 %vm1481_vm1, %v14517_v13  ;;  %12048 = vmatprep.subr.msk.bf16.mxu1 %vm14360_vm2, %v12046_v44  ;;  %v12900_v55 = vpop.permute.xlu0 %12899 }
 0x22c   : > { %12189 = vmatpush3.bf16.xpose.msk.msra.mxu0 %vm14360_vm2, %v12184_v11  ;;  %11097 = vmatprep.mubr.msk.f32.mxu0 %vm1481_vm1, %v14552_v23  ;;  %v12902_v13 = vunpack.i.h.bf16 %v12900_v55  ;;  %v12901_v24 = vunpack.i.l.bf16 %v12900_v55  ;;  %v12052_v23 = vpack.c.bf16 %v12782_v53, %v12781_v37  ;;  %v12801_v55 = vunpack.i.l.bf16 %v14945_v20  ;;  %v18812_v53 = vld [vmem:[#allocation17_spill] sm:$0xff] }
 0x22d   : > { %10958 = vmatmul.mubr.msk.f32.gmra.mrb[42].mxu1 %vm1481_vm1, %v18802_v59  ;;  %12192 = vmatprep.subr.msk.bf16.mxu0 %vm14360_vm2, %v12190_v6  ;;  %v18813_v59 = vld [vmem:[#allocation21_spill] sm:$0xff] }
 0x22e   : > { %10960 = vmatprep.mubr.msk.f32.mxu1 %vm1481_vm1, %v18803_v50  ;;  %v12196_v63 = vpack.c.bf16 %v12902_v13, %v12901_v24  ;;  %v18814_v13 = vld [vmem:[#allocation88_spill] sm:$0xff] }
 0x22f   : > { %11098 = vmatmul.mubr.msk.f32.gmra.mrb[138].mxu0 %vm1481_vm1, %v14545_v5  ;;  %v12905_v30 = vpop.permute.xlu0 %12904  ;;  %v12787_v5 = vunpack.i.h.bf16 %v14902_v38  ;;  %v18815_v24 = vld [vmem:[#allocation92_spill] sm:$0xff] }
 0x230   : > { %11100 = vmatprep.mubr.msk.f32.mxu0 %vm1481_vm1, %v14574_v3  ;;  %v12786_v3 = vunpack.i.l.bf16 %v14902_v38  ;;  %v12907_v57 = vunpack.i.h.bf16 %v12905_v30  ;;  %v12906_v58 = vunpack.i.l.bf16 %v12905_v30  ;;  %v18816_v50 = vld [vmem:[#allocation20_spill] sm:$0xff]  ;;  %v12807_v30 = vunpack.i.h.bf16 %v14974_v8 }
 0x231   : > { %10961 = vmatmul.mubr.msk.f32.gmra.mrb[44].mxu1 %vm1481_vm1, %v18804_v18 }
 0x232   : > { %10963 = vmatprep.mubr.msk.f32.mxu1 %vm1481_vm1, %v18805_v51  ;;  %12051 = vmatpush3.bf16.xpose.msk.msra.mxu1 %vm14360_vm2, %v12046_v44  ;;  %v12202_v38 = vpack.c.bf16 %v12907_v57, %v12906_v58  ;;  %v18810_v44 = vld [vmem:[#allocation14_spill] sm:$0xff]  ;;  %v18819_v51 = vld [vmem:[#allocation95_spill] sm:$0xff] }
 0x233   : > { %12054 = vmatprep.subr.msk.bf16.mxu1 %vm14360_vm2, %v12052_v23  ;;  %11101 = vmatmul.mubr.msk.f32.gmra.mrb[140].mxu0 %vm1481_vm1, %v18806_v0  ;;  %v15179_v4 = vpop.permute.xlu1 %12909  ;;  %v12806_v0 = vunpack.i.l.bf16 %v14974_v8  ;;  %v18821_v57 = vld [vmem:[#allocation27_spill] sm:$0xff]  ;;  %v18822_v58 = vld [vmem:[#allocation94_spill] sm:$0xff] }
 0x234   : > { %12195 = vmatpush3.bf16.xpose.msk.msra.mxu0 %vm14360_vm2, %v12190_v6  ;;  %11103 = vmatprep.mubr.msk.f32.mxu0 %vm1481_vm1, %v14590_v19  ;;  %v12058_v19 = vpack.c.bf16 %v12787_v5, %v12786_v3  ;;  %v12802_v6 = vunpack.i.h.bf16 %v14945_v20  ;;  %v18820_v5 = vld [vmem:[#allocation23_spill] sm:$0xff] }
 0x235   : > { %10964 = vmatmul.mubr.msk.f32.gmra.mrb[46].mxu1 %vm1481_vm1, %v18807_v46  ;;  %12198 = vmatprep.subr.msk.bf16.mxu0 %vm14360_vm2, %v12196_v63 }
 0x236   : > { %10982 = vmatprep.mubr.msk.f32.mxu1 %vm1481_vm1, %v18808_v9  ;;  %v18823_v9 = vld [vmem:[#allocation114_spill] sm:$0xff] }
 0x237   : > { %11104 = vmatmul.mubr.msk.f32.gmra.mrb[142].mxu0 %vm1481_vm1, %v18809_v7  ;;  %v15193_v61 = vpop.permute.xlu1 %12914  ;;  %v12082_v7 = vpack.c.bf16 %v12807_v30, %v12806_v0  ;;  %v12841_v30 = vunpack.i.l.bf16 %v15043_v16  ;;  %v18830_v0 = vld [vmem:[#allocation29_spill] sm:$0xff] }
 0x238   : > { %11150 = vmatprep.mubr.msk.f32.mxu0 %vm1481_vm1, %v14674_v42 }
 0x23a   : > { %12057 = vmatpush3.bf16.xpose.msk.msra.mxu1 %vm14360_vm2, %v12052_v23  ;;  %v18817_v23 = vld [vmem:[#allocation24_spill] sm:$0xff] }
 0x23b   : > { %12060 = vmatprep.subr.msk.bf16.mxu1 %vm14360_vm2, %v12058_v19  ;;  %v15197_v42 = vpop.permute.xlu0 %12919 }
 0x23c   : > { %12201 = vmatpush3.bf16.xpose.msk.msra.mxu0 %vm14360_vm2, %v12196_v63  ;;  %v18818_v63 = vld [vmem:[#allocation91_spill] sm:$0xff] }
 0x23d   : > { %12204 = vmatprep.subr.msk.bf16.mxu0 %vm14360_vm2, %v12202_v38 }
 0x23f   : > { %v15207_v27 = vpop.permute.xlu0 %12924 }
 0x242   : > { %12063 = vmatpush3.bf16.xpose.msk.msra.mxu1 %vm14360_vm2, %v12058_v19 }
 0x243   : > { %12066 = vmatprep.subr.msk.bf16.mxu1 %vm14360_vm2, %v12064_v52  ;;  %v12930_v35 = vpop.permute.xlu1 %12929 }
 0x244   : > { %12207 = vmatpush3.bf16.xpose.msk.msra.mxu0 %vm14360_vm2, %v12202_v38  ;;  %v12932_v31 = vunpack.i.h.bf16 %v12930_v35  ;;  %v12931_v29 = vunpack.i.l.bf16 %v12930_v35  ;;  %v12832_v38 = vunpack.i.h.bf16 %v15023_v36 }
 0x246   : > { %v12232_v45 = vpack.c.bf16 %v12932_v31, %v12931_v29  ;;  %v18824_v31 = vld [vmem:[#allocation31_spill] sm:$0xff]  ;;  %v12112_v36 = vpack.c.bf16 %v12832_v38, %v12831_v25  ;;  %v18835_v38 = vld [vmem:[#allocation38_spill] sm:$0xff]  ;;  %v18836_v25 = vld [vmem:[#allocation44_spill] sm:$0xff] }
 0x247   : > { %v12935_v11 = vpop.permute.xlu1 %12934  ;;  %v12557_v29 = vunpack.i.h.bf16 %v18824_v31  ;;  %v12556_v34 = vunpack.i.l.bf16 %v18824_v31 }
 0x248   : > { %12234 = vmatprep.subr.msk.bf16.mxu0 %vm14360_vm2, %v12232_v45  ;;  %v12937_v21 = vunpack.i.h.bf16 %v12935_v11  ;;  %v12936_v49 = vunpack.i.l.bf16 %v12935_v11 }
 0x249   : > { %10983 = vmatmul.mubr.msk.f32.vlgmr.msra.gmra.mrb[48].mxu1 %vm1481_vm1, %v18810_v44 }
 0x24a   : > { %10985 = vmatprep.mubr.msk.f32.mxu1 %vm1481_vm1, %v18811_v56  ;;  %12069 = vmatpush3.bf16.xpose.msk.msra.mxu1 %vm14360_vm2, %v12064_v52  ;;  %v12238_v15 = vpack.c.bf16 %v12937_v21, %v12936_v49  ;;  %v12280_v21 = vpack.c.bf16 %v12557_v29, %v12556_v34  ;;  %v18837_v29 = vld [vmem:[#allocation116_spill] sm:$0xff] }
 0x24b   : > { %11151 = vmatmul.mubr.msk.f32.vlgmr.msra.gmra.mrb[144].mxu0 %vm1481_vm1, %v14671_v12  ;;  %12072 = vmatprep.subr.msk.bf16.mxu1 %vm14360_vm2, %v12070_v48  ;;  %v12940_v43 = vpop.permute.xlu0 %12939  ;;  %v18838_v34 = vld [vmem:[#allocation120_spill] sm:$0xff] }
 0x24c   : > { %12237 = vmatpush3.bf16.xpose.msk.msra.mxu0 %vm14360_vm2, %v12232_v45  ;;  %11153 = vmatprep.mubr.msk.f32.mxu0 %vm1481_vm1, %v14700_v33  ;;  %v12942_v12 = vunpack.i.h.bf16 %v12940_v43  ;;  %v12941_v37 = vunpack.i.l.bf16 %v12940_v43  ;;  %v12076_v33 = vpack.c.bf16 %v12802_v6, %v12801_v55  ;;  %v12837_v55 = vunpack.i.h.bf16 %v15035_v47 }
 0x24d   : > { %10986 = vmatmul.mubr.msk.f32.gmra.mrb[50].mxu1 %vm1481_vm1, %v18812_v53  ;;  %12240 = vmatprep.subr.msk.bf16.mxu0 %vm14360_vm2, %v12238_v15  ;;  %v12836_v53 = vunpack.i.l.bf16 %v15035_v47  ;;  %v18828_v47 = vld [vmem:[#allocation40_spill] sm:$0xff] }
 0x24e   : > { %10988 = vmatprep.mubr.msk.f32.mxu1 %vm1481_vm1, %v18813_v59  ;;  %v12244_v20 = vpack.c.bf16 %v12942_v12, %v12941_v37  ;;  %v18826_v59 = vld [vmem:[#allocation26_spill] sm:$0xff] }
 0x24f   : > { %11154 = vmatmul.mubr.msk.f32.gmra.mrb[146].mxu0 %vm1481_vm1, %v18814_v13  ;;  %v12945_v18 = vpop.permute.xlu0 %12944  ;;  %v18827_v13 = vld [vmem:[#allocation30_spill] sm:$0xff] }
 0x250   : > { %11156 = vmatprep.mubr.msk.f32.mxu0 %vm1481_vm1, %v18815_v24  ;;  %v12947_v3 = vunpack.i.h.bf16 %v12945_v18  ;;  %v12946_v46 = vunpack.i.l.bf16 %v12945_v18 }
 0x251   : > { %10989 = vmatmul.mubr.msk.f32.gmra.mrb[52].mxu1 %vm1481_vm1, %v18816_v50  ;;  %v12577_v50 = vunpack.i.h.bf16 %v18828_v47 }
 0x252   : > { %10991 = vmatprep.mubr.msk.f32.mxu1 %vm1481_vm1, %v18817_v23  ;;  %12075 = vmatpush3.bf16.xpose.msk.msra.mxu1 %vm14360_vm2, %v12070_v48  ;;  %v12250_v19 = vpack.c.bf16 %v12947_v3, %v12946_v46  ;;  %v18829_v23 = vld [vmem:[#allocation112_spill] sm:$0xff]  ;;  %v18832_v46 = vld [vmem:[#allocation42_spill] sm:$0xff] }
 0x253   : > { %12078 = vmatprep.subr.msk.bf16.mxu1 %vm14360_vm2, %v12076_v33  ;;  %11157 = vmatmul.mubr.msk.f32.gmra.mrb[148].mxu0 %vm1481_vm1, %v18818_v63  ;;  %v12118_v63 = vpack.c.bf16 %v12837_v55, %v12836_v53  ;;  %v12872_v53 = vunpack.i.h.bf16 %v15103_v1 }
 0x254   : > { %12243 = vmatpush3.bf16.xpose.msk.msra.mxu0 %vm14360_vm2, %v12238_v15  ;;  %11159 = vmatprep.mubr.msk.f32.mxu0 %vm1481_vm1, %v18819_v51  ;;  %v18825_v15 = vld [vmem:[#allocation35_spill] sm:$0xff]  ;;  %v12842_v51 = vunpack.i.h.bf16 %v15043_v16  ;;  %v18833_v16 = vld [vmem:[#allocation117_spill] sm:$0xff] }
 0x255   : > { %10992 = vmatmul.mubr.msk.f32.gmra.mrb[54].mxu1 %vm1481_vm1, %v18820_v5  ;;  %12246 = vmatprep.subr.msk.bf16.mxu0 %vm14360_vm2, %v12244_v20  ;;  %v12567_v43 = vunpack.i.h.bf16 %v18825_v15  ;;  %v12566_v6 = vunpack.i.l.bf16 %v18825_v15  ;;  %v18831_v5 = vld [vmem:[#allocation34_spill] sm:$0xff]  ;;  %v18841_v15 = vld [vmem:[#allocation119_spill] sm:$0xff] }
 0x256   : > { %11010 = vmatprep.mubr.msk.f32.mxu1 %vm1481_vm1, %v18821_v57  ;;  %v12587_v57 = vunpack.i.h.bf16 %v18832_v46 }
 0x257   : > { %11160 = vmatmul.mubr.msk.f32.gmra.mrb[150].mxu0 %vm1481_vm1, %v18822_v58  ;;  %v12284_v18 = vpack.c.bf16 %v12567_v43, %v12566_v6  ;;  %v12586_v58 = vunpack.i.l.bf16 %v18832_v46  ;;  %v18842_v43 = vld [vmem:[#allocation123_spill] sm:$0xff] }
 0x258   : > { %11206 = vmatprep.mubr.msk.f32.mxu0 %vm1481_vm1, %v18823_v9 }
 0x259   : > { %v12292_v31 = vpack.c.bf16 %v12587_v57, %v12586_v58  ;;  %v18844_v57 = vld [vmem:[#allocation47_spill] sm:$0xff] }
 0x25a   : > { %12081 = vmatpush3.bf16.xpose.msk.msra.mxu1 %vm14360_vm2, %v12076_v33 }
 0x25b   : > { %12084 = vmatprep.subr.msk.bf16.mxu1 %vm14360_vm2, %v12082_v7 }
 0x25c   : > { %12249 = vmatpush3.bf16.xpose.msk.msra.mxu0 %vm14360_vm2, %v12244_v20  ;;  %v15269_v8 = vpop.f32.mrb[0].mxu1  ;;  %v12576_v20 = vunpack.i.l.bf16 %v18828_v47 }
 0x25d   : > { %v15273_v28 = vpop.f32.mrb[1].mxu1  ;;  %v4038_v52 = vsel %vm4034_vm3, %v15269_v8, -inf  ;;  %12252 = vmatprep.subr.msk.bf16.mxu0 %vm14360_vm2, %v12250_v19 }
 0x25e   : > { %4039 = vmax.xlane.f32.xlu1 %v4038_v52  ;;  %v4035_v35 = vsel %vm4034_vm3, %v15273_v28, -inf  ;;  %v12288_v9 = vpack.c.bf16 %v12577_v50, %v12576_v20  ;;  %v12597_v52 = vunpack.i.h.bf16 %v18836_v25 }
 0x25f   : > { %4036 = vmax.xlane.f32.xlu0 %v4035_v35  ;;  %v12596_v35 = vunpack.i.l.bf16 %v18836_v25  ;;  %v18847_v25 = vld [vmem:[#allocation57_spill] sm:$0xff] }
 0x260   : > { %v15283_v41 = vpop.f32.mrb[2].mxu1 }
 0x261   : > { %v15285_v45 = vpop.f32.mrb[3].mxu1  ;;  %v4044_v11 = vsel %vm4034_vm3, %v15283_v41, -inf }
 0x262   : > { %12087 = vmatpush3.bf16.xpose.msk.msra.mxu1 %vm14360_vm2, %v12082_v7  ;;  %v4041_v44 = vsel %vm4034_vm3, %v15285_v45, -inf  ;;  %v12124_v7 = vpack.c.bf16 %v12842_v51, %v12841_v30  ;;  %v12877_v30 = vunpack.i.h.bf16 %v15115_v62 }
 0x263   : > { %4045 = vmax.xlane.f32.xlu0 %v4044_v11  ;;  %12114 = vmatprep.subr.msk.bf16.mxu1 %vm14360_vm2, %v12112_v36  ;;  %v12846_v11 = vunpack.i.l.bf16 %v15055_v10 }
 0x264   : > { %12255 = vmatpush3.bf16.xpose.msk.msra.mxu0 %vm14360_vm2, %v12250_v19  ;;  %v15295_v49 = vpop.f32.mrb[4].mxu1  ;;  %v18834_v19 = vld [vmem:[#allocation33_spill] sm:$0xff] }
 0x265   : > { %12281 = vmatprep.subr.bf16.mxu0 %v12280_v21  ;;  %v15297_v48 = vpop.f32.mrb[5].mxu1  ;;  %v4050_v24 = vsel %vm4034_vm3, %v15295_v49, -inf }
 0x266   : > { %v4047_v56 = vsel %vm4034_vm3, %v15297_v48, -inf }
 0x267   : > { %4042 = vmax.xlane.f32.xlu0 %v4041_v44  ;;  %4048 = vmax.xlane.f32.xlu1 %v4047_v56  ;;  %v18840_v44 = vld [vmem:[#allocation49_spill] sm:$0xff]  ;;  %v15359_v56 = vpack.c.bf16 %v12597_v52, %v12596_v35  ;;  %v18848_v35 = vld [vmem:[#allocation55_spill] sm:$0xff] }
 0x268   : > { %v15307_v12 = vpop.f32.mrb[6].mxu1 }
 0x269   : > { %v15309_v37 = vpop.f32.mrb[7].mxu1  ;;  %11011 = vmatmul.mubr.msk.f32.vlgmr.msra.gmra.mrb[56].mxu1 %vm1481_vm1, %v18826_v59  ;;  %v4056_v3 = vsel %vm4034_vm3, %v15307_v12, -inf  ;;  %v12871_v59 = vunpack.i.l.bf16 %v15103_v1 }
 0x26a   : > { %11013 = vmatprep.mubr.msk.f32.mxu1 %vm1481_vm1, %v18827_v13  ;;  %12117 = vmatpush3.bf16.xpose.msk.msra.mxu1 %vm14360_vm2, %v12112_v36  ;;  %v4053_v33 = vsel %vm4034_vm3, %v15309_v37, -inf  ;;  %v12847_v36 = vunpack.i.h.bf16 %v15055_v10  ;;  %v18843_v10 = vld [vmem:[#allocation122_spill] sm:$0xff] }
 0x26b   : > { %11207 = vmatmul.mubr.msk.f32.vlgmr.msra.gmra.mrb[152].mxu0 %vm1481_vm1, %v18829_v23  ;;  %4051 = vmax.xlane.f32.xlu0 %v4050_v24  ;;  %v12160_v50 = vpack.c.bf16 %v12872_v53, %v12871_v59 }
 0x26c   : > { %12283 = vmatpush3.bf16.msra.mxu0 %v12280_v21  ;;  %4054 = vmax.xlane.f32.xlu1 %v4053_v33  ;;  %v18839_v21 = vld [vmem:[#allocation37_spill] sm:$0xff]  ;;  %v12130_v6 = vpack.c.bf16 %v12847_v36, %v12846_v11  ;;  %v18851_v36 = vld [vmem:[#allocation72_spill] sm:$0xff] }
 0x26d   : > { %12285 = vmatprep.subr.bf16.mxu0 %v12284_v18  ;;  %11014 = vmatmul.mubr.msk.f32.gmra.mrb[58].mxu1 %vm1481_vm1, %v18830_v0  ;;  %v12876_v0 = vunpack.i.l.bf16 %v15115_v62 }
 0x26e   : > { %11016 = vmatprep.mubr.msk.f32.mxu1 %vm1481_vm1, %v18831_v5  ;;  %12120 = vmatprep.subr.msk.bf16.mxu1 %vm14360_vm2, %v12118_v63 }
 0x26f   : > { %4057 = vmax.xlane.f32.xlu0 %v4056_v3  ;;  %11209 = vmatprep.mubr.msk.f32.mxu0 %vm1481_vm1, %v18833_v16  ;;  %v18845_v16 = vld [vmem:[#allocation52_spill] sm:$0xff] }
 0x270   : > { %12287 = vmatpush3.bf16.msra.mxu0 %v12284_v18 }
 0x271   : > { %12289 = vmatprep.subr.bf16.mxu0 %v12288_v9  ;;  %11017 = vmatmul.mubr.msk.f32.gmra.mrb[60].mxu1 %vm1481_vm1, %v18834_v19  ;;  %v12881_v19 = vunpack.i.l.bf16 %v15117_v22 }
 0x272   : > { %11019 = vmatprep.mubr.msk.f32.mxu1 %vm1481_vm1, %v18835_v38  ;;  %12123 = vmatpush3.bf16.xpose.msk.msra.mxu1 %vm14360_vm2, %v12118_v63  ;;  %v18846_v38 = vld [vmem:[#allocation50_spill] sm:$0xff] }
 0x273   : > { %12126 = vmatprep.subr.msk.bf16.mxu1 %vm14360_vm2, %v12124_v7  ;;  %11210 = vmatmul.mubr.msk.f32.gmra.mrb[154].mxu0 %vm1481_vm1, %v18837_v29  ;;  %v12886_v29 = vunpack.i.l.bf16 %v15127_v32 }
 0x274   : > { %12291 = vmatpush3.bf16.msra.mxu0 %v12288_v9  ;;  %11212 = vmatprep.mubr.msk.f32.mxu0 %vm1481_vm1, %v18838_v34  ;;  %v12166_v9 = vpack.c.bf16 %v12877_v30, %v12876_v0  ;;  %v18850_v34 = vld [vmem:[#allocation58_spill] sm:$0xff] }
 0x275   : > { %12293 = vmatprep.subr.bf16.mxu0 %v12292_v31  ;;  %11020 = vmatmul.mubr.msk.f32.gmra.mrb[62].mxu1 %vm1481_vm1, %v18839_v21  ;;  %v18852_v0 = vld [vmem:[#allocation70_spill] sm:$0xff] }
 0x276   : > { %11066 = vmatprep.mubr.msk.f32.mxu1 %vm1481_vm1, %v18840_v44  ;;  %v12912_v44 = vunpack.i.h.bf16 %v15179_v4 }
 0x277   : > { %11213 = vmatmul.mubr.msk.f32.gmra.mrb[156].mxu0 %vm1481_vm1, %v18841_v15  ;;  %v12911_v15 = vunpack.i.l.bf16 %v15179_v4 }
 0x278   : > { %12295 = vmatpush3.bf16.msra.mxu0 %v12292_v31  ;;  %11215 = vmatprep.mubr.msk.f32.mxu0 %vm1481_vm1, %v18842_v43  ;;  %v18849_v31 = vld [vmem:[#allocation60_spill] sm:$0xff] }
 0x279   : > { %12297 = vmatprep.subr.bf16.mxu0 %v15359_v56 }
 0x27a   : > { %12129 = vmatpush3.bf16.xpose.msk.msra.mxu1 %vm14360_vm2, %v12124_v7  ;;  %v12882_v7 = vunpack.i.h.bf16 %v15117_v22  ;;  %v12887_v22 = vunpack.i.h.bf16 %v15127_v32 }
 0x27b   : > { %12132 = vmatprep.subr.msk.bf16.mxu1 %vm14360_vm2, %v12130_v6  ;;  %11216 = vmatmul.mubr.msk.f32.gmra.mrb[158].mxu0 %vm1481_vm1, %v18843_v10  ;;  %v12208_v10 = vpack.c.bf16 %v12912_v44, %v12911_v15 }
 0x27c   : > { %v15372_v55 = vpop.f32.mrb[8].mxu1  ;;  %v12172_v52 = vpack.c.bf16 %v12882_v7, %v12881_v19  ;;  %v12178_v11 = vpack.c.bf16 %v12887_v22, %v12886_v29  ;;  %v18859_v22 = vld [vmem:[#allocation99_spill] sm:$0xff] }
 0x27d   : > { %v15376_v13 = vpop.f32.mrb[9].mxu1  ;;  %v4062_v24 = vsel %vm4034_vm3, %v15372_v55, -inf }
 0x27e   : > { %4063 = vmax.xlane.f32.xlu0 %v4062_v24  ;;  %v4059_v33 = vsel %vm4034_vm3, %v15376_v13, -inf  ;;  %v12917_v24 = vunpack.i.h.bf16 %v15193_v61 }
 0x27f   : > { %4060 = vmax.xlane.f32.xlu1 %v4059_v33  ;;  %v12916_v33 = vunpack.i.l.bf16 %v15193_v61  ;;  %v18853_v61 = vld [vmem:[#allocation77_spill] sm:$0xff] }
 0x280   : > { %v15382_v47 = vpop.f32.mrb[10].mxu1 }
 0x281   : > { %v15384_v20 = vpop.f32.mrb[11].mxu1  ;;  %v4068_v23 = vsel %vm4034_vm3, %v15382_v47, -inf }
 0x282   : > { %12135 = vmatpush3.bf16.xpose.msk.msra.mxu1 %vm14360_vm2, %v12130_v6  ;;  %4069 = vmax.xlane.f32.xlu0 %v4068_v23  ;;  %v4065_v1 = vsel %vm4034_vm3, %v15384_v20, -inf }
 0x283   : > { %4066 = vmax.xlane.f32.xlu1 %v4065_v1  ;;  %12162 = vmatprep.subr.msk.bf16.mxu1 %vm14360_vm2, %v12160_v50 }
 0x284   : > { %v15394_v18 = vpop.f32.mrb[12].mxu1 }
 0x285   : > { %v15396_v63 = vpop.f32.mrb[13].mxu1  ;;  %v4074_v51 = vsel %vm4034_vm3, %v15394_v18, -inf }
 0x286   : > { %4075 = vmax.xlane.f32.xlu0 %v4074_v51  ;;  %v4071_v5 = vsel %vm4034_vm3, %v15396_v63, -inf  ;;  %v12214_v51 = vpack.c.bf16 %v12917_v24, %v12916_v33 }
 0x287   : > { %4072 = vmax.xlane.f32.xlu1 %v4071_v5 }
 0x288   : > { %v15404_v3 = vpop.f32.mrb[14].mxu1 }
 0x289   : > { %v15406_v46 = vpop.f32.mrb[15].mxu1  ;;  %11067 = vmatmul.mubr.msk.f32.vlgmr.msra.gmra.mrb[64].mxu1 %vm1481_vm1, %v18844_v57  ;;  %v4080_v58 = vsel %vm4034_vm3, %v15404_v3, -inf  ;;  %v12922_v57 = vunpack.i.h.bf16 %v15197_v42 }
 0x28a   : > { %11069 = vmatprep.mubr.msk.f32.mxu1 %vm1481_vm1, %v18845_v16  ;;  %12165 = vmatpush3.bf16.xpose.msk.msra.mxu1 %vm14360_vm2, %v12160_v50  ;;  %v4077_v62 = vsel %vm4034_vm3, %v15406_v46, -inf  ;;  %v18854_v16 = vld [vmem:[#allocation74_spill] sm:$0xff] }
 0x28b   : > { %4081 = vmax.xlane.f32.xlu0 %v4080_v58  ;;  %4078 = vmax.xlane.f32.xlu1 %v4077_v62  ;;  %v12921_v58 = vunpack.i.l.bf16 %v15197_v42  ;;  %v18855_v62 = vld [vmem:[#allocation81_spill] sm:$0xff] }
 0x28c   : > { %12168 = vmatprep.subr.msk.bf16.mxu1 %vm14360_vm2, %v12166_v9  ;;  %v18857_v42 = vld [vmem:[#allocation85_spill] sm:$0xff] }
 0x28d   : > { %11070 = vmatmul.mubr.msk.f32.gmra.mrb[66].mxu1 %vm1481_vm1, %v18846_v38  ;;  %v12220_v7 = vpack.c.bf16 %v12922_v57, %v12921_v58  ;;  %v18856_v38 = vld [vmem:[#allocation79_spill] sm:$0xff] }
 0x28e   : > { %11072 = vmatprep.mubr.msk.f32.mxu1 %vm1481_vm1, %v18847_v25  ;;  %v12927_v25 = vunpack.i.h.bf16 %v15207_v27 }
 0x291   : > { %11073 = vmatmul.mubr.msk.f32.gmra.mrb[68].mxu1 %vm1481_vm1, %v18848_v35 }
 0x292   : > { %11075 = vmatprep.mubr.msk.f32.mxu1 %vm1481_vm1, %v18849_v31  ;;  %12171 = vmatpush3.bf16.xpose.msk.msra.mxu1 %vm14360_vm2, %v12166_v9  ;;  %v18858_v31 = vld [vmem:[#allocation83_spill] sm:$0xff] }
 0x293   : > { %12174 = vmatprep.subr.msk.bf16.mxu1 %vm14360_vm2, %v12172_v52 }
 0x295   : > { %11076 = vmatmul.mubr.msk.f32.gmra.mrb[70].mxu1 %vm1481_vm1, %v18850_v34 }
 0x296   : > { %11122 = vmatprep.mubr.msk.f32.mxu1 %vm1481_vm1, %v18851_v36  ;;  %v12950_v36 = vpop.permute.xlu1 %12949 }
 0x297   : > { %v12952_v15 = vunpack.i.h.bf16 %v12950_v36 }
 0x29a   : > { %12177 = vmatpush3.bf16.xpose.msk.msra.mxu1 %vm14360_vm2, %v12172_v52  ;;  %v12926_v52 = vunpack.i.l.bf16 %v15207_v27 }
 0x29b   : > { %12180 = vmatprep.subr.msk.bf16.mxu1 %vm14360_vm2, %v12178_v11 }
 0x29c   : > { %v15444_v21 = vpop.f32.mrb[16].mxu1  ;;  %v12226_v29 = vpack.c.bf16 %v12927_v25, %v12926_v52 }
 0x29d   : > { %v15448_v32 = vpop.f32.mrb[17].mxu1  ;;  %v4086_v43 = vsel %vm4034_vm3, %v15444_v21, -inf }
 0x29e   : > { %4087 = vmax.xlane.f32.xlu1 %v4086_v43  ;;  %v4083_v59 = vsel %vm4034_vm3, %v15448_v32, -inf  ;;  %v12951_v43 = vunpack.i.l.bf16 %v12950_v36 }
 0x2a0   : > { %v15452_v6 = vpop.f32.mrb[18].mxu1  ;;  %v12256_v33 = vpack.c.bf16 %v12952_v15, %v12951_v43 }
 0x2a1   : > { %v15454_v53 = vpop.f32.mrb[19].mxu1  ;;  %v4092_v23 = vsel %vm4034_vm3, %v15452_v6, -inf }
 0x2a2   : > { %12183 = vmatpush3.bf16.xpose.msk.msra.mxu1 %vm14360_vm2, %v12178_v11  ;;  %4084 = vmax.xlane.f32.xlu1 %v4083_v59  ;;  %v4089_v5 = vsel %vm4034_vm3, %v15454_v53, -inf }
 0x2a3   : > { %12210 = vmatprep.subr.msk.bf16.mxu1 %vm14360_vm2, %v12208_v10 }
 0x2a4   : > { %v15462_v4 = vpop.f32.mrb[20].mxu1 }
 0x2a5   : > { %v15466_v50 = vpop.f32.mrb[21].mxu1  ;;  %v4098_v9 = vsel %vm4034_vm3, %v15462_v4, -inf }
 0x2a6   : > { %4093 = vmax.xlane.f32.xlu1 %v4092_v23  ;;  %v4095_v19 = vsel %vm4034_vm3, %v15466_v50, -inf  ;;  %v12955_v23 = vpop.permute.xlu1 %12954 }
 0x2a7   : > { %v12956_v57 = vunpack.i.l.bf16 %v12955_v23 }
 0x2a8   : > { %v15470_v1 = vpop.f32.mrb[22].mxu1 }
 0x2a9   : > { %v15472_v30 = vpop.f32.mrb[23].mxu1  ;;  %11123 = vmatmul.mubr.msk.f32.vlgmr.msra.gmra.mrb[72].mxu1 %vm1481_vm1, %v18852_v0  ;;  %v4104_v35 = vsel %vm4034_vm3, %v15470_v1, -inf }
 0x2aa   : > { %12213 = vmatpush3.bf16.xpose.msk.msra.mxu1 %vm14360_vm2, %v12208_v10  ;;  %4090 = vmax.xlane.f32.xlu1 %v4089_v5  ;;  %v4101_v34 = vsel %vm4034_vm3, %v15472_v30, -inf  ;;  %v12965_v36 = vpop.permute.xlu1 %12964 }
 0x2ab   : > { %11125 = vmatprep.mubr.msk.f32.mxu1 %vm1481_vm1, %v18853_v61  ;;  %12216 = vmatprep.subr.msk.bf16.mxu1 %vm14360_vm2, %v12214_v51  ;;  %v12957_v61 = vunpack.i.h.bf16 %v12955_v23  ;;  %v12967_v43 = vunpack.i.h.bf16 %v12965_v36  ;;  %v18867_v23 = vld [vmem:[#allocation126_spill] sm:$0xff] }
 0x2ad   : > { %11126 = vmatmul.mubr.msk.f32.gmra.mrb[74].mxu1 %vm1481_vm1, %v18854_v16  ;;  %v18860_v16 = vld [vmem:[#allocation97_spill] sm:$0xff] }
 0x2ae   : > { %4099 = vmax.xlane.f32.xlu1 %v4098_v9  ;;  %11128 = vmatprep.mubr.msk.f32.mxu1 %vm1481_vm1, %v18855_v62 }
 0x2b1   : > { %11129 = vmatmul.mubr.msk.f32.gmra.mrb[76].mxu1 %vm1481_vm1, %v18856_v38  ;;  %v18861_v38 = vld [vmem:[#allocation102_spill] sm:$0xff] }
 0x2b2   : > { %12219 = vmatpush3.bf16.xpose.msk.msra.mxu1 %vm14360_vm2, %v12214_v51  ;;  %4096 = vmax.xlane.f32.xlu1 %v4095_v19  ;;  %v12960_v19 = vpop.permute.xlu0 %12959 }
 0x2b3   : > { %11131 = vmatprep.mubr.msk.f32.mxu1 %vm1481_vm1, %v18857_v42  ;;  %12222 = vmatprep.subr.msk.bf16.mxu1 %vm14360_vm2, %v12220_v7  ;;  %v12962_v25 = vunpack.i.h.bf16 %v12960_v19  ;;  %v12961_v52 = vunpack.i.l.bf16 %v12960_v19  ;;  %v18870_v19 = vld [vmem:[#allocation63_spill] sm:$0xff] }
 0x2b5   : > { %11132 = vmatmul.mubr.msk.f32.gmra.mrb[78].mxu1 %vm1481_vm1, %v18858_v31  ;;  %v18863_v31 = vld [vmem:[#allocation107_spill] sm:$0xff] }
 0x2b6   : > { %4105 = vmax.xlane.f32.xlu1 %v4104_v35  ;;  %11178 = vmatprep.mubr.msk.f32.mxu1 %vm1481_vm1, %v18859_v22  ;;  %v18862_v35 = vld [vmem:[#allocation100_spill] sm:$0xff] }
 0x2ba   : > { %12225 = vmatpush3.bf16.xpose.msk.msra.mxu1 %vm14360_vm2, %v12220_v7  ;;  %4102 = vmax.xlane.f32.xlu1 %v4101_v34  ;;  %v12262_v7 = vpack.c.bf16 %v12957_v61, %v12956_v57  ;;  %v18864_v34 = vld [vmem:[#allocation106_spill] sm:$0xff] }
 0x2bb   : > { %12228 = vmatprep.subr.msk.bf16.mxu1 %vm14360_vm2, %v12226_v29 }
 0x2bc   : > { %v15516_v27 = vpop.f32.mrb[24].mxu1 }
 0x2bd   : > { %v15518_v11 = vpop.f32.mrb[25].mxu1  ;;  %v4110_v44 = vsel %vm4034_vm3, %v15516_v27, -inf }
 0x2be   : > { %4111 = vmax.xlane.f32.xlu0 %v4110_v44  ;;  %v4107_v24 = vsel %vm4034_vm3, %v15518_v11, -inf  ;;  %v18865_v44 = vld [vmem:[#allocation110_spill] sm:$0xff] }
 0x2c0   : > { %v15522_v10 = vpop.f32.mrb[26].mxu1 }
 0x2c1   : > { %v15524_v59 = vpop.f32.mrb[27].mxu1  ;;  %v4116_v5 = vsel %vm4034_vm3, %v15522_v10, -inf }
 0x2c2   : > { %12231 = vmatpush3.bf16.xpose.msk.msra.mxu1 %vm14360_vm2, %v12226_v29  ;;  %4108 = vmax.xlane.f32.xlu0 %v4107_v24  ;;  %v4113_v62 = vsel %vm4034_vm3, %v15524_v59, -inf  ;;  %v12268_v29 = vpack.c.bf16 %v12962_v25, %v12961_v52  ;;  %v12966_v24 = vunpack.i.l.bf16 %v12965_v36 }
 0x2c3   : > { %12258 = vmatprep.subr.msk.bf16.mxu1 %vm14360_vm2, %v12256_v33 }
 0x2c4   : > { %v15532_v51 = vpop.f32.mrb[28].mxu1  ;;  %v12274_v61 = vpack.c.bf16 %v12967_v43, %v12966_v24 }
 0x2c5   : > { %v15534_v0 = vpop.f32.mrb[29].mxu1  ;;  %v4122_v42 = vsel %vm4034_vm3, %v15532_v51, -inf }
 0x2c6   : > { %4117 = vmax.xlane.f32.xlu0 %v4116_v5  ;;  %v4119_v22 = vsel %vm4034_vm3, %v15534_v0, -inf }
 0x2c8   : > { %v15538_v58 = vpop.f32.mrb[30].mxu1 }
 0x2c9   : > { %v15540_v9 = vpop.f32.mrb[31].mxu1  ;;  %11179 = vmatmul.mubr.msk.f32.vlgmr.msra.gmra.mrb[80].mxu1 %vm1481_vm1, %v18860_v16  ;;  %v4128_v15 = vsel %vm4034_vm3, %v15538_v58, -inf }
 0x2ca   : > { %12261 = vmatpush3.bf16.xpose.msk.msra.mxu1 %vm14360_vm2, %v12256_v33  ;;  %4114 = vmax.xlane.f32.xlu0 %v4113_v62  ;;  %v18866_v33 = vld [vmem:[#allocation109_spill] sm:$0xff]  ;;  %v4125_v5 = vsel %vm4034_vm3, %v15540_v9, -inf }
 0x2cb   : > { %12264 = vmatprep.subr.msk.bf16.mxu1 %vm14360_vm2, %v12262_v7  ;;  %11181 = vmatprep.mubr.msk.f32.mxu1 %vm1481_vm1, %v18861_v38  ;;  %v12637_v38 = vunpack.i.h.bf16 %v18870_v19 }
 0x2cd   : > { %11182 = vmatmul.mubr.msk.f32.gmra.mrb[82].mxu1 %vm1481_vm1, %v18862_v35 }
 0x2ce   : > { %4123 = vmax.xlane.f32.xlu0 %v4122_v42  ;;  %11184 = vmatprep.mubr.msk.f32.mxu1 %vm1481_vm1, %v18863_v31  ;;  %v12636_v42 = vunpack.i.l.bf16 %v18870_v19 }
 0x2d0   : > { %v12312_v36 = vpack.c.bf16 %v12637_v38, %v12636_v42  ;;  %v18882_v42 = vld [vmem:[#allocation76_spill] sm:$0xff] }
 0x2d1   : > { %11185 = vmatmul.mubr.msk.f32.gmra.mrb[84].mxu1 %vm1481_vm1, %v18864_v34 }
 0x2d2   : > { %12267 = vmatpush3.bf16.xpose.msk.msra.mxu1 %vm14360_vm2, %v12262_v7  ;;  %4120 = vmax.xlane.f32.xlu0 %v4119_v22 }
 0x2d3   : > { %12270 = vmatprep.subr.msk.bf16.mxu1 %vm14360_vm2, %v12268_v29  ;;  %11187 = vmatprep.mubr.msk.f32.mxu1 %vm1481_vm1, %v18865_v44 }
 0x2d5   : > { %11188 = vmatmul.mubr.msk.f32.gmra.mrb[86].mxu1 %vm1481_vm1, %v18866_v33  ;;  %v18877_v33 = vld [vmem:[#allocation67_spill] sm:$0xff] }
 0x2d6   : > { %4129 = vmax.xlane.f32.xlu0 %v4128_v15  ;;  %11234 = vmatprep.mubr.msk.f32.mxu1 %vm1481_vm1, %v18867_v23  ;;  %v12647_v23 = vunpack.i.h.bf16 %v18877_v33 }
 0x2da   : > { %12273 = vmatpush3.bf16.xpose.msk.msra.mxu1 %vm14360_vm2, %v12268_v29  ;;  %4126 = vmax.xlane.f32.xlu0 %v4125_v5  ;;  %v12646_v5 = vunpack.i.l.bf16 %v18877_v33 }
 0x2db   : > { %v15578_v57 = vpop.f32.mrb[128].mxu0  ;;  %12276 = vmatprep.subr.msk.bf16.mxu1 %vm14360_vm2, %v12274_v61 }
 0x2dc   : > { %18868 = vst [vmem:[#allocation5_spill] sm:$0xff] %v15578_v57  ;;  %v15582_v16 = vpop.f32.mrb[32].mxu1  ;;  %v15584_v62 = vpop.f32.mrb[129].mxu0  ;;  %v4230_v7 = vsel %vm4034_vm3, %v15578_v57, -inf  ;;  %v12316_v33 = vpack.c.bf16 %v12647_v23, %v12646_v5 }
 0x2dd   : > { %18869 = vst [vmem:[#allocation4_spill] sm:$0xff] %v15584_v62  ;;  %v15590_v25 = vpop.f32.mrb[33].mxu1  ;;  %v4134_v52 = vsel %vm4034_vm3, %v15582_v16, -inf  ;;  %v4227_v39 = vsel %vm4034_vm3, %v15584_v62, -inf }
 0x2de   : > { %18871 = vst [vmem:[#allocation7_spill] sm:$0xff] %v15590_v25  ;;  %4231 = vmax.xlane.f32.xlu0 %v4230_v7  ;;  %4135 = vmax.xlane.f32.xlu1 %v4134_v52  ;;  %v4131_v44 = vsel %vm4034_vm3, %v15590_v25, -inf  ;;  %v12657_v52 = vunpack.i.h.bf16 %v18882_v42 }
 0x2df   : > { %v15594_v35 = vpop.f32.mrb[130].mxu0 }
 0x2e0   : > { %18872 = vst [vmem:[#allocation6_spill] sm:$0xff] %v15594_v35  ;;  %v15596_v31 = vpop.f32.mrb[34].mxu1  ;;  %v15598_v22 = vpop.f32.mrb[131].mxu0  ;;  %v4236_v29 = vsel %vm4034_vm3, %v15594_v35, -inf }
 0x2e1   : > { %18873 = vst [vmem:[#allocation9_spill] sm:$0xff] %v15598_v22  ;;  %v15602_v34 = vpop.f32.mrb[35].mxu1 }
 0x2e2   : > { %12279 = vmatpush3.bf16.xpose.msk.msra.mxu1 %vm14360_vm2, %v12274_v61  ;;  %4237 = vmax.xlane.f32.xlu0 %v4236_v29  ;;  %v12656_v29 = vunpack.i.l.bf16 %v18882_v42  ;;  %v18886_v42 = vld [vmem:[#allocation82_spill] sm:$0xff] }
 0x2e3   : > { %4132 = vmax.xlane.f32.xlu1 %v4131_v44  ;;  %12313 = vmatprep.subr.bf16.mxu1 %v12312_v36  ;;  %v15608_v15 = vpop.f32.mrb[132].mxu0  ;;  %v12667_v57 = vunpack.i.h.bf16 %v18886_v42  ;;  %v12666_v25 = vunpack.i.l.bf16 %v18886_v42 }
 0x2e4   : > { %18874 = vst [vmem:[#allocation8_spill] sm:$0xff] %v15608_v15  ;;  %v15610_v43 = vpop.f32.mrb[36].mxu1  ;;  %v15612_v24 = vpop.f32.mrb[133].mxu0  ;;  %v12320_v23 = vpack.c.bf16 %v12657_v52, %v12656_v29 }
 0x2e5   : > { %18875 = vst [vmem:[#allocation12_spill] sm:$0xff] %v15610_v43  ;;  %18876 = vst [vmem:[#allocation66_spill] sm:$0xff] %v15612_v24  ;;  %v15616_v7 = vpop.f32.mrb[37].mxu1 }
 0x2e6   : > { %18878 = vst [vmem:[#allocation11_spill] sm:$0xff] %v15616_v7 }
 0x2e7   : > { %4228 = vmax.xlane.f32.xlu1 %v4227_v39  ;;  %v15620_v61 = vpop.f32.mrb[134].mxu0  ;;  %v4140_v39 = vsel %vm4034_vm3, %v15596_v31, -inf }
 0x2e8   : > { %18879 = vst [vmem:[#allocation15_spill] sm:$0xff] %v15620_v61  ;;  %v15622_v19 = vpop.f32.mrb[38].mxu1  ;;  %v15624_v38 = vpop.f32.mrb[135].mxu0 }
 0x2e9   : > { %18880 = vst [vmem:[#allocation68_spill] sm:$0xff] %v15622_v19  ;;  %18881 = vst [vmem:[#allocation14_spill] sm:$0xff] %v15624_v38  ;;  %v15628_v44 = vpop.f32.mrb[39].mxu1  ;;  %11235 = vmatmul.mubr.msk.f32.vlgmr.msra.gmra.mrb[88].mxu1 %vm1481_vm1, %v18884_v54 }
 0x2ea   : > { %18883 = vst [vmem:[#allocation18_spill] sm:$0xff] %v15628_v44  ;;  %12315 = vmatpush3.bf16.msra.mxu1 %v12312_v36  ;;  %11237 = vmatprep.mubr.msk.f32.mxu1 %vm1481_vm1, %v18885_v14  ;;  %v18887_v36 = vld [vmem:[#allocation128_spill] sm:$0xff]  ;;  %v4137_v14 = vsel %vm4034_vm3, %v15602_v34, -inf }
 0x2eb   : > { %4141 = vmax.xlane.f32.xlu1 %v4140_v39  ;;  %12317 = vmatprep.subr.bf16.mxu1 %v12316_v33  ;;  %v4040_v17 = vpop.xlane.xlu1 %4039 }
 0x2ec   : > { %v4420_v35 = vsub.f32 %v15269_v8, %v4040_v17  ;;  %v4037_v62 = vpop.xlane.xlu0 %4036  ;;  %v18888_v8 = vld [vmem:[#allocation98_spill] sm:$0xff] }
 0x2ed   : > { %v4419_v54 = vsub.f32 %v15273_v28, %v4037_v62  ;;  %11238 = vmatmul.mubr.msk.f32.gmra.mrb[90].mxu1 %vm1481_vm1, %v18887_v36  ;;  %v12717_v39 = vunpack.i.h.bf16 %v18888_v8  ;;  %v12716_v28 = vunpack.i.l.bf16 %v18888_v8  ;;  %v12324_v62 = vpack.c.bf16 %v12667_v57, %v12666_v25 }
 0x2ee   : > { %v4549_v5 = vmul.f32 1.442695, %v4420_v35  ;;  %12319 = vmatpush3.bf16.msra.mxu1 %v12316_v33  ;;  %11240 = vmatprep.mubr.msk.f32.mxu1 %vm1481_vm1, %v14961_v26  ;;  %v4233_v35 = vsel %vm4034_vm3, %v15598_v22, -inf  ;;  %v4146_v57 = vsel %vm4034_vm3, %v15610_v43, -inf }
 0x2ef   : > { %v4547_v17 = vmul.f32 1.442695, %v4419_v54  ;;  %4138 = vmax.xlane.f32.xlu1 %v4137_v14  ;;  %12321 = vmatprep.subr.bf16.mxu1 %v12320_v23  ;;  %v15654_v26 = vpack.c.bf16 %v12717_v39, %v12716_v28  ;;  %v4143_v54 = vsel %vm4034_vm3, %v15616_v7, -inf  ;;  %v4245_v7 = vsel %vm4034_vm3, %v15624_v38, -inf }
 0x2f0   : > { %13188 = vpow2.f32 %v4549_v5 }
 0x2f1   : > { %11241 = vmatmul.mubr.msk.f32.gmra.mrb[92].mxu1 %vm1481_vm1, %v14956_v2  ;;  %13190 = vpow2.f32 %v4547_v17  ;;  %18889 = vst [vmem:[#allocation17_spill] sm:$0xff] %v15654_v26  ;;  %v4046_v2 = vpop.xlane.xlu0 %4045 }
 0x2f2   : > { %12323 = vmatpush3.bf16.msra.mxu1 %v12320_v23  ;;  %11243 = vmatprep.mubr.msk.f32.mxu1 %vm1481_vm1, %v14981_v60  ;;  %v4242_v60 = vsel %vm4034_vm3, %v15608_v15, -inf  ;;  %v4422_v42 = vsub.f32 %v15283_v41, %v4046_v2 }
 0x2f3   : > { %4234 = vmax.xlane.f32.xlu1 %v4233_v35  ;;  %12325 = vmatprep.subr.bf16.mxu1 %v12324_v62 }
 0x2f4   : > { %v4553_v39 = vmul.f32 1.442695, %v4422_v42  ;;  %v4049_v28 = vpop.xlane.xlu1 %4048 }
 0x2f5   : > { %11244 = vmatmul.mubr.msk.f32.gmra.mrb[94].mxu1 %vm1481_vm1, %v14972_v40  ;;  %v4043_v36 = vpop.xlane.xlu0 %4042 }
 0x2f6   : > { %12327 = vmatpush3.bf16.msra.mxu1 %v12324_v62  ;;  %v4421_v41 = vsub.f32 %v15285_v45, %v4043_v36  ;;  %v4239_v62 = vsel %vm4034_vm3, %v15612_v24, -inf  ;;  %13192 = vpow2.f32 %v4553_v39  ;;  %v4152_v45 = vsel %vm4034_vm3, %v15622_v19, -inf }
 0x2f7   : > { %4147 = vmax.xlane.f32.xlu1 %v4146_v57  ;;  %12345 = vmatprep.subr.bf16.mxu1 %v15654_v26  ;;  %v4248_v39 = vsel %vm4034_vm3, %v15620_v61, -inf  ;;  %v4149_v19 = vsel %vm4034_vm3, %v15628_v44, -inf }
 0x2f8   : > { %v4551_v42 = vmul.f32 1.442695, %v4421_v41 }
 0x2f9   : > { %v4052_v26 = vpop.xlane.xlu0 %4051 }
 0x2fa   : > { %v15661_v25 = vpop.eup %13188  ;;  %13194 = vpow2.f32 %v4551_v42 }
 0x2fb   : > { %4243 = vmax.xlane.f32.xlu1 %v4242_v60  ;;  %v4806_v52 = vsel %vm4034_vm3, %v15661_v25, 0.0  ;;  %v15667_v29 = vpop.eup %13190 }
 0x2fc   : > { %4807 = vadd.xlane.f32.xlu0 %v4806_v52  ;;  %v15669_v40 = vpop.f32.mrb[40].mxu1  ;;  %v4803_v5 = vsel %vm4034_vm3, %v15667_v29, 0.0 }
 0x2fd   : > { %v15671_v33 = vpop.f32.mrb[41].mxu1  ;;  %v4158_v57 = vsel %vm4034_vm3, %v15669_v40, -inf }
 0x2fe   : > { %18890 = vst [vmem:[#allocation21_spill] sm:$0xff] %v15671_v33  ;;  %v15676_v23 = vpop.f32.mrb[136].mxu0 }
 0x2ff   : > { %18891 = vst [vmem:[#allocation88_spill] sm:$0xff] %v15676_v23  ;;  %4144 = vmax.xlane.f32.xlu1 %v4143_v54  ;;  %v15680_v14 = vpop.f32.mrb[137].mxu0  ;;  %v4278_v36 = vsel %vm4034_vm3, %v15676_v23, -inf  ;;  %v18972_v23 = vld [vmem:[#allocation7_spill] sm:$0xff] }
 0x300   : > { %18892 = vst [vmem:[#allocation92_spill] sm:$0xff] %v15680_v14  ;;  %4804 = vadd.xlane.f32.xlu0 %v4803_v5  ;;  %v15682_v17 = vpop.f32.mrb[42].mxu1  ;;  %v4275_v42 = vsel %vm4034_vm3, %v15680_v14, -inf  ;;  %v15726_v61 = vpop.eup %13192 }
 0x301   : > { %v15684_v8 = vpop.f32.mrb[43].mxu1  ;;  %18900 = vst [vmem:[#allocation114_spill] sm:$0xff] %v15726_v61 }
 0x302   : > { %18893 = vst [vmem:[#allocation20_spill] sm:$0xff] %v15684_v8  ;;  %v15689_v35 = vpop.f32.mrb[138].mxu0 }
 0x303   : > { %18894 = vst [vmem:[#allocation24_spill] sm:$0xff] %v15689_v35  ;;  %4240 = vmax.xlane.f32.xlu1 %v4239_v62  ;;  %v15693_v2 = vpop.f32.mrb[139].mxu0  ;;  %v15707_v62 = vpop.xlane.xlu1 %4054 }
 0x304   : > { %18895 = vst [vmem:[#allocation91_spill] sm:$0xff] %v15693_v2  ;;  %4159 = vmax.xlane.f32.xlu0 %v4158_v57  ;;  %v15695_v60 = vpop.f32.mrb[44].mxu1 }
 0x305   : > { %v15697_v52 = vpop.f32.mrb[45].mxu1 }
 0x306   : > { %v15701_v54 = vpop.f32.mrb[140].mxu0 }
 0x307   : > { %18896 = vst [vmem:[#allocation95_spill] sm:$0xff] %v15701_v54  ;;  %4153 = vmax.xlane.f32.xlu1 %v4152_v45  ;;  %v15705_v5 = vpop.f32.mrb[141].mxu0  ;;  %v4155_v45 = vsel %vm4034_vm3, %v15671_v33, -inf  ;;  %v4424_v33 = vsub.f32 %v15295_v49, %v4052_v26 }
 0x308   : > { %18897 = vst [vmem:[#allocation23_spill] sm:$0xff] %v15705_v5  ;;  %4279 = vmax.xlane.f32.xlu0 %v4278_v36  ;;  %v15709_v57 = vpop.f32.mrb[46].mxu1 }
 0x309   : > { %v15711_v24 = vpop.f32.mrb[47].mxu1  ;;  %v4557_v44 = vmul.f32 1.442695, %v4424_v33 }
 0x30a   : > { %v15715_v41 = vpop.f32.mrb[142].mxu0 }
 0x30b   : > { %18898 = vst [vmem:[#allocation27_spill] sm:$0xff] %v15715_v41  ;;  %4249 = vmax.xlane.f32.xlu1 %v4248_v39  ;;  %v15719_v15 = vpop.f32.mrb[143].mxu0 }
 0x30c   : > { %18899 = vst [vmem:[#allocation94_spill] sm:$0xff] %v15719_v15  ;;  %v4061_v22 = vpop.xlane.xlu1 %4060  ;;  %4156 = vmax.xlane.f32.xlu0 %v4155_v45  ;;  %v15735_v45 = vpop.xlane.xlu0 %4057 }
 0x30d   : > { %v4427_v36 = vsub.f32 %v15376_v13, %v4061_v22  ;;  %v4812_v13 = vsel %vm4034_vm3, %v15726_v61, 0.0  ;;  %v15733_v22 = vpop.eup %13194 }
 0x30e   : > { %18901 = vst [vmem:[#allocation31_spill] sm:$0xff] %v15733_v22  ;;  %v4809_v49 = vsel %vm4034_vm3, %v15733_v22, 0.0 }
 0x30f   : > { %4150 = vmax.xlane.f32.xlu1 %v4149_v19  ;;  %v4563_v39 = vmul.f32 1.442695, %v4427_v36  ;;  %v4423_v19 = vsub.f32 %v15297_v48, %v4049_v28  ;;  %v4284_v36 = vsel %vm4034_vm3, %v15689_v35, -inf  ;;  %v4164_v48 = vsel %vm4034_vm3, %v15682_v17, -inf }
 0x310   : > { %4276 = vmax.xlane.f32.xlu0 %v4275_v42  ;;  %v4296_v42 = vsel %vm4034_vm3, %v15715_v41, -inf  ;;  %v4067_v41 = vpop.xlane.xlu1 %4066 }
 0x311   : > { %13196 = vpow2.f32 %v4563_v39  ;;  %v4555_v26 = vmul.f32 1.442695, %v4423_v19  ;;  %v4161_v19 = vsel %vm4034_vm3, %v15684_v8, -inf }
 0x312   : > { %13198 = vpow2.f32 %v4557_v44 }
 0x313   : > { %4246 = vmax.xlane.f32.xlu1 %v4245_v7  ;;  %v15742_v7 = vpop.xlane.xlu0 %4063  ;;  %13200 = vpow2.f32 %v4555_v26 }
 0x314   : > { %4813 = vadd.xlane.f32.xlu0 %v4812_v13  ;;  %v4293_v13 = vsel %vm4034_vm3, %v15719_v15, -inf }
 0x317   : > { %4285 = vmax.xlane.f32.xlu1 %v4284_v36  ;;  %v4070_v39 = vpop.xlane.xlu0 %4069 }
 0x318   : > { %4810 = vadd.xlane.f32.xlu0 %v4809_v49 }
 0x31b   : > { %4297 = vmax.xlane.f32.xlu1 %v4296_v42  ;;  %v15756_v44 = vpop.eup %13196 }
 0x31c   : > { %4165 = vmax.xlane.f32.xlu0 %v4164_v48  ;;  %v15748_v33 = vpop.f32.mrb[48].mxu1  ;;  %18904 = vst [vmem:[#allocation30_spill] sm:$0xff] %v15756_v44  ;;  %v4430_v48 = vsub.f32 %v15382_v47, %v4070_v39  ;;  %v4827_v15 = vsel %vm4034_vm3, %v15756_v44, 0.0  ;;  %v15775_v8 = vpop.eup %13198  ;;  %v4429_v39 = vsub.f32 %v15384_v20, %v4067_v41 }
 0x31d   : > { %18902 = vst [vmem:[#allocation35_spill] sm:$0xff] %v15748_v33  ;;  %v15750_v28 = vpop.f32.mrb[49].mxu1  ;;  %v4182_v44 = vsel %vm4034_vm3, %v15748_v33, -inf  ;;  %v15790_v22 = vpop.eup %13200 }
 0x31e   : > { %v15754_v36 = vpop.f32.mrb[144].mxu0  ;;  %v4569_v47 = vmul.f32 1.442695, %v4430_v48  ;;  %v4567_v20 = vmul.f32 1.442695, %v4429_v39  ;;  %v4426_v48 = vsub.f32 %v15307_v12, %v15735_v45  ;;  %v4073_v33 = vpop.xlane.xlu1 %4072  ;;  %v4179_v12 = vsel %vm4034_vm3, %v15750_v28, -inf }
 0x31f   : > { %18903 = vst [vmem:[#allocation26_spill] sm:$0xff] %v15754_v36  ;;  %4294 = vmax.xlane.f32.xlu1 %v4293_v13  ;;  %v15760_v49 = vpop.f32.mrb[145].mxu0  ;;  %v4281_v13 = vsel %vm4034_vm3, %v15693_v2, -inf  ;;  %v4170_v45 = vsel %vm4034_vm3, %v15695_v60, -inf }
 0x320   : > { %18905 = vst [vmem:[#allocation40_spill] sm:$0xff] %v15760_v49  ;;  %4162 = vmax.xlane.f32.xlu0 %v4161_v19  ;;  %v15762_v42 = vpop.f32.mrb[50].mxu1  ;;  %13202 = vpow2.f32 %v4569_v47  ;;  %v4425_v47 = vsub.f32 %v15309_v37, %v15707_v62  ;;  %v4561_v39 = vmul.f32 1.442695, %v4426_v48  ;;  %v4290_v37 = vsel %vm4034_vm3, %v15701_v54, -inf }
 0x321   : > { %18906 = vst [vmem:[#allocation112_spill] sm:$0xff] %v15762_v42  ;;  %v15765_v26 = vpop.f32.mrb[51].mxu1  ;;  %13204 = vpow2.f32 %v4567_v20 }
 0x322   : > { %18907 = vst [vmem:[#allocation29_spill] sm:$0xff] %v15765_v26  ;;  %v15769_v35 = vpop.f32.mrb[146].mxu0  ;;  %13206 = vpow2.f32 %v4561_v39  ;;  %v4431_v39 = vsub.f32 %v15396_v63, %v4073_v33 }
 0x323   : > { %18908 = vst [vmem:[#allocation34_spill] sm:$0xff] %v15769_v35  ;;  %4828 = vadd.xlane.f32.xlu1 %v4827_v15  ;;  %v15773_v38 = vpop.f32.mrb[147].mxu0  ;;  %v4818_v15 = vsel %vm4034_vm3, %v15775_v8, 0.0 }
 0x324   : > { %18909 = vst [vmem:[#allocation42_spill] sm:$0xff] %v15773_v38  ;;  %4282 = vmax.xlane.f32.xlu0 %v4281_v13  ;;  %v15777_v19 = vpop.f32.mrb[52].mxu1 }
 0x325   : > { %18910 = vst [vmem:[#allocation117_spill] sm:$0xff] %v15777_v19  ;;  %v15780_v43 = vpop.f32.mrb[53].mxu1 }
 0x326   : > { %18911 = vst [vmem:[#allocation33_spill] sm:$0xff] %v15780_v43  ;;  %v15784_v61 = vpop.f32.mrb[148].mxu0 }
 0x327   : > { %18912 = vst [vmem:[#allocation38_spill] sm:$0xff] %v15784_v61  ;;  %4183 = vmax.xlane.f32.xlu1 %v4182_v44  ;;  %v15788_v2 = vpop.f32.mrb[149].mxu0  ;;  %v4326_v44 = vsel %vm4034_vm3, %v15754_v36, -inf  ;;  %v15812_v36 = vpop.xlane.xlu1 %4078 }
 0x328   : > { %18913 = vst [vmem:[#allocation44_spill] sm:$0xff] %v15788_v2  ;;  %4819 = vadd.xlane.f32.xlu0 %v4818_v15  ;;  %v15792_v13 = vpop.f32.mrb[54].mxu1  ;;  %v4815_v2 = vsel %vm4034_vm3, %v15790_v22, 0.0 }
 0x329   : > { %18914 = vst [vmem:[#allocation116_spill] sm:$0xff] %v15792_v13  ;;  %v15794_v41 = vpop.f32.mrb[55].mxu1 }
 0x32a   : > { %18915 = vst [vmem:[#allocation120_spill] sm:$0xff] %v15794_v41  ;;  %v15800_v61 = vpop.f32.mrb[150].mxu0  ;;  %v15816_v20 = vpop.eup %13202 }
 0x32b   : > { %18916 = vst [vmem:[#allocation37_spill] sm:$0xff] %v15800_v61  ;;  %4327 = vmax.xlane.f32.xlu1 %v4326_v44  ;;  %v15804_v15 = vpop.f32.mrb[151].mxu0  ;;  %v4559_v44 = vmul.f32 1.442695, %v4425_v47  ;;  %18918 = vst [vmem:[#allocation119_spill] sm:$0xff] %v15816_v20  ;;  %v4088_v62 = vpop.xlane.xlu1 %4087  ;;  %v4836_v48 = vsel %vm4034_vm3, %v15816_v20, 0.0 }
 0x32c   : > { %18917 = vst [vmem:[#allocation49_spill] sm:$0xff] %v15804_v15  ;;  %4816 = vadd.xlane.f32.xlu0 %v4815_v2  ;;  %v4323_v2 = vsel %vm4034_vm3, %v15760_v49, -inf  ;;  %v4167_v47 = vsel %vm4034_vm3, %v15697_v52, -inf  ;;  %v4287_v49 = vsel %vm4034_vm3, %v15705_v5, -inf }
 0x32d   : > { %13208 = vpow2.f32 %v4559_v44 }
 0x32f   : > { %4180 = vmax.xlane.f32.xlu1 %v4179_v12  ;;  %v15822_v12 = vpop.eup %13204 }
 0x330   : > { %4171 = vmax.xlane.f32.xlu0 %v4170_v45  ;;  %18919 = vst [vmem:[#allocation123_spill] sm:$0xff] %v15822_v12  ;;  %v4428_v45 = vsub.f32 %v15372_v55, %v15742_v7  ;;  %v4833_v44 = vsel %vm4034_vm3, %v15822_v12, 0.0  ;;  %v4188_v7 = vsel %vm4034_vm3, %v15762_v42, -inf }
 0x332   : > { %v4565_v33 = vmul.f32 1.442695, %v4428_v45 }
 0x333   : > { %4324 = vmax.xlane.f32.xlu1 %v4323_v2  ;;  %v15829_v2 = vpop.xlane.xlu1 %4084 }
 0x334   : > { %4291 = vmax.xlane.f32.xlu0 %v4290_v37  ;;  %v4076_v37 = vpop.xlane.xlu0 %4075 }
 0x335   : > { %v4432_v55 = vsub.f32 %v15394_v18, %v4076_v37 }
 0x337   : > { %4837 = vadd.xlane.f32.xlu1 %v4836_v48  ;;  %v15835_v48 = vpop.eup %13206  ;;  %v15852_v20 = vpop.xlane.xlu1 %4093  ;;  %v4573_v45 = vmul.f32 1.442695, %v4432_v55 }
 0x338   : > { %4168 = vmax.xlane.f32.xlu0 %v4167_v47  ;;  %v4571_v47 = vmul.f32 1.442695, %v4431_v39  ;;  %v4082_v37 = vpop.xlane.xlu0 %4081 }
 0x33a   : > { %13210 = vpow2.f32 %v4571_v47 }
 0x33b   : > { %4834 = vadd.xlane.f32.xlu1 %v4833_v44  ;;  %v4824_v44 = vsel %vm4034_vm3, %v15835_v48, 0.0  ;;  %13212 = vpow2.f32 %v4565_v33  ;;  %v4091_v55 = vpop.xlane.xlu1 %4090 }
 0x33c   : > { %4288 = vmax.xlane.f32.xlu0 %v4287_v49  ;;  %v15837_v61 = vpop.f32.mrb[56].mxu1  ;;  %v15850_v49 = vpop.eup %13208  ;;  %13214 = vpow2.f32 %v4573_v45  ;;  %v4433_v45 = vsub.f32 %v15406_v46, %v15812_v36  ;;  %v4437_v36 = vsub.f32 %v15454_v53, %v4091_v55  ;;  %v4194_v53 = vsel %vm4034_vm3, %v15777_v19, -inf }
 0x33d   : > { %18920 = vst [vmem:[#allocation122_spill] sm:$0xff] %v15837_v61  ;;  %v15839_v63 = vpop.f32.mrb[57].mxu1 }
 0x33e   : > { %18921 = vst [vmem:[#allocation47_spill] sm:$0xff] %v15839_v63  ;;  %v15844_v15 = vpop.f32.mrb[152].mxu0  ;;  %v4575_v46 = vmul.f32 1.442695, %v4433_v45 }
 0x33f   : > { %18922 = vst [vmem:[#allocation52_spill] sm:$0xff] %v15844_v15  ;;  %4189 = vmax.xlane.f32.xlu1 %v4188_v7  ;;  %v15848_v5 = vpop.f32.mrb[153].mxu0  ;;  %v4436_v7 = vsub.f32 %v15444_v21, %v4088_v62  ;;  %v4332_v15 = vsel %vm4034_vm3, %v15769_v35, -inf  ;;  %v4185_v21 = vsel %vm4034_vm3, %v15765_v26, -inf  ;;  %v4100_v26 = vpop.xlane.xlu1 %4099 }
 0x340   : > { %18923 = vst [vmem:[#allocation50_spill] sm:$0xff] %v15848_v5  ;;  %4825 = vadd.xlane.f32.xlu0 %v4824_v44  ;;  %v15854_v39 = vpop.f32.mrb[58].mxu1  ;;  %v4821_v5 = vsel %vm4034_vm3, %v15850_v49, 0.0  ;;  %v4434_v44 = vsub.f32 %v15404_v3, %v4082_v37 }
 0x341   : > { %18924 = vst [vmem:[#allocation57_spill] sm:$0xff] %v15854_v39  ;;  %v15856_v18 = vpop.f32.mrb[59].mxu1  ;;  %v4581_v33 = vmul.f32 1.442695, %v4436_v7  ;;  %v4329_v7 = vsel %vm4034_vm3, %v15773_v38, -inf }
 0x342   : > { %18925 = vst [vmem:[#allocation55_spill] sm:$0xff] %v15856_v18  ;;  %v4577_v3 = vmul.f32 1.442695, %v4434_v44 }
 0x343   : > { %4333 = vmax.xlane.f32.xlu1 %v4332_v15  ;;  %v4176_v15 = vsel %vm4034_vm3, %v15709_v57, -inf  ;;  %13216 = vpow2.f32 %v4581_v33  ;;  %v4097_v45 = vpop.xlane.xlu1 %4096 }
 0x344   : > { %4822 = vadd.xlane.f32.xlu0 %v4821_v5  ;;  %v15863_v42 = vpop.f32.mrb[60].mxu1  ;;  %13218 = vpow2.f32 %v4577_v3  ;;  %v4583_v3 = vmul.f32 1.442695, %v4437_v36 }
 0x345   : > { %18926 = vst [vmem:[#allocation60_spill] sm:$0xff] %v15863_v42  ;;  %v15866_v47 = vpop.f32.mrb[61].mxu1  ;;  %13220 = vpow2.f32 %v4575_v46  ;;  %v4191_v46 = vsel %vm4034_vm3, %v15780_v43, -inf }
 0x346   : > { %18927 = vst [vmem:[#allocation58_spill] sm:$0xff] %v15866_v47  ;;  %v15870_v62 = vpop.f32.mrb[154].mxu0  ;;  %13222 = vpow2.f32 %v4583_v3 }
 0x347   : > { %18928 = vst [vmem:[#allocation72_spill] sm:$0xff] %v15870_v62  ;;  %4186 = vmax.xlane.f32.xlu1 %v4185_v21  ;;  %v15874_v35 = vpop.f32.mrb[155].mxu0  ;;  %v15886_v21 = vpop.eup %13210 }
 0x348   : > { %18929 = vst [vmem:[#allocation70_spill] sm:$0xff] %v15874_v35  ;;  %4177 = vmax.xlane.f32.xlu0 %v4176_v15  ;;  %v15876_v5 = vpop.f32.mrb[62].mxu1  ;;  %v4173_v15 = vsel %vm4034_vm3, %v15711_v24, -inf  ;;  %v15892_v44 = vpop.eup %13212  ;;  %v4839_v33 = vsel %vm4034_vm3, %v15886_v21, 0.0 }
 0x349   : > { %18930 = vst [vmem:[#allocation77_spill] sm:$0xff] %v15876_v5  ;;  %v15880_v37 = vpop.f32.mrb[63].mxu1  ;;  %v15905_v12 = vpop.eup %13214 }
 0x34a   : > { %18931 = vst [vmem:[#allocation74_spill] sm:$0xff] %v15880_v37  ;;  %v15884_v62 = vpop.f32.mrb[156].mxu0  ;;  %v4842_v55 = vsel %vm4034_vm3, %v15905_v12, 0.0 }
 0x34b   : > { %18932 = vst [vmem:[#allocation81_spill] sm:$0xff] %v15884_v62  ;;  %4330 = vmax.xlane.f32.xlu1 %v4329_v7  ;;  %v15890_v35 = vpop.f32.mrb[157].mxu0  ;;  %v15899_v62 = vpop.xlane.xlu0 %4111  ;;  %v4830_v7 = vsel %vm4034_vm3, %v15892_v44, 0.0 }
 0x34c   : > { %18933 = vst [vmem:[#allocation79_spill] sm:$0xff] %v15890_v35  ;;  %4174 = vmax.xlane.f32.xlu0 %v4173_v15 }
 0x34d   : > { %v15911_v15 = vpop.eup %13216 }
 0x34e   : > { %v15897_v38 = vpop.f32.mrb[158].mxu0  ;;  %18936 = vst [vmem:[#allocation99_spill] sm:$0xff] %v15911_v15  ;;  %v15919_v36 = vpop.eup %13218 }
 0x34f   : > { %18934 = vst [vmem:[#allocation85_spill] sm:$0xff] %v15897_v38  ;;  %4840 = vadd.xlane.f32.xlu1 %v4839_v33  ;;  %v15903_v35 = vpop.f32.mrb[159].mxu0  ;;  %v4435_v33 = vsub.f32 %v15448_v32, %v15829_v2  ;;  %v15915_v38 = vpop.xlane.xlu0 %4108  ;;  %v4440_v32 = vsub.f32 %v15462_v4, %v4100_v26  ;;  %v4848_v2 = vsel %vm4034_vm3, %v15919_v36, 0.0 }
 0x350   : > { %18935 = vst [vmem:[#allocation83_spill] sm:$0xff] %v15903_v35  ;;  %4831 = vadd.xlane.f32.xlu0 %v4830_v7  ;;  %v4854_v7 = vsel %vm4034_vm3, %v15911_v15, 0.0  ;;  %v15928_v3 = vpop.eup %13220 }
 0x351   : > { %v4579_v35 = vmul.f32 1.442695, %v4435_v33  ;;  %v4589_v4 = vmul.f32 1.442695, %v4440_v32  ;;  %v15941_v15 = vpop.eup %13222  ;;  %v4200_v32 = vsel %vm4034_vm3, %v15792_v13, -inf }
 0x353   : > { %4195 = vmax.xlane.f32.xlu1 %v4194_v53  ;;  %v4106_v53 = vpop.xlane.xlu1 %4105  ;;  %v4118_v19 = vpop.xlane.xlu0 %4117  ;;  %13224 = vpow2.f32 %v4579_v35 }
 0x354   : > { %4843 = vadd.xlane.f32.xlu0 %v4842_v55  ;;  %v4438_v55 = vsub.f32 %v15452_v6, %v15852_v20  ;;  %v4845_v20 = vsel %vm4034_vm3, %v15928_v3, 0.0 }
 0x356   : > { %v4585_v33 = vmul.f32 1.442695, %v4438_v55 }
 0x357   : > { %4192 = vmax.xlane.f32.xlu1 %v4191_v46  ;;  %v4206_v46 = vsel %vm4034_vm3, %v15837_v61, -inf  ;;  %v4103_v26 = vpop.xlane.xlu1 %4102 }
 0x358   : > { %4855 = vadd.xlane.f32.xlu0 %v4854_v7  ;;  %v4439_v7 = vsub.f32 %v15466_v50, %v4097_v45  ;;  %13226 = vpow2.f32 %v4585_v33  ;;  %v4441_v50 = vsub.f32 %v15472_v30, %v4103_v26  ;;  %v4115_v45 = vpop.xlane.xlu0 %4114  ;;  %v4442_v30 = vsub.f32 %v15470_v1, %v4106_v53 }
 0x359   : > { %13228 = vpow2.f32 %v4589_v4 }
 0x35a   : > { %v4587_v35 = vmul.f32 1.442695, %v4439_v7  ;;  %v4197_v7 = vsel %vm4034_vm3, %v15794_v41, -inf }
 0x35b   : > { %4849 = vadd.xlane.f32.xlu1 %v4848_v2  ;;  %v4203_v2 = vsel %vm4034_vm3, %v15839_v63, -inf }
 0x35c   : > { %4207 = vmax.xlane.f32.xlu0 %v4206_v46  ;;  %v15932_v43 = vpop.f32.mrb[64].mxu1  ;;  %13230 = vpow2.f32 %v4587_v35  ;;  %v15961_v26 = vpop.xlane.xlu0 %4123 }
 0x35d   : > { %18937 = vst [vmem:[#allocation97_spill] sm:$0xff] %v15932_v43  ;;  %v15935_v6 = vpop.f32.mrb[65].mxu1  ;;  %v15959_v4 = vpop.eup %13224 }
 0x35e   : > { %18938 = vst [vmem:[#allocation102_spill] sm:$0xff] %v15935_v6  ;;  %v4851_v1 = vsel %vm4034_vm3, %v15959_v4, 0.0 }
 0x35f   : > { %4846 = vadd.xlane.f32.xlu1 %v4845_v20  ;;  %v4857_v20 = vsel %vm4034_vm3, %v15941_v15, 0.0 }
 0x360   : > { %4204 = vmax.xlane.f32.xlu0 %v4203_v2  ;;  %v15943_v46 = vpop.f32.mrb[66].mxu1  ;;  %v4591_v2 = vmul.f32 1.442695, %v4441_v50  ;;  %v4593_v50 = vmul.f32 1.442695, %v4442_v30 }
 0x361   : > { %18939 = vst [vmem:[#allocation100_spill] sm:$0xff] %v15943_v46  ;;  %v15946_v55 = vpop.f32.mrb[67].mxu1 }
 0x362   : > { %18940 = vst [vmem:[#allocation107_spill] sm:$0xff] %v15946_v55  ;;  %13232 = vpow2.f32 %v4591_v2  ;;  %v15971_v53 = vpop.eup %13226  ;;  %v15980_v2 = vpop.xlane.xlu0 %4120 }
 0x363   : > { %4201 = vmax.xlane.f32.xlu1 %v4200_v32  ;;  %v4212_v32 = vsel %vm4034_vm3, %v15854_v39, -inf  ;;  %18945 = vst [vmem:[#allocation63_spill] sm:$0xff] %v15971_v53  ;;  %v15977_v41 = vpop.eup %13228  ;;  %13234 = vpow2.f32 %v4593_v50  ;;  %v4860_v30 = vsel %vm4034_vm3, %v15971_v53, 0.0 }
 0x364   : > { %4858 = vadd.xlane.f32.xlu0 %v4857_v20  ;;  %v15952_v63 = vpop.f32.mrb[68].mxu1  ;;  %18946 = vst [vmem:[#allocation67_spill] sm:$0xff] %v15977_v41 }
 0x365   : > { %18941 = vst [vmem:[#allocation106_spill] sm:$0xff] %v15952_v63  ;;  %v15954_v33 = vpop.f32.mrb[69].mxu1 }
 0x366   : > { %18942 = vst [vmem:[#allocation110_spill] sm:$0xff] %v15954_v33  ;;  %v15984_v39 = vpop.eup %13230  ;;  %v15997_v53 = vpop.xlane.xlu0 %4129 }
 0x367   : > { %4198 = vmax.xlane.f32.xlu1 %v4197_v7  ;;  %v4209_v7 = vsel %vm4034_vm3, %v15856_v18, -inf }
 0x368   : > { %4213 = vmax.xlane.f32.xlu0 %v4212_v32  ;;  %v15965_v20 = vpop.f32.mrb[70].mxu1  ;;  %v4446_v32 = vsub.f32 %v15522_v10, %v4118_v19  ;;  %v4444_v10 = vsub.f32 %v15516_v27, %v15899_v62  ;;  %v4863_v19 = vsel %vm4034_vm3, %v15984_v39, 0.0  ;;  %v4443_v27 = vsub.f32 %v15518_v11, %v15915_v38 }
 0x369   : > { %18943 = vst [vmem:[#allocation109_spill] sm:$0xff] %v15965_v20  ;;  %v15967_v35 = vpop.f32.mrb[71].mxu1  ;;  %v4254_v11 = vsel %vm4034_vm3, %v15932_v43, -inf }
 0x36a   : > { %18944 = vst [vmem:[#allocation126_spill] sm:$0xff] %v15967_v35  ;;  %v4601_v18 = vmul.f32 1.442695, %v4446_v32 }
 0x36b   : > { %4852 = vadd.xlane.f32.xlu1 %v4851_v1  ;;  %v15973_v13 = vpop.xlane.xlu1 %4135  ;;  %v4866_v1 = vsel %vm4034_vm3, %v15977_v41, 0.0 }
 0x36c   : > { %4210 = vmax.xlane.f32.xlu0 %v4209_v7  ;;  %v4445_v7 = vsub.f32 %v15524_v59, %v4115_v45  ;;  %v15995_v50 = vpop.eup %13232  ;;  %13236 = vpow2.f32 %v4601_v18  ;;  %v4597_v59 = vmul.f32 1.442695, %v4444_v10  ;;  %v4215_v45 = vsel %vm4034_vm3, %v15866_v47, -inf }
 0x36d   : > { %v4869_v62 = vsel %vm4034_vm3, %v15995_v50, 0.0  ;;  %v4595_v18 = vmul.f32 1.442695, %v4443_v27 }
 0x36e   : > { %v4599_v32 = vmul.f32 1.442695, %v4445_v7 }
 0x36f   : > { %4861 = vadd.xlane.f32.xlu1 %v4860_v30  ;;  %v4218_v30 = vsel %vm4034_vm3, %v15863_v42, -inf }
 0x370   : > { %v15988_v61 = vpop.xlane.xlu1 %4132  ;;  %4867 = vadd.xlane.f32.xlu0 %v4866_v1  ;;  %v16009_v1 = vpop.eup %13234  ;;  %13238 = vpow2.f32 %v4599_v32  ;;  %v4251_v32 = vsel %vm4034_vm3, %v15935_v6, -inf }
 0x371   : > { %13240 = vpow2.f32 %v4597_v59  ;;  %v4872_v38 = vsel %vm4034_vm3, %v16009_v1, 0.0 }
 0x372   : > { %13242 = vpow2.f32 %v4595_v18  ;;  %v4448_v18 = vsub.f32 %v15532_v51, %v15961_v26 }
 0x373   : > { %4864 = vadd.xlane.f32.xlu1 %v4863_v19 }
 0x374   : > { %v16001_v41 = vpop.xlane.xlu1 %4228  ;;  %4219 = vmax.xlane.f32.xlu0 %v4218_v30  ;;  %v16013_v30 = vpop.xlane.xlu0 %4126  ;;  %v4605_v47 = vmul.f32 1.442695, %v4448_v18  ;;  %v4272_v18 = vsel %vm4034_vm3, %v15965_v20, -inf }
 0x375   : > { %18947 = vst [vmem:[#allocation76_spill] sm:$0xff] %v16001_v41 }
 0x376   : > { %v16027_v59 = vpop.eup %13236  ;;  %13244 = vpow2.f32 %v4605_v47  ;;  %v4260_v47 = vsel %vm4034_vm3, %v15943_v46, -inf }
 0x377   : > { %4870 = vadd.xlane.f32.xlu1 %v4869_v62  ;;  %18950 = vst [vmem:[#allocation82_spill] sm:$0xff] %v16027_v59  ;;  %v4884_v6 = vsel %vm4034_vm3, %v16027_v59, 0.0 }
 0x378   : > { %v16011_v19 = vpop.xlane.xlu1 %4141  ;;  %4216 = vmax.xlane.f32.xlu0 %v4215_v45  ;;  %v16029_v27 = vpop.xlane.xlu0 %4231  ;;  %v4224_v45 = vsel %vm4034_vm3, %v15876_v5, -inf }
 0x379   : > { %18951 = vst [vmem:[#allocation128_spill] sm:$0xff] %v16029_v27 }
 0x37a   : > { %v16043_v41 = vpop.eup %13238 }
 0x37b   : > { %4255 = vmax.xlane.f32.xlu1 %v4254_v11  ;;  %18955 = vst [vmem:[#allocation135_spill] sm:$0xff] %v16043_v41  ;;  %v16047_v27 = vpop.eup %13240 }
 0x37c   : > { %v16019_v7 = vpop.xlane.xlu1 %4138  ;;  %4873 = vadd.xlane.f32.xlu0 %v4872_v38  ;;  %v16021_v10 = vpop.f32.mrb[72].mxu1 }
 0x37d   : > { %18948 = vst [vmem:[#allocation125_spill] sm:$0xff] %v16021_v10  ;;  %v16023_v62 = vpop.f32.mrb[73].mxu1  ;;  %v16055_v51 = vpop.xlane.xlu0 %4237 }
 0x37e   : > { %18949 = vst [vmem:[#allocation129_spill] sm:$0xff] %v16023_v62  ;;  %18957 = vst [vmem:[#allocation137_spill] sm:$0xff] %v16055_v51  ;;  %v16063_v42 = vpop.eup %13242 }
 0x37f   : > { %4252 = vmax.xlane.f32.xlu1 %v4251_v32  ;;  %v4221_v32 = vsel %vm4034_vm3, %v15880_v37, -inf  ;;  %v4878_v37 = vsel %vm4034_vm3, %v16047_v27, 0.0 }
 0x380   : > { %v16033_v11 = vpop.xlane.xlu1 %4234  ;;  %4225 = vmax.xlane.f32.xlu0 %v4224_v45  ;;  %v16035_v38 = vpop.f32.mrb[74].mxu1  ;;  %v4447_v45 = vsub.f32 %v15534_v0, %v15980_v2 }
 0x381   : > { %18952 = vst [vmem:[#allocation98_spill] sm:$0xff] %v16033_v11  ;;  %18953 = vst [vmem:[#allocation133_spill] sm:$0xff] %v16035_v38  ;;  %v16037_v43 = vpop.f32.mrb[75].mxu1 }
 0x382   : > { %18954 = vst [vmem:[#allocation134_spill] sm:$0xff] %v16037_v43  ;;  %v4603_v0 = vmul.f32 1.442695, %v4447_v45 }
 0x383   : > { %4885 = vadd.xlane.f32.xlu1 %v4884_v6  ;;  %v4881_v6 = vsel %vm4034_vm3, %v16043_v41, 0.0 }
 0x384   : > { %v16051_v11 = vpop.xlane.xlu1 %4147  ;;  %4222 = vmax.xlane.f32.xlu0 %v4221_v32  ;;  %v16053_v5 = vpop.f32.mrb[76].mxu1  ;;  %13246 = vpow2.f32 %v4603_v0 }
 0x385   : > { %18956 = vst [vmem:[#allocation136_spill] sm:$0xff] %v16053_v5  ;;  %v16057_v26 = vpop.f32.mrb[77].mxu1 }
 0x386   : > { %18958 = vst [vmem:[#allocation138_spill] sm:$0xff] %v16057_v26 }
 0x387   : > { %4882 = vadd.xlane.f32.xlu1 %v4881_v6  ;;  %v4875_v6 = vsel %vm4034_vm3, %v16063_v42, 0.0 }
 0x388   : > { %v16065_v2 = vpop.xlane.xlu1 %4243  ;;  %4879 = vadd.xlane.f32.xlu0 %v4878_v37  ;;  %v16067_v32 = vpop.f32.mrb[78].mxu1  ;;  %v4314_v37 = vsel %vm4034_vm3, %v16053_v5, -inf }
 0x389   : > { %18959 = vst [vmem:[#allocation139_spill] sm:$0xff] %v16065_v2  ;;  %18960 = vst [vmem:[#allocation140_spill] sm:$0xff] %v16067_v32  ;;  %v4808_v59 = vpop.xlane.xlu0 %4807  ;;  %v16069_v51 = vpop.f32.mrb[79].mxu1 }
 0x38a   : > { %18961 = vst [vmem:[#allocation141_spill] sm:$0xff] %v16069_v51  ;;  %13248 = vrcp.f32 %v4808_v59  ;;  %v4311_v59 = vsel %vm4034_vm3, %v16057_v26, -inf }
 0x38b   : > { %4273 = vmax.xlane.f32.xlu1 %v4272_v18  ;;  %v4450_v18 = vsub.f32 %v15538_v58, %v15997_v53 }
 0x38c   : > { %v16075_v41 = vpop.xlane.xlu1 %4144  ;;  %4876 = vadd.xlane.f32.xlu0 %v4875_v6  ;;  %v4257_v6 = vsel %vm4034_vm3, %v15946_v55, -inf }
 0x38d   : > { %v4805_v45 = vpop.xlane.xlu0 %4804 }
 0x38e   : > { %13250 = vrcp.f32 %v4805_v45  ;;  %v16090_v45 = vpop.eup %13244 }
 0x38f   : > { %4315 = vmax.xlane.f32.xlu1 %v4314_v37  ;;  %v16096_v58 = vpop.eup %13246 }
 0x390   : > { %v16081_v2 = vpop.xlane.xlu1 %4240  ;;  %4261 = vmax.xlane.f32.xlu0 %v4260_v47  ;;  %v4609_v47 = vmul.f32 1.442695, %v4450_v18 }
 0x391   : > { %18962 = vst [vmem:[#allocation142_spill] sm:$0xff] %v16081_v2  ;;  %v4160_v0 = vpop.xlane.xlu0 %4159 }
 0x392   : > { %v4460_v20 = vsub.f32 %v15669_v40, %v4160_v0  ;;  %v4449_v40 = vsub.f32 %v15540_v9, %v16013_v30  ;;  %v4320_v0 = vsel %vm4034_vm3, %v16067_v32, -inf  ;;  %v18966_v32 = vld [vmem:[#allocation54_spill] sm:$0xff] }
 0x393   : > { %4312 = vmax.xlane.f32.xlu1 %v4311_v59 }
 0x394   : > { %v4629_v37 = vmul.f32 1.442695, %v4460_v20  ;;  %v16092_v5 = vpop.xlane.xlu1 %4153  ;;  %4258 = vmax.xlane.f32.xlu0 %v4257_v6  ;;  %v13249_v59 = vpop.eup %13248  ;;  %v4890_v20 = vsel %vm4034_vm3, %v16090_v45, 0.0  ;;  %v18964_v6 = vld [vmem:[#allocation46_spill] sm:$0xff] }
 0x395   : > { %v16094_v46 = vpop.xlane.xlu0 %4279  ;;  %v12607_v26 = vunpack.i.h.bf16 %v18964_v6  ;;  %v12606_v55 = vunpack.i.l.bf16 %v18964_v6  ;;  %v5316_v53 = vmul.f32 %v13249_v59, %v15661_v25  ;;  %v4887_v6 = vsel %vm4034_vm3, %v16096_v58, 0.0 }
 0x396   : > { %18963 = vst [vmem:[#allocation143_spill] sm:$0xff] %v16094_v46  ;;  %13252 = vpow2.f32 %v4629_v37  ;;  %v4607_v37 = vmul.f32 1.442695, %v4449_v40  ;;  %v12617_v46 = vunpack.i.h.bf16 %v18966_v32 }
 0x397   : > { %4321 = vmax.xlane.f32.xlu1 %v4320_v0  ;;  %13254 = vpow2.f32 %v4609_v47  ;;  %v4317_v0 = vsel %vm4034_vm3, %v16069_v51, -inf  ;;  %v12300_v25 = vpack.c.bf16 %v12607_v26, %v12606_v55 }
 0x398   : > { %v13251_v18 = vpop.eup %13250  ;;  %v16108_v2 = vpop.xlane.xlu1 %4249  ;;  %4891 = vadd.xlane.f32.xlu0 %v4890_v20  ;;  %v12616_v20 = vunpack.i.l.bf16 %v18966_v32  ;;  %13256 = vpow2.f32 %v4607_v37 }
 0x399   : > { %18965 = vst [vmem:[#allocation46_spill] sm:$0xff] %v16108_v2  ;;  %v16110_v9 = vpop.xlane.xlu0 %4156  ;;  %v5315_v30 = vmul.f32 %v13251_v18, %v15667_v29  ;;  %v4452_v29 = vsub.f32 %v15582_v16, %v15973_v13  ;;  %v4266_v16 = vsel %vm4034_vm3, %v15952_v63, -inf }
 0x39b   : > { %4318 = vmax.xlane.f32.xlu1 %v4317_v0  ;;  %11262 = vmatprep.mubr.msk.f32.mxu0 %vm4034_vm3, %v5315_v30  ;;  %v4613_v30 = vmul.f32 1.442695, %v4452_v29  ;;  %v12304_v0 = vpack.c.bf16 %v12617_v46, %v12616_v20  ;;  %v4263_v29 = vsel %vm4034_vm3, %v15954_v33, -inf  ;;  %v18973_v46 = vld [vmem:[#allocation64_spill] sm:$0xff] }
 0x39c   : > { %v16123_v47 = vpop.xlane.xlu1 %4150  ;;  %11263 = vmatmul.mubr.msk.f32.vlgmr.msra.gmra.mrb[160].mxu0 %vm4034_vm3, %v5316_v53  ;;  %4888 = vadd.xlane.f32.xlu0 %v4887_v6  ;;  %v16126_v40 = vpop.f32.mrb[80].mxu1  ;;  %v18970_v53 = vld [vmem:[#allocation53_spill] sm:$0xff]  ;;  %v12677_v20 = vunpack.i.h.bf16 %v18973_v46 }
 0x39d   : > { %18967 = vst [vmem:[#allocation54_spill] sm:$0xff] %v16126_v40  ;;  %12299 = vmatpush3.bf16.msra.mxu0 %v15359_v56  ;;  %v16129_v59 = vpop.xlane.xlu0 %4276  ;;  %v16131_v18 = vpop.f32.mrb[81].mxu1  ;;  %v12627_v55 = vunpack.i.h.bf16 %v18970_v53  ;;  %v12626_v26 = vunpack.i.l.bf16 %v18970_v53  ;;  %13258 = vpow2.f32 %v4613_v30 }
 0x39e   : > { %18968 = vst [vmem:[#allocation144_spill] sm:$0xff] %v16129_v59  ;;  %18969 = vst [vmem:[#allocation145_spill] sm:$0xff] %v16131_v18  ;;  %12301 = vmatprep.subr.bf16.mxu0 %v12300_v25  ;;  %v4451_v59 = vsub.f32 %v18972_v23, %v15988_v61 }
 0x39f   : > { %v12308_v14 = vpack.c.bf16 %v12627_v55, %v12626_v26 }
 0x3a0   : > { %v16137_v13 = vpop.eup %13252  ;;  %v16141_v56 = vpop.xlane.xlu1 %4246  ;;  %4267 = vmax.xlane.f32.xlu0 %v4266_v16 }
 0x3a1   : > { %18971 = vst [vmem:[#allocation53_spill] sm:$0xff] %v16141_v56  ;;  %v16143_v6 = vpop.f32.mrb[82].mxu1  ;;  %12303 = vmatpush3.bf16.msra.mxu0 %v12300_v25  ;;  %v4814_v37 = vpop.xlane.xlu0 %4813  ;;  %v4926_v32 = vsel %vm4034_vm3, %v16137_v13, 0.0  ;;  %v12676_v25 = vunpack.i.l.bf16 %v18973_v46 }
 0x3a2   : > { %v16147_v51 = vpop.f32.mrb[83].mxu1  ;;  %12305 = vmatprep.subr.bf16.mxu0 %v12304_v0  ;;  %4927 = vadd.xlane.f32.xlu1 %v4926_v32  ;;  %v16153_v53 = vpop.eup %13254  ;;  %13260 = vrcp.f32 %v4814_v37  ;;  %v4611_v32 = vmul.f32 1.442695, %v4451_v59 }
 0x3a3   : > { %v4896_v33 = vsel %vm4034_vm3, %v16153_v53, 0.0  ;;  %v16165_v2 = vpop.eup %13256 }
 0x3a4   : > { %v16157_v16 = vpop.xlane.xlu1 %4285  ;;  %4264 = vmax.xlane.f32.xlu0 %v4263_v29  ;;  %v16159_v63 = vpop.f32.mrb[84].mxu1  ;;  %v16169_v29 = vpack.c.bf16 %v12677_v20, %v12676_v25  ;;  %v4893_v37 = vsel %vm4034_vm3, %v16165_v2, 0.0 }
 0x3a5   : > { %18974 = vst [vmem:[#allocation7_spill] sm:$0xff] %v16157_v16  ;;  %12307 = vmatpush3.bf16.msra.mxu0 %v12304_v0  ;;  %v4811_v61 = vpop.xlane.xlu0 %4810  ;;  %v16161_v23 = vpop.f32.mrb[85].mxu1 }
 0x3a6   : > { %12309 = vmatprep.subr.bf16.mxu0 %v12308_v14  ;;  %13262 = vrcp.f32 %v4811_v61 }
 0x3a7   : > { %13264 = vpow2.f32 %v4611_v32  ;;  %v16183_v20 = vpop.eup %13258  ;;  %v4269_v32 = vsel %vm4034_vm3, %v15967_v35, -inf }
 0x3a8   : > { %v16167_v30 = vpop.xlane.xlu1 %4297  ;;  %4897 = vadd.xlane.f32.xlu0 %v4896_v33  ;;  %v16171_v55 = vpop.f32.mrb[86].mxu1  ;;  %v4902_v35 = vsel %vm4034_vm3, %v16183_v20, 0.0 }
 0x3a9   : > { %18975 = vst [vmem:[#allocation64_spill] sm:$0xff] %v16167_v30  ;;  %18976 = vst [vmem:[#allocation146_spill] sm:$0xff] %v16171_v55  ;;  %12311 = vmatpush3.bf16.msra.mxu0 %v12308_v14  ;;  %v4166_v26 = vpop.xlane.xlu0 %4165  ;;  %v16173_v0 = vpop.f32.mrb[87].mxu1  ;;  %v4454_v14 = vsub.f32 %v15596_v31, %v16011_v19  ;;  %v18979_v30 = vld [vmem:[#allocation31_spill] sm:$0xff]  ;;  %v18981_v19 = vld [vmem:[#allocation114_spill] sm:$0xff] }
 0x3aa   : > { %12329 = vmatprep.subr.bf16.mxu0 %v16169_v29  ;;  %v4462_v59 = vsub.f32 %v15682_v17, %v4166_v26  ;;  %v4453_v26 = vsub.f32 %v15602_v34, %v16019_v7 }
 0x3ab   : > { %v4617_v16 = vmul.f32 1.442695, %v4454_v14 }
 0x3ac   : > { %v4633_v46 = vmul.f32 1.442695, %v4462_v59  ;;  %v16179_v61 = vpop.xlane.xlu1 %4294  ;;  %4894 = vadd.xlane.f32.xlu0 %v4893_v37  ;;  %v13261_v25 = vpop.eup %13260  ;;  %v4615_v34 = vmul.f32 1.442695, %v4453_v26 }
 0x3ad   : > { %18977 = vst [vmem:[#allocation147_spill] sm:$0xff] %v16179_v61  ;;  %v16181_v33 = vpop.xlane.xlu0 %4162 }
 0x3ae   : > { %13266 = vpow2.f32 %v4633_v46  ;;  %v5318_v46 = vmul.f32 %v13261_v25, %v18981_v19 }
 0x3af   : > { %13268 = vpow2.f32 %v4617_v16 }
 0x3b0   : > { %v13263_v17 = vpop.eup %13262  ;;  %v16191_v59 = vpop.xlane.xlu1 %4828  ;;  %4270 = vmax.xlane.f32.xlu0 %v4269_v32  ;;  %13270 = vpow2.f32 %v4615_v34  ;;  %v18985_v34 = vld [vmem:[#allocation12_spill] sm:$0xff] }
 0x3b1   : > { %v16193_v37 = vpop.xlane.xlu0 %4282  ;;  %v5317_v61 = vmul.f32 %v13263_v17, %v18979_v30  ;;  %v16202_v55 = vpop.eup %13264 }
 0x3b2   : > { %18978 = vst [vmem:[#allocation148_spill] sm:$0xff] %v16193_v37  ;;  %v4899_v14 = vsel %vm4034_vm3, %v16202_v55, 0.0 }
 0x3b3   : > { %11265 = vmatprep.mubr.msk.f32.mxu0 %vm4034_vm3, %v5317_v61 }
 0x3b4   : > { %v16204_v7 = vpop.xlane.xlu1 %4183  ;;  %11266 = vmatmul.mubr.msk.f32.gmra.mrb[162].mxu0 %vm4034_vm3, %v5318_v46  ;;  %4903 = vadd.xlane.f32.xlu0 %v4902_v35  ;;  %v4302_v35 = vsel %vm4034_vm3, %v16021_v10, -inf }
 0x3b5   : > { %v4820_v30 = vpop.xlane.xlu0 %4819 }
 0x3b6   : > { %13272 = vrcp.f32 %v4820_v30  ;;  %v4456_v30 = vsub.f32 %v18985_v34, %v16051_v11 }
 0x3b8   : > { %v16209_v32 = vpop.eup %13266  ;;  %v16211_v61 = vpop.xlane.xlu1 %4327  ;;  %4900 = vadd.xlane.f32.xlu0 %v4899_v14  ;;  %v4621_v11 = vmul.f32 1.442695, %v4456_v30 }
 0x3b9   : > { %18982 = vst [vmem:[#allocation31_spill] sm:$0xff] %v16211_v61  ;;  %v4817_v25 = vpop.xlane.xlu0 %4816  ;;  %v4932_v17 = vsel %vm4034_vm3, %v16209_v32, 0.0 }
 0x3ba   : > { %13274 = vrcp.f32 %v4817_v25  ;;  %4933 = vadd.xlane.f32.xlu1 %v4932_v17  ;;  %v4299_v25 = vsel %vm4034_vm3, %v16023_v62, -inf  ;;  %v16228_v17 = vpop.eup %13268 }
 0x3bb   : > { %v16238_v56 = vpop.eup %13270 }
 0x3bc   : > { %v16217_v16 = vpop.xlane.xlu1 %4180  ;;  %4303 = vmax.xlane.f32.xlu0 %v4302_v35  ;;  %v16219_v26 = vpop.f32.mrb[88].mxu1 }
 0x3bd   : > { %18983 = vst [vmem:[#allocation114_spill] sm:$0xff] %v16219_v26  ;;  %v4172_v19 = vpop.xlane.xlu0 %4171  ;;  %v16221_v46 = vpop.f32.mrb[89].mxu1 }
 0x3be   : > { %18984 = vst [vmem:[#allocation149_spill] sm:$0xff] %v16221_v46  ;;  %v4464_v14 = vsub.f32 %v15695_v60, %v4172_v19  ;;  %v18990_v60 = vld [vmem:[#allocation11_spill] sm:$0xff] }
 0x3bf   : > { %v4455_v19 = vsub.f32 %v18990_v60, %v16075_v41 }
 0x3c0   : > { %v4637_v31 = vmul.f32 1.442695, %v4464_v14  ;;  %v16230_v61 = vpop.xlane.xlu1 %4324  ;;  %4300 = vmax.xlane.f32.xlu0 %v4299_v25  ;;  %v16232_v35 = vpop.f32.mrb[90].mxu1  ;;  %v4908_v25 = vsel %vm4034_vm3, %v16228_v17, 0.0 }
 0x3c1   : > { %18986 = vst [vmem:[#allocation12_spill] sm:$0xff] %v16230_v61  ;;  %18987 = vst [vmem:[#allocation150_spill] sm:$0xff] %v16232_v35  ;;  %v16234_v10 = vpop.xlane.xlu0 %4291  ;;  %v16236_v37 = vpop.f32.mrb[91].mxu1  ;;  %v4619_v41 = vmul.f32 1.442695, %v4455_v19 }
 0x3c2   : > { %18988 = vst [vmem:[#allocation151_spill] sm:$0xff] %v16234_v10  ;;  %18989 = vst [vmem:[#allocation152_spill] sm:$0xff] %v16236_v37  ;;  %13276 = vpow2.f32 %v4637_v31  ;;  %v13273_v14 = vpop.eup %13272  ;;  %v18993_v31 = vld [vmem:[#allocation68_spill] sm:$0xff]  ;;  %v18994_v10 = vld [vmem:[#allocation18_spill] sm:$0xff] }
 0x3c3   : > { %13278 = vpow2.f32 %v4621_v11  ;;  %v4458_v60 = vsub.f32 %v18993_v31, %v16092_v5  ;;  %v5320_v34 = vmul.f32 %v13273_v14, %v15775_v8  ;;  %v4457_v54 = vsub.f32 %v18994_v10, %v16123_v47 }
 0x3c4   : > { %v13275_v61 = vpop.eup %13274  ;;  %v16246_v62 = vpop.xlane.xlu1 %4837  ;;  %4909 = vadd.xlane.f32.xlu0 %v4908_v25  ;;  %v4905_v25 = vsel %vm4034_vm3, %v16238_v56, 0.0  ;;  %13280 = vpow2.f32 %v4619_v41  ;;  %v4308_v10 = vsel %vm4034_vm3, %v16035_v38, -inf }
 0x3c5   : > { %v16248_v35 = vpop.f32.mrb[92].mxu1  ;;  %v4169_v37 = vpop.xlane.xlu0 %4168  ;;  %v5319_v30 = vmul.f32 %v13275_v61, %v15790_v22  ;;  %v4625_v8 = vmul.f32 1.442695, %v4458_v60  ;;  %v4623_v5 = vmul.f32 1.442695, %v4457_v54  ;;  %v4305_v54 = vsel %vm4034_vm3, %v16037_v43, -inf }
 0x3c6   : > { %18991 = vst [vmem:[#allocation11_spill] sm:$0xff] %v16248_v35  ;;  %v16251_v46 = vpop.f32.mrb[93].mxu1 }
 0x3c7   : > { %18992 = vst [vmem:[#allocation153_spill] sm:$0xff] %v16251_v46  ;;  %11268 = vmatprep.mubr.msk.f32.mxu0 %vm4034_vm3, %v5319_v30  ;;  %13282 = vpow2.f32 %v4625_v8  ;;  %v18998_v30 = vld [vmem:[#allocation21_spill] sm:$0xff] }
 0x3c8   : > { %v4835_v35 = vpop.xlane.xlu1 %4834  ;;  %11269 = vmatmul.mubr.msk.f32.gmra.mrb[164].mxu0 %vm4034_vm3, %v5320_v34  ;;  %4906 = vadd.xlane.f32.xlu0 %v4905_v25  ;;  %v16262_v22 = vpop.f32.mrb[94].mxu1  ;;  %v4459_v31 = vsub.f32 %v18998_v30, %v16110_v9  ;;  %13284 = vpow2.f32 %v4623_v5  ;;  %v19000_v25 = vld [vmem:[#allocation20_spill] sm:$0xff] }
 0x3c9   : > { %18995 = vst [vmem:[#allocation68_spill] sm:$0xff] %v16262_v22  ;;  %v16264_v61 = vpop.xlane.xlu0 %4288  ;;  %v16266_v11 = vpop.f32.mrb[95].mxu1  ;;  %13286 = vrcp.f32 %v16191_v59 }
 0x3ca   : > { %18996 = vst [vmem:[#allocation18_spill] sm:$0xff] %v16264_v61  ;;  %18997 = vst [vmem:[#allocation154_spill] sm:$0xff] %v16266_v11  ;;  %v4627_v38 = vmul.f32 1.442695, %v4459_v31  ;;  %v19007_v11 = vld [vmem:[#allocation78_spill] sm:$0xff] }
 0x3cb   : > { %v12697_v46 = vunpack.i.h.bf16 %v19007_v11 }
 0x3cc   : > { %v16270_v47 = vpop.eup %13276  ;;  %v16272_v19 = vpop.xlane.xlu1 %4189  ;;  %4309 = vmax.xlane.f32.xlu0 %v4308_v10  ;;  %v4461_v10 = vsub.f32 %v19000_v25, %v16181_v33 }
 0x3cd   : > { %v4826_v14 = vpop.xlane.xlu0 %4825  ;;  %v4938_v34 = vsel %vm4034_vm3, %v16270_v47, 0.0  ;;  %v16280_v41 = vpop.eup %13278 }
 0x3ce   : > { %4939 = vadd.xlane.f32.xlu1 %v4938_v34  ;;  %13288 = vrcp.f32 %v4826_v14  ;;  %v4914_v9 = vsel %vm4034_vm3, %v16280_v41, 0.0  ;;  %v16289_v5 = vpop.eup %13280  ;;  %v4631_v30 = vmul.f32 1.442695, %v4461_v10 }
 0x3cf   : > { %v4911_v33 = vsel %vm4034_vm3, %v16289_v5, 0.0 }
 0x3d0   : > { %v16283_v60 = vpop.xlane.xlu1 %4333  ;;  %4306 = vmax.xlane.f32.xlu0 %v4305_v54  ;;  %v4463_v54 = vsub.f32 %v15697_v52, %v4169_v37 }
 0x3d1   : > { %18999 = vst [vmem:[#allocation21_spill] sm:$0xff] %v16283_v60  ;;  %v4823_v8 = vpop.xlane.xlu0 %4822  ;;  %v16297_v14 = vpop.eup %13282 }
 0x3d2   : > { %13290 = vrcp.f32 %v4823_v8  ;;  %v16301_v8 = vpop.eup %13284  ;;  %v4635_v43 = vmul.f32 1.442695, %v4463_v54 }
 0x3d3   : > { %13292 = vpow2.f32 %v4627_v38  ;;  %v13287_v10 = vpop.eup %13286 }
 0x3d4   : > { %v16291_v34 = vpop.xlane.xlu1 %4186  ;;  %4915 = vadd.xlane.f32.xlu0 %v4914_v9  ;;  %13294 = vpow2.f32 %v4631_v30 }
 0x3d5   : > { %v4178_v59 = vpop.xlane.xlu0 %4177 }
 0x3d6   : > { %v4466_v60 = vsub.f32 %v15709_v57, %v4178_v59  ;;  %v4920_v57 = vsel %vm4034_vm3, %v16297_v14, 0.0 }
 0x3d8   : > { %v4641_v31 = vmul.f32 1.442695, %v4466_v60  ;;  %v16299_v25 = vpop.xlane.xlu1 %4330  ;;  %4912 = vadd.xlane.f32.xlu0 %v4911_v33  ;;  %v13289_v38 = vpop.eup %13288  ;;  %v19002_v60 = vld [vmem:[#allocation35_spill] sm:$0xff] }
 0x3d9   : > { %19001 = vst [vmem:[#allocation20_spill] sm:$0xff] %v16299_v25  ;;  %v4175_v9 = vpop.xlane.xlu0 %4174  ;;  %v4468_v25 = vsub.f32 %v19002_v60, %v16204_v7  ;;  %v5322_v54 = vmul.f32 %v13289_v38, %v15835_v48 }
 0x3da   : > { %13296 = vpow2.f32 %v4641_v31  ;;  %v4465_v52 = vsub.f32 %v15711_v24, %v4175_v9  ;;  %v4917_v24 = vsel %vm4034_vm3, %v16301_v8, 0.0  ;;  %v19003_v31 = vld [vmem:[#allocation30_spill] sm:$0xff] }
 0x3db   : > { %13298 = vpow2.f32 %v4635_v43  ;;  %v5323_v9 = vmul.f32 %v13287_v10, %v19003_v31  ;;  %v4645_v43 = vmul.f32 1.442695, %v4468_v25 }
 0x3dc   : > { %v13291_v37 = vpop.eup %13290  ;;  %v4841_v59 = vpop.xlane.xlu1 %4840  ;;  %4921 = vadd.xlane.f32.xlu0 %v4920_v57  ;;  %v4639_v30 = vmul.f32 1.442695, %v4465_v52  ;;  %13300 = vrcp.f32 %v4835_v35 }
 0x3dd   : > { %v4832_v33 = vpop.xlane.xlu0 %4831  ;;  %v5321_v61 = vmul.f32 %v13291_v37, %v15850_v49  ;;  %v16314_v22 = vpop.eup %13292  ;;  %v4467_v49 = vsub.f32 %v15750_v28, %v16217_v16 }
 0x3de   : > { %13302 = vrcp.f32 %v4832_v33  ;;  %v16323_v7 = vpop.eup %13294  ;;  %v4923_v35 = vsel %vm4034_vm3, %v16314_v22, 0.0 }
 0x3df   : > { %11271 = vmatprep.mubr.msk.f32.mxu0 %vm4034_vm3, %v5321_v61  ;;  %13304 = vrcp.f32 %v16246_v62  ;;  %v4643_v52 = vmul.f32 1.442695, %v4467_v49  ;;  %v4929_v28 = vsel %vm4034_vm3, %v16323_v7, 0.0 }
 0x3e0   : > { %v16316_v57 = vpop.xlane.xlu1 %4195  ;;  %11272 = vmatmul.mubr.msk.f32.gmra.mrb[166].mxu0 %vm4034_vm3, %v5322_v54  ;;  %4918 = vadd.xlane.f32.xlu0 %v4917_v24  ;;  %13306 = vpow2.f32 %v4639_v30  ;;  %v19005_v54 = vld [vmem:[#allocation44_spill] sm:$0xff] }
 0x3e1   : > { %11290 = vmatprep.mubr.msk.f32.mxu0 %vm4034_vm3, %v5323_v9  ;;  %v4844_v48 = vpop.xlane.xlu0 %4843  ;;  %13308 = vrcp.f32 %v4841_v59  ;;  %v19004_v59 = vld [vmem:[#allocation73_spill] sm:$0xff]  ;;  %v4335_v24 = vsel %vm4034_vm3, %v19005_v54, -inf  ;;  %v12696_v54 = vunpack.i.l.bf16 %v19007_v11 }
 0x3e2   : > { %13310 = vpow2.f32 %v4645_v43  ;;  %v12687_v60 = vunpack.i.h.bf16 %v19004_v59  ;;  %v12686_v33 = vunpack.i.l.bf16 %v19004_v59 }
 0x3e3   : > { %13312 = vrcp.f32 %v4844_v48 }
 0x3e4   : > { %v16327_v61 = vpop.eup %13296  ;;  %v16329_v10 = vpop.xlane.xlu1 %4192  ;;  %4924 = vadd.xlane.f32.xlu0 %v4923_v35  ;;  %13314 = vpow2.f32 %v4643_v52  ;;  %v12332_v52 = vpack.c.bf16 %v12687_v60, %v12686_v33 }
 0x3e5   : > { %v16331_v62 = vpop.xlane.xlu0 %4855  ;;  %v4944_v25 = vsel %vm4034_vm3, %v16327_v61, 0.0  ;;  %v16337_v16 = vpop.eup %13298 }
 0x3e6   : > { %4945 = vadd.xlane.f32.xlu1 %v4944_v25  ;;  %v13301_v37 = vpop.eup %13300  ;;  %v4935_v48 = vsel %vm4034_vm3, %v16337_v16, 0.0  ;;  %v19006_v25 = vld [vmem:[#allocation123_spill] sm:$0xff] }
 0x3e8   : > { %v4850_v38 = vpop.xlane.xlu1 %4849  ;;  %4930 = vadd.xlane.f32.xlu0 %v4929_v28  ;;  %v13303_v31 = vpop.eup %13302  ;;  %v5325_v28 = vmul.f32 %v13301_v37, %v19006_v25 }
 0x3e9   : > { %v16341_v30 = vpop.xlane.xlu0 %4207  ;;  %v13305_v9 = vpop.eup %13304  ;;  %v5324_v43 = vmul.f32 %v13303_v31, %v15892_v44  ;;  %13316 = vrcp.f32 %v4850_v38  ;;  %v19008_v38 = vld [vmem:[#allocation38_spill] sm:$0xff]  ;;  %v19010_v31 = vld [vmem:[#allocation119_spill] sm:$0xff] }
 0x3ea   : > { %4336 = vmax.xlane.f32.xlu1 %v4335_v24  ;;  %v16348_v49 = vpop.eup %13306  ;;  %v4338_v24 = vsel %vm4034_vm3, %v19008_v38, -inf }
 0x3eb   : > { %v13309_v59 = vpop.eup %13308  ;;  %11291 = vmatmul.mubr.msk.f32.vlgmr.msra.gmra.mrb[168].mxu0 %vm4034_vm3, %v5324_v43  ;;  %v4941_v11 = vsel %vm4034_vm3, %v16348_v49, 0.0 }
 0x3ec   : > { %v4847_v35 = vpop.xlane.xlu1 %4846  ;;  %4936 = vadd.xlane.f32.xlu0 %v4935_v48  ;;  %12331 = vmatpush3.bf16.msra.mxu0 %v16169_v29  ;;  %v16360_v37 = vpop.eup %13310  ;;  %v5326_v48 = vmul.f32 %v13305_v9, %v19010_v31  ;;  %v5327_v33 = vmul.f32 %v13309_v59, %v15886_v21  ;;  %v19011_v29 = vld [vmem:[#allocation89_spill] sm:$0xff] }
 0x3ed   : > { %13318 = vrcp.f32 %v4847_v35  ;;  %v16354_v44 = vpop.xlane.xlu0 %4204  ;;  %11293 = vmatprep.mubr.msk.f32.mxu0 %vm4034_vm3, %v5325_v28  ;;  %19009 = vst [vmem:[#allocation35_spill] sm:$0xff] %v16360_v37  ;;  %12333 = vmatprep.subr.bf16.mxu0 %v12332_v52  ;;  %v13313_v43 = vpop.eup %13312  ;;  %v12707_v35 = vunpack.i.h.bf16 %v19011_v29  ;;  %v12706_v25 = vunpack.i.l.bf16 %v19011_v29  ;;  %v12336_v28 = vpack.c.bf16 %v12697_v46, %v12696_v54  ;;  %v19012_v59 = vld [vmem:[#allocation101_spill] sm:$0xff] }
 0x3ee   : > { %4339 = vmax.xlane.f32.xlu1 %v4338_v24  ;;  %v5328_v9 = vmul.f32 %v13313_v43, %v15905_v12  ;;  %v4950_v24 = vsel %vm4034_vm3, %v16360_v37, 0.0  ;;  %v16375_v31 = vpop.eup %13314  ;;  %13320 = vrcp.f32 %v16331_v62  ;;  %v19013_v62 = vld [vmem:[#allocation10_spill] sm:$0xff]  ;;  %v19016_v37 = vld [vmem:[#allocation63_spill] sm:$0xff] }
 0x3ef   : > { %11294 = vmatmul.mubr.msk.f32.gmra.mrb[170].mxu0 %vm4034_vm3, %v5326_v48  ;;  %v12746_v48 = vunpack.i.l.bf16 %v19012_v59  ;;  %v12340_v46 = vpack.c.bf16 %v12707_v35, %v12706_v25  ;;  %v4947_v43 = vsel %vm4034_vm3, %v16375_v31, 0.0 }
 0x3f0   : > { %v16365_v60 = vpop.xlane.xlu1 %4201  ;;  %4942 = vadd.xlane.f32.xlu0 %v4941_v11  ;;  %12335 = vmatpush3.bf16.msra.mxu0 %v12332_v52  ;;  %v12747_v11 = vunpack.i.h.bf16 %v19012_v59 }
 0x3f1   : > { %v4859_v38 = vpop.xlane.xlu0 %4858  ;;  %11296 = vmatprep.mubr.msk.f32.mxu0 %vm4034_vm3, %v5327_v33  ;;  %12337 = vmatprep.subr.bf16.mxu0 %v12336_v28 }
 0x3f2   : > { %13322 = vrcp.f32 %v4859_v38 }
 0x3f3   : > { %11297 = vmatmul.mubr.msk.f32.gmra.mrb[172].mxu0 %vm4034_vm3, %v5328_v9  ;;  %v13317_v52 = vpop.eup %13316 }
 0x3f4   : > { %v16377_v21 = vpop.xlane.xlu1 %4198  ;;  %4951 = vadd.xlane.f32.xlu0 %v4950_v24  ;;  %12339 = vmatpush3.bf16.msra.mxu0 %v12336_v28  ;;  %v16388_v24 = vpack.c.bf16 %v12747_v11, %v12746_v48  ;;  %v5330_v35 = vmul.f32 %v13317_v52, %v15919_v36 }
 0x3f5   : > { %v16382_v54 = vpop.xlane.xlu0 %4213  ;;  %12341 = vmatprep.subr.bf16.mxu0 %v12340_v46 }
 0x3f7   : > { %v13319_v12 = vpop.eup %13318 }
 0x3f8   : > { %v4853_v33 = vpop.xlane.xlu1 %4852  ;;  %4948 = vadd.xlane.f32.xlu0 %v4947_v43  ;;  %v5329_v29 = vmul.f32 %v13319_v12, %v15928_v3  ;;  %12343 = vmatpush3.bf16.msra.mxu0 %v12340_v46  ;;  %v13321_v36 = vpop.eup %13320  ;;  %v19014_v46 = vld [vmem:[#allocation105_spill] sm:$0xff] }
 0x3f9   : > { %v16390_v59 = vpop.xlane.xlu0 %4210  ;;  %13324 = vrcp.f32 %v4853_v33  ;;  %12361 = vmatprep.subr.bf16.mxu0 %v16388_v24  ;;  %v12727_v52 = vunpack.i.h.bf16 %v19014_v46  ;;  %v12726_v12 = vunpack.i.l.bf16 %v19014_v46 }
 0x3fa   : > { %11299 = vmatprep.mubr.msk.f32.mxu0 %vm4034_vm3, %v5329_v29 }
 0x3fb   : > { %11300 = vmatmul.mubr.msk.f32.gmra.mrb[174].mxu0 %vm4034_vm3, %v5330_v35  ;;  %v19015_v35 = vld [vmem:[#allocation99_spill] sm:$0xff] }
 0x3fc   : > { %v4862_v25 = vpop.xlane.xlu1 %4861  ;;  %v13323_v38 = vpop.eup %13322 }
 0x3fd   : > { %13326 = vrcp.f32 %v4862_v25  ;;  %v4868_v3 = vpop.xlane.xlu0 %4867  ;;  %v5332_v25 = vmul.f32 %v13321_v36, %v19015_v35 }
 0x3ff   : > { %12974 = vrot.lane.b32.xlu1 %v19013_v62, %s13709_s10  ;;  %v12348_v62 = vpack.c.bf16 %v12727_v52, %v12726_v12  ;;  %v19018_v52 = vld [vmem:[#allocation122_spill] sm:$0xff] }
 0x400   : > { %v4865_v28 = vpop.xlane.xlu1 %4864  ;;  %v4476_v12 = vsub.f32 %v19018_v52, %v16341_v30 }
 0x401   : > { %13328 = vrcp.f32 %v4865_v28  ;;  %v16398_v9 = vpop.xlane.xlu0 %4219 }
 0x402   : > { %13330 = vrcp.f32 %v4868_v3  ;;  %v5333_v3 = vmul.f32 %v13323_v38, %v15941_v15 }
 0x403   : > { %v13325_v48 = vpop.eup %13324 }
 0x404   : > { %v4871_v11 = vpop.xlane.xlu1 %4870  ;;  %v5331_v33 = vmul.f32 %v13325_v48, %v15959_v4 }
 0x405   : > { %13332 = vrcp.f32 %v4871_v11  ;;  %v16402_v43 = vpop.xlane.xlu0 %4216  ;;  %v19017_v11 = vld [vmem:[#allocation17_spill] sm:$0xff] }
 0x406   : > { %11318 = vmatprep.mubr.msk.f32.mxu1 %vm4034_vm3, %v5331_v33  ;;  %v19019_v33 = vld [vmem:[#allocation67_spill] sm:$0xff] }
 0x407   : > { %v13327_v29 = vpop.eup %13326  ;;  %11319 = vmatmul.mubr.msk.f32.vlgmr.msra.gmra.mrb[96].mxu1 %vm4034_vm3, %v5332_v25 }
 0x408   : > { %v16408_v28 = vpop.xlane.xlu1 %4255  ;;  %v5334_v46 = vmul.f32 %v13327_v29, %v19016_v37  ;;  %12347 = vmatpush3.bf16.msra.mxu1 %v19017_v11  ;;  %11321 = vmatprep.mubr.msk.f32.mxu1 %vm4034_vm3, %v5333_v3  ;;  %v4661_v3 = vmul.f32 1.442695, %v4476_v12  ;;  %v19023_v12 = vld [vmem:[#allocation29_spill] sm:$0xff] }
 0x409   : > { %v4874_v26 = vpop.xlane.xlu0 %4873  ;;  %12349 = vmatprep.subr.bf16.mxu1 %v12348_v62 }
 0x40a   : > { %13334 = vrcp.f32 %v4874_v26  ;;  %v19020_v26 = vld [vmem:[#allocation2_spill] sm:$0xff] }
 0x40b   : > { %v13329_v4 = vpop.eup %13328  ;;  %11322 = vmatmul.mubr.msk.f32.gmra.mrb[98].mxu1 %vm4034_vm3, %v5334_v46  ;;  %13336 = vpow2.f32 %v4661_v3 }
 0x40c   : > { %v13331_v36 = vpop.eup %13330  ;;  %v16414_v48 = vpop.xlane.xlu1 %4252  ;;  %v5335_v15 = vmul.f32 %v13329_v4, %v15984_v39  ;;  %12351 = vmatpush3.bf16.msra.mxu1 %v12348_v62  ;;  %v19021_v4 = vld [vmem:[#allocation47_spill] sm:$0xff] }
 0x40d   : > { %v16418_v38 = vpop.xlane.xlu0 %4225  ;;  %v5336_v29 = vmul.f32 %v13331_v36, %v19019_v33  ;;  %v4475_v36 = vsub.f32 %v19021_v4, %v16354_v44 }
 0x40e   : > { %11324 = vmatprep.mubr.msk.f32.mxu1 %vm4034_vm3, %v5335_v15  ;;  %12969 = vrot.lane.b32.xlu0 %v19020_v26, %s13709_s10  ;;  %v19022_v15 = vld [vmem:[#allocation57_spill] sm:$0xff] }
 0x40f   : > { %v13333_v37 = vpop.eup %13332  ;;  %11325 = vmatmul.mubr.msk.f32.gmra.mrb[100].mxu1 %vm4034_vm3, %v5336_v29  ;;  %v4478_v52 = vsub.f32 %v19022_v15, %v16382_v54  ;;  %v4659_v33 = vmul.f32 1.442695, %v4475_v36  ;;  %v19027_v36 = vld [vmem:[#allocation112_spill] sm:$0xff] }
 0x410   : > { %v4886_v35 = vpop.xlane.xlu1 %4885  ;;  %v5337_v25 = vmul.f32 %v13333_v37, %v15995_v50  ;;  %v4469_v37 = vsub.f32 %v19023_v12, %v16291_v34 }
 0x411   : > { %v16428_v39 = vpop.xlane.xlu0 %4222 }
 0x412   : > { %11327 = vmatprep.mubr.msk.f32.mxu1 %vm4034_vm3, %v5337_v25  ;;  %v4647_v44 = vmul.f32 1.442695, %v4469_v37  ;;  %v19025_v25 = vld [vmem:[#allocation55_spill] sm:$0xff] }
 0x413   : > { %v4477_v3 = vsub.f32 %v19025_v25, %v16390_v59  ;;  %v19029_v25 = vld [vmem:[#allocation135_spill] sm:$0xff] }
 0x414   : > { %v13335_v30 = vpop.eup %13334  ;;  %v4883_v62 = vpop.xlane.xlu1 %4882 }
 0x415   : > { %v4880_v46 = vpop.xlane.xlu0 %4879  ;;  %v5338_v11 = vmul.f32 %v13335_v30, %v16009_v1  ;;  %13338 = vrcp.f32 %v4883_v62  ;;  %v4665_v1 = vmul.f32 1.442695, %v4478_v52  ;;  %v16441_v26 = vpop.eup %13336  ;;  %v4663_v15 = vmul.f32 1.442695, %v4477_v3 }
 0x416   : > { %13340 = vrcp.f32 %v4880_v46  ;;  %v19026_v46 = vld [vmem:[#allocation113_spill] sm:$0xff]  ;;  %v4974_v34 = vsel %vm4034_vm3, %v16441_v26, 0.0 }
 0x417   : > { %11328 = vmatmul.mubr.msk.f32.gmra.mrb[102].mxu1 %vm4034_vm3, %v5338_v11  ;;  %v12757_v11 = vunpack.i.h.bf16 %v19026_v46  ;;  %v12756_v4 = vunpack.i.l.bf16 %v19026_v46 }
 0x419   : > { %v4877_v50 = vpop.xlane.xlu0 %4876 }
 0x41a   : > { %13342 = vrcp.f32 %v4877_v50  ;;  %v4470_v50 = vsub.f32 %v19027_v36, %v16272_v19  ;;  %v12364_v19 = vpack.c.bf16 %v12757_v11, %v12756_v4 }
 0x41b   : > { %13344 = vrcp.f32 %v4886_v35 }
 0x41c   : > { %13346 = vpow2.f32 %v4659_v33  ;;  %v19028_v33 = vld [vmem:[#allocation49_spill] sm:$0xff]  ;;  %v4649_v46 = vmul.f32 1.442695, %v4470_v50 }
 0x41d   : > { %v16439_v29 = vpop.xlane.xlu0 %4261  ;;  %13348 = vpow2.f32 %v4665_v1  ;;  %v4341_v1 = vsel %vm4034_vm3, %v19028_v33, -inf }
 0x41e   : > { %19024 = vst [vmem:[#allocation30_spill] sm:$0xff] %v16439_v29  ;;  %13350 = vpow2.f32 %v4647_v44  ;;  %v19030_v44 = vld [vmem:[#allocation82_spill] sm:$0xff] }
 0x41f   : > { %v13339_v62 = vpop.eup %13338  ;;  %13352 = vpow2.f32 %v4663_v15 }
 0x420   : > { %v13341_v54 = vpop.eup %13340  ;;  %v5341_v29 = vmul.f32 %v13339_v62, %v19029_v25 }
 0x421   : > { %v16445_v30 = vpop.xlane.xlu0 %4258  ;;  %v5340_v12 = vmul.f32 %v13341_v54, %v16047_v27  ;;  %v19031_v54 = vld [vmem:[#allocation37_spill] sm:$0xff] }
 0x422   : > { %v4344_v62 = vsel %vm4034_vm3, %v19031_v54, -inf }
 0x423   : > { %4975 = vadd.xlane.f32.xlu1 %v4974_v34 }
 0x424   : > { %v13343_v35 = vpop.eup %13342 }
 0x425   : > { %v4892_v59 = vpop.xlane.xlu0 %4891  ;;  %v5339_v52 = vmul.f32 %v13343_v35, %v16063_v42  ;;  %v13345_v37 = vpop.eup %13344 }
 0x426   : > { %13354 = vrcp.f32 %v4892_v59  ;;  %v16462_v27 = vpop.eup %13346  ;;  %v5342_v3 = vmul.f32 %v13345_v37, %v19030_v44 }
 0x427   : > { %11346 = vmatprep.mubr.msk.f32.mxu0 %vm4034_vm3, %v5339_v52  ;;  %4342 = vmax.xlane.f32.xlu1 %v4341_v1  ;;  %v16467_v34 = vpop.eup %13348 }
 0x428   : > { %11347 = vmatmul.mubr.msk.f32.vlgmr.msra.gmra.mrb[176].mxu0 %vm4034_vm3, %v5340_v12  ;;  %v16474_v11 = vpop.eup %13350  ;;  %v4980_v35 = vsel %vm4034_vm3, %v16467_v34, 0.0 }
 0x429   : > { %12363 = vmatpush3.bf16.msra.mxu0 %v16388_v24  ;;  %11349 = vmatprep.mubr.msk.f32.mxu0 %vm4034_vm3, %v5341_v29  ;;  %v4889_v42 = vpop.xlane.xlu0 %4888  ;;  %v4971_v29 = vsel %vm4034_vm3, %v16462_v27, 0.0  ;;  %19033 = vst [vmem:[#allocation123_spill] sm:$0xff] %v16474_v11  ;;  %v4953_v36 = vsel %vm4034_vm3, %v16474_v11, 0.0  ;;  %v16482_v50 = vpop.eup %13352 }
 0x42a   : > { %12365 = vmatprep.subr.bf16.mxu0 %v12364_v19  ;;  %13356 = vrcp.f32 %v4889_v42  ;;  %v4977_v12 = vsel %vm4034_vm3, %v16482_v50, 0.0 }
 0x42b   : > { %13358 = vpow2.f32 %v4649_v46  ;;  %4345 = vmax.xlane.f32.xlu1 %v4344_v62 }
 0x42c   : > { %11350 = vmatmul.mubr.msk.f32.gmra.mrb[178].mxu0 %vm4034_vm3, %v5342_v3 }
 0x42d   : > { %12367 = vmatpush3.bf16.msra.mxu0 %v12364_v19  ;;  %v16470_v24 = vpop.xlane.xlu0 %4267  ;;  %4972 = vadd.xlane.f32.xlu0 %v4971_v29 }
 0x42e   : > { %19032 = vst [vmem:[#allocation73_spill] sm:$0xff] %v16470_v24 }
 0x42f   : > { %4981 = vadd.xlane.f32.xlu1 %v4980_v35 }
 0x430   : > { %v13355_v15 = vpop.eup %13354 }
 0x431   : > { %v16478_v4 = vpop.xlane.xlu0 %4264  ;;  %4954 = vadd.xlane.f32.xlu0 %v4953_v36  ;;  %v5344_v25 = vmul.f32 %v13355_v15, %v16090_v45  ;;  %v16506_v15 = vpop.xlane.xlu1 %4273 }
 0x432   : > { %19038 = vst [vmem:[#allocation101_spill] sm:$0xff] %v16506_v15 }
 0x434   : > { %v13357_v59 = vpop.eup %13356 }
 0x435   : > { %v4898_v52 = vpop.xlane.xlu0 %4897  ;;  %v5343_v37 = vmul.f32 %v13357_v59, %v16096_v58  ;;  %v16487_v1 = vpop.eup %13358  ;;  %4978 = vadd.xlane.f32.xlu0 %v4977_v12  ;;  %v19036_v58 = vld [vmem:[#allocation13_spill] sm:$0xff]  ;;  %v19040_v12 = vld [vmem:[#allocation3_spill] sm:$0xff] }
 0x436   : > { %19034 = vst [vmem:[#allocation78_spill] sm:$0xff] %v16487_v1  ;;  %13360 = vrcp.f32 %v4898_v52  ;;  %v4956_v19 = vsel %vm4034_vm3, %v16487_v1, 0.0 }
 0x437   : > { %11352 = vmatprep.mubr.msk.f32.mxu0 %vm4034_vm3, %v5343_v37  ;;  %v16512_v37 = vpop.xlane.xlu1 %4315 }
 0x438   : > { %11353 = vmatmul.mubr.msk.f32.gmra.mrb[180].mxu0 %vm4034_vm3, %v5344_v25  ;;  %19041 = vst [vmem:[#allocation105_spill] sm:$0xff] %v16512_v37 }
 0x439   : > { %v4895_v46 = vpop.xlane.xlu0 %4894  ;;  %4957 = vadd.xlane.f32.xlu0 %v4956_v19 }
 0x43a   : > { %13362 = vrcp.f32 %v4895_v46  ;;  %v19042_v46 = vld [vmem:[#allocation60_spill] sm:$0xff] }
 0x43b   : > { %v4480_v19 = vsub.f32 %v19042_v46, %v16398_v9 }
 0x43d   : > { %v16494_v42 = vpop.xlane.xlu0 %4270 }
 0x43e   : > { %19035 = vst [vmem:[#allocation119_spill] sm:$0xff] %v16494_v42 }
 0x440   : > { %12984 = vrot.lane.b32.xlu1 %v19036_v58, %s13709_s10  ;;  %v13361_v3 = vpop.eup %13360  ;;  %v16522_v58 = vpop.xlane.xlu1 %4312 }
 0x441   : > { %v16498_v44 = vpop.xlane.xlu0 %4903  ;;  %v5346_v35 = vmul.f32 %v13361_v3, %v16153_v53  ;;  %19043 = vst [vmem:[#allocation99_spill] sm:$0xff] %v16522_v58  ;;  %v19044_v3 = vld [vmem:[#allocation33_spill] sm:$0xff] }
 0x444   : > { %v13363_v45 = vpop.eup %13362 }
 0x445   : > { %v4901_v62 = vpop.xlane.xlu0 %4900  ;;  %v5345_v29 = vmul.f32 %v13363_v45, %v16165_v2  ;;  %v4471_v45 = vsub.f32 %v19044_v3, %v16329_v10 }
 0x446   : > { %13364 = vrcp.f32 %v4901_v62 }
 0x447   : > { %11355 = vmatprep.mubr.msk.f32.mxu0 %vm4034_vm3, %v5345_v29  ;;  %v4669_v29 = vmul.f32 1.442695, %v4480_v19  ;;  %v4347_v19 = vsel %vm4034_vm3, %v16131_v18, -inf }
 0x448   : > { %11356 = vmatmul.mubr.msk.f32.gmra.mrb[182].mxu0 %vm4034_vm3, %v5346_v35  ;;  %v4651_v35 = vmul.f32 1.442695, %v4471_v45 }
 0x449   : > { %v16504_v36 = vpop.xlane.xlu0 %4303  ;;  %13366 = vpow2.f32 %v4669_v29  ;;  %v4350_v29 = vsel %vm4034_vm3, %v16126_v40, -inf }
 0x44a   : > { %19037 = vst [vmem:[#allocation89_spill] sm:$0xff] %v16504_v36  ;;  %13368 = vpow2.f32 %v4651_v35 }
 0x44d   : > { %v16508_v59 = vpop.xlane.xlu0 %4300 }
 0x44e   : > { %19039 = vst [vmem:[#allocation10_spill] sm:$0xff] %v16508_v59 }
 0x44f   : > { %12979 = vrot.lane.b32.xlu0 %v19040_v12, %s13709_s10  ;;  %v19046_v12 = vld [vmem:[#allocation58_spill] sm:$0xff] }
 0x450   : > { %v13365_v52 = vpop.eup %13364  ;;  %v4479_v54 = vsub.f32 %v19046_v12, %v16402_v43 }
 0x451   : > { %v16514_v2 = vpop.xlane.xlu0 %4909  ;;  %v5347_v53 = vmul.f32 %v13365_v52, %v16202_v55  ;;  %v16530_v55 = vpop.xlane.xlu1 %4321 }
 0x452   : > { %19047 = vst [vmem:[#allocation17_spill] sm:$0xff] %v16530_v55  ;;  %v4667_v46 = vmul.f32 1.442695, %v4479_v54 }
 0x453   : > { %11374 = vmatprep.mubr.msk.f32.mxu1 %vm4034_vm3, %v5347_v53  ;;  %v19049_v53 = vld [vmem:[#allocation117_spill] sm:$0xff] }
 0x454   : > { %v4472_v9 = vsub.f32 %v19049_v53, %v16316_v57  ;;  %13370 = vpow2.f32 %v4667_v46  ;;  %v16548_v57 = vpop.eup %13366 }
 0x455   : > { %v16518_v25 = vpop.xlane.xlu0 %4906  ;;  %v16538_v10 = vpop.xlane.xlu1 %4318  ;;  %v4986_v53 = vsel %vm4034_vm3, %v16548_v57, 0.0 }
 0x456   : > { %19050 = vst [vmem:[#allocation67_spill] sm:$0xff] %v16538_v10  ;;  %v4653_v3 = vmul.f32 1.442695, %v4472_v9  ;;  %v16552_v35 = vpop.eup %13368 }
 0x457   : > { %19051 = vst [vmem:[#allocation2_spill] sm:$0xff] %v16552_v35  ;;  %v4959_v46 = vsel %vm4034_vm3, %v16552_v35, 0.0 }
 0x458   : > { %13372 = vpow2.f32 %v4653_v3 }
 0x459   : > { %v16526_v62 = vpop.xlane.xlu0 %4309  ;;  %v16544_v45 = vpop.xlane.xlu1 %4927 }
 0x45a   : > { %19045 = vst [vmem:[#allocation63_spill] sm:$0xff] %v16526_v62 }
 0x45d   : > { %v16532_v52 = vpop.xlane.xlu0 %4306  ;;  %v16554_v12 = vpop.xlane.xlu1 %4933 }
 0x45e   : > { %19048 = vst [vmem:[#allocation122_spill] sm:$0xff] %v16532_v52 }
 0x461   : > { %v16536_v33 = vpop.xlane.xlu0 %4915  ;;  %v16564_v18 = vpop.xlane.xlu1 %4939 }
 0x464   : > { %4348 = vmax.xlane.f32.xlu1 %v4347_v19  ;;  %v16562_v19 = vpop.eup %13370 }
 0x465   : > { %v16542_v43 = vpop.xlane.xlu0 %4912  ;;  %v4983_v55 = vsel %vm4034_vm3, %v16562_v19, 0.0 }
 0x468   : > { %4351 = vmax.xlane.f32.xlu1 %v4350_v29 }
 0x469   : > { %v16550_v54 = vpop.xlane.xlu0 %4921 }
 0x46c   : > { %4987 = vadd.xlane.f32.xlu1 %v4986_v53  ;;  %v16572_v53 = vpop.eup %13372 }
 0x46d   : > { %v16558_v9 = vpop.xlane.xlu0 %4918  ;;  %19054 = vst [vmem:[#allocation29_spill] sm:$0xff] %v16572_v53  ;;  %v4962_v37 = vsel %vm4034_vm3, %v16572_v53, 0.0 }
 0x46e   : > { %4960 = vadd.xlane.f32.xlu0 %v4959_v46 }
 0x46f   : > { %v16566_v3 = vpop.f32.mrb[160].mxu0 }
 0x470   : > { %19052 = vst [vmem:[#allocation47_spill] sm:$0xff] %v16566_v3  ;;  %v16568_v29 = vpop.f32.mrb[161].mxu0 }
 0x471   : > { %19053 = vst [vmem:[#allocation57_spill] sm:$0xff] %v16568_v29  ;;  %v4925_v40 = vpop.xlane.xlu0 %4924 }
 0x472   : > { %13374 = vrcp.f32 %v4925_v40  ;;  %4984 = vadd.xlane.f32.xlu0 %v4983_v55  ;;  %v19057_v55 = vld [vmem:[#allocation28_spill] sm:$0xff] }
 0x473   : > { %v16574_v10 = vpop.xlane.xlu1 %4945 }
 0x475   : > { %v16576_v58 = vpop.xlane.xlu0 %4930 }
 0x476   : > { %4963 = vadd.xlane.f32.xlu0 %v4962_v37 }
 0x477   : > { %v16580_v46 = vpop.xlane.xlu1 %4336 }
 0x478   : > { %19055 = vst [vmem:[#allocation55_spill] sm:$0xff] %v16580_v46 }
 0x479   : > { %v16582_v3 = vpop.xlane.xlu0 %4936 }
 0x47b   : > { %v16584_v40 = vpop.xlane.xlu1 %4339 }
 0x47c   : > { %v13375_v29 = vpop.eup %13374  ;;  %19056 = vst [vmem:[#allocation113_spill] sm:$0xff] %v16584_v40 }
 0x47d   : > { %v16586_v62 = vpop.xlane.xlu0 %4942  ;;  %v5355_v52 = vmul.f32 %v13375_v29, %v16314_v22  ;;  %12994 = vrot.lane.b32.xlu1 %v19057_v55, %s13709_s10 }
 0x47f   : > { %11402 = vmatprep.mubr.msk.f32.mxu0 %vm4034_vm3, %v5355_v52  ;;  %v12975_v59 = vpop.permute.xlu1 %12974  ;;  %v19060_v52 = vld [vmem:[#allocation16_spill] sm:$0xff] }
 0x480   : > { %v12977_v36 = vunpack.i.h.bf16 %v12975_v59  ;;  %v12976_v15 = vunpack.i.l.bf16 %v12975_v59  ;;  %v19061_v59 = vld [vmem:[#allocation77_spill] sm:$0xff] }
 0x481   : > { %v16592_v37 = vpop.xlane.xlu0 %4951 }
 0x482   : > { %v12368_v46 = vpack.c.bf16 %v12977_v36, %v12976_v15  ;;  %v4482_v36 = vsub.f32 %v19061_v59, %v16418_v38  ;;  %v19062_v15 = vld [vmem:[#allocation120_spill] sm:$0xff]  ;;  %v4353_v38 = vsel %vm4034_vm3, %v16147_v51, -inf }
 0x483   : > { %v4473_v35 = vsub.f32 %v19062_v15, %v16377_v21  ;;  %v4356_v21 = vsel %vm4034_vm3, %v16143_v6, -inf }
 0x484   : > { %12369 = vmatprep.subr.bf16.mxu0 %v12368_v46 }
 0x485   : > { %v16594_v42 = vpop.xlane.xlu0 %4948  ;;  %12371 = vmatpush3.bf16.msra.mxu0 %v12368_v46  ;;  %v4673_v46 = vmul.f32 1.442695, %v4482_v36  ;;  %v4655_v1 = vmul.f32 1.442695, %v4473_v35 }
 0x487   : > { %v16596_v40 = vpop.f32.mrb[162].mxu0  ;;  %13376 = vpow2.f32 %v4673_v46 }
 0x488   : > { %19058 = vst [vmem:[#allocation112_spill] sm:$0xff] %v16596_v40  ;;  %v16598_v24 = vpop.f32.mrb[163].mxu0  ;;  %v19063_v40 = vld [vmem:[#allocation74_spill] sm:$0xff]  ;;  %13378 = vpow2.f32 %v4655_v1 }
 0x489   : > { %19059 = vst [vmem:[#allocation135_spill] sm:$0xff] %v16598_v24  ;;  %v12970_v22 = vpop.permute.xlu0 %12969  ;;  %v4481_v24 = vsub.f32 %v19063_v40, %v16428_v39 }
 0x48a   : > { %v12972_v29 = vunpack.i.h.bf16 %v12970_v22  ;;  %v12971_v53 = vunpack.i.l.bf16 %v12970_v22  ;;  %v19066_v22 = vld [vmem:[#allocation116_spill] sm:$0xff] }
 0x48c   : > { %v12352_v55 = vpack.c.bf16 %v12972_v29, %v12971_v53  ;;  %12989 = vrot.lane.b32.xlu0 %v19060_v52, %s13709_s10  ;;  %v4474_v29 = vsub.f32 %v19066_v22, %v16365_v60 }
 0x48e   : > { %12353 = vmatprep.subr.bf16.mxu1 %v12352_v55  ;;  %v4657_v52 = vmul.f32 1.442695, %v4474_v29 }
 0x48f   : > { %12355 = vmatpush3.bf16.msra.mxu1 %v12352_v55  ;;  %v4671_v55 = vmul.f32 1.442695, %v4481_v24 }
 0x491   : > { %13380 = vpow2.f32 %v4671_v55  ;;  %v16618_v39 = vpop.eup %13376 }
 0x492   : > { %13382 = vpow2.f32 %v4657_v52  ;;  %v16620_v35 = vpop.eup %13378  ;;  %v4992_v60 = vsel %vm4034_vm3, %v16618_v39, 0.0  ;;  %v19069_v52 = vld [vmem:[#allocation32_spill] sm:$0xff] }
 0x493   : > { %v4965_v24 = vsel %vm4034_vm3, %v16620_v35, 0.0  ;;  %13384 = vrcp.f32 %v16544_v45 }
 0x494   : > { %13386 = vrcp.f32 %v16576_v58 }
 0x495   : > { %13388 = vrcp.f32 %v16554_v12 }
 0x496   : > { %13390 = vrcp.f32 %v16582_v3 }
 0x497   : > { %13392 = vrcp.f32 %v16564_v18 }
 0x498   : > { %13394 = vrcp.f32 %v16586_v62 }
 0x499   : > { %13396 = vrcp.f32 %v16498_v44 }
 0x49a   : > { %13398 = vrcp.f32 %v16518_v25  ;;  %v19076_v25 = vld [vmem:[#allocation19_spill] sm:$0xff] }
 0x49b   : > { %v16608_v11 = vpop.f32.mrb[164].mxu0  ;;  %v16626_v1 = vpop.eup %13380  ;;  %13400 = vrcp.f32 %v16574_v10 }
 0x49c   : > { %19064 = vst [vmem:[#allocation82_spill] sm:$0xff] %v16608_v11  ;;  %v16610_v53 = vpop.f32.mrb[165].mxu0  ;;  %v4989_v40 = vsel %vm4034_vm3, %v16626_v1, 0.0  ;;  %v16630_v59 = vpop.eup %13382 }
 0x49d   : > { %19065 = vst [vmem:[#allocation13_spill] sm:$0xff] %v16610_v53  ;;  %v4968_v46 = vsel %vm4034_vm3, %v16630_v59, 0.0 }
 0x4a1   : > { %4354 = vmax.xlane.f32.xlu1 %v4353_v38 }
 0x4a5   : > { %4357 = vmax.xlane.f32.xlu1 %v4356_v21 }
 0x4a9   : > { %4993 = vadd.xlane.f32.xlu1 %v4992_v60 }
 0x4ab   : > { %4966 = vadd.xlane.f32.xlu0 %v4965_v24 }
 0x4af   : > { %4990 = vadd.xlane.f32.xlu0 %v4989_v40 }
 0x4b0   : > { %v16632_v36 = vpop.xlane.xlu1 %4975 }
 0x4b3   : > { %v16634_v15 = vpop.f32.mrb[166].mxu0  ;;  %4969 = vadd.xlane.f32.xlu0 %v4968_v46 }
 0x4b4   : > { %19067 = vst [vmem:[#allocation3_spill] sm:$0xff] %v16634_v15  ;;  %v16638_v22 = vpop.f32.mrb[167].mxu0  ;;  %v16640_v29 = vpop.xlane.xlu1 %4342 }
 0x4b5   : > { %19068 = vst [vmem:[#allocation60_spill] sm:$0xff] %v16638_v22  ;;  %v13385_v22 = vpop.eup %13384 }
 0x4b6   : > { %v5356_v18 = vmul.f32 %v13385_v22, %v16137_v13 }
 0x4b8   : > { %v16642_v55 = vpop.xlane.xlu1 %4345 }
 0x4ba   : > { %v4973_v38 = vpop.xlane.xlu0 %4972  ;;  %13004 = vrot.lane.b32.xlu1 %v19069_v52, %s13709_s10 }
 0x4bb   : > { %13402 = vrcp.f32 %v4973_v38 }
 0x4bc   : > { %v16648_v21 = vpop.xlane.xlu1 %4981  ;;  %13404 = vrcp.f32 %v16514_v2 }
 0x4bd   : > { %13406 = vrcp.f32 %v16542_v43 }
 0x4be   : > { %v16651_v60 = vpop.xlane.xlu0 %4954  ;;  %v16654_v24 = vpop.f32.mrb[168].mxu0  ;;  %13408 = vrcp.f32 %v16536_v33 }
 0x4bf   : > { %19070 = vst [vmem:[#allocation33_spill] sm:$0xff] %v16654_v24  ;;  %v16656_v40 = vpop.f32.mrb[169].mxu0  ;;  %v13387_v24 = vpop.eup %13386  ;;  %13410 = vrcp.f32 %v16558_v9 }
 0x4c0   : > { %19071 = vst [vmem:[#allocation58_spill] sm:$0xff] %v16656_v40  ;;  %v12985_v46 = vpop.permute.xlu1 %12984  ;;  %13412 = vrcp.f32 %v16550_v54 }
 0x4c1   : > { %v12987_v45 = vunpack.i.h.bf16 %v12985_v46  ;;  %v12986_v15 = vunpack.i.l.bf16 %v12985_v46  ;;  %13414 = vrcp.f32 %v16594_v42 }
 0x4c2   : > { %v16659_v52 = vpop.xlane.xlu0 %4978  ;;  %v16662_v58 = vpop.f32.mrb[170].mxu0 }
 0x4c3   : > { %19072 = vst [vmem:[#allocation117_spill] sm:$0xff] %v16662_v58  ;;  %v12372_v12 = vpack.c.bf16 %v12987_v45, %v12986_v15  ;;  %v16665_v3 = vpop.f32.mrb[171].mxu0  ;;  %v13389_v15 = vpop.eup %13388  ;;  %v5357_v45 = vmul.f32 %v13387_v24, %v16323_v7 }
 0x4c4   : > { %19073 = vst [vmem:[#allocation28_spill] sm:$0xff] %v16665_v3  ;;  %v13391_v58 = vpop.eup %13390  ;;  %v5358_v38 = vmul.f32 %v13389_v15, %v16209_v32  ;;  %v19121_v3 = vld [vmem:[#allocation43_spill] sm:$0xff] }
 0x4c5   : > { %12373 = vmatprep.subr.bf16.mxu0 %v12372_v12  ;;  %v13393_v2 = vpop.eup %13392  ;;  %v5359_v7 = vmul.f32 %v13391_v58, %v16337_v16 }
 0x4c6   : > { %v16669_v46 = vpop.xlane.xlu0 %4957  ;;  %12375 = vmatpush3.bf16.msra.mxu0 %v12372_v12  ;;  %v16672_v62 = vpop.f32.mrb[172].mxu0  ;;  %v19077_v12 = vld [vmem:[#allocation128_spill] sm:$0xff] }
 0x4c7   : > { %19074 = vst [vmem:[#allocation16_spill] sm:$0xff] %v16672_v62  ;;  %v16675_v44 = vpop.f32.mrb[173].mxu0  ;;  %v19078_v62 = vld [vmem:[#allocation5_spill] sm:$0xff]  ;;  %v13395_v43 = vpop.eup %13394 }
 0x4c8   : > { %19075 = vst [vmem:[#allocation77_spill] sm:$0xff] %v16675_v44  ;;  %v4484_v44 = vsub.f32 %v19078_v62, %v19077_v12  ;;  %v5360_v62 = vmul.f32 %v13393_v2, %v16270_v47  ;;  %v5361_v16 = vmul.f32 %v13395_v43, %v16348_v49 }
 0x4c9   : > { %12999 = vrot.lane.b32.xlu0 %v19076_v25, %s13709_s10  ;;  %11403 = vmatmul.mubr.msk.f32.vlgmr.msra.gmra.mrb[184].mxu0 %vm4034_vm3, %v5356_v18 }
 0x4ca   : > { %v12980_v10 = vpop.permute.xlu0 %12979  ;;  %11405 = vmatprep.mubr.msk.f32.mxu0 %vm4034_vm3, %v5357_v45  ;;  %v13397_v45 = vpop.eup %13396  ;;  %v4677_v15 = vmul.f32 1.442695, %v4484_v44 }
 0x4cb   : > { %v12982_v13 = vunpack.i.h.bf16 %v12980_v10  ;;  %v12981_v22 = vunpack.i.l.bf16 %v12980_v10  ;;  %v13399_v32 = vpop.eup %13398  ;;  %v5348_v58 = vmul.f32 %v13397_v45, %v16183_v20 }
 0x4cc   : > { %v13401_v33 = vpop.eup %13400  ;;  %v5349_v47 = vmul.f32 %v13399_v32, %v16238_v56  ;;  %13416 = vpow2.f32 %v4677_v15 }
 0x4cd   : > { %11406 = vmatmul.mubr.msk.f32.gmra.mrb[186].mxu0 %vm4034_vm3, %v5358_v38  ;;  %v12356_v18 = vpack.c.bf16 %v12982_v13, %v12981_v22  ;;  %v13403_v9 = vpop.eup %13402  ;;  %v19081_v13 = vld [vmem:[#allocation76_spill] sm:$0xff]  ;;  %v5362_v49 = vmul.f32 %v13401_v33, %v16327_v61 }
 0x4ce   : > { %v16689_v24 = vpop.f32.mrb[174].mxu0  ;;  %11408 = vmatprep.mubr.msk.f32.mxu0 %vm4034_vm3, %v5359_v7  ;;  %v13405_v10 = vpop.eup %13404  ;;  %v19082_v22 = vld [vmem:[#allocation4_spill] sm:$0xff]  ;;  %v5371_v20 = vmul.f32 %v13403_v9, %v16462_v27 }
 0x4cf   : > { %19079 = vst [vmem:[#allocation120_spill] sm:$0xff] %v16689_v24  ;;  %v16692_v25 = vpop.f32.mrb[175].mxu0  ;;  %12357 = vmatprep.subr.bf16.mxu1 %v12356_v18  ;;  %v4483_v38 = vsub.f32 %v19082_v22, %v19081_v13  ;;  %v13407_v44 = vpop.eup %13406  ;;  %v5350_v42 = vmul.f32 %v13405_v10, %v16228_v17  ;;  %v4362_v10 = vsel %vm4034_vm3, %v16159_v63, -inf  ;;  %v19091_v22 = vld [vmem:[#allocation36_spill] sm:$0xff] }
 0x4d0   : > { %19080 = vst [vmem:[#allocation74_spill] sm:$0xff] %v16692_v25  ;;  %12359 = vmatpush3.bf16.msra.mxu1 %v12356_v18  ;;  %v13409_v54 = vpop.eup %13408  ;;  %v5351_v56 = vmul.f32 %v13407_v44, %v16289_v5  ;;  %v4359_v5 = vsel %vm4034_vm3, %v16161_v23, -inf }
 0x4d1   : > { %11409 = vmatmul.mubr.msk.f32.gmra.mrb[188].mxu0 %vm4034_vm3, %v5360_v62  ;;  %v4675_v2 = vmul.f32 1.442695, %v4483_v38  ;;  %v13411_v12 = vpop.eup %13410  ;;  %v5352_v61 = vmul.f32 %v13409_v54, %v16280_v41 }
 0x4d2   : > { %11411 = vmatprep.mubr.msk.f32.mxu0 %vm4034_vm3, %v5361_v16  ;;  %v13413_v7 = vpop.eup %13412  ;;  %v5353_v27 = vmul.f32 %v13411_v12, %v16301_v8 }
 0x4d3   : > { %11375 = vmatmul.mubr.msk.f32.vlgmr.msra.gmra.mrb[104].mxu1 %vm4034_vm3, %v5348_v58  ;;  %13418 = vpow2.f32 %v4675_v2  ;;  %v13415_v43 = vpop.eup %13414  ;;  %v5354_v45 = vmul.f32 %v13413_v7, %v16297_v14 }
 0x4d4   : > { %11377 = vmatprep.mubr.msk.f32.mxu1 %vm4034_vm3, %v5349_v47  ;;  %v5363_v41 = vmul.f32 %v13415_v43, %v16375_v31 }
 0x4d5   : > { %11412 = vmatmul.mubr.msk.f32.gmra.mrb[190].mxu0 %vm4034_vm3, %v5362_v49 }
 0x4d6   : > { %11458 = vmatprep.mubr.msk.f32.mxu0 %vm4034_vm3, %v5371_v20  ;;  %v16726_v32 = vpop.eup %13416 }
 0x4d7   : > { %11378 = vmatmul.mubr.msk.f32.gmra.mrb[106].mxu1 %vm4034_vm3, %v5350_v42  ;;  %v4998_v33 = vsel %vm4034_vm3, %v16726_v32, 0.0 }
 0x4d8   : > { %11380 = vmatprep.mubr.msk.f32.mxu1 %vm4034_vm3, %v5351_v56 }
 0x4da   : > { %v16717_v18 = vpop.f32.mrb[96].mxu1 }
 0x4db   : > { %19083 = vst [vmem:[#allocation116_spill] sm:$0xff] %v16717_v18  ;;  %11381 = vmatmul.mubr.msk.f32.gmra.mrb[108].mxu1 %vm4034_vm3, %v5352_v61  ;;  %v16720_v17 = vpop.f32.mrb[97].mxu1 }
 0x4dc   : > { %19084 = vst [vmem:[#allocation32_spill] sm:$0xff] %v16720_v17  ;;  %11383 = vmatprep.mubr.msk.f32.mxu1 %vm4034_vm3, %v5353_v27  ;;  %v19096_v27 = vld [vmem:[#allocation22_spill] sm:$0xff]  ;;  %v19112_v17 = vld [vmem:[#allocation53_spill] sm:$0xff] }
 0x4dd   : > { %v16739_v14 = vpop.eup %13418 }
 0x4de   : > { %4360 = vmax.xlane.f32.xlu1 %v4359_v5  ;;  %v16729_v8 = vpop.f32.mrb[98].mxu1  ;;  %v4995_v31 = vsel %vm4034_vm3, %v16739_v14, 0.0  ;;  %v19097_v5 = vld [vmem:[#allocation137_spill] sm:$0xff] }
 0x4df   : > { %19085 = vst [vmem:[#allocation19_spill] sm:$0xff] %v16729_v8  ;;  %11384 = vmatmul.mubr.msk.f32.gmra.mrb[110].mxu1 %vm4034_vm3, %v5354_v45  ;;  %v16732_v62 = vpop.f32.mrb[99].mxu1  ;;  %v19098_v45 = vld [vmem:[#allocation6_spill] sm:$0xff] }
 0x4e0   : > { %19086 = vst [vmem:[#allocation128_spill] sm:$0xff] %v16732_v62  ;;  %11430 = vmatprep.mubr.msk.f32.mxu1 %vm4034_vm3, %v5363_v41  ;;  %v4486_v41 = vsub.f32 %v19098_v45, %v19097_v5 }
 0x4e2   : > { %4999 = vadd.xlane.f32.xlu1 %v4998_v33  ;;  %v16737_v15 = vpop.f32.mrb[100].mxu1 }
 0x4e3   : > { %19087 = vst [vmem:[#allocation5_spill] sm:$0xff] %v16737_v15  ;;  %v16741_v16 = vpop.f32.mrb[101].mxu1  ;;  %v19110_v15 = vld [vmem:[#allocation142_spill] sm:$0xff] }
 0x4e4   : > { %19088 = vst [vmem:[#allocation76_spill] sm:$0xff] %v16741_v16  ;;  %v19111_v16 = vld [vmem:[#allocation66_spill] sm:$0xff] }
 0x4e5   : > { %v4487_v8 = vsub.f32 %v19111_v16, %v19110_v15 }
 0x4e8   : > { %4996 = vadd.xlane.f32.xlu0 %v4995_v31 }
 0x4ea   : > { %v16745_v9 = vpop.f32.mrb[102].mxu1 }
 0x4eb   : > { %19089 = vst [vmem:[#allocation4_spill] sm:$0xff] %v16745_v9  ;;  %v16747_v58 = vpop.f32.mrb[103].mxu1 }
 0x4ec   : > { %19090 = vst [vmem:[#allocation155_spill] sm:$0xff] %v16747_v58  ;;  %4363 = vmax.xlane.f32.xlu0 %v4362_v10 }
 0x4f1   : > { %v16751_v13 = vpop.xlane.xlu1 %4348 }
 0x4f3   : > { %13014 = vrot.lane.b32.xlu1 %v19091_v22, %s13709_s10  ;;  %v4681_v22 = vmul.f32 1.442695, %v4486_v41 }
 0x4f5   : > { %v16755_v38 = vpop.xlane.xlu1 %4351  ;;  %13420 = vpow2.f32 %v4681_v22 }
 0x4f9   : > { %v16757_v47 = vpop.xlane.xlu1 %4987 }
 0x4fb   : > { %v16759_v44 = vpop.f32.mrb[176].mxu0  ;;  %v16761_v49 = vpop.xlane.xlu0 %4960 }
 0x4fc   : > { %19092 = vst [vmem:[#allocation36_spill] sm:$0xff] %v16759_v44  ;;  %v16763_v20 = vpop.f32.mrb[177].mxu0  ;;  %v19100_v44 = vld [vmem:[#allocation98_spill] sm:$0xff] }
 0x4fd   : > { %19093 = vst [vmem:[#allocation156_spill] sm:$0xff] %v16763_v20  ;;  %v12995_v42 = vpop.permute.xlu1 %12994  ;;  %v19109_v20 = vld [vmem:[#allocation8_spill] sm:$0xff] }
 0x4fe   : > { %v12997_v54 = vunpack.i.h.bf16 %v12995_v42  ;;  %v12996_v2 = vunpack.i.l.bf16 %v12995_v42 }
 0x4ff   : > { %v16765_v56 = vpop.f32.mrb[178].mxu0  ;;  %v16767_v12 = vpop.xlane.xlu0 %4984 }
 0x500   : > { %19094 = vst [vmem:[#allocation157_spill] sm:$0xff] %v16765_v56  ;;  %v16769_v61 = vpop.f32.mrb[179].mxu0  ;;  %v12392_v7 = vpack.c.bf16 %v12997_v54, %v12996_v2  ;;  %v16785_v5 = vpop.eup %13420 }
 0x501   : > { %19095 = vst [vmem:[#allocation158_spill] sm:$0xff] %v16769_v61  ;;  %v19101_v61 = vld [vmem:[#allocation9_spill] sm:$0xff]  ;;  %v5004_v41 = vsel %vm4034_vm3, %v16785_v5, 0.0 }
 0x502   : > { %12393 = vmatprep.subr.bf16.mxu0 %v12392_v7  ;;  %13009 = vrot.lane.b32.xlu0 %v19096_v27, %s13709_s10  ;;  %v4485_v54 = vsub.f32 %v19101_v61, %v19100_v44 }
 0x503   : > { %v16773_v43 = vpop.xlane.xlu0 %4963  ;;  %12395 = vmatpush3.bf16.msra.mxu0 %v12392_v7  ;;  %v4365_v7 = vsel %vm4034_vm3, %v16173_v0, -inf }
 0x504   : > { %v4679_v27 = vmul.f32 1.442695, %v4485_v54 }
 0x506   : > { %13422 = vpow2.f32 %v4679_v27 }
 0x507   : > { %v12990_v33 = vpop.permute.xlu0 %12989 }
 0x508   : > { %v12992_v31 = vunpack.i.h.bf16 %v12990_v33  ;;  %v12991_v10 = vunpack.i.l.bf16 %v12990_v33  ;;  %v19105_v33 = vld [vmem:[#allocation146_spill] sm:$0xff] }
 0x50a   : > { %v12376_v56 = vpack.c.bf16 %v12992_v31, %v12991_v10  ;;  %v4368_v31 = vsel %vm4034_vm3, %v19105_v33, -inf  ;;  %v19106_v10 = vld [vmem:[#allocation39_spill] sm:$0xff] }
 0x50b   : > { %v16777_v42 = vpop.f32.mrb[180].mxu0 }
 0x50c   : > { %19099 = vst [vmem:[#allocation22_spill] sm:$0xff] %v16777_v42  ;;  %v16781_v2 = vpop.f32.mrb[181].mxu0  ;;  %12377 = vmatprep.subr.bf16.mxu1 %v12376_v56 }
 0x50d   : > { %19102 = vst [vmem:[#allocation137_spill] sm:$0xff] %v16781_v2  ;;  %12379 = vmatpush3.bf16.msra.mxu1 %v12376_v56  ;;  %v19108_v2 = vld [vmem:[#allocation139_spill] sm:$0xff] }
 0x510   : > { %v16793_v61 = vpop.eup %13422 }
 0x511   : > { %v5001_v56 = vsel %vm4034_vm3, %v16793_v61, 0.0 }
 0x517   : > { %4366 = vmax.xlane.f32.xlu1 %v4365_v7 }
 0x51b   : > { %v16787_v45 = vpop.f32.mrb[182].mxu0  ;;  %5005 = vadd.xlane.f32.xlu1 %v5004_v41 }
 0x51c   : > { %19103 = vst [vmem:[#allocation6_spill] sm:$0xff] %v16787_v45  ;;  %v16791_v44 = vpop.f32.mrb[183].mxu0 }
 0x51d   : > { %19104 = vst [vmem:[#allocation98_spill] sm:$0xff] %v16791_v44 }
 0x521   : > { %5002 = vadd.xlane.f32.xlu0 %v5001_v56  ;;  %v19107_v56 = vld [vmem:[#allocation25_spill] sm:$0xff] }
 0x525   : > { %4369 = vmax.xlane.f32.xlu0 %v4368_v31 }
 0x52c   : > { %13024 = vrot.lane.b32.xlu1 %v19106_v10, %s13709_s10  ;;  %v4488_v10 = vsub.f32 %v19109_v20, %v19108_v2  ;;  %v19114_v20 = vld [vmem:[#allocation46_spill] sm:$0xff]  ;;  %v19115_v2 = vld [vmem:[#allocation15_spill] sm:$0xff] }
 0x52e   : > { %v16801_v22 = vpop.xlane.xlu1 %4354  ;;  %v4685_v58 = vmul.f32 1.442695, %v4488_v10  ;;  %v19116_v10 = vld [vmem:[#allocation50_spill] sm:$0xff] }
 0x52f   : > { %v4371_v15 = vsel %vm4034_vm3, %v19116_v10, -inf }
 0x530   : > { %13424 = vpow2.f32 %v4685_v58 }
 0x532   : > { %v16803_v54 = vpop.xlane.xlu1 %4357 }
 0x536   : > { %v16805_v27 = vpop.xlane.xlu1 %4993 }
 0x538   : > { %v16807_v7 = vpop.xlane.xlu0 %4966 }
 0x53a   : > { %v13005_v41 = vpop.permute.xlu1 %13004  ;;  %v16825_v16 = vpop.eup %13424 }
 0x53b   : > { %v13007_v45 = vunpack.i.h.bf16 %v13005_v41  ;;  %v13006_v44 = vunpack.i.l.bf16 %v13005_v41  ;;  %13019 = vrot.lane.b32.xlu0 %v19107_v56, %s13709_s10  ;;  %v19113_v56 = vld [vmem:[#allocation14_spill] sm:$0xff] }
 0x53c   : > { %v16811_v42 = vpop.xlane.xlu0 %4990  ;;  %v4489_v24 = vsub.f32 %v19113_v56, %v19112_v17  ;;  %v5010_v17 = vsel %vm4034_vm3, %v16825_v16, 0.0  ;;  %v19118_v56 = vld [vmem:[#allocation52_spill] sm:$0xff] }
 0x53d   : > { %v12396_v31 = vpack.c.bf16 %v13007_v45, %v13006_v44  ;;  %v4683_v45 = vmul.f32 1.442695, %v4487_v8 }
 0x53e   : > { %v4687_v44 = vmul.f32 1.442695, %v4489_v24  ;;  %v19117_v24 = vld [vmem:[#allocation70_spill] sm:$0xff] }
 0x53f   : > { %12397 = vmatprep.subr.bf16.mxu0 %v12396_v31  ;;  %13426 = vpow2.f32 %v4683_v45  ;;  %v4374_v45 = vsel %vm4034_vm3, %v19118_v56, -inf }
 0x540   : > { %v16815_v9 = vpop.xlane.xlu0 %4969  ;;  %12399 = vmatpush3.bf16.msra.mxu0 %v12396_v31  ;;  %v4490_v31 = vsub.f32 %v19115_v2, %v19114_v20  ;;  %13428 = vpow2.f32 %v4687_v44  ;;  %v19119_v44 = vld [vmem:[#allocation72_spill] sm:$0xff] }
 0x541   : > { %v4380_v20 = vsel %vm4034_vm3, %v19119_v44, -inf }
 0x544   : > { %v13000_v62 = vpop.permute.xlu0 %12999 }
 0x545   : > { %v13002_v18 = vunpack.i.h.bf16 %v13000_v62  ;;  %v13001_v41 = vunpack.i.l.bf16 %v13000_v62  ;;  %v4689_v62 = vmul.f32 1.442695, %v4490_v31 }
 0x547   : > { %v12380_v25 = vpack.c.bf16 %v13002_v18, %v13001_v41  ;;  %13430 = vpow2.f32 %v4689_v62 }
 0x549   : > { %12381 = vmatprep.subr.bf16.mxu1 %v12380_v25  ;;  %v16829_v18 = vpop.eup %13426 }
 0x54a   : > { %12383 = vmatpush3.bf16.msra.mxu1 %v12380_v25  ;;  %v4377_v25 = vsel %vm4034_vm3, %v19117_v24, -inf  ;;  %v16833_v8 = vpop.eup %13428  ;;  %v5007_v58 = vsel %vm4034_vm3, %v16829_v18, 0.0 }
 0x54b   : > { %v5013_v41 = vsel %vm4034_vm3, %v16833_v8, 0.0 }
 0x550   : > { %4372 = vmax.xlane.f32.xlu1 %v4371_v15 }
 0x551   : > { %v16843_v2 = vpop.eup %13430 }
 0x552   : > { %v5016_v31 = vsel %vm4034_vm3, %v16843_v2, 0.0 }
 0x554   : > { %5011 = vadd.xlane.f32.xlu1 %v5010_v17 }
 0x558   : > { %4378 = vmax.xlane.f32.xlu1 %v4377_v25 }
 0x55a   : > { %5008 = vadd.xlane.f32.xlu0 %v5007_v58 }
 0x55c   : > { %5014 = vadd.xlane.f32.xlu1 %v5013_v41  ;;  %v19120_v41 = vld [vmem:[#allocation41_spill] sm:$0xff] }
 0x55e   : > { %4375 = vmax.xlane.f32.xlu0 %v4374_v45 }
 0x560   : > { %4381 = vmax.xlane.f32.xlu1 %v4380_v20 }
 0x564   : > { %5017 = vadd.xlane.f32.xlu1 %v5016_v31 }
 0x56b   : > { %v16847_v15 = vpop.xlane.xlu1 %4360 }
 0x56f   : > { %v16849_v62 = vpop.xlane.xlu1 %4999 }
 0x573   : > { %v13015_v17 = vpop.permute.xlu1 %13014 }
 0x574   : > { %v13017_v25 = vunpack.i.h.bf16 %v13015_v17  ;;  %v13016_v58 = vunpack.i.l.bf16 %v13015_v17  ;;  %13029 = vrot.lane.b32.xlu0 %v19120_v41, %s13709_s10  ;;  %v19122_v17 = vld [vmem:[#allocation102_spill] sm:$0xff]  ;;  %v19123_v41 = vld [vmem:[#allocation97_spill] sm:$0xff] }
 0x575   : > { %v16853_v45 = vpop.xlane.xlu0 %4996  ;;  %13034 = vrot.lane.b32.xlu1 %v19121_v3, %s13709_s10  ;;  %v4491_v24 = vsub.f32 %v19122_v17, %v16414_v48  ;;  %v4492_v10 = vsub.f32 %v19123_v41, %v16408_v28  ;;  %v19124_v3 = vld [vmem:[#allocation107_spill] sm:$0xff]  ;;  %v19126_v48 = vld [vmem:[#allocation81_spill] sm:$0xff] }
 0x576   : > { %v12400_v20 = vpack.c.bf16 %v13017_v25, %v13016_v58  ;;  %v4493_v25 = vsub.f32 %v19124_v3, %v16445_v30 }
 0x577   : > { %v4691_v56 = vmul.f32 1.442695, %v4491_v24  ;;  %v4693_v33 = vmul.f32 1.442695, %v4492_v10  ;;  %v19128_v10 = vld [vmem:[#allocation83_spill] sm:$0xff] }
 0x578   : > { %12401 = vmatprep.subr.bf16.mxu0 %v12400_v20  ;;  %v4695_v58 = vmul.f32 1.442695, %v4493_v25  ;;  %v4389_v24 = vsel %vm4034_vm3, %v19128_v10, -inf }
 0x579   : > { %v16857_v40 = vpop.xlane.xlu0 %4363  ;;  %12403 = vmatpush3.bf16.msra.mxu0 %v12400_v20  ;;  %13432 = vpow2.f32 %v4691_v56  ;;  %v19125_v20 = vld [vmem:[#allocation79_spill] sm:$0xff] }
 0x57a   : > { %13434 = vpow2.f32 %v4693_v33 }
 0x57b   : > { %13436 = vpow2.f32 %v4695_v58 }
 0x57c   : > { %13438 = vrcp.f32 %v16632_v36 }
 0x57d   : > { %v13010_v31 = vpop.permute.xlu0 %13009  ;;  %13440 = vrcp.f32 %v16659_v52 }
 0x57e   : > { %v13012_v11 = vunpack.i.h.bf16 %v13010_v31  ;;  %v13011_v53 = vunpack.i.l.bf16 %v13010_v31  ;;  %v4383_v31 = vsel %vm4034_vm3, %v19125_v20, -inf  ;;  %13442 = vrcp.f32 %v16648_v21 }
 0x57f   : > { %13444 = vrcp.f32 %v16767_v12 }
 0x580   : > { %v12384_v44 = vpack.c.bf16 %v13012_v11, %v13011_v53  ;;  %v4386_v53 = vsel %vm4034_vm3, %v19126_v48, -inf  ;;  %13446 = vrcp.f32 %v16757_v47 }
 0x581   : > { %13448 = vrcp.f32 %v16811_v42 }
 0x582   : > { %12385 = vmatprep.subr.bf16.mxu1 %v12384_v44  ;;  %13450 = vrcp.f32 %v16592_v37 }
 0x583   : > { %12387 = vmatpush3.bf16.msra.mxu1 %v12384_v44  ;;  %v16867_v11 = vpop.eup %13432  ;;  %13452 = vrcp.f32 %v16651_v60 }
 0x584   : > { %v16871_v44 = vpop.eup %13434  ;;  %v5019_v28 = vsel %vm4034_vm3, %v16867_v11, 0.0  ;;  %13454 = vrcp.f32 %v16805_v27 }
 0x585   : > { %v5022_v30 = vsel %vm4034_vm3, %v16871_v44, 0.0  ;;  %v16881_v56 = vpop.eup %13436  ;;  %13456 = vrcp.f32 %v16669_v46 }
 0x586   : > { %v5025_v3 = vsel %vm4034_vm3, %v16881_v56, 0.0  ;;  %13458 = vrcp.f32 %v16761_v49 }
 0x587   : > { %13460 = vrcp.f32 %v16773_v43  ;;  %v19149_v43 = vld [vmem:[#allocation35_spill] sm:$0xff] }
 0x588   : > { %13462 = vrcp.f32 %v16807_v7 }
 0x589   : > { %13464 = vrcp.f32 %v16815_v9  ;;  %v19152_v9 = vld [vmem:[#allocation78_spill] sm:$0xff] }
 0x58a   : > { %13466 = vrcp.f32 %v16853_v45 }
 0x593   : > { %4384 = vmax.xlane.f32.xlu0 %v4383_v31 }
 0x597   : > { %4387 = vmax.xlane.f32.xlu0 %v4386_v53  ;;  %v19133_v53 = vld [vmem:[#allocation85_spill] sm:$0xff] }
 0x599   : > { %5020 = vadd.xlane.f32.xlu1 %v5019_v28  ;;  %v4392_v28 = vsel %vm4034_vm3, %v19133_v53, -inf }
 0x59b   : > { %5023 = vadd.xlane.f32.xlu0 %v5022_v30 }
 0x59c   : > { %v16877_v33 = vpop.f32.mrb[184].mxu0 }
 0x59d   : > { %19127 = vst [vmem:[#allocation9_spill] sm:$0xff] %v16877_v33  ;;  %v16883_v17 = vpop.f32.mrb[185].mxu0  ;;  %4390 = vmax.xlane.f32.xlu1 %v4389_v24 }
 0x59e   : > { %19129 = vst [vmem:[#allocation39_spill] sm:$0xff] %v16883_v17 }
 0x5a0   : > { %v16885_v41 = vpop.f32.mrb[186].mxu0 }
 0x5a1   : > { %19130 = vst [vmem:[#allocation25_spill] sm:$0xff] %v16885_v41  ;;  %v16889_v25 = vpop.f32.mrb[187].mxu0  ;;  %5026 = vadd.xlane.f32.xlu1 %v5025_v3 }
 0x5a2   : > { %19131 = vst [vmem:[#allocation139_spill] sm:$0xff] %v16889_v25 }
 0x5a4   : > { %v16891_v58 = vpop.f32.mrb[188].mxu0  ;;  %v16893_v31 = vpop.xlane.xlu1 %4366 }
 0x5a5   : > { %19132 = vst [vmem:[#allocation8_spill] sm:$0xff] %v16891_v58  ;;  %v16897_v30 = vpop.f32.mrb[189].mxu0  ;;  %4393 = vmax.xlane.f32.xlu1 %v4392_v28 }
 0x5a6   : > { %19134 = vst [vmem:[#allocation142_spill] sm:$0xff] %v16897_v30  ;;  %v16900_v24 = vpop.f32.mrb[104].mxu1 }
 0x5a7   : > { %19135 = vst [vmem:[#allocation66_spill] sm:$0xff] %v16900_v24  ;;  %v16903_v41 = vpop.f32.mrb[105].mxu1  ;;  %v13439_v24 = vpop.eup %13438 }
 0x5a8   : > { %19136 = vst [vmem:[#allocation53_spill] sm:$0xff] %v16903_v41  ;;  %v16905_v25 = vpop.f32.mrb[190].mxu0  ;;  %v16907_v3 = vpop.xlane.xlu1 %5005  ;;  %v5372_v42 = vmul.f32 %v13439_v24, %v16441_v26 }
 0x5a9   : > { %19137 = vst [vmem:[#allocation14_spill] sm:$0xff] %v16905_v25  ;;  %v16909_v58 = vpop.f32.mrb[191].mxu0  ;;  %v13441_v12 = vpop.eup %13440 }
 0x5aa   : > { %19138 = vst [vmem:[#allocation46_spill] sm:$0xff] %v16909_v58  ;;  %v16912_v33 = vpop.f32.mrb[106].mxu1  ;;  %v5373_v37 = vmul.f32 %v13441_v12, %v16482_v50 }
 0x5ab   : > { %19139 = vst [vmem:[#allocation15_spill] sm:$0xff] %v16912_v33  ;;  %v16915_v28 = vpop.f32.mrb[107].mxu1  ;;  %v19143_v33 = vld [vmem:[#allocation45_spill] sm:$0xff] }
 0x5ac   : > { %19140 = vst [vmem:[#allocation41_spill] sm:$0xff] %v16915_v28  ;;  %v13025_v36 = vpop.permute.xlu1 %13024 }
 0x5ad   : > { %v13027_v30 = vunpack.i.h.bf16 %v13025_v36  ;;  %v13026_v17 = vunpack.i.l.bf16 %v13025_v36 }
 0x5ae   : > { %v16918_v52 = vpop.xlane.xlu0 %5002  ;;  %v16920_v25 = vpop.f32.mrb[108].mxu1 }
 0x5af   : > { %19141 = vst [vmem:[#allocation43_spill] sm:$0xff] %v16920_v25  ;;  %v16923_v58 = vpop.f32.mrb[109].mxu1  ;;  %v12404_v21 = vpack.c.bf16 %v13027_v30, %v13026_v17  ;;  %v13443_v30 = vpop.eup %13442 }
 0x5b0   : > { %19142 = vst [vmem:[#allocation102_spill] sm:$0xff] %v16923_v58  ;;  %v13445_v60 = vpop.eup %13444  ;;  %v5374_v24 = vmul.f32 %v13443_v30, %v16467_v34  ;;  %v19170_v58 = vld [vmem:[#allocation92_spill] sm:$0xff] }
 0x5b1   : > { %13039 = vrot.lane.b32.xlu0 %v19143_v33, %s13709_s10  ;;  %12405 = vmatprep.subr.bf16.mxu0 %v12404_v21  ;;  %v19146_v33 = vld [vmem:[#allocation48_spill] sm:$0xff]  ;;  %v5375_v50 = vmul.f32 %v13445_v60, %v16562_v19 }
 0x5b2   : > { %v16930_v47 = vpop.xlane.xlu0 %4369  ;;  %v16932_v36 = vpop.f32.mrb[110].mxu1  ;;  %12407 = vmatpush3.bf16.msra.mxu0 %v12404_v21 }
 0x5b3   : > { %19144 = vst [vmem:[#allocation97_spill] sm:$0xff] %v16932_v36  ;;  %v16935_v17 = vpop.f32.mrb[111].mxu1  ;;  %v13447_v36 = vpop.eup %13446 }
 0x5b4   : > { %19145 = vst [vmem:[#allocation107_spill] sm:$0xff] %v16935_v17  ;;  %v13449_v46 = vpop.eup %13448  ;;  %v5376_v34 = vmul.f32 %v13447_v36, %v16548_v57  ;;  %v19151_v57 = vld [vmem:[#allocation123_spill] sm:$0xff] }
 0x5b5   : > { %11459 = vmatmul.mubr.msk.f32.vlgmr.msra.gmra.mrb[192].mxu0 %vm4034_vm3, %v5372_v42  ;;  %v13451_v12 = vpop.eup %13450  ;;  %v19147_v42 = vld [vmem:[#allocation30_spill] sm:$0xff]  ;;  %v5377_v19 = vmul.f32 %v13449_v46, %v16626_v1 }
 0x5b6   : > { %v13020_v27 = vpop.permute.xlu0 %13019  ;;  %13044 = vrot.lane.b32.xlu1 %v19146_v33, %s13709_s10  ;;  %11461 = vmatprep.mubr.msk.f32.mxu0 %vm4034_vm3, %v5373_v37  ;;  %v19148_v33 = vld [vmem:[#allocation100_spill] sm:$0xff]  ;;  %v13453_v37 = vpop.eup %13452  ;;  %v5364_v7 = vmul.f32 %v13451_v12, %v19149_v43  ;;  %v19153_v46 = vld [vmem:[#allocation2_spill] sm:$0xff]  ;;  %v19154_v12 = vld [vmem:[#allocation29_spill] sm:$0xff] }
 0x5b7   : > { %v13022_v21 = vunpack.i.h.bf16 %v13020_v27  ;;  %v13021_v26 = vunpack.i.l.bf16 %v13020_v27  ;;  %v4494_v17 = vsub.f32 %v19148_v33, %v19147_v42  ;;  %v13455_v30 = vpop.eup %13454  ;;  %v5365_v36 = vmul.f32 %v13453_v37, %v19151_v57  ;;  %v19156_v37 = vld [vmem:[#allocation106_spill] sm:$0xff] }
 0x5b8   : > { %v13457_v60 = vpop.eup %13456  ;;  %v5378_v1 = vmul.f32 %v13455_v30, %v16618_v39  ;;  %v19155_v39 = vld [vmem:[#allocation73_spill] sm:$0xff] }
 0x5b9   : > { %11462 = vmatmul.mubr.msk.f32.gmra.mrb[194].mxu0 %vm4034_vm3, %v5374_v24  ;;  %v12388_v49 = vpack.c.bf16 %v13022_v21, %v13021_v26  ;;  %v4697_v27 = vmul.f32 1.442695, %v4494_v17  ;;  %v19150_v21 = vld [vmem:[#allocation110_spill] sm:$0xff]  ;;  %v13459_v24 = vpop.eup %13458  ;;  %v5366_v45 = vmul.f32 %v13457_v60, %v19152_v9 }
 0x5ba   : > { %11464 = vmatprep.mubr.msk.f32.mxu0 %vm4034_vm3, %v5375_v50  ;;  %v4495_v26 = vsub.f32 %v19150_v21, %v16478_v4  ;;  %v13461_v50 = vpop.eup %13460  ;;  %v5367_v4 = vmul.f32 %v13459_v24, %v19153_v46  ;;  %v19157_v21 = vld [vmem:[#allocation119_spill] sm:$0xff] }
 0x5bb   : > { %12389 = vmatprep.subr.bf16.mxu1 %v12388_v49  ;;  %13468 = vpow2.f32 %v4697_v27  ;;  %v5368_v42 = vmul.f32 %v13461_v50, %v19154_v12 }
 0x5bc   : > { %12391 = vmatpush3.bf16.msra.mxu1 %v12388_v49  ;;  %v4699_v17 = vmul.f32 1.442695, %v4495_v26  ;;  %v13463_v49 = vpop.eup %13462  ;;  %v19158_v26 = vld [vmem:[#allocation126_spill] sm:$0xff] }
 0x5bd   : > { %11465 = vmatmul.mubr.msk.f32.gmra.mrb[196].mxu0 %vm4034_vm3, %v5376_v34  ;;  %v13465_v33 = vpop.eup %13464  ;;  %v4496_v34 = vsub.f32 %v19156_v37, %v19155_v39  ;;  %v5369_v30 = vmul.f32 %v13463_v49, %v16620_v35  ;;  %v4497_v57 = vsub.f32 %v19158_v26, %v19157_v21  ;;  %v19164_v37 = vld [vmem:[#allocation150_spill] sm:$0xff] }
 0x5be   : > { %11467 = vmatprep.mubr.msk.f32.mxu0 %vm4034_vm3, %v5377_v19  ;;  %13470 = vpow2.f32 %v4699_v17  ;;  %v13467_v19 = vpop.eup %13466  ;;  %v5370_v43 = vmul.f32 %v13465_v33, %v16630_v59 }
 0x5bf   : > { %11431 = vmatmul.mubr.msk.f32.vlgmr.msra.gmra.mrb[112].mxu1 %vm4034_vm3, %v5364_v7  ;;  %v4701_v7 = vmul.f32 1.442695, %v4496_v34  ;;  %v5379_v60 = vmul.f32 %v13467_v19, %v16739_v14  ;;  %v4703_v24 = vmul.f32 1.442695, %v4497_v57  ;;  %v19159_v14 = vld [vmem:[#allocation114_spill] sm:$0xff]  ;;  %v4404_v34 = vsel %vm4034_vm3, %v19164_v37, -inf }
 0x5c0   : > { %11433 = vmatprep.mubr.msk.f32.mxu1 %vm4034_vm3, %v5365_v36  ;;  %v19210_v37 = vld [vmem:[#allocation134_spill] sm:$0xff] }
 0x5c1   : > { %11468 = vmatmul.mubr.msk.f32.gmra.mrb[198].mxu0 %vm4034_vm3, %v5378_v1  ;;  %13472 = vpow2.f32 %v4701_v7  ;;  %v4398_v1 = vsel %vm4034_vm3, %v19159_v14, -inf }
 0x5c2   : > { %13474 = vpow2.f32 %v4703_v24  ;;  %v19166_v24 = vld [vmem:[#allocation51_spill] sm:$0xff] }
 0x5c3   : > { %11434 = vmatmul.mubr.msk.f32.gmra.mrb[114].mxu1 %vm4034_vm3, %v5366_v45  ;;  %v19160_v45 = vld [vmem:[#allocation149_spill] sm:$0xff] }
 0x5c4   : > { %11436 = vmatprep.mubr.msk.f32.mxu1 %vm4034_vm3, %v5367_v4  ;;  %v4395_v50 = vsel %vm4034_vm3, %v19160_v45, -inf  ;;  %v19162_v4 = vld [vmem:[#allocation152_spill] sm:$0xff]  ;;  %v19208_v45 = vld [vmem:[#allocation129_spill] sm:$0xff] }
 0x5c5   : > { %v16979_v27 = vpop.eup %13468  ;;  %v4401_v49 = vsel %vm4034_vm3, %v19162_v4, -inf  ;;  %v19205_v4 = vld [vmem:[#allocation89_spill] sm:$0xff] }
 0x5c6   : > { %v5028_v35 = vsel %vm4034_vm3, %v16979_v27, 0.0 }
 0x5c7   : > { %11437 = vmatmul.mubr.msk.f32.gmra.mrb[116].mxu1 %vm4034_vm3, %v5368_v42 }
 0x5c8   : > { %11439 = vmatprep.mubr.msk.f32.mxu1 %vm4034_vm3, %v5369_v30  ;;  %v16986_v36 = vpop.eup %13470 }
 0x5c9   : > { %v5031_v59 = vsel %vm4034_vm3, %v16986_v36, 0.0 }
 0x5cb   : > { %11440 = vmatmul.mubr.msk.f32.gmra.mrb[118].mxu1 %vm4034_vm3, %v5370_v43  ;;  %v16992_v9 = vpop.eup %13472 }
 0x5cc   : > { %11486 = vmatprep.mubr.msk.f32.mxu1 %vm4034_vm3, %v5379_v60  ;;  %v5034_v17 = vsel %vm4034_vm3, %v16992_v9, 0.0  ;;  %v17002_v12 = vpop.eup %13474 }
 0x5cd   : > { %v5037_v33 = vsel %vm4034_vm3, %v17002_v12, 0.0 }
 0x5d0   : > { %5029 = vadd.xlane.f32.xlu0 %v5028_v35 }
 0x5d4   : > { %5032 = vadd.xlane.f32.xlu0 %v5031_v59 }
 0x5d8   : > { %4399 = vmax.xlane.f32.xlu0 %v4398_v1 }
 0x5da   : > { %4396 = vmax.xlane.f32.xlu1 %v4395_v50 }
 0x5dc   : > { %5035 = vadd.xlane.f32.xlu0 %v5034_v17  ;;  %v19167_v17 = vld [vmem:[#allocation56_spill] sm:$0xff] }
 0x5dd   : > { %v16998_v46 = vpop.xlane.xlu1 %4372 }
 0x5de   : > { %19161 = vst [vmem:[#allocation81_spill] sm:$0xff] %v16998_v46  ;;  %4402 = vmax.xlane.f32.xlu1 %v4401_v49 }
 0x5e1   : > { %v17004_v42 = vpop.xlane.xlu1 %5011 }
 0x5e2   : > { %5038 = vadd.xlane.f32.xlu1 %v5037_v33  ;;  %v19168_v33 = vld [vmem:[#allocation101_spill] sm:$0xff] }
 0x5e5   : > { %v17008_v39 = vpop.xlane.xlu1 %4378 }
 0x5e6   : > { %19163 = vst [vmem:[#allocation83_spill] sm:$0xff] %v17008_v39  ;;  %4405 = vmax.xlane.f32.xlu1 %v4404_v34  ;;  %v19169_v34 = vld [vmem:[#allocation109_spill] sm:$0xff] }
 0x5e7   : > { %v17012_v30 = vpop.xlane.xlu0 %5008  ;;  %v4498_v25 = vsub.f32 %v19169_v34, %v19168_v33 }
 0x5e9   : > { %v17014_v19 = vpop.xlane.xlu1 %5014 }
 0x5eb   : > { %v17016_v43 = vpop.xlane.xlu0 %4375 }
 0x5ed   : > { %v17018_v7 = vpop.xlane.xlu1 %4381 }
 0x5ee   : > { %19165 = vst [vmem:[#allocation85_spill] sm:$0xff] %v17018_v7 }
 0x5ef   : > { %v13030_v60 = vpop.permute.xlu0 %13029 }
 0x5f0   : > { %v13032_v21 = vunpack.i.h.bf16 %v13030_v60  ;;  %v13031_v26 = vunpack.i.l.bf16 %v13030_v60  ;;  %v4705_v60 = vmul.f32 1.442695, %v4498_v25  ;;  %v19177_v25 = vld [vmem:[#allocation148_spill] sm:$0xff] }
 0x5f1   : > { %v17020_v57 = vpop.xlane.xlu1 %5017 }
 0x5f2   : > { %v12408_v35 = vpack.c.bf16 %v13032_v21, %v13031_v26  ;;  %13049 = vrot.lane.b32.xlu0 %v19166_v24, %s13709_s10  ;;  %v19171_v21 = vld [vmem:[#allocation144_spill] sm:$0xff]  ;;  %13476 = vpow2.f32 %v4705_v60  ;;  %v19174_v24 = vld [vmem:[#allocation143_spill] sm:$0xff]  ;;  %v19180_v60 = vld [vmem:[#allocation153_spill] sm:$0xff] }
 0x5f3   : > { %v19172_v26 = vsub.f32 %v19170_v58, %v19171_v21  ;;  %v4407_v21 = vsel %vm4034_vm3, %v19180_v60, -inf }
 0x5f4   : > { %12409 = vmatprep.subr.bf16.mxu1 %v12408_v35 }
 0x5f5   : > { %12411 = vmatpush3.bf16.msra.mxu1 %v12408_v35  ;;  %v13035_v59 = vpop.permute.xlu1 %13034  ;;  %v4707_v28 = vmul.f32 1.442695, %v19172_v26  ;;  %v19173_v35 = vld [vmem:[#allocation88_spill] sm:$0xff] }
 0x5f6   : > { %v13037_v1 = vunpack.i.h.bf16 %v13035_v59  ;;  %v13036_v50 = vunpack.i.l.bf16 %v13035_v59  ;;  %v19175_v41 = vsub.f32 %v19173_v35, %v19174_v24  ;;  %v19181_v35 = vld [vmem:[#allocation154_spill] sm:$0xff] }
 0x5f7   : > { %13054 = vrot.lane.b32.xlu1 %v19167_v17, %s13709_s10  ;;  %13478 = vpow2.f32 %v4707_v28  ;;  %v19176_v17 = vld [vmem:[#allocation91_spill] sm:$0xff]  ;;  %v4413_v24 = vsel %vm4034_vm3, %v19181_v35, -inf }
 0x5f8   : > { %v12412_v49 = vpack.c.bf16 %v13037_v1, %v13036_v50  ;;  %v4709_v59 = vmul.f32 1.442695, %v19175_v41  ;;  %v19179_v28 = vld [vmem:[#allocation11_spill] sm:$0xff] }
 0x5f9   : > { %v4410_v41 = vsel %vm4034_vm3, %v19179_v28, -inf }
 0x5fa   : > { %12413 = vmatprep.subr.bf16.mxu1 %v12412_v49  ;;  %13480 = vpow2.f32 %v4709_v59 }
 0x5fb   : > { %12415 = vmatpush3.bf16.msra.mxu1 %v12412_v49  ;;  %v19178_v49 = vsub.f32 %v19176_v17, %v19177_v25 }
 0x5fc   : > { %v17034_v7 = vpop.eup %13476 }
 0x5fd   : > { %v5040_v1 = vsel %vm4034_vm3, %v17034_v7, 0.0  ;;  %v4711_v33 = vmul.f32 1.442695, %v19178_v49 }
 0x5ff   : > { %13482 = vpow2.f32 %v4711_v33 }
 0x601   : > { %v17038_v50 = vpop.eup %13478 }
 0x602   : > { %v5043_v58 = vsel %vm4034_vm3, %v17038_v50, 0.0 }
 0x604   : > { %v17047_v34 = vpop.eup %13480 }
 0x605   : > { %v5046_v26 = vsel %vm4034_vm3, %v17047_v34, 0.0 }
 0x609   : > { %v17055_v59 = vpop.eup %13482 }
 0x60a   : > { %v5049_v25 = vsel %vm4034_vm3, %v17055_v59, 0.0 }
 0x611   : > { %5041 = vadd.xlane.f32.xlu0 %v5040_v1 }
 0x615   : > { %5044 = vadd.xlane.f32.xlu0 %v5043_v58 }
 0x619   : > { %4411 = vmax.xlane.f32.xlu0 %v4410_v41  ;;  %v19183_v41 = vld [vmem:[#allocation68_spill] sm:$0xff] }
 0x61b   : > { %4408 = vmax.xlane.f32.xlu1 %v4407_v21  ;;  %v4416_v21 = vsel %vm4034_vm3, %v19183_v41, -inf }
 0x61d   : > { %5047 = vadd.xlane.f32.xlu0 %v5046_v26 }
 0x61f   : > { %4414 = vmax.xlane.f32.xlu1 %v4413_v24 }
 0x620   : > { %v17057_v1 = vpop.xlane.xlu0 %4384 }
 0x621   : > { %19182 = vst [vmem:[#allocation45_spill] sm:$0xff] %v17057_v1 }
 0x623   : > { %5050 = vadd.xlane.f32.xlu1 %v5049_v25 }
 0x624   : > { %v17063_v49 = vpop.xlane.xlu0 %4387 }
 0x626   : > { %v5021_v58 = vpop.xlane.xlu1 %5020 }
 0x627   : > { %13484 = vrcp.f32 %v5021_v58  ;;  %4417 = vmax.xlane.f32.xlu1 %v4416_v21 }
 0x628   : > { %v17069_v26 = vpop.xlane.xlu0 %5023  ;;  %13486 = vrcp.f32 %v16849_v62 }
 0x629   : > { %13488 = vrcp.f32 %v16918_v52 }
 0x62a   : > { %v17071_v24 = vpop.xlane.xlu1 %4390  ;;  %13490 = vrcp.f32 %v16907_v3  ;;  %v19189_v3 = vld [vmem:[#allocation24_spill] sm:$0xff] }
 0x62b   : > { %19184 = vst [vmem:[#allocation48_spill] sm:$0xff] %v17071_v24  ;;  %v19186_v24 = vld [vmem:[#allocation59_spill] sm:$0xff]  ;;  %13492 = vrcp.f32 %v17012_v30 }
 0x62c   : > { %v13040_v1 = vpop.permute.xlu0 %13039  ;;  %13494 = vrcp.f32 %v17004_v42 }
 0x62d   : > { %v13042_v25 = vunpack.i.h.bf16 %v13040_v1  ;;  %v13041_v20 = vunpack.i.l.bf16 %v13040_v1  ;;  %13496 = vrcp.f32 %v17014_v19 }
 0x62e   : > { %v17075_v39 = vpop.xlane.xlu1 %5026  ;;  %13498 = vrcp.f32 %v17020_v57  ;;  %v19190_v57 = vld [vmem:[#allocation95_spill] sm:$0xff] }
 0x62f   : > { %v12416_v46 = vpack.c.bf16 %v13042_v25, %v13041_v20 }
 0x631   : > { %v13485_v33 = vpop.eup %13484  ;;  %12417 = vmatprep.subr.bf16.mxu1 %v12416_v46 }
 0x632   : > { %v17079_v58 = vpop.xlane.xlu1 %4393  ;;  %12419 = vmatpush3.bf16.msra.mxu1 %v12416_v46  ;;  %v5387_v21 = vmul.f32 %v13485_v33, %v16867_v11  ;;  %v19187_v46 = vld [vmem:[#allocation61_spill] sm:$0xff]  ;;  %v13487_v1 = vpop.eup %13486 }
 0x633   : > { %19185 = vst [vmem:[#allocation30_spill] sm:$0xff] %v17079_v58  ;;  %13059 = vrot.lane.b32.xlu0 %v19186_v24, %s13709_s10  ;;  %v13489_v33 = vpop.eup %13488  ;;  %v19188_v24 = vld [vmem:[#allocation7_spill] sm:$0xff]  ;;  %v5380_v30 = vmul.f32 %v13487_v1, %v16726_v32 }
 0x634   : > { %11514 = vmatprep.mubr.msk.f32.mxu0 %vm4034_vm3, %v5387_v21  ;;  %v4502_v25 = vsub.f32 %v19189_v3, %v19188_v24  ;;  %v13491_v21 = vpop.eup %13490  ;;  %v5381_v42 = vmul.f32 %v13489_v33, %v16793_v61  ;;  %v19191_v32 = vld [vmem:[#allocation151_spill] sm:$0xff]  ;;  %v19193_v3 = vld [vmem:[#allocation18_spill] sm:$0xff] }
 0x635   : > { %v5382_v19 = vmul.f32 %v13491_v21, %v16785_v5  ;;  %v19195_v21 = vld [vmem:[#allocation147_spill] sm:$0xff] }
 0x636   : > { %v13045_v62 = vpop.permute.xlu1 %13044 }
 0x637   : > { %v13047_v20 = vunpack.i.h.bf16 %v13045_v62  ;;  %v13046_v52 = vunpack.i.l.bf16 %v13045_v62  ;;  %v13493_v62 = vpop.eup %13492 }
 0x638   : > { %13064 = vrot.lane.b32.xlu1 %v19187_v46, %s13709_s10  ;;  %v4713_v46 = vmul.f32 1.442695, %v4502_v25  ;;  %v19194_v25 = vld [vmem:[#allocation23_spill] sm:$0xff] }
 0x639   : > { %v12420_v11 = vpack.c.bf16 %v13047_v20, %v13046_v52  ;;  %v13495_v20 = vpop.eup %13494  ;;  %v5383_v52 = vmul.f32 %v13493_v62, %v16829_v18 }
 0x63a   : > { %v13497_v24 = vpop.eup %13496  ;;  %13500 = vpow2.f32 %v4713_v46  ;;  %v5384_v61 = vmul.f32 %v13495_v20, %v16825_v16 }
 0x63b   : > { %12421 = vmatprep.subr.bf16.mxu1 %v12420_v11  ;;  %v13499_v33 = vpop.eup %13498  ;;  %v5385_v5 = vmul.f32 %v13497_v24, %v16833_v8 }
 0x63c   : > { %12423 = vmatpush3.bf16.msra.mxu1 %v12420_v11  ;;  %v19192_v11 = vsub.f32 %v19190_v57, %v19191_v32  ;;  %v5386_v18 = vmul.f32 %v13499_v33, %v16843_v2 }
 0x63e   : > { %v4717_v1 = vmul.f32 1.442695, %v19192_v11 }
 0x63f   : > { %11487 = vmatmul.mubr.msk.f32.vlgmr.msra.gmra.mrb[120].mxu1 %vm4034_vm3, %v5380_v30  ;;  %v4503_v30 = vsub.f32 %v19194_v25, %v19193_v3  ;;  %v19204_v25 = vld [vmem:[#allocation27_spill] sm:$0xff] }
 0x640   : > { %11489 = vmatprep.mubr.msk.f32.mxu1 %vm4034_vm3, %v5381_v42  ;;  %13502 = vpow2.f32 %v4717_v1  ;;  %v19196_v42 = vld [vmem:[#allocation94_spill] sm:$0xff] }
 0x641   : > { %v4505_v62 = vsub.f32 %v19196_v42, %v19195_v21  ;;  %v4715_v46 = vmul.f32 1.442695, %v4503_v30  ;;  %v19200_v21 = vld [vmem:[#allocation62_spill] sm:$0xff] }
 0x643   : > { %11490 = vmatmul.mubr.msk.f32.gmra.mrb[122].mxu1 %vm4034_vm3, %v5382_v19  ;;  %v4719_v19 = vmul.f32 1.442695, %v4505_v62  ;;  %13504 = vpow2.f32 %v4715_v46 }
 0x644   : > { %11492 = vmatprep.mubr.msk.f32.mxu1 %vm4034_vm3, %v5383_v52  ;;  %v17117_v16 = vpop.eup %13500 }
 0x645   : > { %v5052_v8 = vsel %vm4034_vm3, %v17117_v16, 0.0  ;;  %13506 = vpow2.f32 %v4719_v19 }
 0x647   : > { %11493 = vmatmul.mubr.msk.f32.gmra.mrb[124].mxu1 %vm4034_vm3, %v5384_v61 }
 0x648   : > { %11495 = vmatprep.mubr.msk.f32.mxu1 %vm4034_vm3, %v5385_v5 }
 0x64a   : > { %v17121_v20 = vpop.eup %13502 }
 0x64b   : > { %11496 = vmatmul.mubr.msk.f32.gmra.mrb[126].mxu1 %vm4034_vm3, %v5386_v18  ;;  %v5058_v2 = vsel %vm4034_vm3, %v17121_v20, 0.0  ;;  %v19203_v18 = vld [vmem:[#allocation64_spill] sm:$0xff] }
 0x64c   : > { %v4506_v33 = vsub.f32 %v19204_v25, %v19203_v18 }
 0x64d   : > { %v17125_v52 = vpop.eup %13504 }
 0x64e   : > { %v5055_v24 = vsel %vm4034_vm3, %v17125_v52, 0.0 }
 0x64f   : > { %v17129_v57 = vpop.eup %13506 }
 0x650   : > { %v5061_v11 = vsel %vm4034_vm3, %v17129_v57, 0.0 }
 0x652   : > { %5053 = vadd.xlane.f32.xlu0 %v5052_v8 }
 0x656   : > { %5059 = vadd.xlane.f32.xlu0 %v5058_v2  ;;  %v19201_v2 = vld [vmem:[#allocation65_spill] sm:$0xff] }
 0x65c   : > { %5056 = vadd.xlane.f32.xlu1 %v5055_v24 }
 0x65d   : > { %v17131_v32 = vpop.xlane.xlu0 %5029 }
 0x660   : > { %5062 = vadd.xlane.f32.xlu1 %v5061_v11 }
 0x661   : > { %v17135_v1 = vpop.xlane.xlu0 %5032 }
 0x665   : > { %v17137_v61 = vpop.xlane.xlu0 %4399 }
 0x666   : > { %19197 = vst [vmem:[#allocation100_spill] sm:$0xff] %v17137_v61 }
 0x667   : > { %v17141_v3 = vpop.xlane.xlu1 %4396 }
 0x668   : > { %19198 = vst [vmem:[#allocation35_spill] sm:$0xff] %v17141_v3  ;;  %v19206_v3 = vld [vmem:[#allocation125_spill] sm:$0xff] }
 0x669   : > { %v17145_v30 = vpop.xlane.xlu0 %5035 }
 0x66b   : > { %v17147_v5 = vpop.xlane.xlu1 %4402 }
 0x66c   : > { %19199 = vst [vmem:[#allocation110_spill] sm:$0xff] %v17147_v5  ;;  %13069 = vrot.lane.b32.xlu0 %v19200_v21, %s13709_s10 }
 0x66d   : > { %v13050_v42 = vpop.permute.xlu0 %13049 }
 0x66e   : > { %v13052_v62 = vunpack.i.h.bf16 %v13050_v42  ;;  %v13051_v46 = vunpack.i.l.bf16 %v13050_v42  ;;  %v4721_v42 = vmul.f32 1.442695, %v4506_v33 }
 0x66f   : > { %v17153_v19 = vpop.xlane.xlu1 %5038 }
 0x670   : > { %v12424_v8 = vpack.c.bf16 %v13052_v62, %v13051_v46  ;;  %v4508_v62 = vsub.f32 %v19206_v3, %v19205_v4  ;;  %13508 = vpow2.f32 %v4721_v42 }
 0x671   : > { %13074 = vrot.lane.b32.xlu1 %v19201_v2, %s13709_s10 }
 0x672   : > { %12425 = vmatprep.subr.bf16.mxu0 %v12424_v8  ;;  %v4725_v2 = vmul.f32 1.442695, %v4508_v62 }
 0x673   : > { %12427 = vmatpush3.bf16.msra.mxu0 %v12424_v8  ;;  %v17157_v24 = vpop.xlane.xlu1 %4405  ;;  %v19207_v8 = vld [vmem:[#allocation10_spill] sm:$0xff] }
 0x674   : > { %19202 = vst [vmem:[#allocation123_spill] sm:$0xff] %v17157_v24  ;;  %v4507_v61 = vsub.f32 %v19208_v45, %v19207_v8  ;;  %13510 = vpow2.f32 %v4725_v2  ;;  %v19209_v24 = vld [vmem:[#allocation122_spill] sm:$0xff] }
 0x675   : > { %v4509_v25 = vsub.f32 %v19210_v37, %v19209_v24 }
 0x676   : > { %v4723_v11 = vmul.f32 1.442695, %v4507_v61 }
 0x677   : > { %v13055_v21 = vpop.permute.xlu1 %13054  ;;  %v4727_v33 = vmul.f32 1.442695, %v4509_v25 }
 0x678   : > { %v13057_v17 = vunpack.i.h.bf16 %v13055_v21  ;;  %v13056_v5 = vunpack.i.l.bf16 %v13055_v21  ;;  %13512 = vpow2.f32 %v4723_v11 }
 0x679   : > { %13514 = vpow2.f32 %v4727_v33 }
 0x67a   : > { %v12428_v46 = vpack.c.bf16 %v13057_v17, %v13056_v5  ;;  %v17169_v18 = vpop.eup %13508 }
 0x67b   : > { %v5064_v17 = vsel %vm4034_vm3, %v17169_v18, 0.0 }
 0x67c   : > { %12429 = vmatprep.subr.bf16.mxu0 %v12428_v46 }
 0x67d   : > { %12431 = vmatpush3.bf16.msra.mxu0 %v12428_v46 }
 0x67e   : > { %v17177_v3 = vpop.eup %13510 }
 0x67f   : > { %v5070_v37 = vsel %vm4034_vm3, %v17177_v3, 0.0 }
 0x682   : > { %v17187_v24 = vpop.eup %13512 }
 0x683   : > { %v5067_v2 = vsel %vm4034_vm3, %v17187_v24, 0.0  ;;  %v17199_v8 = vpop.eup %13514 }
 0x688   : > { %v17171_v21 = vpop.f32.mrb[192].mxu0 }
 0x689   : > { %19211 = vst [vmem:[#allocation78_spill] sm:$0xff] %v17171_v21  ;;  %v17173_v4 = vpop.f32.mrb[193].mxu0 }
 0x68a   : > { %19212 = vst [vmem:[#allocation2_spill] sm:$0xff] %v17173_v4 }
 0x68b   : > { %5065 = vadd.xlane.f32.xlu0 %v5064_v17 }
 0x68c   : > { %v17179_v45 = vpop.f32.mrb[194].mxu0 }
 0x68d   : > { %19213 = vst [vmem:[#allocation29_spill] sm:$0xff] %v17179_v45  ;;  %v17181_v61 = vpop.f32.mrb[195].mxu0 }
 0x68e   : > { %19214 = vst [vmem:[#allocation73_spill] sm:$0xff] %v17181_v61 }
 0x68f   : > { %5071 = vadd.xlane.f32.xlu0 %v5070_v37  ;;  %v5073_v37 = vsel %vm4034_vm3, %v17199_v8, 0.0 }
 0x690   : > { %v17185_v5 = vpop.f32.mrb[196].mxu0 }
 0x691   : > { %19215 = vst [vmem:[#allocation106_spill] sm:$0xff] %v17185_v5  ;;  %v17189_v11 = vpop.f32.mrb[197].mxu0 }
 0x692   : > { %19216 = vst [vmem:[#allocation119_spill] sm:$0xff] %v17189_v11  ;;  %v17191_v42 = vpop.f32.mrb[112].mxu1 }
 0x693   : > { %19217 = vst [vmem:[#allocation126_spill] sm:$0xff] %v17191_v42  ;;  %v17193_v62 = vpop.f32.mrb[113].mxu1  ;;  %v19231_v42 = vld [vmem:[#allocation63_spill] sm:$0xff] }
 0x694   : > { %19218 = vst [vmem:[#allocation51_spill] sm:$0xff] %v17193_v62  ;;  %v17195_v46 = vpop.f32.mrb[198].mxu0 }
 0x695   : > { %19219 = vst [vmem:[#allocation56_spill] sm:$0xff] %v17195_v46  ;;  %v17201_v25 = vpop.f32.mrb[199].mxu0  ;;  %5068 = vadd.xlane.f32.xlu1 %v5067_v2  ;;  %v19227_v2 = vld [vmem:[#allocation69_spill] sm:$0xff] }
 0x696   : > { %19220 = vst [vmem:[#allocation101_spill] sm:$0xff] %v17201_v25  ;;  %v17203_v33 = vpop.f32.mrb[114].mxu1 }
 0x697   : > { %19221 = vst [vmem:[#allocation109_spill] sm:$0xff] %v17203_v33  ;;  %v17205_v17 = vpop.f32.mrb[115].mxu1 }
 0x698   : > { %19222 = vst [vmem:[#allocation92_spill] sm:$0xff] %v17205_v17 }
 0x699   : > { %5074 = vadd.xlane.f32.xlu1 %v5073_v37 }
 0x69a   : > { %v17209_v5 = vpop.f32.mrb[116].mxu1 }
 0x69b   : > { %19223 = vst [vmem:[#allocation144_spill] sm:$0xff] %v17209_v5  ;;  %v17211_v11 = vpop.f32.mrb[117].mxu1 }
 0x69c   : > { %19224 = vst [vmem:[#allocation88_spill] sm:$0xff] %v17211_v11 }
 0x69e   : > { %v5042_v45 = vpop.xlane.xlu0 %5041  ;;  %v17213_v61 = vpop.f32.mrb[118].mxu1 }
 0x69f   : > { %19225 = vst [vmem:[#allocation143_spill] sm:$0xff] %v17213_v61  ;;  %v17215_v21 = vpop.f32.mrb[119].mxu1  ;;  %v19230_v61 = vld [vmem:[#allocation71_spill] sm:$0xff] }
 0x6a0   : > { %19226 = vst [vmem:[#allocation91_spill] sm:$0xff] %v17215_v21 }
 0x6a2   : > { %v5045_v4 = vpop.xlane.xlu0 %5044 }
 0x6a3   : > { %13516 = vrcp.f32 %v5045_v4 }
 0x6a4   : > { %13518 = vrcp.f32 %v17069_v26 }
 0x6a5   : > { %13079 = vrot.lane.b32.xlu0 %v19227_v2, %s13709_s10  ;;  %v19232_v2 = vld [vmem:[#allocation133_spill] sm:$0xff]  ;;  %13520 = vrcp.f32 %v17075_v39 }
 0x6a6   : > { %v17219_v33 = vpop.xlane.xlu0 %4411  ;;  %v4510_v62 = vsub.f32 %v19232_v2, %v19231_v42 }
 0x6a7   : > { %19228 = vst [vmem:[#allocation148_spill] sm:$0xff] %v17219_v33 }
 0x6a8   : > { %v17223_v37 = vpop.xlane.xlu1 %4408  ;;  %v4729_v14 = vmul.f32 1.442695, %v4510_v62  ;;  %v19237_v62 = vld [vmem:[#allocation138_spill] sm:$0xff] }
 0x6a9   : > { %19229 = vst [vmem:[#allocation154_spill] sm:$0xff] %v17223_v37  ;;  %v19233_v37 = vld [vmem:[#allocation105_spill] sm:$0xff] }
 0x6aa   : > { %v17227_v11 = vpop.xlane.xlu0 %5047  ;;  %13084 = vrot.lane.b32.xlu1 %v19230_v61, %s13709_s10  ;;  %v19234_v61 = vld [vmem:[#allocation136_spill] sm:$0xff]  ;;  %13522 = vpow2.f32 %v4729_v14 }
 0x6ab   : > { %v4512_v60 = vsub.f32 %v19234_v61, %v19233_v37  ;;  %13524 = vrcp.f32 %v17131_v32  ;;  %v19238_v37 = vld [vmem:[#allocation67_spill] sm:$0xff] }
 0x6ac   : > { %v17231_v21 = vpop.xlane.xlu1 %4414  ;;  %13526 = vrcp.f32 %v17135_v1 }
 0x6ad   : > { %v13517_v4 = vpop.eup %13516 }
 0x6ae   : > { %v13060_v17 = vpop.permute.xlu0 %13059  ;;  %v5395_v25 = vmul.f32 %v13517_v4, %v17038_v50  ;;  %v4733_v50 = vmul.f32 1.442695, %v4512_v60  ;;  %v13519_v14 = vpop.eup %13518  ;;  %v19239_v4 = vld [vmem:[#allocation141_spill] sm:$0xff] }
 0x6af   : > { %v13062_v33 = vunpack.i.h.bf16 %v13060_v17  ;;  %v13061_v28 = vunpack.i.l.bf16 %v13060_v17  ;;  %v19236_v17 = vld [vmem:[#allocation99_spill] sm:$0xff]  ;;  %v4513_v2 = vsub.f32 %v19239_v4, %v19238_v37  ;;  %v13521_v32 = vpop.eup %13520  ;;  %v5388_v61 = vmul.f32 %v13519_v14, %v16871_v44 }
 0x6b0   : > { %11542 = vmatprep.mubr.msk.f32.mxu1 %vm4034_vm3, %v5395_v25  ;;  %v17239_v5 = vpop.xlane.xlu1 %5050  ;;  %13528 = vpow2.f32 %v4733_v50 }
 0x6b1   : > { %v12432_v58 = vpack.c.bf16 %v13062_v33, %v13061_v28  ;;  %v4511_v28 = vsub.f32 %v19237_v62, %v19236_v17  ;;  %13530 = vrcp.f32 %v17145_v30  ;;  %v4735_v17 = vmul.f32 1.442695, %v4513_v2 }
 0x6b2   : > { %13532 = vrcp.f32 %v17153_v19  ;;  %v5389_v30 = vmul.f32 %v13521_v32, %v16881_v56  ;;  %v19242_v32 = vld [vmem:[#allocation17_spill] sm:$0xff] }
 0x6b3   : > { %12433 = vmatprep.subr.bf16.mxu0 %v12432_v58  ;;  %13534 = vrcp.f32 %v5042_v45 }
 0x6b4   : > { %12435 = vmatpush3.bf16.msra.mxu0 %v12432_v58  ;;  %v17245_v42 = vpop.xlane.xlu1 %4417  ;;  %v4731_v58 = vmul.f32 1.442695, %v4511_v28  ;;  %v17257_v1 = vpop.eup %13522 }
 0x6b5   : > { %19235 = vst [vmem:[#allocation68_spill] sm:$0xff] %v17245_v42  ;;  %v13525_v50 = vpop.eup %13524  ;;  %v5076_v45 = vsel %vm4034_vm3, %v17257_v1, 0.0 }
 0x6b6   : > { %13536 = vpow2.f32 %v4731_v58  ;;  %v13527_v19 = vpop.eup %13526  ;;  %v5390_v28 = vmul.f32 %v13525_v50, %v16979_v27 }
 0x6b7   : > { %13538 = vpow2.f32 %v4735_v17  ;;  %v5391_v44 = vmul.f32 %v13527_v19, %v16986_v36 }
 0x6b8   : > { %v13065_v33 = vpop.permute.xlu1 %13064 }
 0x6b9   : > { %v13067_v26 = vunpack.i.h.bf16 %v13065_v33  ;;  %v13066_v39 = vunpack.i.l.bf16 %v13065_v33 }
 0x6ba   : > { %v17263_v62 = vpop.eup %13528 }
 0x6bb   : > { %v12436_v60 = vpack.c.bf16 %v13067_v26, %v13066_v39  ;;  %v13531_v33 = vpop.eup %13530  ;;  %v5082_v56 = vsel %vm4034_vm3, %v17263_v62, 0.0 }
 0x6bc   : > { %v13533_v26 = vpop.eup %13532  ;;  %v5392_v39 = vmul.f32 %v13531_v33, %v16992_v9  ;;  %v19244_v33 = vld [vmem:[#allocation31_spill] sm:$0xff] }
 0x6bd   : > { %12437 = vmatprep.subr.bf16.mxu0 %v12436_v60  ;;  %v5393_v14 = vmul.f32 %v13533_v26, %v17002_v12  ;;  %v19240_v12 = vld [vmem:[#allocation75_spill] sm:$0xff] }
 0x6be   : > { %12439 = vmatpush3.bf16.msra.mxu0 %v12436_v60  ;;  %v13535_v60 = vpop.eup %13534 }
 0x6bf   : > { %v5394_v36 = vmul.f32 %v13535_v60, %v17034_v7  ;;  %v19241_v7 = vld [vmem:[#allocation80_spill] sm:$0xff] }
 0x6c0   : > { %v17276_v27 = vpop.eup %13536 }
 0x6c1   : > { %11515 = vmatmul.mubr.msk.f32.vlgmr.msra.gmra.mrb[200].mxu0 %vm4034_vm3, %v5388_v61  ;;  %v5079_v58 = vsel %vm4034_vm3, %v17276_v27, 0.0  ;;  %v17283_v37 = vpop.eup %13538  ;;  %v19243_v61 = vld [vmem:[#allocation140_spill] sm:$0xff] }
 0x6c2   : > { %11517 = vmatprep.mubr.msk.f32.mxu0 %vm4034_vm3, %v5389_v30  ;;  %v5085_v9 = vsel %vm4034_vm3, %v17283_v37, 0.0  ;;  %v4514_v50 = vsub.f32 %v19243_v61, %v19242_v32 }
 0x6c4   : > { %5077 = vadd.xlane.f32.xlu0 %v5076_v45 }
 0x6c5   : > { %11518 = vmatmul.mubr.msk.f32.gmra.mrb[202].mxu0 %vm4034_vm3, %v5390_v28 }
 0x6c6   : > { %11520 = vmatprep.mubr.msk.f32.mxu0 %vm4034_vm3, %v5391_v44  ;;  %v19245_v44 = vld [vmem:[#allocation26_spill] sm:$0xff] }
 0x6c7   : > { %v4516_v26 = vsub.f32 %v19245_v44, %v19244_v33 }
 0x6c8   : > { %5083 = vadd.xlane.f32.xlu0 %v5082_v56  ;;  %v4737_v56 = vmul.f32 1.442695, %v4514_v50 }
 0x6c9   : > { %11521 = vmatmul.mubr.msk.f32.gmra.mrb[204].mxu0 %vm4034_vm3, %v5392_v39  ;;  %v4741_v60 = vmul.f32 1.442695, %v4516_v26 }
 0x6ca   : > { %11523 = vmatprep.mubr.msk.f32.mxu0 %vm4034_vm3, %v5393_v14  ;;  %13540 = vpow2.f32 %v4737_v56  ;;  %v19246_v14 = vld [vmem:[#allocation12_spill] sm:$0xff] }
 0x6cb   : > { %13542 = vpow2.f32 %v4741_v60 }
 0x6cd   : > { %11524 = vmatmul.mubr.msk.f32.gmra.mrb[206].mxu0 %vm4034_vm3, %v5394_v36  ;;  %v19247_v36 = vld [vmem:[#allocation40_spill] sm:$0xff] }
 0x6ce   : > { %5080 = vadd.xlane.f32.xlu1 %v5079_v58  ;;  %v4515_v58 = vsub.f32 %v19247_v36, %v19246_v14 }
 0x6d0   : > { %v4739_v61 = vmul.f32 1.442695, %v4515_v58 }
 0x6d2   : > { %5086 = vadd.xlane.f32.xlu1 %v5085_v9  ;;  %13544 = vpow2.f32 %v4739_v61 }
 0x6d4   : > { %v17305_v50 = vpop.eup %13540 }
 0x6d5   : > { %v5088_v33 = vsel %vm4034_vm3, %v17305_v50, 0.0  ;;  %v17309_v44 = vpop.eup %13542 }
 0x6d6   : > { %v5094_v26 = vsel %vm4034_vm3, %v17309_v44, 0.0 }
 0x6dc   : > { %v17313_v56 = vpop.eup %13544 }
 0x6dd   : > { %v5091_v60 = vsel %vm4034_vm3, %v17313_v56, 0.0 }
 0x6de   : > { %13089 = vrot.lane.b32.xlu0 %v19240_v12, %s13709_s10 }
 0x6df   : > { %v17289_v4 = vpop.xlane.xlu0 %5053 }
 0x6e3   : > { %v17291_v2 = vpop.xlane.xlu0 %5059  ;;  %13094 = vrot.lane.b32.xlu1 %v19241_v7, %s13709_s10 }
 0x6e7   : > { %v13070_v17 = vpop.permute.xlu0 %13069 }
 0x6e8   : > { %v13072_v30 = vunpack.i.h.bf16 %v13070_v17  ;;  %v13071_v19 = vunpack.i.l.bf16 %v13070_v17  ;;  %v19248_v17 = vld [vmem:[#allocation20_spill] sm:$0xff] }
 0x6e9   : > { %v5057_v45 = vpop.xlane.xlu1 %5056 }
 0x6ea   : > { %v12440_v28 = vpack.c.bf16 %v13072_v30, %v13071_v19  ;;  %v19249_v30 = vld [vmem:[#allocation42_spill] sm:$0xff] }
 0x6eb   : > { %v4517_v19 = vsub.f32 %v19249_v30, %v19248_v17 }
 0x6ec   : > { %12441 = vmatprep.subr.bf16.mxu1 %v12440_v28 }
 0x6ed   : > { %12443 = vmatpush3.bf16.msra.mxu1 %v12440_v28  ;;  %v17299_v39 = vpop.xlane.xlu1 %5062  ;;  %v4743_v28 = vmul.f32 1.442695, %v4517_v19 }
 0x6ef   : > { %13546 = vpow2.f32 %v4743_v28  ;;  %v19257_v28 = vld [vmem:[#allocation86_spill] sm:$0xff] }
 0x6f1   : > { %v13075_v9 = vpop.permute.xlu1 %13074 }
 0x6f2   : > { %v13077_v12 = vunpack.i.h.bf16 %v13075_v9  ;;  %v13076_v7 = vunpack.i.l.bf16 %v13075_v9 }
 0x6f4   : > { %v12444_v32 = vpack.c.bf16 %v13077_v12, %v13076_v7  ;;  %v19253_v7 = vld [vmem:[#allocation84_spill] sm:$0xff] }
 0x6f6   : > { %12445 = vmatprep.subr.bf16.mxu1 %v12444_v32 }
 0x6f7   : > { %12447 = vmatpush3.bf16.msra.mxu1 %v12444_v32 }
 0x6f9   : > { %v17317_v14 = vpop.eup %13546 }
 0x6fa   : > { %v5097_v36 = vsel %vm4034_vm3, %v17317_v14, 0.0 }
 0x6fd   : > { %5089 = vadd.xlane.f32.xlu0 %v5088_v33 }
 0x701   : > { %5095 = vadd.xlane.f32.xlu0 %v5094_v26  ;;  %v19259_v26 = vld [vmem:[#allocation21_spill] sm:$0xff] }
 0x707   : > { %5092 = vadd.xlane.f32.xlu1 %v5091_v60  ;;  %v19260_v60 = vld [vmem:[#allocation34_spill] sm:$0xff] }
 0x70b   : > { %5098 = vadd.xlane.f32.xlu1 %v5097_v36  ;;  %v4518_v36 = vsub.f32 %v19260_v60, %v19259_v26  ;;  %v19263_v60 = vld [vmem:[#allocation55_spill] sm:$0xff] }
 0x712   : > { %v17321_v58 = vpop.f32.mrb[120].mxu1 }
 0x713   : > { %19250 = vst [vmem:[#allocation59_spill] sm:$0xff] %v17321_v58  ;;  %v17323_v9 = vpop.f32.mrb[121].mxu1  ;;  %v4745_v58 = vmul.f32 1.442695, %v4518_v36  ;;  %v19264_v36 = vld [vmem:[#allocation44_spill] sm:$0xff] }
 0x714   : > { %19251 = vst [vmem:[#allocation61_spill] sm:$0xff] %v17323_v9  ;;  %v19262_v9 = vld [vmem:[#allocation38_spill] sm:$0xff] }
 0x716   : > { %v17325_v12 = vpop.f32.mrb[122].mxu1 }
 0x717   : > { %19252 = vst [vmem:[#allocation7_spill] sm:$0xff] %v17325_v12  ;;  %13099 = vrot.lane.b32.xlu0 %v19253_v7, %s13709_s10  ;;  %v17329_v32 = vpop.f32.mrb[123].mxu1 }
 0x718   : > { %19254 = vst [vmem:[#allocation24_spill] sm:$0xff] %v17329_v32  ;;  %v5066_v61 = vpop.xlane.xlu0 %5065 }
 0x71a   : > { %v17331_v17 = vpop.f32.mrb[124].mxu1 }
 0x71b   : > { %19255 = vst [vmem:[#allocation95_spill] sm:$0xff] %v17331_v17  ;;  %v17333_v30 = vpop.f32.mrb[125].mxu1  ;;  %v19261_v17 = vld [vmem:[#allocation113_spill] sm:$0xff] }
 0x71c   : > { %19256 = vst [vmem:[#allocation151_spill] sm:$0xff] %v17333_v30  ;;  %v17335_v19 = vpop.xlane.xlu0 %5071  ;;  %13104 = vrot.lane.b32.xlu1 %v19257_v28, %s13709_s10  ;;  %v4520_v30 = vsub.f32 %v19262_v9, %v19261_v17 }
 0x71e   : > { %v17339_v33 = vpop.f32.mrb[126].mxu1  ;;  %v4749_v26 = vmul.f32 1.442695, %v4520_v30 }
 0x71f   : > { %19258 = vst [vmem:[#allocation18_spill] sm:$0xff] %v17339_v33  ;;  %v17343_v25 = vpop.f32.mrb[127].mxu1 }
 0x720   : > { %v13080_v7 = vpop.permute.xlu0 %13079 }
 0x721   : > { %v13082_v46 = vunpack.i.h.bf16 %v13080_v7  ;;  %v13081_v12 = vunpack.i.l.bf16 %v13080_v7  ;;  %v4519_v7 = vsub.f32 %v19264_v36, %v19263_v60 }
 0x722   : > { %v5069_v32 = vpop.xlane.xlu1 %5068 }
 0x723   : > { %v12448_v42 = vpack.c.bf16 %v13082_v46, %v13081_v12  ;;  %13548 = vrcp.f32 %v5069_v32 }
 0x724   : > { %13550 = vrcp.f32 %v17227_v11 }
 0x725   : > { %13552 = vrcp.f32 %v17239_v5  ;;  %12449 = vmatprep.subr.bf16.mxu1 %v12448_v42 }
 0x726   : > { %v17349_v28 = vpop.xlane.xlu1 %5074  ;;  %12451 = vmatpush3.bf16.msra.mxu1 %v12448_v42  ;;  %13554 = vpow2.f32 %v4745_v58  ;;  %v4747_v42 = vmul.f32 1.442695, %v4519_v7  ;;  %v19265_v58 = vld [vmem:[#allocation49_spill] sm:$0xff] }
 0x727   : > { %13556 = vrcp.f32 %v17289_v4  ;;  %v4521_v32 = vsub.f32 %v19265_v58, %v16640_v29  ;;  %v19268_v58 = vld [vmem:[#allocation37_spill] sm:$0xff] }
 0x728   : > { %13558 = vrcp.f32 %v5057_v45 }
 0x729   : > { %13560 = vpow2.f32 %v4749_v26 }
 0x72a   : > { %v13085_v33 = vpop.permute.xlu1 %13084  ;;  %13562 = vrcp.f32 %v17291_v2 }
 0x72b   : > { %v13087_v46 = vunpack.i.h.bf16 %v13085_v33  ;;  %v13086_v9 = vunpack.i.l.bf16 %v13085_v33  ;;  %13564 = vrcp.f32 %v17299_v39  ;;  %v4751_v39 = vmul.f32 1.442695, %v4521_v32 }
 0x72c   : > { %13566 = vrcp.f32 %v5066_v61  ;;  %v4522_v32 = vsub.f32 %v19268_v58, %v16642_v55 }
 0x72d   : > { %v13549_v11 = vpop.eup %13548  ;;  %v12452_v5 = vpack.c.bf16 %v13087_v46, %v13086_v9  ;;  %13568 = vpow2.f32 %v4747_v42 }
 0x72e   : > { %v13551_v12 = vpop.eup %13550  ;;  %v5403_v4 = vmul.f32 %v13549_v11, %v17187_v24  ;;  %13570 = vpow2.f32 %v4751_v39 }
 0x72f   : > { %v13553_v45 = vpop.eup %13552  ;;  %12453 = vmatprep.subr.bf16.mxu1 %v12452_v5  ;;  %v5396_v2 = vmul.f32 %v13551_v12, %v17047_v34 }
 0x730   : > { %12455 = vmatpush3.bf16.msra.mxu1 %v12452_v5  ;;  %11570 = vmatprep.mubr.msk.f32.mxu0 %vm4034_vm3, %v5403_v4  ;;  %v17360_v17 = vpop.eup %13554  ;;  %v5397_v33 = vmul.f32 %v13553_v45, %v17055_v59 }
 0x731   : > { %v13557_v30 = vpop.eup %13556  ;;  %v5100_v24 = vsel %vm4034_vm3, %v17360_v17, 0.0 }
 0x732   : > { %v13559_v26 = vpop.eup %13558  ;;  %v5398_v61 = vmul.f32 %v13557_v30, %v17117_v16 }
 0x733   : > { %11543 = vmatmul.mubr.msk.f32.vlgmr.msra.gmra.mrb[128].mxu1 %vm4034_vm3, %v5396_v2  ;;  %v17366_v29 = vpop.eup %13560  ;;  %v5399_v34 = vmul.f32 %v13559_v26, %v17125_v52  ;;  %v19269_v26 = vld [vmem:[#allocation54_spill] sm:$0xff] }
 0x734   : > { %11545 = vmatprep.mubr.msk.f32.mxu1 %vm4034_vm3, %v5397_v33  ;;  %v13563_v60 = vpop.eup %13562  ;;  %v5106_v59 = vsel %vm4034_vm3, %v17366_v29, 0.0  ;;  %v4753_v33 = vmul.f32 1.442695, %v4522_v32  ;;  %v19271_v32 = vld [vmem:[#allocation93_spill] sm:$0xff] }
 0x735   : > { %v13565_v36 = vpop.eup %13564  ;;  %v5400_v7 = vmul.f32 %v13563_v60, %v17121_v20 }
 0x736   : > { %5101 = vadd.xlane.f32.xlu0 %v5100_v24  ;;  %v13567_v46 = vpop.eup %13566  ;;  %v5401_v9 = vmul.f32 %v13565_v36, %v17129_v57  ;;  %v19266_v57 = vld [vmem:[#allocation87_spill] sm:$0xff]  ;;  %v4524_v24 = vsub.f32 %v19269_v26, %v16755_v38  ;;  %13572 = vpow2.f32 %v4753_v33 }
 0x737   : > { %11546 = vmatmul.mubr.msk.f32.gmra.mrb[130].mxu1 %vm4034_vm3, %v5398_v61  ;;  %v17379_v16 = vpop.eup %13568  ;;  %v5402_v52 = vmul.f32 %v13567_v46, %v17169_v18  ;;  %v19267_v18 = vld [vmem:[#allocation90_spill] sm:$0xff] }
 0x738   : > { %11548 = vmatprep.mubr.msk.f32.mxu1 %vm4034_vm3, %v5399_v34  ;;  %v5103_v11 = vsel %vm4034_vm3, %v17379_v16, 0.0  ;;  %v17386_v5 = vpop.eup %13570  ;;  %v4757_v60 = vmul.f32 1.442695, %v4524_v24  ;;  %v19270_v34 = vld [vmem:[#allocation145_spill] sm:$0xff] }
 0x739   : > { %v5109_v20 = vsel %vm4034_vm3, %v17386_v5, 0.0  ;;  %v4523_v36 = vsub.f32 %v19270_v34, %v16751_v13 }
 0x73a   : > { %5107 = vadd.xlane.f32.xlu0 %v5106_v59  ;;  %13574 = vpow2.f32 %v4757_v60 }
 0x73b   : > { %11549 = vmatmul.mubr.msk.f32.gmra.mrb[132].mxu1 %vm4034_vm3, %v5400_v7 }
 0x73c   : > { %11551 = vmatprep.mubr.msk.f32.mxu1 %vm4034_vm3, %v5401_v9  ;;  %v4755_v9 = vmul.f32 1.442695, %v4523_v36 }
 0x73e   : > { %13576 = vpow2.f32 %v4755_v9 }
 0x73f   : > { %11552 = vmatmul.mubr.msk.f32.gmra.mrb[134].mxu1 %vm4034_vm3, %v5402_v52  ;;  %v4525_v52 = vsub.f32 %v16147_v51, %v16801_v22 }
 0x740   : > { %5104 = vadd.xlane.f32.xlu1 %v5103_v11  ;;  %v17408_v38 = vpop.eup %13572 }
 0x741   : > { %v4759_v11 = vmul.f32 1.442695, %v4525_v52 }
 0x743   : > { %13578 = vpow2.f32 %v4759_v11 }
 0x744   : > { %5110 = vadd.xlane.f32.xlu1 %v5109_v20  ;;  %v5112_v20 = vsel %vm4034_vm3, %v17408_v38, 0.0 }
 0x750   : > { %13109 = vrot.lane.b32.xlu0 %v19266_v57, %s13709_s10  ;;  %v17412_v57 = vpop.eup %13574 }
 0x751   : > { %v17392_v12 = vpop.xlane.xlu0 %5077  ;;  %v5118_v13 = vsel %vm4034_vm3, %v17412_v57, 0.0 }
 0x755   : > { %v17394_v42 = vpop.xlane.xlu0 %5083  ;;  %13114 = vrot.lane.b32.xlu1 %v19267_v18, %s13709_s10  ;;  %v17416_v18 = vpop.eup %13576 }
 0x756   : > { %v5115_v51 = vsel %vm4034_vm3, %v17416_v18, 0.0  ;;  %v17420_v22 = vpop.eup %13578 }
 0x757   : > { %v5121_v58 = vsel %vm4034_vm3, %v17420_v22, 0.0 }
 0x759   : > { %v13090_v4 = vpop.permute.xlu0 %13089 }
 0x75a   : > { %v13092_v45 = vunpack.i.h.bf16 %v13090_v4  ;;  %v13091_v2 = vunpack.i.l.bf16 %v13090_v4 }
 0x75b   : > { %v5081_v30 = vpop.xlane.xlu1 %5080 }
 0x75c   : > { %v12456_v39 = vpack.c.bf16 %v13092_v45, %v13091_v2  ;;  %v19272_v2 = vld [vmem:[#allocation96_spill] sm:$0xff] }
 0x75e   : > { %12457 = vmatprep.subr.bf16.mxu0 %v12456_v39 }
 0x75f   : > { %v17402_v61 = vpop.xlane.xlu1 %5086  ;;  %12459 = vmatpush3.bf16.msra.mxu0 %v12456_v39  ;;  %v4526_v39 = vsub.f32 %v16143_v6, %v16803_v54 }
 0x761   : > { %v4761_v36 = vmul.f32 1.442695, %v4526_v39 }
 0x763   : > { %v13095_v59 = vpop.permute.xlu1 %13094 }
 0x764   : > { %v13097_v55 = vunpack.i.h.bf16 %v13095_v59  ;;  %v13096_v7 = vunpack.i.l.bf16 %v13095_v59  ;;  %v4528_v59 = vsub.f32 %v16159_v63, %v16857_v40  ;;  %v4527_v63 = vsub.f32 %v16161_v23, %v16847_v15 }
 0x766   : > { %v12460_v46 = vpack.c.bf16 %v13097_v55, %v13096_v7 }
 0x768   : > { %12461 = vmatprep.subr.bf16.mxu0 %v12460_v46 }
 0x769   : > { %12463 = vmatpush3.bf16.msra.mxu0 %v12460_v46  ;;  %v4765_v46 = vmul.f32 1.442695, %v4528_v59 }
 0x76f   : > { %5113 = vadd.xlane.f32.xlu0 %v5112_v20 }
 0x773   : > { %5119 = vadd.xlane.f32.xlu0 %v5118_v13 }
 0x779   : > { %5116 = vadd.xlane.f32.xlu1 %v5115_v51 }
 0x77d   : > { %5122 = vadd.xlane.f32.xlu1 %v5121_v58 }
 0x789   : > { %13119 = vrot.lane.b32.xlu0 %v19271_v32, %s13709_s10 }
 0x78a   : > { %v5090_v4 = vpop.xlane.xlu0 %5089 }
 0x78e   : > { %v17426_v45 = vpop.xlane.xlu0 %5095  ;;  %13124 = vrot.lane.b32.xlu1 %v19272_v2, %s13709_s10 }
 0x792   : > { %v13100_v33 = vpop.permute.xlu0 %13099 }
 0x793   : > { %v13102_v26 = vunpack.i.h.bf16 %v13100_v33  ;;  %v13101_v24 = vunpack.i.l.bf16 %v13100_v33 }
 0x794   : > { %v5093_v60 = vpop.xlane.xlu1 %5092  ;;  %v17432_v34 = vpop.f32.mrb[200].mxu0 }
 0x795   : > { %v12464_v55 = vpack.c.bf16 %v13102_v26, %v13101_v24  ;;  %13580 = vrcp.f32 %v5093_v60  ;;  %v17436_v7 = vpop.f32.mrb[201].mxu0 }
 0x796   : > { %13582 = vrcp.f32 %v17335_v19 }
 0x797   : > { %13584 = vrcp.f32 %v17349_v28  ;;  %12465 = vmatprep.subr.bf16.mxu0 %v12464_v55 }
 0x798   : > { %v17440_v6 = vpop.xlane.xlu1 %5098  ;;  %v17442_v54 = vpop.f32.mrb[202].mxu0  ;;  %12467 = vmatpush3.bf16.msra.mxu0 %v12464_v55  ;;  %13586 = vpow2.f32 %v4761_v36 }
 0x799   : > { %v17444_v9 = vpop.f32.mrb[203].mxu0  ;;  %13588 = vrcp.f32 %v17392_v12  ;;  %v4763_v12 = vmul.f32 1.442695, %v4527_v63 }
 0x79a   : > { %13590 = vrcp.f32 %v5081_v30  ;;  %v4529_v30 = vsub.f32 %v16173_v0, %v16893_v31 }
 0x79b   : > { %13592 = vpow2.f32 %v4765_v46 }
 0x79c   : > { %v13105_v40 = vpop.permute.xlu1 %13104  ;;  %v17449_v19 = vpop.f32.mrb[204].mxu0  ;;  %13594 = vrcp.f32 %v17394_v42  ;;  %v4767_v39 = vmul.f32 1.442695, %v4529_v30 }
 0x79d   : > { %v13107_v28 = vunpack.i.h.bf16 %v13105_v40  ;;  %v13106_v52 = vunpack.i.l.bf16 %v13105_v40  ;;  %v17451_v11 = vpop.f32.mrb[205].mxu0  ;;  %13596 = vrcp.f32 %v17402_v61 }
 0x79e   : > { %13598 = vrcp.f32 %v5090_v4 }
 0x79f   : > { %v13581_v20 = vpop.eup %13580  ;;  %v12468_v13 = vpack.c.bf16 %v13107_v28, %v13106_v52  ;;  %13600 = vpow2.f32 %v4763_v12  ;;  %v19275_v28 = vld [vmem:[#allocation146_spill] sm:$0xff] }
 0x7a0   : > { %v13583_v51 = vpop.eup %13582  ;;  %v17457_v23 = vpop.f32.mrb[206].mxu0  ;;  %v5411_v15 = vmul.f32 %v13581_v20, %v17313_v56  ;;  %13602 = vpow2.f32 %v4767_v39  ;;  %v4530_v52 = vsub.f32 %v19275_v28, %v16930_v47 }
 0x7a1   : > { %v13585_v58 = vpop.eup %13584  ;;  %v17460_v32 = vpop.f32.mrb[207].mxu0  ;;  %12469 = vmatprep.subr.bf16.mxu0 %v12468_v13  ;;  %v5404_v61 = vmul.f32 %v13583_v51, %v17177_v3 }
 0x7a2   : > { %12471 = vmatpush3.bf16.msra.mxu0 %v12468_v13  ;;  %11598 = vmatprep.mubr.msk.f32.mxu1 %vm4034_vm3, %v5411_v15  ;;  %v17463_v42 = vpop.eup %13586  ;;  %v5405_v0 = vmul.f32 %v13585_v58, %v17199_v8  ;;  %v4769_v15 = vmul.f32 1.442695, %v4530_v52  ;;  %v19276_v58 = vld [vmem:[#allocation52_spill] sm:$0xff] }
 0x7a3   : > { %v13589_v2 = vpop.eup %13588  ;;  %v5124_v4 = vsel %vm4034_vm3, %v17463_v42, 0.0 }
 0x7a4   : > { %v13591_v31 = vpop.eup %13590  ;;  %v5406_v33 = vmul.f32 %v13589_v2, %v17257_v1  ;;  %13604 = vpow2.f32 %v4769_v15  ;;  %v19283_v15 = vld [vmem:[#allocation85_spill] sm:$0xff] }
 0x7a5   : > { %11571 = vmatmul.mubr.msk.f32.vlgmr.msra.gmra.mrb[208].mxu0 %vm4034_vm3, %v5404_v61  ;;  %v17469_v56 = vpop.eup %13592  ;;  %v5407_v3 = vmul.f32 %v13591_v31, %v17276_v27  ;;  %v4532_v61 = vsub.f32 %v19276_v58, %v17016_v43  ;;  %v19278_v31 = vld [vmem:[#allocation50_spill] sm:$0xff]  ;;  %v19284_v58 = vld [vmem:[#allocation72_spill] sm:$0xff] }
 0x7a6   : > { %11573 = vmatprep.mubr.msk.f32.mxu0 %vm4034_vm3, %v5405_v0  ;;  %v13595_v26 = vpop.eup %13594  ;;  %v5130_v8 = vsel %vm4034_vm3, %v17469_v56, 0.0  ;;  %v19277_v0 = vld [vmem:[#allocation81_spill] sm:$0xff] }
 0x7a7   : > { %v13597_v24 = vpop.eup %13596  ;;  %v5408_v60 = vmul.f32 %v13595_v26, %v17263_v62  ;;  %v4773_v39 = vmul.f32 1.442695, %v4532_v61  ;;  %v4534_v61 = vsub.f32 %v19284_v58, %v19283_v15 }
 0x7a8   : > { %5125 = vadd.xlane.f32.xlu0 %v5124_v4  ;;  %v13599_v36 = vpop.eup %13598  ;;  %v5409_v59 = vmul.f32 %v13597_v24, %v17283_v37  ;;  %v19273_v37 = vld [vmem:[#allocation103_spill] sm:$0xff]  ;;  %v4531_v4 = vsub.f32 %v19278_v31, %v19277_v0 }
 0x7a9   : > { %11574 = vmatmul.mubr.msk.f32.gmra.mrb[210].mxu0 %vm4034_vm3, %v5406_v33  ;;  %v17482_v1 = vpop.eup %13600  ;;  %v5410_v27 = vmul.f32 %v13599_v36, %v17305_v50  ;;  %v19274_v50 = vld [vmem:[#allocation104_spill] sm:$0xff]  ;;  %13606 = vpow2.f32 %v4773_v39 }
 0x7aa   : > { %11576 = vmatprep.mubr.msk.f32.mxu0 %vm4034_vm3, %v5407_v3  ;;  %v5127_v55 = vsel %vm4034_vm3, %v17482_v1, 0.0  ;;  %v17489_v46 = vpop.eup %13602  ;;  %v4771_v24 = vmul.f32 1.442695, %v4531_v4 }
 0x7ab   : > { %v5133_v62 = vsel %vm4034_vm3, %v17489_v46, 0.0 }
 0x7ac   : > { %5131 = vadd.xlane.f32.xlu0 %v5130_v8  ;;  %v19279_v8 = vld [vmem:[#allocation83_spill] sm:$0xff]  ;;  %13608 = vpow2.f32 %v4771_v24 }
 0x7ad   : > { %11577 = vmatmul.mubr.msk.f32.gmra.mrb[212].mxu0 %vm4034_vm3, %v5408_v60  ;;  %v19280_v60 = vld [vmem:[#allocation70_spill] sm:$0xff] }
 0x7ae   : > { %11579 = vmatprep.mubr.msk.f32.mxu0 %vm4034_vm3, %v5409_v59  ;;  %v4533_v36 = vsub.f32 %v19280_v60, %v19279_v8  ;;  %v17509_v43 = vpop.eup %13604  ;;  %v19285_v60 = vsub.f32 %v19126_v48, %v17063_v49  ;;  %v19286_v49 = vld [vmem:[#allocation79_spill] sm:$0xff] }
 0x7b0   : > { %v4775_v59 = vmul.f32 1.442695, %v4533_v36  ;;  %v4781_v36 = vmul.f32 1.442695, %v19285_v60 }
 0x7b1   : > { %11580 = vmatmul.mubr.msk.f32.gmra.mrb[214].mxu0 %vm4034_vm3, %v5410_v27  ;;  %v5136_v27 = vsel %vm4034_vm3, %v17509_v43, 0.0 }
 0x7b2   : > { %5128 = vadd.xlane.f32.xlu1 %v5127_v55  ;;  %13610 = vpow2.f32 %v4775_v59 }
 0x7b3   : > { %v17513_v55 = vpop.eup %13606 }
 0x7b6   : > { %5134 = vadd.xlane.f32.xlu1 %v5133_v62  ;;  %v5142_v62 = vsel %vm4034_vm3, %v17513_v55, 0.0 }
 0x7c2   : > { %13129 = vrot.lane.b32.xlu0 %v19273_v37, %s13709_s10  ;;  %v17517_v37 = vpop.eup %13608 }
 0x7c3   : > { %v17495_v63 = vpop.xlane.xlu0 %5101  ;;  %v17521_v28 = vpop.eup %13610 }
 0x7c4   : > { %v5145_v52 = vsel %vm4034_vm3, %v17521_v28, 0.0 }
 0x7c7   : > { %v17497_v40 = vpop.xlane.xlu0 %5107  ;;  %13134 = vrot.lane.b32.xlu1 %v19274_v50, %s13709_s10  ;;  %v5139_v50 = vsel %vm4034_vm3, %v17517_v37, 0.0 }
 0x7cb   : > { %v13110_v20 = vpop.permute.xlu0 %13109 }
 0x7cc   : > { %v13112_v13 = vunpack.i.h.bf16 %v13110_v20  ;;  %v13111_v51 = vunpack.i.l.bf16 %v13110_v20  ;;  %v19281_v20 = vld [vmem:[#allocation108_spill] sm:$0xff] }
 0x7cd   : > { %v5105_v12 = vpop.xlane.xlu1 %5104 }
 0x7ce   : > { %v12472_v30 = vpack.c.bf16 %v13112_v13, %v13111_v51 }
 0x7d0   : > { %12473 = vmatprep.subr.bf16.mxu1 %v12472_v30 }
 0x7d1   : > { %v5111_v2 = vpop.xlane.xlu1 %5110  ;;  %12475 = vmatpush3.bf16.msra.mxu1 %v12472_v30  ;;  %v19282_v30 = vld [vmem:[#allocation111_spill] sm:$0xff] }
 0x7d5   : > { %v13115_v33 = vpop.permute.xlu1 %13114 }
 0x7d6   : > { %v13117_v26 = vunpack.i.h.bf16 %v13115_v33  ;;  %v13116_v47 = vunpack.i.l.bf16 %v13115_v33 }
 0x7d8   : > { %v12476_v3 = vpack.c.bf16 %v13117_v26, %v13116_v47  ;;  %v4777_v26 = vmul.f32 1.442695, %v4534_v61 }
 0x7da   : > { %12477 = vmatprep.subr.bf16.mxu1 %v12476_v3 }
 0x7db   : > { %12479 = vmatpush3.bf16.msra.mxu1 %v12476_v3 }
 0x7e1   : > { %5137 = vadd.xlane.f32.xlu0 %v5136_v27 }
 0x7e5   : > { %5143 = vadd.xlane.f32.xlu0 %v5142_v62 }
 0x7eb   : > { %5140 = vadd.xlane.f32.xlu1 %v5139_v50 }
 0x7ef   : > { %5146 = vadd.xlane.f32.xlu1 %v5145_v52 }
 0x7fb   : > { %13139 = vrot.lane.b32.xlu0 %v19281_v20, %s13709_s10 }
 0x7fc   : > { %v5114_v13 = vpop.xlane.xlu0 %5113 }
 0x800   : > { %v17527_v51 = vpop.xlane.xlu0 %5119  ;;  %13144 = vrot.lane.b32.xlu1 %v19282_v30, %s13709_s10  ;;  %v19287_v30 = vld [vmem:[#allocation45_spill] sm:$0xff] }
 0x801   : > { %v19288_v15 = vsub.f32 %v19286_v49, %v19287_v30 }
 0x803   : > { %v4779_v58 = vmul.f32 1.442695, %v19288_v15 }
 0x804   : > { %v13120_v39 = vpop.permute.xlu0 %13119 }
 0x805   : > { %v13122_v0 = vunpack.i.h.bf16 %v13120_v39  ;;  %v13121_v31 = vunpack.i.l.bf16 %v13120_v39 }
 0x806   : > { %v5117_v4 = vpop.xlane.xlu1 %5116  ;;  %v17533_v33 = vpop.f32.mrb[128].mxu1 }
 0x807   : > { %v12480_v47 = vpack.c.bf16 %v13122_v0, %v13121_v31  ;;  %13612 = vrcp.f32 %v5117_v4  ;;  %v17535_v3 = vpop.f32.mrb[129].mxu1  ;;  %v19289_v31 = vld [vmem:[#allocation48_spill] sm:$0xff] }
 0x808   : > { %13614 = vrcp.f32 %v17426_v45  ;;  %v19290_v4 = vsub.f32 %v19128_v10, %v19289_v31 }
 0x809   : > { %13616 = vrcp.f32 %v17440_v6  ;;  %12481 = vmatprep.subr.bf16.mxu1 %v12480_v47 }
 0x80a   : > { %v17539_v24 = vpop.xlane.xlu1 %5122  ;;  %v17541_v8 = vpop.f32.mrb[130].mxu1  ;;  %12483 = vmatpush3.bf16.msra.mxu1 %v12480_v47  ;;  %13618 = vpow2.f32 %v4777_v26  ;;  %v4783_v26 = vmul.f32 1.442695, %v19290_v4 }
 0x80b   : > { %v17546_v59 = vpop.f32.mrb[131].mxu1  ;;  %13620 = vrcp.f32 %v17495_v63 }
 0x80c   : > { %13622 = vrcp.f32 %v5105_v12 }
 0x80d   : > { %13624 = vpow2.f32 %v4781_v36 }
 0x80e   : > { %v13125_v27 = vpop.permute.xlu1 %13124  ;;  %v17549_v45 = vpop.f32.mrb[132].mxu1  ;;  %13626 = vrcp.f32 %v17497_v40 }
 0x80f   : > { %v13127_v6 = vunpack.i.h.bf16 %v13125_v27  ;;  %v13126_v62 = vunpack.i.l.bf16 %v13125_v27  ;;  %v17551_v50 = vpop.f32.mrb[133].mxu1  ;;  %13628 = vrcp.f32 %v5111_v2 }
 0x810   : > { %13630 = vrcp.f32 %v5114_v13 }
 0x811   : > { %v13613_v52 = vpop.eup %13612  ;;  %v12484_v20 = vpack.c.bf16 %v13127_v6, %v13126_v62  ;;  %13632 = vpow2.f32 %v4779_v58 }
 0x812   : > { %v13615_v48 = vpop.eup %13614  ;;  %v17557_v63 = vpop.f32.mrb[134].mxu1  ;;  %v5419_v12 = vmul.f32 %v13613_v52, %v17416_v18  ;;  %13634 = vpow2.f32 %v4783_v26 }
 0x813   : > { %v13617_v61 = vpop.eup %13616  ;;  %v17560_v39 = vpop.f32.mrb[135].mxu1  ;;  %12485 = vmatprep.subr.bf16.mxu1 %v12484_v20  ;;  %v5412_v2 = vmul.f32 %v13615_v48, %v17309_v44 }
 0x814   : > { %12487 = vmatpush3.bf16.msra.mxu1 %v12484_v20  ;;  %11626 = vmatprep.mubr.msk.f32.mxu0 %vm4034_vm3, %v5419_v12  ;;  %v17563_v40 = vpop.eup %13618  ;;  %v5413_v18 = vmul.f32 %v13617_v61, %v17317_v14 }
 0x815   : > { %v13621_v0 = vpop.eup %13620  ;;  %v5148_v60 = vsel %vm4034_vm3, %v17563_v40, 0.0 }
 0x816   : > { %v13623_v47 = vpop.eup %13622  ;;  %v5414_v44 = vmul.f32 %v13621_v0, %v17360_v17  ;;  %v19293_v0 = vld [vmem:[#allocation30_spill] sm:$0xff] }
 0x817   : > { %11599 = vmatmul.mubr.msk.f32.vlgmr.msra.gmra.mrb[136].mxu1 %vm4034_vm3, %v5412_v2  ;;  %v17572_v13 = vpop.eup %13624  ;;  %v5415_v10 = vmul.f32 %v13623_v47, %v17379_v16  ;;  %v19294_v31 = vsub.f32 %v19133_v53, %v19293_v0  ;;  %v19296_v47 = vld [vmem:[#allocation100_spill] sm:$0xff] }
 0x818   : > { %11601 = vmatprep.mubr.msk.f32.mxu1 %vm4034_vm3, %v5413_v18  ;;  %v13627_v36 = vpop.eup %13626  ;;  %v5154_v14 = vsel %vm4034_vm3, %v17572_v13, 0.0  ;;  %v19295_v18 = vld [vmem:[#allocation114_spill] sm:$0xff] }
 0x819   : > { %v13629_v27 = vpop.eup %13628  ;;  %v5416_v6 = vmul.f32 %v13627_v36, %v17366_v29  ;;  %v4785_v4 = vmul.f32 1.442695, %v19294_v31 }
 0x81a   : > { %5149 = vadd.xlane.f32.xlu0 %v5148_v60  ;;  %v13631_v62 = vpop.eup %13630  ;;  %v5417_v52 = vmul.f32 %v13629_v27, %v17386_v5  ;;  %v19291_v5 = vld [vmem:[#allocation115_spill] sm:$0xff]  ;;  %v19297_v60 = vsub.f32 %v19295_v18, %v19296_v47  ;;  %v19304_v18 = vld [vmem:[#allocation121_spill] sm:$0xff] }
 0x81b   : > { %11602 = vmatmul.mubr.msk.f32.gmra.mrb[138].mxu1 %vm4034_vm3, %v5414_v44  ;;  %v17585_v17 = vpop.eup %13632  ;;  %v5418_v16 = vmul.f32 %v13631_v62, %v17408_v38  ;;  %v19292_v38 = vld [vmem:[#allocation118_spill] sm:$0xff]  ;;  %13636 = vpow2.f32 %v4785_v4  ;;  %v19299_v62 = vld [vmem:[#allocation35_spill] sm:$0xff] }
 0x81c   : > { %11604 = vmatprep.mubr.msk.f32.mxu1 %vm4034_vm3, %v5415_v10  ;;  %v5151_v20 = vsel %vm4034_vm3, %v17585_v17, 0.0  ;;  %v17592_v48 = vpop.eup %13634  ;;  %v4789_v44 = vmul.f32 1.442695, %v19297_v60 }
 0x81d   : > { %v5157_v29 = vsel %vm4034_vm3, %v17592_v48, 0.0 }
 0x81e   : > { %5155 = vadd.xlane.f32.xlu0 %v5154_v14  ;;  %13638 = vpow2.f32 %v4789_v44  ;;  %v19305_v44 = vld [vmem:[#allocation124_spill] sm:$0xff] }
 0x81f   : > { %11605 = vmatmul.mubr.msk.f32.gmra.mrb[140].mxu1 %vm4034_vm3, %v5416_v6  ;;  %v19298_v6 = vld [vmem:[#allocation149_spill] sm:$0xff] }
 0x820   : > { %11607 = vmatprep.mubr.msk.f32.mxu1 %vm4034_vm3, %v5417_v52  ;;  %v19300_v52 = vsub.f32 %v19298_v6, %v19299_v62  ;;  %v19306_v62 = vld [vmem:[#allocation150_spill] sm:$0xff] }
 0x823   : > { %11608 = vmatmul.mubr.msk.f32.gmra.mrb[142].mxu1 %vm4034_vm3, %v5418_v16  ;;  %v4787_v16 = vmul.f32 1.442695, %v19300_v52  ;;  %v19307_v52 = vld [vmem:[#allocation123_spill] sm:$0xff] }
 0x824   : > { %5152 = vadd.xlane.f32.xlu1 %v5151_v20  ;;  %v19301_v20 = vld [vmem:[#allocation152_spill] sm:$0xff] }
 0x825   : > { %v17611_v53 = vpop.eup %13636  ;;  %13640 = vpow2.f32 %v4787_v16  ;;  %v19308_v16 = vsub.f32 %v19306_v62, %v19307_v52 }
 0x828   : > { %5158 = vadd.xlane.f32.xlu1 %v5157_v29  ;;  %v19302_v29 = vld [vmem:[#allocation110_spill] sm:$0xff] }
 0x834   : > { %13149 = vrot.lane.b32.xlu0 %v19291_v5, %s13709_s10  ;;  %v19303_v5 = vsub.f32 %v19301_v20, %v19302_v29  ;;  %v4793_v20 = vmul.f32 1.442695, %v19308_v16  ;;  %v19312_v16 = vld [vmem:[#allocation153_spill] sm:$0xff] }
 0x835   : > { %v5126_v49 = vpop.xlane.xlu0 %5125 }
 0x839   : > { %v17598_v30 = vpop.xlane.xlu0 %5131  ;;  %13154 = vrot.lane.b32.xlu1 %v19292_v38, %s13709_s10  ;;  %v4791_v38 = vmul.f32 1.442695, %v19303_v5 }
 0x83b   : > { %13642 = vpow2.f32 %v4791_v38 }
 0x83d   : > { %v13130_v15 = vpop.permute.xlu0 %13129 }
 0x83e   : > { %v13132_v58 = vunpack.i.h.bf16 %v13130_v15  ;;  %v13131_v12 = vunpack.i.l.bf16 %v13130_v15  ;;  %v5160_v15 = vsel %vm4034_vm3, %v17611_v53, 0.0 }
 0x83f   : > { %v5129_v61 = vpop.xlane.xlu1 %5128 }
 0x840   : > { %v12488_v2 = vpack.c.bf16 %v13132_v58, %v13131_v12  ;;  %v17618_v58 = vpop.eup %13638 }
 0x841   : > { %v5166_v12 = vsel %vm4034_vm3, %v17618_v58, 0.0 }
 0x842   : > { %12489 = vmatprep.subr.bf16.mxu0 %v12488_v2 }
 0x843   : > { %v5135_v26 = vpop.xlane.xlu1 %5134  ;;  %12491 = vmatpush3.bf16.msra.mxu0 %v12488_v2  ;;  %v17622_v2 = vpop.eup %13640 }
 0x844   : > { %v5163_v0 = vsel %vm4034_vm3, %v17622_v2, 0.0 }
 0x845   : > { %v17626_v31 = vpop.eup %13642 }
 0x846   : > { %v5169_v4 = vsel %vm4034_vm3, %v17626_v31, 0.0 }
 0x847   : > { %v13135_v36 = vpop.permute.xlu1 %13134 }
 0x848   : > { %v13137_v10 = vunpack.i.h.bf16 %v13135_v36  ;;  %v13136_v27 = vunpack.i.l.bf16 %v13135_v36 }
 0x84a   : > { %v12492_v14 = vpack.c.bf16 %v13137_v10, %v13136_v27 }
 0x84c   : > { %12493 = vmatprep.subr.bf16.mxu0 %v12492_v14 }
 0x84d   : > { %12495 = vmatpush3.bf16.msra.mxu0 %v12492_v14 }
 0x853   : > { %5161 = vadd.xlane.f32.xlu0 %v5160_v15 }
 0x857   : > { %5167 = vadd.xlane.f32.xlu0 %v5166_v12  ;;  %v19309_v12 = vld [vmem:[#allocation11_spill] sm:$0xff] }
 0x85d   : > { %5164 = vadd.xlane.f32.xlu1 %v5163_v0  ;;  %v19310_v0 = vld [vmem:[#allocation148_spill] sm:$0xff] }
 0x861   : > { %5170 = vadd.xlane.f32.xlu1 %v5169_v4  ;;  %v19311_v4 = vsub.f32 %v19309_v12, %v19310_v0 }
 0x86d   : > { %13159 = vrot.lane.b32.xlu0 %v19304_v18, %s13709_s10  ;;  %v4797_v18 = vmul.f32 1.442695, %v19311_v4 }
 0x86e   : > { %v5138_v47 = vpop.xlane.xlu0 %5137 }
 0x872   : > { %v17632_v60 = vpop.xlane.xlu0 %5143  ;;  %13164 = vrot.lane.b32.xlu1 %v19305_v44, %s13709_s10 }
 0x876   : > { %v13140_v36 = vpop.permute.xlu0 %13139 }
 0x877   : > { %v13142_v10 = vunpack.i.h.bf16 %v13140_v36  ;;  %v13141_v27 = vunpack.i.l.bf16 %v13140_v36 }
 0x878   : > { %v5141_v14 = vpop.xlane.xlu1 %5140  ;;  %v17636_v6 = vpop.f32.mrb[208].mxu0 }
 0x879   : > { %v12496_v29 = vpack.c.bf16 %v13142_v10, %v13141_v27  ;;  %13644 = vrcp.f32 %v5141_v14  ;;  %v17641_v5 = vpop.f32.mrb[209].mxu0 }
 0x87a   : > { %13646 = vrcp.f32 %v17527_v51 }
 0x87b   : > { %13648 = vrcp.f32 %v17539_v24  ;;  %12497 = vmatprep.subr.bf16.mxu0 %v12496_v29 }
 0x87c   : > { %v17645_v38 = vpop.xlane.xlu1 %5146  ;;  %v17647_v15 = vpop.f32.mrb[210].mxu0  ;;  %12499 = vmatpush3.bf16.msra.mxu0 %v12496_v29  ;;  %13650 = vpow2.f32 %v4793_v20  ;;  %v19313_v20 = vld [vmem:[#allocation154_spill] sm:$0xff] }
 0x87d   : > { %v17652_v44 = vpop.f32.mrb[211].mxu0  ;;  %13652 = vrcp.f32 %v5126_v49  ;;  %v19314_v29 = vsub.f32 %v19312_v16, %v19313_v20 }
 0x87e   : > { %13654 = vrcp.f32 %v5129_v61 }
 0x87f   : > { %13656 = vpow2.f32 %v4797_v18  ;;  %v4795_v12 = vmul.f32 1.442695, %v19314_v29 }
 0x880   : > { %v13145_v36 = vpop.permute.xlu1 %13144  ;;  %v17654_v10 = vpop.f32.mrb[212].mxu0  ;;  %13658 = vrcp.f32 %v17598_v30 }
 0x881   : > { %v13147_v51 = vunpack.i.h.bf16 %v13145_v36  ;;  %v13146_v24 = vunpack.i.l.bf16 %v13145_v36  ;;  %v17656_v27 = vpop.f32.mrb[213].mxu0  ;;  %13660 = vrcp.f32 %v5135_v26  ;;  %v19315_v36 = vsub.f32 %v19181_v35, %v17231_v21 }
 0x882   : > { %13662 = vrcp.f32 %v5138_v47 }
 0x883   : > { %v13645_v14 = vpop.eup %13644  ;;  %v12500_v62 = vpack.c.bf16 %v13147_v51, %v13146_v24  ;;  %13664 = vpow2.f32 %v4795_v12  ;;  %v4799_v51 = vmul.f32 1.442695, %v19315_v36 }
 0x884   : > { %v13647_v52 = vpop.eup %13646  ;;  %v17662_v49 = vpop.f32.mrb[214].mxu0  ;;  %v5427_v61 = vmul.f32 %v13645_v14, %v17517_v37 }
 0x885   : > { %v13649_v0 = vpop.eup %13648  ;;  %v17665_v4 = vpop.f32.mrb[215].mxu0  ;;  %12501 = vmatprep.subr.bf16.mxu0 %v12500_v62  ;;  %v5420_v26 = vmul.f32 %v13647_v52, %v17412_v57  ;;  %13666 = vpow2.f32 %v4799_v51 }
 0x886   : > { %12503 = vmatpush3.bf16.msra.mxu0 %v12500_v62  ;;  %11654 = vmatprep.mubr.msk.f32.mxu1 %vm4034_vm3, %v5427_v61  ;;  %v17668_v30 = vpop.eup %13650  ;;  %v5421_v37 = vmul.f32 %v13649_v0, %v17420_v22 }
 0x887   : > { %v13653_v18 = vpop.eup %13652  ;;  %v5172_v14 = vsel %vm4034_vm3, %v17668_v30, 0.0 }
 0x888   : > { %v13655_v24 = vpop.eup %13654  ;;  %v5422_v57 = vmul.f32 %v13653_v18, %v17463_v42  ;;  %v19318_v18 = vld [vmem:[#allocation131_spill] sm:$0xff] }
 0x889   : > { %11627 = vmatmul.mubr.msk.f32.vlgmr.msra.gmra.mrb[216].mxu0 %vm4034_vm3, %v5420_v26  ;;  %v17677_v47 = vpop.eup %13656  ;;  %v5423_v35 = vmul.f32 %v13655_v24, %v17482_v1  ;;  %v19317_v26 = vld [vmem:[#allocation130_spill] sm:$0xff] }
 0x88a   : > { %11629 = vmatprep.mubr.msk.f32.mxu0 %vm4034_vm3, %v5421_v37  ;;  %v13659_v62 = vpop.eup %13658  ;;  %v5178_v22 = vsel %vm4034_vm3, %v17677_v47, 0.0 }
 0x88b   : > { %v13661_v21 = vpop.eup %13660  ;;  %v5424_v52 = vmul.f32 %v13659_v62, %v17469_v56 }
 0x88c   : > { %5173 = vadd.xlane.f32.xlu0 %v5172_v14  ;;  %v13663_v16 = vpop.eup %13662  ;;  %v5425_v20 = vmul.f32 %v13661_v21, %v17489_v46  ;;  %v19316_v46 = vld [vmem:[#allocation127_spill] sm:$0xff]  ;;  %v19319_v14 = vld [vmem:[#allocation68_spill] sm:$0xff] }
 0x88d   : > { %11630 = vmatmul.mubr.msk.f32.gmra.mrb[218].mxu0 %vm4034_vm3, %v5422_v57  ;;  %v17690_v42 = vpop.eup %13664  ;;  %v5426_v1 = vmul.f32 %v13663_v16, %v17509_v43  ;;  %v19320_v57 = vsub.f32 %v19183_v41, %v19319_v14 }
 0x88e   : > { %11632 = vmatprep.mubr.msk.f32.mxu0 %vm4034_vm3, %v5423_v35  ;;  %v5175_v29 = vsel %vm4034_vm3, %v17690_v42, 0.0  ;;  %v19321_v35 = vld [vmem:[#allocation132_spill] sm:$0xff] }
 0x88f   : > { %v17697_v12 = vpop.eup %13666  ;;  %v4801_v62 = vmul.f32 1.442695, %v19320_v57 }
 0x890   : > { %5179 = vadd.xlane.f32.xlu0 %v5178_v22  ;;  %v5181_v56 = vsel %vm4034_vm3, %v17697_v12, 0.0 }
 0x891   : > { %11633 = vmatmul.mubr.msk.f32.gmra.mrb[220].mxu0 %vm4034_vm3, %v5424_v52  ;;  %13668 = vpow2.f32 %v4801_v62 }
 0x892   : > { %11635 = vmatprep.mubr.msk.f32.mxu0 %vm4034_vm3, %v5425_v20 }
 0x895   : > { %11636 = vmatmul.mubr.msk.f32.gmra.mrb[222].mxu0 %vm4034_vm3, %v5426_v1 }
 0x896   : > { %5176 = vadd.xlane.f32.xlu1 %v5175_v29 }
 0x89a   : > { %5182 = vadd.xlane.f32.xlu1 %v5181_v56 }
 0x89b   : > { %v17712_v1 = vpop.eup %13668 }
 0x89c   : > { %v5184_v29 = vsel %vm4034_vm3, %v17712_v1, 0.0 }
 0x8a6   : > { %13169 = vrot.lane.b32.xlu0 %v19316_v46, %s13709_s10 }
 0x8a7   : > { %v5150_v61 = vpop.xlane.xlu0 %5149 }
 0x8ab   : > { %v5156_v0 = vpop.xlane.xlu0 %5155  ;;  %13174 = vrot.lane.b32.xlu1 %v19317_v26, %s13709_s10 }
 0x8af   : > { %v13150_v43 = vpop.permute.xlu0 %13149  ;;  %13179 = vrot.lane.b32.xlu1 %v19318_v18, %s13709_s10 }
 0x8b0   : > { %v13152_v36 = vunpack.i.h.bf16 %v13150_v43  ;;  %v13151_v51 = vunpack.i.l.bf16 %v13150_v43 }
 0x8b1   : > { %v5153_v37 = vpop.xlane.xlu1 %5152 }
 0x8b2   : > { %v12504_v24 = vpack.c.bf16 %v13152_v36, %v13151_v51 }
 0x8b3   : > { %13184 = vrot.lane.b32.xlu1 %v19321_v35, %s13709_s10 }
 0x8b4   : > { %12505 = vmatprep.subr.bf16.mxu1 %v12504_v24 }
 0x8b5   : > { %v5159_v21 = vpop.xlane.xlu1 %5158  ;;  %12507 = vmatpush3.bf16.msra.mxu1 %v12504_v24 }
 0x8b9   : > { %v13155_v22 = vpop.permute.xlu1 %13154 }
 0x8ba   : > { %v13157_v52 = vunpack.i.h.bf16 %v13155_v22  ;;  %v13156_v16 = vunpack.i.l.bf16 %v13155_v22 }
 0x8bc   : > { %v12508_v20 = vpack.c.bf16 %v13157_v52, %v13156_v16 }
 0x8be   : > { %12509 = vmatprep.subr.bf16.mxu1 %v12508_v20 }
 0x8bf   : > { %12511 = vmatpush3.bf16.msra.mxu1 %v12508_v20 }
 0x8c5   : > { %5185 = vadd.xlane.f32.xlu0 %v5184_v29 }
 0x8e0   : > { %v5162_v41 = vpop.xlane.xlu0 %5161 }
 0x8e4   : > { %v17716_v56 = vpop.xlane.xlu0 %5167 }
 0x8e8   : > { %v13160_v46 = vpop.permute.xlu0 %13159 }
 0x8e9   : > { %v13162_v26 = vunpack.i.h.bf16 %v13160_v46  ;;  %v13161_v43 = vunpack.i.l.bf16 %v13160_v46 }
 0x8ea   : > { %v5165_v18 = vpop.xlane.xlu1 %5164  ;;  %v17718_v36 = vpop.f32.mrb[136].mxu1 }
 0x8eb   : > { %v12512_v51 = vpack.c.bf16 %v13162_v26, %v13161_v43  ;;  %13670 = vrcp.f32 %v5165_v18  ;;  %v17720_v24 = vpop.f32.mrb[137].mxu1 }
 0x8ec   : > { %13672 = vrcp.f32 %v17632_v60 }
 0x8ed   : > { %13674 = vrcp.f32 %v17645_v38  ;;  %12513 = vmatprep.subr.bf16.mxu1 %v12512_v51 }
 0x8ee   : > { %v17724_v14 = vpop.xlane.xlu1 %5170  ;;  %v17726_v57 = vpop.f32.mrb[138].mxu1  ;;  %12515 = vmatpush3.bf16.msra.mxu1 %v12512_v51  ;;  %13676 = vrcp.f32 %v5150_v61  ;;  %v17740_v61 = vld [vmem:[%s18413_s3] sm:$0xff] }
 0x8ef   : > { %v17728_v62 = vpop.f32.mrb[139].mxu1  ;;  %13678 = vrcp.f32 %v5153_v37 }
 0x8f0   : > { %13680 = vrcp.f32 %v5156_v0 }
 0x8f1   : > { %13682 = vrcp.f32 %v5159_v21 }
 0x8f2   : > { %v13165_v35 = vpop.permute.xlu1 %13164  ;;  %v17730_v22 = vpop.f32.mrb[140].mxu1  ;;  %13684 = vrcp.f32 %v5162_v41 }
 0x8f3   : > { %v13167_v52 = vunpack.i.h.bf16 %v13165_v35  ;;  %v13166_v16 = vunpack.i.l.bf16 %v13165_v35  ;;  %v17732_v20 = vpop.f32.mrb[141].mxu1  ;;  %13686 = vrcp.f32 %v17716_v56 }
 0x8f4   : > { %13688 = vrcp.f32 %v17724_v14 }
 0x8f5   : > { %v13671_v60 = vpop.eup %13670  ;;  %v12516_v38 = vpack.c.bf16 %v13167_v52, %v13166_v16 }
 0x8f6   : > { %v13673_v29 = vpop.eup %13672  ;;  %v17734_v46 = vpop.f32.mrb[142].mxu1  ;;  %v5435_v26 = vmul.f32 %v13671_v60, %v17622_v2 }
 0x8f7   : > { %v13675_v37 = vpop.eup %13674  ;;  %v17742_v43 = vpop.f32.mrb[143].mxu1  ;;  %12517 = vmatprep.subr.bf16.mxu1 %v12516_v38  ;;  %v5428_v0 = vmul.f32 %v13673_v29, %v17513_v55  ;;  %v19327_v29 = vld [vmem:[#allocation7_spill] sm:$0xff] }
 0x8f8   : > { %12519 = vmatpush3.bf16.msra.mxu1 %v12516_v38  ;;  %11682 = vmatprep.mubr.msk.f32.mxu0 %vm4034_vm3, %v5435_v26  ;;  %v13677_v21 = vpop.eup %13676  ;;  %v5429_v2 = vmul.f32 %v13675_v37, %v17521_v28  ;;  %v19324_v38 = vld [vmem:[#allocation61_spill] sm:$0xff]  ;;  %v19329_v26 = vld [vmem:[#allocation95_spill] sm:$0xff] }
 0x8f9   : > { %12536 = vmatprep.subr.mxu1 %v17740_v61  ;;  %v13679_v18 = vpop.eup %13678  ;;  %v5430_v51 = vmul.f32 %v13677_v21, %v17563_v40  ;;  %v19322_v40 = vld [vmem:[#allocation101_spill] sm:$0xff] }
 0x8fa   : > { %v13681_v41 = vpop.eup %13680  ;;  %v5431_v35 = vmul.f32 %v13679_v18, %v17585_v17  ;;  %v19323_v17 = vld [vmem:[#allocation56_spill] sm:$0xff] }
 0x8fb   : > { %11655 = vmatmul.mubr.msk.f32.vlgmr.msra.gmra.mrb[144].mxu1 %vm4034_vm3, %v5428_v0  ;;  %v13683_v52 = vpop.eup %13682  ;;  %v5432_v55 = vmul.f32 %v13681_v41, %v17572_v13  ;;  %v19325_v13 = vld [vmem:[#allocation59_spill] sm:$0xff]  ;;  %v19330_v0 = vld [vmem:[#allocation18_spill] sm:$0xff] }
 0x8fc   : > { %11657 = vmatprep.mubr.msk.f32.mxu1 %vm4034_vm3, %v5429_v2  ;;  %12537 = vmatpush3.msra.mxu1 %v17740_v61  ;;  %v13685_v28 = vpop.eup %13684  ;;  %v5433_v16 = vmul.f32 %v13683_v52, %v17592_v48  ;;  %v19326_v48 = vld [vmem:[#allocation24_spill] sm:$0xff] }
 0x8fd   : > { %v5434_v60 = vmul.f32 %v13685_v28, %v17611_v53  ;;  %v19328_v53 = vld [vmem:[#allocation151_spill] sm:$0xff]  ;;  %v13687_v52 = vpop.eup %13686 }
 0x8ff   : > { %11658 = vmatmul.mubr.msk.f32.gmra.mrb[146].mxu1 %vm4034_vm3, %v5430_v51 }
 0x900   : > { %11660 = vmatprep.mubr.msk.f32.mxu1 %vm4034_vm3, %v5431_v35 }
 0x903   : > { %11661 = vmatmul.mubr.msk.f32.gmra.mrb[148].mxu1 %vm4034_vm3, %v5432_v55 }
 0x904   : > { %11663 = vmatprep.mubr.msk.f32.mxu1 %vm4034_vm3, %v5433_v16  ;;  %v19341_v16 = vld [vmem:[#allocation28_spill] sm:$0xff] }
 0x907   : > { %11664 = vmatmul.mubr.msk.f32.gmra.mrb[150].mxu1 %vm4034_vm3, %v5434_v60  ;;  %v19342_v60 = vld [vmem:[#allocation117_spill] sm:$0xff] }
 0x908   : > { %11789 = vmatprep.mubr.msk.f32.mxu1 %vm1481_vm1, %v19322_v40  ;;  %v19343_v40 = vld [vmem:[#allocation77_spill] sm:$0xff] }
 0x90b   : > { %11790 = vmatmul.mubr.msk.f32.vlgmr.msra.gmra.mrb[152].mxu1 %vm1481_vm1, %v19323_v17  ;;  %v19344_v17 = vld [vmem:[#allocation16_spill] sm:$0xff] }
 0x90c   : > { %11792 = vmatprep.mubr.msk.f32.mxu1 %vm1481_vm1, %v19324_v38  ;;  %v19345_v38 = vld [vmem:[#allocation74_spill] sm:$0xff] }
 0x90f   : > { %11793 = vmatmul.mubr.msk.f32.gmra.mrb[154].mxu1 %vm1481_vm1, %v19325_v13  ;;  %v19346_v13 = vld [vmem:[#allocation120_spill] sm:$0xff] }
 0x910   : > { %11795 = vmatprep.mubr.msk.f32.mxu1 %vm1481_vm1, %v19326_v48  ;;  %v19347_v48 = vld [vmem:[#allocation32_spill] sm:$0xff] }
 0x913   : > { %11796 = vmatmul.mubr.msk.f32.gmra.mrb[156].mxu1 %vm1481_vm1, %v19327_v29  ;;  %v19348_v29 = vld [vmem:[#allocation116_spill] sm:$0xff] }
 0x914   : > { %11798 = vmatprep.mubr.msk.f32.mxu1 %vm1481_vm1, %v19328_v53  ;;  %v19349_v53 = vld [vmem:[#allocation128_spill] sm:$0xff] }
 0x917   : > { %11799 = vmatmul.mubr.msk.f32.gmra.mrb[158].mxu1 %vm1481_vm1, %v19329_v26  ;;  %v19350_v26 = vld [vmem:[#allocation19_spill] sm:$0xff] }
 0x918   : > { %11801 = vmatprep.mubr.msk.f32.mxu1 %vm1481_vm1, %v17343_v25 }
 0x919   : > { %v5174_v37 = vpop.xlane.xlu0 %5173 }
 0x91a   : > { %13690 = vrcp.f32 %v5174_v37  ;;  %v19351_v37 = vld [vmem:[#allocation76_spill] sm:$0xff] }
 0x91b   : > { %11802 = vmatmul.mubr.msk.f32.gmra.mrb[160].mxu1 %vm1481_vm1, %v19330_v0  ;;  %v19352_v0 = vld [vmem:[#allocation5_spill] sm:$0xff] }
 0x91c   : > { %11804 = vmatprep.mubr.msk.f32.mxu1 %vm1481_vm1, %v17436_v7 }
 0x91d   : > { %v5180_v21 = vpop.xlane.xlu0 %5179 }
 0x91f   : > { %11805 = vmatmul.mubr.msk.f32.gmra.mrb[162].mxu1 %vm1481_vm1, %v17432_v34 }
 0x920   : > { %11807 = vmatprep.mubr.msk.f32.mxu1 %vm1481_vm1, %v17444_v9 }
 0x921   : > { %v13170_v2 = vpop.permute.xlu0 %13169 }
 0x922   : > { %v13172_v18 = vunpack.i.h.bf16 %v13170_v2  ;;  %v13171_v51 = vunpack.i.l.bf16 %v13170_v2  ;;  %v19354_v2 = vld [vmem:[#allocation4_spill] sm:$0xff] }
 0x923   : > { %v5177_v41 = vpop.xlane.xlu1 %5176  ;;  %11808 = vmatmul.mubr.msk.f32.gmra.mrb[164].mxu1 %vm1481_vm1, %v17442_v54 }
 0x924   : > { %v12520_v25 = vpack.c.bf16 %v13172_v18, %v13171_v51  ;;  %11810 = vmatprep.mubr.msk.f32.mxu1 %vm1481_vm1, %v17451_v11  ;;  %13692 = vrcp.f32 %v5177_v41  ;;  %v19355_v18 = vld [vmem:[#allocation156_spill] sm:$0xff]  ;;  %v19357_v41 = vld [vmem:[#allocation158_spill] sm:$0xff] }
 0x925   : > { %13694 = vrcp.f32 %v5180_v21  ;;  %v19353_v21 = vld [vmem:[#allocation155_spill] sm:$0xff]  ;;  %v19356_v51 = vld [vmem:[#allocation36_spill] sm:$0xff] }
 0x926   : > { %12521 = vmatprep.subr.bf16.mxu0 %v12520_v25 }
 0x927   : > { %v5183_v7 = vpop.xlane.xlu1 %5182  ;;  %12523 = vmatpush3.bf16.msra.mxu0 %v12520_v25  ;;  %11811 = vmatmul.mubr.msk.f32.gmra.mrb[166].mxu1 %vm1481_vm1, %v17449_v19  ;;  %v19358_v25 = vld [vmem:[#allocation157_spill] sm:$0xff] }
 0x928   : > { %11813 = vmatprep.mubr.msk.f32.mxu1 %vm1481_vm1, %v17460_v32  ;;  %13696 = vrcp.f32 %v5183_v7  ;;  %v19359_v7 = vld [vmem:[#allocation137_spill] sm:$0xff] }
 0x92b   : > { %v13175_v34 = vpop.permute.xlu1 %13174  ;;  %11814 = vmatmul.mubr.msk.f32.gmra.mrb[168].mxu1 %vm1481_vm1, %v17457_v23 }
 0x92c   : > { %v13177_v9 = vunpack.i.h.bf16 %v13175_v34  ;;  %v13176_v35 = vunpack.i.l.bf16 %v13175_v34  ;;  %11816 = vmatprep.mubr.msk.f32.mxu1 %vm1481_vm1, %v17535_v3  ;;  %v19360_v34 = vld [vmem:[#allocation22_spill] sm:$0xff] }
 0x92e   : > { %v12524_v54 = vpack.c.bf16 %v13177_v9, %v13176_v35  ;;  %v19361_v9 = vld [vmem:[#allocation98_spill] sm:$0xff] }
 0x92f   : > { %v13180_v11 = vpop.permute.xlu1 %13179  ;;  %11817 = vmatmul.mubr.msk.f32.gmra.mrb[170].mxu1 %vm1481_vm1, %v17533_v33  ;;  %v19362_v35 = vld [vmem:[#allocation6_spill] sm:$0xff] }
 0x930   : > { %v13182_v19 = vunpack.i.h.bf16 %v13180_v11  ;;  %v13181_v32 = vunpack.i.l.bf16 %v13180_v11  ;;  %12525 = vmatprep.subr.bf16.mxu0 %v12524_v54  ;;  %11819 = vmatprep.mubr.msk.f32.mxu1 %vm1481_vm1, %v17546_v59  ;;  %v13689_v59 = vpop.eup %13688  ;;  %v19364_v11 = vld [vmem:[#allocation66_spill] sm:$0xff] }
 0x931   : > { %12527 = vmatpush3.bf16.msra.mxu0 %v12524_v54  ;;  %v13691_v55 = vpop.eup %13690  ;;  %v19363_v54 = vld [vmem:[#allocation53_spill] sm:$0xff] }
 0x932   : > { %v12528_v23 = vpack.c.bf16 %v13182_v19, %v13181_v32  ;;  %v13693_v28 = vpop.eup %13692  ;;  %v19365_v19 = vld [vmem:[#allocation41_spill] sm:$0xff]  ;;  %v19366_v32 = vld [vmem:[#allocation15_spill] sm:$0xff] }
 0x933   : > { %v13185_v3 = vpop.permute.xlu1 %13184  ;;  %11820 = vmatmul.mubr.msk.f32.gmra.mrb[172].mxu1 %vm1481_vm1, %v17541_v8  ;;  %v5436_v8 = vmul.f32 %v13687_v52, %v17618_v58  ;;  %v19372_v52 = vld [vmem:[#allocation9_spill] sm:$0xff] }
 0x934   : > { %v13187_v56 = vunpack.i.h.bf16 %v13185_v3  ;;  %v13186_v14 = vunpack.i.l.bf16 %v13185_v3  ;;  %12529 = vmatprep.subr.bf16.mxu0 %v12528_v23  ;;  %11822 = vmatprep.mubr.msk.f32.mxu1 %vm1481_vm1, %v17551_v50  ;;  %v5437_v50 = vmul.f32 %v13689_v59, %v17626_v31  ;;  %v19368_v3 = vld [vmem:[#allocation43_spill] sm:$0xff] }
 0x935   : > { %12531 = vmatpush3.bf16.msra.mxu0 %v12528_v23  ;;  %v19367_v23 = vld [vmem:[#allocation102_spill] sm:$0xff]  ;;  %v19373_v59 = vld [vmem:[#allocation139_spill] sm:$0xff] }
 0x936   : > { %v12532_v33 = vpack.c.bf16 %v13187_v56, %v13186_v14  ;;  %v19369_v56 = vld [vmem:[#allocation107_spill] sm:$0xff]  ;;  %v19370_v14 = vld [vmem:[#allocation97_spill] sm:$0xff] }
 0x937   : > { %11823 = vmatmul.mubr.msk.f32.gmra.mrb[174].mxu1 %vm1481_vm1, %v17549_v45  ;;  %v5438_v45 = vmul.f32 %v13691_v55, %v17668_v30  ;;  %v19331_v30 = vld [vmem:[#allocation57_spill] sm:$0xff]  ;;  %v19375_v55 = vld [vmem:[#allocation142_spill] sm:$0xff] }
 0x938   : > { %12533 = vmatprep.subr.bf16.mxu0 %v12532_v33  ;;  %11825 = vmatprep.mubr.msk.f32.mxu1 %vm1481_vm1, %v17560_v39  ;;  %v13695_v39 = vpop.eup %13694 }
 0x939   : > { %12535 = vmatpush3.bf16.msra.mxu0 %v12532_v33  ;;  %v13697_v58 = vpop.eup %13696  ;;  %v5440_v31 = vmul.f32 %v13695_v39, %v17677_v47  ;;  %v19371_v33 = vld [vmem:[#allocation39_spill] sm:$0xff] }
 0x93a   : > { %11694 = vmatprep.subr.mxu0 %v17740_v61  ;;  %v19379_v39 = vld [vmem:[#allocation51_spill] sm:$0xff] }
 0x93b   : > { %11826 = vmatmul.mubr.msk.f32.gmra.mrb[176].mxu1 %vm1481_vm1, %v17557_v63  ;;  %v5439_v63 = vmul.f32 %v13693_v28, %v17690_v42  ;;  %v19332_v42 = vld [vmem:[#allocation47_spill] sm:$0xff]  ;;  %v19377_v28 = vld [vmem:[#allocation46_spill] sm:$0xff] }
 0x93c   : > { %11683 = vmatmul.mubr.msk.f32.vlgmr.msra.gmra.mrb[224].mxu0 %vm4034_vm3, %v5436_v8  ;;  %11828 = vmatprep.mubr.msk.f32.mxu1 %vm1481_vm1, %v17641_v5  ;;  %v5441_v5 = vmul.f32 %v13697_v58, %v17697_v12  ;;  %v19374_v8 = vld [vmem:[#allocation25_spill] sm:$0xff]  ;;  %v19381_v58 = vld [vmem:[#allocation92_spill] sm:$0xff] }
 0x93d   : > { %11685 = vmatprep.mubr.msk.f32.mxu0 %vm4034_vm3, %v5437_v50  ;;  %11695 = vmatpush3.msra.mxu0 %v17740_v61  ;;  %v19339_v61 = vld [vmem:[#allocation58_spill] sm:$0xff]  ;;  %v19376_v50 = vld [vmem:[#allocation8_spill] sm:$0xff] }
 0x93f   : > { %11829 = vmatmul.mubr.msk.f32.gmra.mrb[178].mxu1 %vm1481_vm1, %v17636_v6 }
 0x940   : > { %11686 = vmatmul.mubr.msk.f32.gmra.mrb[226].mxu0 %vm4034_vm3, %v5438_v45  ;;  %11831 = vmatprep.mubr.msk.f32.mxu1 %vm1481_vm1, %v17652_v44  ;;  %v19378_v45 = vld [vmem:[#allocation14_spill] sm:$0xff] }
 0x941   : > { %11688 = vmatprep.mubr.msk.f32.mxu0 %vm4034_vm3, %v5439_v63  ;;  %v19380_v63 = vld [vmem:[#allocation126_spill] sm:$0xff] }
 0x943   : > { %11832 = vmatmul.mubr.msk.f32.gmra.mrb[180].mxu1 %vm1481_vm1, %v17647_v15 }
 0x944   : > { %11689 = vmatmul.mubr.msk.f32.gmra.mrb[228].mxu0 %vm4034_vm3, %v5440_v31  ;;  %11834 = vmatprep.mubr.msk.f32.mxu1 %vm1481_vm1, %v17656_v27  ;;  %v19382_v31 = vld [vmem:[#allocation109_spill] sm:$0xff] }
 0x945   : > { %11691 = vmatprep.mubr.msk.f32.mxu0 %vm4034_vm3, %v5441_v5  ;;  %v19383_v5 = vld [vmem:[#allocation88_spill] sm:$0xff] }
 0x947   : > { %11835 = vmatmul.mubr.msk.f32.gmra.mrb[182].mxu1 %vm1481_vm1, %v17654_v10 }
 0x948   : > { %11837 = vmatprep.mubr.msk.f32.mxu1 %vm1481_vm1, %v17665_v4 }
 0x94b   : > { %11838 = vmatmul.mubr.msk.f32.gmra.mrb[184].mxu1 %vm1481_vm1, %v17662_v49 }
 0x94c   : > { %11840 = vmatprep.mubr.msk.f32.mxu1 %vm1481_vm1, %v17720_v24  ;;  %v19334_v24 = vld [vmem:[#allocation112_spill] sm:$0xff] }
 0x94f   : > { %11841 = vmatmul.mubr.msk.f32.gmra.mrb[186].mxu1 %vm1481_vm1, %v17718_v36  ;;  %v19333_v36 = vld [vmem:[#allocation135_spill] sm:$0xff] }
 0x950   : > { %11843 = vmatprep.mubr.msk.f32.mxu1 %vm1481_vm1, %v17728_v62  ;;  %v19335_v62 = vld [vmem:[#allocation13_spill] sm:$0xff] }
 0x952   : > { %v5186_v6 = vpop.xlane.xlu0 %5185 }
 0x953   : > { %13698 = vrcp.f32 %v5186_v6  ;;  %11844 = vmatmul.mubr.msk.f32.gmra.mrb[188].mxu1 %vm1481_vm1, %v17726_v57  ;;  %v19384_v6 = vld [vmem:[#allocation144_spill] sm:$0xff] }
 0x954   : > { %11846 = vmatprep.mubr.msk.f32.mxu1 %vm1481_vm1, %v17732_v20  ;;  %v19337_v20 = vld [vmem:[#allocation60_spill] sm:$0xff] }
 0x957   : > { %11847 = vmatmul.mubr.msk.f32.gmra.mrb[190].mxu1 %vm1481_vm1, %v17730_v22  ;;  %v19336_v22 = vld [vmem:[#allocation82_spill] sm:$0xff] }
 0x958   : > { %11849 = vmatprep.mubr.msk.f32.mxu1 %vm1481_vm1, %v17742_v43  ;;  %v19340_v43 = vld [vmem:[#allocation33_spill] sm:$0xff] }
 0x95b   : > { %11850 = vmatmul.mubr.msk.f32.gmra.mrb[192].mxu1 %vm1481_vm1, %v17734_v46  ;;  %v19338_v46 = vld [vmem:[#allocation3_spill] sm:$0xff] }
 0x95c   : > { %v11628_v15 = vpop.f32.mrb[216].mxu0 }
 0x95d   : > { %v13699_v44 = vpop.eup %13698  ;;  %v7546_v10 = vpop.f32.mrb[217].mxu0 }
 0x95e   : > { %11852 = vmatprep.mubr.msk.f32.mxu1 %vm1481_vm1, %v7546_v10  ;;  %v5442_v27 = vmul.f32 %v13699_v44, %v17712_v1 }
 0x95f   : > { %11853 = vmatmul.mubr.msk.f32.gmra.mrb[194].mxu1 %vm1481_vm1, %v11628_v15  ;;  %v19385_v15 = vld [vmem:[#allocation91_spill] sm:$0xff] }
 0x960   : > { %v11631_v49 = vpop.f32.mrb[218].mxu0  ;;  %11692 = vmatmul.mubr.msk.f32.gmra.mrb[230].mxu0 %vm4034_vm3, %v5442_v27  ;;  %v19386_v27 = vld [vmem:[#allocation143_spill] sm:$0xff] }
 0x961   : > { %v7556_v4 = vpop.f32.mrb[219].mxu0  ;;  %11696 = vmatprep.mubr.msk.f32.mxu0 %vm1481_vm1, %v19331_v30 }
 0x962   : > { %11855 = vmatprep.mubr.msk.f32.mxu1 %vm1481_vm1, %v7556_v4 }
 0x963   : > { %11856 = vmatmul.mubr.msk.f32.gmra.mrb[196].mxu1 %vm1481_vm1, %v11631_v49  ;;  %v19387_v49 = vld [vmem:[#allocation2_spill] sm:$0xff] }
 0x964   : > { %v11634_v47 = vpop.f32.mrb[220].mxu0  ;;  %11697 = vmatmul.mubr.msk.f32.vlgmr.msra.gmra.mrb[232].mxu0 %vm1481_vm1, %v19332_v42  ;;  %v19389_v42 = vld [vmem:[#allocation73_spill] sm:$0xff] }
 0x965   : > { %v7566_v12 = vpop.f32.mrb[221].mxu0  ;;  %11699 = vmatprep.mubr.msk.f32.mxu0 %vm1481_vm1, %v19333_v36 }
 0x966   : > { %11858 = vmatprep.mubr.msk.f32.mxu1 %vm1481_vm1, %v7566_v12 }
 0x967   : > { %11859 = vmatmul.mubr.msk.f32.gmra.mrb[198].mxu1 %vm1481_vm1, %v11634_v47  ;;  %v19388_v47 = vld [vmem:[#allocation78_spill] sm:$0xff] }
 0x968   : > { %v11637_v1 = vpop.f32.mrb[222].mxu0  ;;  %11700 = vmatmul.mubr.msk.f32.gmra.mrb[234].mxu0 %vm1481_vm1, %v19334_v24  ;;  %v19391_v24 = vld [vmem:[#allocation119_spill] sm:$0xff] }
 0x969   : > { %v7576_v57 = vpop.f32.mrb[223].mxu0  ;;  %11702 = vmatprep.mubr.msk.f32.mxu0 %vm1481_vm1, %v19335_v62 }
 0x96a   : > { %11861 = vmatprep.mubr.msk.f32.mxu1 %vm1481_vm1, %v7576_v57 }
 0x96b   : > { %11862 = vmatmul.mubr.msk.f32.gmra.mrb[200].mxu1 %vm1481_vm1, %v11637_v1  ;;  %v19390_v1 = vld [vmem:[#allocation29_spill] sm:$0xff] }
 0x96c   : > { %11703 = vmatmul.mubr.msk.f32.gmra.mrb[236].mxu0 %vm1481_vm1, %v19336_v22  ;;  %v19392_v22 = vld [vmem:[#allocation106_spill] sm:$0xff] }
 0x96d   : > { %11705 = vmatprep.mubr.msk.f32.mxu0 %vm1481_vm1, %v19337_v20  ;;  %v18005_v20 = vld [vmem:[%s18414_s4] ss:$0 sm:$0xff] }
 0x970   : > { %11706 = vmatmul.mubr.msk.f32.gmra.mrb[238].mxu0 %vm1481_vm1, %v19338_v46 }
 0x971   : > { %11708 = vmatprep.mubr.msk.f32.mxu0 %vm1481_vm1, %v19339_v61 }
 0x974   : > { %11709 = vmatmul.mubr.msk.f32.gmra.mrb[240].mxu0 %vm1481_vm1, %v19340_v43 }
 0x975   : > { %11711 = vmatprep.mubr.msk.f32.mxu0 %vm1481_vm1, %v19341_v16 }
 0x978   : > { %11712 = vmatmul.mubr.msk.f32.gmra.mrb[242].mxu0 %vm1481_vm1, %v19342_v60 }
 0x979   : > { %11714 = vmatprep.mubr.msk.f32.mxu0 %vm1481_vm1, %v19343_v40 }
 0x97c   : > { %11715 = vmatmul.mubr.msk.f32.gmra.mrb[244].mxu0 %vm1481_vm1, %v19344_v17 }
 0x97d   : > { %11717 = vmatprep.mubr.msk.f32.mxu0 %vm1481_vm1, %v19345_v38 }
 0x980   : > { %11718 = vmatmul.mubr.msk.f32.gmra.mrb[246].mxu0 %vm1481_vm1, %v19346_v13 }
 0x981   : > { %11720 = vmatprep.mubr.msk.f32.mxu0 %vm1481_vm1, %v19347_v48 }
 0x984   : > { %11721 = vmatmul.mubr.msk.f32.gmra.mrb[248].mxu0 %vm1481_vm1, %v19348_v29 }
 0x985   : > { %11723 = vmatprep.mubr.msk.f32.mxu0 %vm1481_vm1, %v19349_v53 }
 0x988   : > { %11724 = vmatmul.mubr.msk.f32.gmra.mrb[250].mxu0 %vm1481_vm1, %v19350_v26 }
 0x989   : > { %11726 = vmatprep.mubr.msk.f32.mxu0 %vm1481_vm1, %v19351_v37 }
 0x98c   : > { %11727 = vmatmul.mubr.msk.f32.gmra.mrb[252].mxu0 %vm1481_vm1, %v19352_v0 }
 0x98d   : > { %11729 = vmatprep.mubr.msk.f32.mxu0 %vm1481_vm1, %v19353_v21 }
 0x990   : > { %11730 = vmatmul.mubr.msk.f32.gmra.mrb[254].mxu0 %vm1481_vm1, %v19354_v2 }
 0x991   : > { %11732 = vmatprep.mubr.msk.f32.mxu0 %vm1481_vm1, %v19355_v18 }
 0x994   : > { %11733 = vmatmul.mubr.msk.f32.gmra.mrb[0].mxu0 %vm1481_vm1, %v19356_v51 }
 0x995   : > { %11735 = vmatprep.mubr.msk.f32.mxu0 %vm1481_vm1, %v19357_v41 }
 0x998   : > { %11736 = vmatmul.mubr.msk.f32.gmra.mrb[2].mxu0 %vm1481_vm1, %v19358_v25 }
 0x999   : > { %11738 = vmatprep.mubr.msk.f32.mxu0 %vm1481_vm1, %v19359_v7 }
 0x99c   : > { %11739 = vmatmul.mubr.msk.f32.gmra.mrb[4].mxu0 %vm1481_vm1, %v19360_v34 }
 0x99d   : > { %11741 = vmatprep.mubr.msk.f32.mxu0 %vm1481_vm1, %v19361_v9 }
 0x9a0   : > { %11742 = vmatmul.mubr.msk.f32.gmra.mrb[6].mxu0 %vm1481_vm1, %v19362_v35 }
 0x9a1   : > { %11744 = vmatprep.mubr.msk.f32.mxu0 %vm1481_vm1, %v19363_v54 }
 0x9a4   : > { %11745 = vmatmul.mubr.msk.f32.gmra.mrb[8].mxu0 %vm1481_vm1, %v19364_v11 }
 0x9a5   : > { %11747 = vmatprep.mubr.msk.f32.mxu0 %vm1481_vm1, %v19365_v19 }
 0x9a8   : > { %11748 = vmatmul.mubr.msk.f32.gmra.mrb[10].mxu0 %vm1481_vm1, %v19366_v32 }
 0x9a9   : > { %11750 = vmatprep.mubr.msk.f32.mxu0 %vm1481_vm1, %v19367_v23 }
 0x9ac   : > { %11751 = vmatmul.mubr.msk.f32.gmra.mrb[12].mxu0 %vm1481_vm1, %v19368_v3 }
 0x9ad   : > { %11753 = vmatprep.mubr.msk.f32.mxu0 %vm1481_vm1, %v19369_v56 }
 0x9b0   : > { %11754 = vmatmul.mubr.msk.f32.gmra.mrb[14].mxu0 %vm1481_vm1, %v19370_v14 }
 0x9b1   : > { %11756 = vmatprep.mubr.msk.f32.mxu0 %vm1481_vm1, %v19371_v33 }
 0x9b4   : > { %11757 = vmatmul.mubr.msk.f32.gmra.mrb[16].mxu0 %vm1481_vm1, %v19372_v52 }
 0x9b5   : > { %11759 = vmatprep.mubr.msk.f32.mxu0 %vm1481_vm1, %v19373_v59 }
 0x9b8   : > { %11760 = vmatmul.mubr.msk.f32.gmra.mrb[18].mxu0 %vm1481_vm1, %v19374_v8 }
 0x9b9   : > { %11762 = vmatprep.mubr.msk.f32.mxu0 %vm1481_vm1, %v19375_v55 }
 0x9bc   : > { %11763 = vmatmul.mubr.msk.f32.gmra.mrb[20].mxu0 %vm1481_vm1, %v19376_v50 }
 0x9bd   : > { %11765 = vmatprep.mubr.msk.f32.mxu0 %vm1481_vm1, %v19377_v28 }
 0x9c0   : > { %11766 = vmatmul.mubr.msk.f32.gmra.mrb[22].mxu0 %vm1481_vm1, %v19378_v45 }
 0x9c1   : > { %11768 = vmatprep.mubr.msk.f32.mxu0 %vm1481_vm1, %v19379_v39 }
 0x9c4   : > { %11769 = vmatmul.mubr.msk.f32.gmra.mrb[24].mxu0 %vm1481_vm1, %v19380_v63 }
 0x9c5   : > { %11771 = vmatprep.mubr.msk.f32.mxu0 %vm1481_vm1, %v19381_v58 }
 0x9c8   : > { %11772 = vmatmul.mubr.msk.f32.gmra.mrb[26].mxu0 %vm1481_vm1, %v19382_v31 }
 0x9c9   : > { %11774 = vmatprep.mubr.msk.f32.mxu0 %vm1481_vm1, %v19383_v5 }
 0x9cc   : > { %11775 = vmatmul.mubr.msk.f32.gmra.mrb[28].mxu0 %vm1481_vm1, %v19384_v6 }
 0x9cd   : > { %11777 = vmatprep.mubr.msk.f32.mxu0 %vm1481_vm1, %v19385_v15 }
 0x9ce   : > { %v11656_v44 = vpop.f32.mrb[144].mxu1 }
 0x9cf   : > { %v7699_v10 = vpop.f32.mrb[145].mxu1 }
 0x9d0   : > { %11778 = vmatmul.mubr.msk.f32.gmra.mrb[30].mxu0 %vm1481_vm1, %v19386_v27  ;;  %11864 = vmatprep.mubr.msk.f32.mxu1 %vm1481_vm1, %v7699_v10 }
 0x9d1   : > { %11780 = vmatprep.mubr.msk.f32.mxu0 %vm1481_vm1, %v19387_v49  ;;  %11865 = vmatmul.mubr.msk.f32.gmra.mrb[202].mxu1 %vm1481_vm1, %v11656_v44 }
 0x9d2   : > { %v11659_v4 = vpop.f32.mrb[146].mxu1 }
 0x9d3   : > { %v7709_v30 = vpop.f32.mrb[147].mxu1 }
 0x9d4   : > { %11781 = vmatmul.mubr.msk.f32.gmra.mrb[32].mxu0 %vm1481_vm1, %v19388_v47  ;;  %11867 = vmatprep.mubr.msk.f32.mxu1 %vm1481_vm1, %v7709_v30 }
 0x9d5   : > { %11783 = vmatprep.mubr.msk.f32.mxu0 %vm1481_vm1, %v19389_v42  ;;  %11868 = vmatmul.mubr.msk.f32.gmra.mrb[204].mxu1 %vm1481_vm1, %v11659_v4 }
 0x9d6   : > { %v11662_v12 = vpop.f32.mrb[148].mxu1 }
 0x9d7   : > { %v7719_v36 = vpop.f32.mrb[149].mxu1 }
 0x9d8   : > { %11784 = vmatmul.mubr.msk.f32.gmra.mrb[34].mxu0 %vm1481_vm1, %v19390_v1  ;;  %11870 = vmatprep.mubr.msk.f32.mxu1 %vm1481_vm1, %v7719_v36 }
 0x9d9   : > { %11786 = vmatprep.mubr.msk.f32.mxu0 %vm1481_vm1, %v19391_v24  ;;  %11871 = vmatmul.mubr.msk.f32.gmra.mrb[206].mxu1 %vm1481_vm1, %v11662_v12 }
 0x9da   : > { %v11665_v57 = vpop.f32.mrb[150].mxu1 }
 0x9db   : > { %v7729_v62 = vpop.f32.mrb[151].mxu1 }
 0x9dc   : > { %11787 = vmatmul.mubr.msk.f32.gmra.mrb[36].mxu0 %vm1481_vm1, %v19392_v22  ;;  %11873 = vmatprep.mubr.msk.f32.mxu1 %vm1481_vm1, %v7729_v62 }
 0x9dd   : > { %11874 = vmatmul.mubr.msk.f32.gmra.mrb[208].mxu1 %vm1481_vm1, %v11665_v57 }
 0x9de   : > { %v11791_v46 = vpop.f32.mrb[152].mxu1 }
 0x9df   : > { %v8665_v61 = vadd.f32 %v11791_v46, %v18005_v20  ;;  %v8659_v43 = vpop.f32.mrb[153].mxu1 }
 0x9e0   : > { %v8660_v16 = vadd.f32 %v18005_v20, %v8659_v43 }
 0x9e1   : > { %9051 = vst.msk [vmem:[%s18013_s21 + $0x1f8] sm:$0xff] %vm367_vm0, %v8665_v61 }
 0x9e2   : > { %9050 = vst.msk [vmem:[%s18013_s21 + $0x1f0] sm:$0xff] %vm367_vm0, %v8660_v16  ;;  %v11794_v60 = vpop.f32.mrb[154].mxu1 }
 0x9e3   : > { %v8675_v40 = vadd.f32 %v11794_v60, %v18005_v20  ;;  %v8669_v17 = vpop.f32.mrb[155].mxu1 }
 0x9e4   : > { %v8670_v38 = vadd.f32 %v18005_v20, %v8669_v17 }
 0x9e5   : > { %9053 = vst.msk [vmem:[%s18013_s21 + $0x208] sm:$0xff] %vm367_vm0, %v8675_v40 }
 0x9e6   : > { %9052 = vst.msk [vmem:[%s18013_s21 + $0x200] sm:$0xff] %vm367_vm0, %v8670_v38  ;;  %v11797_v13 = vpop.f32.mrb[156].mxu1 }
 0x9e7   : > { %v8685_v48 = vadd.f32 %v11797_v13, %v18005_v20  ;;  %v8679_v29 = vpop.f32.mrb[157].mxu1 }
 0x9e8   : > { %v8680_v53 = vadd.f32 %v18005_v20, %v8679_v29 }
 0x9e9   : > { %9055 = vst.msk [vmem:[%s18013_s21 + $0x218] sm:$0xff] %vm367_vm0, %v8685_v48 }
 0x9ea   : > { %9054 = vst.msk [vmem:[%s18013_s21 + $0x210] sm:$0xff] %vm367_vm0, %v8680_v53  ;;  %v11800_v26 = vpop.f32.mrb[158].mxu1 }
 0x9eb   : > { %v8695_v37 = vadd.f32 %v11800_v26, %v18005_v20  ;;  %v8689_v0 = vpop.f32.mrb[159].mxu1 }
 0x9ec   : > { %v8690_v21 = vadd.f32 %v18005_v20, %v8689_v0 }
 0x9ed   : > { %9057 = vst.msk [vmem:[%s18013_s21 + $0x228] sm:$0xff] %vm367_vm0, %v8695_v37 }
 0x9ee   : > { %9056 = vst.msk [vmem:[%s18013_s21 + $0x220] sm:$0xff] %vm367_vm0, %v8690_v21  ;;  %v11803_v2 = vpop.f32.mrb[160].mxu1 }
 0x9ef   : > { %v8705_v18 = vadd.f32 %v11803_v2, %v18005_v20  ;;  %v8699_v51 = vpop.f32.mrb[161].mxu1 }
 0x9f0   : > { %v8700_v41 = vadd.f32 %v18005_v20, %v8699_v51 }
 0x9f1   : > { %9059 = vst.msk [vmem:[%s18013_s21 + $0x238] sm:$0xff] %vm367_vm0, %v8705_v18 }
 0x9f2   : > { %9058 = vst.msk [vmem:[%s18013_s21 + $0x230] sm:$0xff] %vm367_vm0, %v8700_v41  ;;  %v11806_v25 = vpop.f32.mrb[162].mxu1 }
 0x9f3   : > { %v8715_v7 = vadd.f32 %v11806_v25, %v18005_v20  ;;  %v8709_v34 = vpop.f32.mrb[163].mxu1 }
 0x9f4   : > { %v8710_v9 = vadd.f32 %v18005_v20, %v8709_v34 }
 0x9f5   : > { %9061 = vst.msk [vmem:[%s18013_s21 + $0x248] sm:$0xff] %vm367_vm0, %v8715_v7 }
 0x9f6   : > { %9060 = vst.msk [vmem:[%s18013_s21 + $0x240] sm:$0xff] %vm367_vm0, %v8710_v9  ;;  %v11809_v35 = vpop.f32.mrb[164].mxu1 }
 0x9f7   : > { %v8725_v54 = vadd.f32 %v11809_v35, %v18005_v20  ;;  %v8719_v11 = vpop.f32.mrb[165].mxu1 }
 0x9f8   : > { %v8720_v19 = vadd.f32 %v18005_v20, %v8719_v11 }
 0x9f9   : > { %9063 = vst.msk [vmem:[%s18013_s21 + $0x258] sm:$0xff] %vm367_vm0, %v8725_v54 }
 0x9fa   : > { %9062 = vst.msk [vmem:[%s18013_s21 + $0x250] sm:$0xff] %vm367_vm0, %v8720_v19  ;;  %v11812_v32 = vpop.f32.mrb[166].mxu1 }
 0x9fb   : > { %v8735_v23 = vadd.f32 %v11812_v32, %v18005_v20  ;;  %v8729_v3 = vpop.f32.mrb[167].mxu1 }
 0x9fc   : > { %v8730_v56 = vadd.f32 %v18005_v20, %v8729_v3 }
 0x9fd   : > { %9065 = vst.msk [vmem:[%s18013_s21 + $0x268] sm:$0xff] %vm367_vm0, %v8735_v23 }
 0x9fe   : > { %9064 = vst.msk [vmem:[%s18013_s21 + $0x260] sm:$0xff] %vm367_vm0, %v8730_v56  ;;  %v11815_v14 = vpop.f32.mrb[168].mxu1 }
 0x9ff   : > { %v8745_v33 = vadd.f32 %v11815_v14, %v18005_v20  ;;  %v8739_v52 = vpop.f32.mrb[169].mxu1 }
 0xa00   : > { %v8740_v59 = vadd.f32 %v18005_v20, %v8739_v52 }
 0xa01   : > { %9067 = vst.msk [vmem:[%s18013_s21 + $0x278] sm:$0xff] %vm367_vm0, %v8745_v33 }
 0xa02   : > { %9066 = vst.msk [vmem:[%s18013_s21 + $0x270] sm:$0xff] %vm367_vm0, %v8740_v59  ;;  %v11818_v8 = vpop.f32.mrb[170].mxu1 }
 0xa03   : > { %v8755_v55 = vadd.f32 %v11818_v8, %v18005_v20  ;;  %v8749_v50 = vpop.f32.mrb[171].mxu1 }
 0xa04   : > { %v8750_v28 = vadd.f32 %v18005_v20, %v8749_v50 }
 0xa05   : > { %9069 = vst.msk [vmem:[%s18013_s21 + $0x288] sm:$0xff] %vm367_vm0, %v8755_v55 }
 0xa06   : > { %9068 = vst.msk [vmem:[%s18013_s21 + $0x280] sm:$0xff] %vm367_vm0, %v8750_v28  ;;  %v11821_v45 = vpop.f32.mrb[172].mxu1 }
 0xa07   : > { %v8765_v39 = vadd.f32 %v11821_v45, %v18005_v20  ;;  %v8759_v63 = vpop.f32.mrb[173].mxu1 }
 0xa08   : > { %v8760_v58 = vadd.f32 %v18005_v20, %v8759_v63 }
 0xa09   : > { %9071 = vst.msk [vmem:[%s18013_s21 + $0x298] sm:$0xff] %vm367_vm0, %v8765_v39 }
 0xa0a   : > { %9070 = vst.msk [vmem:[%s18013_s21 + $0x290] sm:$0xff] %vm367_vm0, %v8760_v58  ;;  %v11824_v31 = vpop.f32.mrb[174].mxu1 }
 0xa0b   : > { %v8775_v5 = vadd.f32 %v11824_v31, %v18005_v20  ;;  %v8769_v6 = vpop.f32.mrb[175].mxu1 }
 0xa0c   : > { %v8770_v15 = vadd.f32 %v18005_v20, %v8769_v6 }
 0xa0d   : > { %9073 = vst.msk [vmem:[%s18013_s21 + $0x2a8] sm:$0xff] %vm367_vm0, %v8775_v5 }
 0xa0e   : > { %9072 = vst.msk [vmem:[%s18013_s21 + $0x2a0] sm:$0xff] %vm367_vm0, %v8770_v15  ;;  %v11827_v44 = vpop.f32.mrb[176].mxu1 }
 0xa0f   : > { %v8785_v10 = vadd.f32 %v11827_v44, %v18005_v20  ;;  %v11684_v27 = vpop.f32.mrb[224].mxu0  ;;  %v8779_v49 = vpop.f32.mrb[177].mxu1 }
 0xa10   : > { %v8780_v4 = vadd.f32 %v18005_v20, %v8779_v49  ;;  %v7852_v30 = vpop.f32.mrb[225].mxu0 }
 0xa11   : > { %9075 = vst.msk [vmem:[%s18013_s21 + $0x2b8] sm:$0xff] %vm367_vm0, %v8785_v10  ;;  %11876 = vmatprep.mubr.msk.f32.mxu1 %vm1481_vm1, %v7852_v30 }
 0xa12   : > { %9074 = vst.msk [vmem:[%s18013_s21 + $0x2b0] sm:$0xff] %vm367_vm0, %v8780_v4  ;;  %v11830_v47 = vpop.f32.mrb[178].mxu1  ;;  %11877 = vmatmul.mubr.msk.f32.gmra.mrb[210].mxu1 %vm1481_vm1, %v11684_v27 }
 0xa13   : > { %v8795_v42 = vadd.f32 %v11830_v47, %v18005_v20  ;;  %v11687_v12 = vpop.f32.mrb[226].mxu0  ;;  %v8789_v36 = vpop.f32.mrb[179].mxu1 }
 0xa14   : > { %v8790_v1 = vadd.f32 %v18005_v20, %v8789_v36  ;;  %v7862_v24 = vpop.f32.mrb[227].mxu0 }
 0xa15   : > { %9077 = vst.msk [vmem:[%s18013_s21 + $0x2c8] sm:$0xff] %vm367_vm0, %v8795_v42  ;;  %11879 = vmatprep.mubr.msk.f32.mxu1 %vm1481_vm1, %v7862_v24 }
 0xa16   : > { %9076 = vst.msk [vmem:[%s18013_s21 + $0x2c0] sm:$0xff] %vm367_vm0, %v8790_v1  ;;  %v11833_v57 = vpop.f32.mrb[180].mxu1  ;;  %11880 = vmatmul.mubr.msk.f32.gmra.mrb[212].mxu1 %vm1481_vm1, %v11687_v12 }
 0xa17   : > { %v8805_v62 = vadd.f32 %v11833_v57, %v18005_v20  ;;  %v11690_v22 = vpop.f32.mrb[228].mxu0  ;;  %v8799_v46 = vpop.f32.mrb[181].mxu1 }
 0xa18   : > { %v8800_v61 = vadd.f32 %v18005_v20, %v8799_v46  ;;  %v7872_v43 = vpop.f32.mrb[229].mxu0 }
 0xa19   : > { %9079 = vst.msk [vmem:[%s18013_s21 + $0x2d8] sm:$0xff] %vm367_vm0, %v8805_v62  ;;  %11882 = vmatprep.mubr.msk.f32.mxu1 %vm1481_vm1, %v7872_v43 }
 0xa1a   : > { %9078 = vst.msk [vmem:[%s18013_s21 + $0x2d0] sm:$0xff] %vm367_vm0, %v8800_v61  ;;  %v11836_v16 = vpop.f32.mrb[182].mxu1  ;;  %11883 = vmatmul.mubr.msk.f32.gmra.mrb[214].mxu1 %vm1481_vm1, %v11690_v22 }
 0xa1b   : > { %v8815_v60 = vadd.f32 %v11836_v16, %v18005_v20  ;;  %v8809_v40 = vpop.f32.mrb[183].mxu1 }
 0xa1c   : > { %v8810_v17 = vadd.f32 %v18005_v20, %v8809_v40 }
 0xa1d   : > { %9081 = vst.msk [vmem:[%s18013_s21 + $0x2e8] sm:$0xff] %vm367_vm0, %v8815_v60 }
 0xa1e   : > { %9080 = vst.msk [vmem:[%s18013_s21 + $0x2e0] sm:$0xff] %vm367_vm0, %v8810_v17  ;;  %v11839_v38 = vpop.f32.mrb[184].mxu1 }
 0xa1f   : > { %v8825_v13 = vadd.f32 %v11839_v38, %v18005_v20  ;;  %v8819_v48 = vpop.f32.mrb[185].mxu1 }
 0xa20   : > { %v8820_v29 = vadd.f32 %v18005_v20, %v8819_v48 }
 0xa21   : > { %9083 = vst.msk [vmem:[%s18013_s21 + $0x2f8] sm:$0xff] %vm367_vm0, %v8825_v13 }
 0xa22   : > { %9082 = vst.msk [vmem:[%s18013_s21 + $0x2f0] sm:$0xff] %vm367_vm0, %v8820_v29  ;;  %v11842_v53 = vpop.f32.mrb[186].mxu1 }
 0xa23   : > { %v8835_v26 = vadd.f32 %v11842_v53, %v18005_v20  ;;  %v8829_v37 = vpop.f32.mrb[187].mxu1 }
 0xa24   : > { %v8830_v0 = vadd.f32 %v18005_v20, %v8829_v37 }
 0xa25   : > { %9085 = vst.msk [vmem:[%s18013_s21 + $0x308] sm:$0xff] %vm367_vm0, %v8835_v26 }
 0xa26   : > { %9084 = vst.msk [vmem:[%s18013_s21 + $0x300] sm:$0xff] %vm367_vm0, %v8830_v0  ;;  %v11845_v21 = vpop.f32.mrb[188].mxu1 }
 0xa27   : > { %v8845_v2 = vadd.f32 %v11845_v21, %v18005_v20  ;;  %v8839_v18 = vpop.f32.mrb[189].mxu1 }
 0xa28   : > { %v8840_v51 = vadd.f32 %v18005_v20, %v8839_v18 }
 0xa29   : > { %9087 = vst.msk [vmem:[%s18013_s21 + $0x318] sm:$0xff] %vm367_vm0, %v8845_v2 }
 0xa2a   : > { %9086 = vst.msk [vmem:[%s18013_s21 + $0x310] sm:$0xff] %vm367_vm0, %v8840_v51  ;;  %v11848_v41 = vpop.f32.mrb[190].mxu1 }
 0xa2b   : > { %v8855_v25 = vadd.f32 %v11848_v41, %v18005_v20  ;;  %v8849_v7 = vpop.f32.mrb[191].mxu1 }
 0xa2c   : > { %v8850_v34 = vadd.f32 %v18005_v20, %v8849_v7 }
 0xa2d   : > { %9089 = vst.msk [vmem:[%s18013_s21 + $0x328] sm:$0xff] %vm367_vm0, %v8855_v25 }
 0xa2e   : > { %9088 = vst.msk [vmem:[%s18013_s21 + $0x320] sm:$0xff] %vm367_vm0, %v8850_v34  ;;  %v11851_v9 = vpop.f32.mrb[192].mxu1 }
 0xa2f   : > { %v8865_v35 = vadd.f32 %v11851_v9, %v18005_v20  ;;  %v8859_v54 = vpop.f32.mrb[193].mxu1 }
 0xa30   : > { %v8860_v11 = vadd.f32 %v18005_v20, %v8859_v54 }
 0xa31   : > { %9091 = vst.msk [vmem:[%s18013_s21 + $0x338] sm:$0xff] %vm367_vm0, %v8865_v35 }
 0xa32   : > { %9090 = vst.msk [vmem:[%s18013_s21 + $0x330] sm:$0xff] %vm367_vm0, %v8860_v11  ;;  %v11854_v19 = vpop.f32.mrb[194].mxu1 }
 0xa33   : > { %v8875_v32 = vadd.f32 %v11854_v19, %v18005_v20  ;;  %v11693_v23 = vpop.f32.mrb[230].mxu0  ;;  %v8869_v3 = vpop.f32.mrb[195].mxu1 }
 0xa34   : > { %v8870_v56 = vadd.f32 %v18005_v20, %v8869_v3  ;;  %v7882_v14 = vpop.f32.mrb[231].mxu0 }
 0xa35   : > { %9093 = vst.msk [vmem:[%s18013_s21 + $0x348] sm:$0xff] %vm367_vm0, %v8875_v32  ;;  %11885 = vmatprep.mubr.msk.f32.mxu1 %vm1481_vm1, %v7882_v14 }
 0xa36   : > { %9092 = vst.msk [vmem:[%s18013_s21 + $0x340] sm:$0xff] %vm367_vm0, %v8870_v56  ;;  %v11857_v33 = vpop.f32.mrb[196].mxu1  ;;  %11886 = vmatmul.mubr.msk.f32.gmra.mrb[216].mxu1 %vm1481_vm1, %v11693_v23 }
 0xa37   : > { %v8885_v52 = vadd.f32 %v11857_v33, %v18005_v20  ;;  %v11698_v59 = vpop.f32.mrb[232].mxu0  ;;  %v8879_v8 = vpop.f32.mrb[197].mxu1 }
 0xa38   : > { %v8355_v55 = vadd.f32 %v11698_v59, %v18005_v20  ;;  %v8880_v50 = vadd.f32 %v18005_v20, %v8879_v8  ;;  %v8349_v28 = vpop.f32.mrb[233].mxu0 }
 0xa39   : > { %9095 = vst.msk [vmem:[%s18013_s21 + $0x358] sm:$0xff] %vm367_vm0, %v8885_v52  ;;  %v8350_v45 = vadd.f32 %v18005_v20, %v8349_v28 }
 0xa3a   : > { %8989 = vst.msk [vmem:[%s18013_s21 + $0x8] sm:$0xff] %vm367_vm0, %v8355_v55  ;;  %9094 = vst.msk [vmem:[%s18013_s21 + $0x350] sm:$0xff] %vm367_vm0, %v8880_v50  ;;  %v11860_v39 = vpop.f32.mrb[198].mxu1 }
 0xa3b   : > { %8988 = vst.msk [vmem:[%s18013_s21] sm:$0xff] %vm367_vm0, %v8350_v45  ;;  %v8895_v63 = vadd.f32 %v11860_v39, %v18005_v20  ;;  %v11701_v58 = vpop.f32.mrb[234].mxu0  ;;  %v8889_v31 = vpop.f32.mrb[199].mxu1 }
 0xa3c   : > { %v8365_v5 = vadd.f32 %v11701_v58, %v18005_v20  ;;  %v8890_v6 = vadd.f32 %v18005_v20, %v8889_v31  ;;  %v8359_v15 = vpop.f32.mrb[235].mxu0 }
 0xa3d   : > { %9097 = vst.msk [vmem:[%s18013_s21 + $0x368] sm:$0xff] %vm367_vm0, %v8895_v63  ;;  %v8360_v44 = vadd.f32 %v18005_v20, %v8359_v15 }
 0xa3e   : > { %8991 = vst.msk [vmem:[%s18013_s21 + $0x18] sm:$0xff] %vm367_vm0, %v8365_v5  ;;  %9096 = vst.msk [vmem:[%s18013_s21 + $0x360] sm:$0xff] %vm367_vm0, %v8890_v6  ;;  %v11863_v10 = vpop.f32.mrb[200].mxu1 }
 0xa3f   : > { %8990 = vst.msk [vmem:[%s18013_s21 + $0x10] sm:$0xff] %vm367_vm0, %v8360_v44  ;;  %v8905_v27 = vadd.f32 %v11863_v10, %v18005_v20  ;;  %v11704_v49 = vpop.f32.mrb[236].mxu0  ;;  %v8899_v4 = vpop.f32.mrb[201].mxu1 }
 0xa40   : > { %v8375_v30 = vadd.f32 %v11704_v49, %v18005_v20  ;;  %v8900_v47 = vadd.f32 %v18005_v20, %v8899_v4  ;;  %v8369_v42 = vpop.f32.mrb[237].mxu0 }
 0xa41   : > { %9099 = vst.msk [vmem:[%s18013_s21 + $0x378] sm:$0xff] %vm367_vm0, %v8905_v27  ;;  %v8370_v12 = vadd.f32 %v18005_v20, %v8369_v42 }
 0xa42   : > { %8993 = vst.msk [vmem:[%s18013_s21 + $0x28] sm:$0xff] %vm367_vm0, %v8375_v30  ;;  %9098 = vst.msk [vmem:[%s18013_s21 + $0x370] sm:$0xff] %vm367_vm0, %v8900_v47 }
 0xa43   : > { %8992 = vst.msk [vmem:[%s18013_s21 + $0x20] sm:$0xff] %vm367_vm0, %v8370_v12  ;;  %v11707_v36 = vpop.f32.mrb[238].mxu0 }
 0xa44   : > { %v8385_v1 = vadd.f32 %v11707_v36, %v18005_v20  ;;  %v8379_v24 = vpop.f32.mrb[239].mxu0 }
 0xa45   : > { %v8380_v57 = vadd.f32 %v18005_v20, %v8379_v24 }
 0xa46   : > { %8995 = vst.msk [vmem:[%s18013_s21 + $0x38] sm:$0xff] %vm367_vm0, %v8385_v1 }
 0xa47   : > { %8994 = vst.msk [vmem:[%s18013_s21 + $0x30] sm:$0xff] %vm367_vm0, %v8380_v57  ;;  %v11710_v62 = vpop.f32.mrb[240].mxu0 }
 0xa48   : > { %v8395_v22 = vadd.f32 %v11710_v62, %v18005_v20  ;;  %v8389_v46 = vpop.f32.mrb[241].mxu0 }
 0xa49   : > { %v8390_v61 = vadd.f32 %v18005_v20, %v8389_v46 }
 0xa4a   : > { %8997 = vst.msk [vmem:[%s18013_s21 + $0x48] sm:$0xff] %vm367_vm0, %v8395_v22 }
 0xa4b   : > { %8996 = vst.msk [vmem:[%s18013_s21 + $0x40] sm:$0xff] %vm367_vm0, %v8390_v61  ;;  %v11713_v43 = vpop.f32.mrb[242].mxu0 }
 0xa4c   : > { %v8405_v16 = vadd.f32 %v11713_v43, %v18005_v20  ;;  %v8399_v60 = vpop.f32.mrb[243].mxu0 }
 0xa4d   : > { %v8400_v40 = vadd.f32 %v18005_v20, %v8399_v60 }
 0xa4e   : > { %8999 = vst.msk [vmem:[%s18013_s21 + $0x58] sm:$0xff] %vm367_vm0, %v8405_v16 }
 0xa4f   : > { %8998 = vst.msk [vmem:[%s18013_s21 + $0x50] sm:$0xff] %vm367_vm0, %v8400_v40  ;;  %v11716_v17 = vpop.f32.mrb[244].mxu0 }
 0xa50   : > { %v8415_v38 = vadd.f32 %v11716_v17, %v18005_v20  ;;  %v8409_v13 = vpop.f32.mrb[245].mxu0 }
 0xa51   : > { %v8410_v48 = vadd.f32 %v18005_v20, %v8409_v13 }
 0xa52   : > { %9001 = vst.msk [vmem:[%s18013_s21 + $0x68] sm:$0xff] %vm367_vm0, %v8415_v38 }
 0xa53   : > { %9000 = vst.msk [vmem:[%s18013_s21 + $0x60] sm:$0xff] %vm367_vm0, %v8410_v48  ;;  %v11719_v29 = vpop.f32.mrb[246].mxu0 }
 0xa54   : > { %v8425_v53 = vadd.f32 %v11719_v29, %v18005_v20  ;;  %v8419_v26 = vpop.f32.mrb[247].mxu0 }
 0xa55   : > { %v8420_v37 = vadd.f32 %v18005_v20, %v8419_v26 }
 0xa56   : > { %9003 = vst.msk [vmem:[%s18013_s21 + $0x78] sm:$0xff] %vm367_vm0, %v8425_v53 }
 0xa57   : > { %9002 = vst.msk [vmem:[%s18013_s21 + $0x70] sm:$0xff] %vm367_vm0, %v8420_v37  ;;  %v11722_v0 = vpop.f32.mrb[248].mxu0 }
 0xa58   : > { %v8435_v21 = vadd.f32 %v11722_v0, %v18005_v20  ;;  %v8429_v2 = vpop.f32.mrb[249].mxu0 }
 0xa59   : > { %v8430_v18 = vadd.f32 %v18005_v20, %v8429_v2 }
 0xa5a   : > { %9005 = vst.msk [vmem:[%s18013_s21 + $0x88] sm:$0xff] %vm367_vm0, %v8435_v21 }
 0xa5b   : > { %9004 = vst.msk [vmem:[%s18013_s21 + $0x80] sm:$0xff] %vm367_vm0, %v8430_v18  ;;  %v11725_v51 = vpop.f32.mrb[250].mxu0 }
 0xa5c   : > { %v8445_v41 = vadd.f32 %v11725_v51, %v18005_v20  ;;  %v8439_v25 = vpop.f32.mrb[251].mxu0 }
 0xa5d   : > { %v8440_v7 = vadd.f32 %v18005_v20, %v8439_v25 }
 0xa5e   : > { %9007 = vst.msk [vmem:[%s18013_s21 + $0x98] sm:$0xff] %vm367_vm0, %v8445_v41 }
 0xa5f   : > { %9006 = vst.msk [vmem:[%s18013_s21 + $0x90] sm:$0xff] %vm367_vm0, %v8440_v7  ;;  %v11728_v34 = vpop.f32.mrb[252].mxu0 }
 0xa60   : > { %v8455_v9 = vadd.f32 %v11728_v34, %v18005_v20  ;;  %v8449_v35 = vpop.f32.mrb[253].mxu0 }
 0xa61   : > { %v8450_v54 = vadd.f32 %v18005_v20, %v8449_v35 }
 0xa62   : > { %9009 = vst.msk [vmem:[%s18013_s21 + $0xa8] sm:$0xff] %vm367_vm0, %v8455_v9 }
 0xa63   : > { %9008 = vst.msk [vmem:[%s18013_s21 + $0xa0] sm:$0xff] %vm367_vm0, %v8450_v54  ;;  %v11731_v11 = vpop.f32.mrb[254].mxu0 }
 0xa64   : > { %v8465_v19 = vadd.f32 %v11731_v11, %v18005_v20  ;;  %v8459_v32 = vpop.f32.mrb[255].mxu0 }
 0xa65   : > { %v8460_v23 = vadd.f32 %v18005_v20, %v8459_v32 }
 0xa66   : > { %9011 = vst.msk [vmem:[%s18013_s21 + $0xb8] sm:$0xff] %vm367_vm0, %v8465_v19 }
 0xa67   : > { %9010 = vst.msk [vmem:[%s18013_s21 + $0xb0] sm:$0xff] %vm367_vm0, %v8460_v23  ;;  %v11734_v3 = vpop.f32.mrb[0].mxu0 }
 0xa68   : > { %v8475_v56 = vadd.f32 %v11734_v3, %v18005_v20  ;;  %v8469_v14 = vpop.f32.mrb[1].mxu0 }
 0xa69   : > { %v8470_v33 = vadd.f32 %v18005_v20, %v8469_v14 }
 0xa6a   : > { %9013 = vst.msk [vmem:[%s18013_s21 + $0xc8] sm:$0xff] %vm367_vm0, %v8475_v56 }
 0xa6b   : > { %9012 = vst.msk [vmem:[%s18013_s21 + $0xc0] sm:$0xff] %vm367_vm0, %v8470_v33  ;;  %v11737_v52 = vpop.f32.mrb[2].mxu0 }
 0xa6c   : > { %v8485_v59 = vadd.f32 %v11737_v52, %v18005_v20  ;;  %v8479_v8 = vpop.f32.mrb[3].mxu0 }
 0xa6d   : > { %v8480_v55 = vadd.f32 %v18005_v20, %v8479_v8 }
 0xa6e   : > { %9015 = vst.msk [vmem:[%s18013_s21 + $0xd8] sm:$0xff] %vm367_vm0, %v8485_v59 }
 0xa6f   : > { %9014 = vst.msk [vmem:[%s18013_s21 + $0xd0] sm:$0xff] %vm367_vm0, %v8480_v55  ;;  %v11740_v50 = vpop.f32.mrb[4].mxu0 }
 0xa70   : > { %v8495_v28 = vadd.f32 %v11740_v50, %v18005_v20  ;;  %v8489_v45 = vpop.f32.mrb[5].mxu0 }
 0xa71   : > { %v8490_v39 = vadd.f32 %v18005_v20, %v8489_v45 }
 0xa72   : > { %9017 = vst.msk [vmem:[%s18013_s21 + $0xe8] sm:$0xff] %vm367_vm0, %v8495_v28 }
 0xa73   : > { %9016 = vst.msk [vmem:[%s18013_s21 + $0xe0] sm:$0xff] %vm367_vm0, %v8490_v39  ;;  %v11743_v63 = vpop.f32.mrb[6].mxu0 }
 0xa74   : > { %v8505_v58 = vadd.f32 %v11743_v63, %v18005_v20  ;;  %v8499_v31 = vpop.f32.mrb[7].mxu0 }
 0xa75   : > { %v8500_v5 = vadd.f32 %v18005_v20, %v8499_v31 }
 0xa76   : > { %9019 = vst.msk [vmem:[%s18013_s21 + $0xf8] sm:$0xff] %vm367_vm0, %v8505_v58 }
 0xa77   : > { %9018 = vst.msk [vmem:[%s18013_s21 + $0xf0] sm:$0xff] %vm367_vm0, %v8500_v5  ;;  %v11746_v6 = vpop.f32.mrb[8].mxu0 }
 0xa78   : > { %v8515_v15 = vadd.f32 %v11746_v6, %v18005_v20  ;;  %v8509_v44 = vpop.f32.mrb[9].mxu0 }
 0xa79   : > { %v8510_v10 = vadd.f32 %v18005_v20, %v8509_v44 }
 0xa7a   : > { %9021 = vst.msk [vmem:[%s18013_s21 + $0x108] sm:$0xff] %vm367_vm0, %v8515_v15 }
 0xa7b   : > { %9020 = vst.msk [vmem:[%s18013_s21 + $0x100] sm:$0xff] %vm367_vm0, %v8510_v10  ;;  %v11749_v27 = vpop.f32.mrb[10].mxu0 }
 0xa7c   : > { %v8525_v49 = vadd.f32 %v11749_v27, %v18005_v20  ;;  %v8519_v4 = vpop.f32.mrb[11].mxu0 }
 0xa7d   : > { %v8520_v30 = vadd.f32 %v18005_v20, %v8519_v4 }
 0xa7e   : > { %9023 = vst.msk [vmem:[%s18013_s21 + $0x118] sm:$0xff] %vm367_vm0, %v8525_v49 }
 0xa7f   : > { %9022 = vst.msk [vmem:[%s18013_s21 + $0x110] sm:$0xff] %vm367_vm0, %v8520_v30  ;;  %v11752_v47 = vpop.f32.mrb[12].mxu0 }
 0xa80   : > { %v8535_v42 = vadd.f32 %v11752_v47, %v18005_v20  ;;  %v8529_v12 = vpop.f32.mrb[13].mxu0 }
 0xa81   : > { %v8530_v36 = vadd.f32 %v18005_v20, %v8529_v12 }
 0xa82   : > { %9025 = vst.msk [vmem:[%s18013_s21 + $0x128] sm:$0xff] %vm367_vm0, %v8535_v42 }
 0xa83   : > { %9024 = vst.msk [vmem:[%s18013_s21 + $0x120] sm:$0xff] %vm367_vm0, %v8530_v36  ;;  %v11755_v1 = vpop.f32.mrb[14].mxu0 }
 0xa84   : > { %v8545_v24 = vadd.f32 %v11755_v1, %v18005_v20  ;;  %v8539_v57 = vpop.f32.mrb[15].mxu0 }
 0xa85   : > { %v8540_v62 = vadd.f32 %v18005_v20, %v8539_v57 }
 0xa86   : > { %9027 = vst.msk [vmem:[%s18013_s21 + $0x138] sm:$0xff] %vm367_vm0, %v8545_v24 }
 0xa87   : > { %9026 = vst.msk [vmem:[%s18013_s21 + $0x130] sm:$0xff] %vm367_vm0, %v8540_v62  ;;  %v11758_v22 = vpop.f32.mrb[16].mxu0 }
 0xa88   : > { %v8555_v46 = vadd.f32 %v11758_v22, %v18005_v20  ;;  %v8549_v61 = vpop.f32.mrb[17].mxu0 }
 0xa89   : > { %v8550_v43 = vadd.f32 %v18005_v20, %v8549_v61 }
 0xa8a   : > { %9029 = vst.msk [vmem:[%s18013_s21 + $0x148] sm:$0xff] %vm367_vm0, %v8555_v46 }
 0xa8b   : > { %9028 = vst.msk [vmem:[%s18013_s21 + $0x140] sm:$0xff] %vm367_vm0, %v8550_v43  ;;  %v11761_v16 = vpop.f32.mrb[18].mxu0 }
 0xa8c   : > { %v8565_v60 = vadd.f32 %v11761_v16, %v18005_v20  ;;  %v8559_v40 = vpop.f32.mrb[19].mxu0 }
 0xa8d   : > { %v8560_v17 = vadd.f32 %v18005_v20, %v8559_v40 }
 0xa8e   : > { %9031 = vst.msk [vmem:[%s18013_s21 + $0x158] sm:$0xff] %vm367_vm0, %v8565_v60 }
 0xa8f   : > { %9030 = vst.msk [vmem:[%s18013_s21 + $0x150] sm:$0xff] %vm367_vm0, %v8560_v17  ;;  %v11764_v38 = vpop.f32.mrb[20].mxu0 }
 0xa90   : > { %v8575_v13 = vadd.f32 %v11764_v38, %v18005_v20  ;;  %v8569_v48 = vpop.f32.mrb[21].mxu0 }
 0xa91   : > { %v8570_v29 = vadd.f32 %v18005_v20, %v8569_v48 }
 0xa92   : > { %9033 = vst.msk [vmem:[%s18013_s21 + $0x168] sm:$0xff] %vm367_vm0, %v8575_v13 }
 0xa93   : > { %9032 = vst.msk [vmem:[%s18013_s21 + $0x160] sm:$0xff] %vm367_vm0, %v8570_v29  ;;  %v11767_v53 = vpop.f32.mrb[22].mxu0 }
 0xa94   : > { %v8585_v26 = vadd.f32 %v11767_v53, %v18005_v20  ;;  %v8579_v37 = vpop.f32.mrb[23].mxu0 }
 0xa95   : > { %v8580_v0 = vadd.f32 %v18005_v20, %v8579_v37 }
 0xa96   : > { %9035 = vst.msk [vmem:[%s18013_s21 + $0x178] sm:$0xff] %vm367_vm0, %v8585_v26 }
 0xa97   : > { %9034 = vst.msk [vmem:[%s18013_s21 + $0x170] sm:$0xff] %vm367_vm0, %v8580_v0  ;;  %v11770_v21 = vpop.f32.mrb[24].mxu0 }
 0xa98   : > { %v8595_v2 = vadd.f32 %v11770_v21, %v18005_v20  ;;  %v8589_v18 = vpop.f32.mrb[25].mxu0 }
 0xa99   : > { %v8590_v51 = vadd.f32 %v18005_v20, %v8589_v18 }
 0xa9a   : > { %9037 = vst.msk [vmem:[%s18013_s21 + $0x188] sm:$0xff] %vm367_vm0, %v8595_v2 }
 0xa9b   : > { %9036 = vst.msk [vmem:[%s18013_s21 + $0x180] sm:$0xff] %vm367_vm0, %v8590_v51  ;;  %v11773_v41 = vpop.f32.mrb[26].mxu0 }
 0xa9c   : > { %v8605_v25 = vadd.f32 %v11773_v41, %v18005_v20  ;;  %v8599_v7 = vpop.f32.mrb[27].mxu0 }
 0xa9d   : > { %v8600_v34 = vadd.f32 %v18005_v20, %v8599_v7 }
 0xa9e   : > { %9039 = vst.msk [vmem:[%s18013_s21 + $0x198] sm:$0xff] %vm367_vm0, %v8605_v25 }
 0xa9f   : > { %9038 = vst.msk [vmem:[%s18013_s21 + $0x190] sm:$0xff] %vm367_vm0, %v8600_v34  ;;  %v11776_v9 = vpop.f32.mrb[28].mxu0 }
 0xaa0   : > { %v8615_v35 = vadd.f32 %v11776_v9, %v18005_v20  ;;  %v8609_v54 = vpop.f32.mrb[29].mxu0 }
 0xaa1   : > { %v8610_v11 = vadd.f32 %v18005_v20, %v8609_v54 }
 0xaa2   : > { %9041 = vst.msk [vmem:[%s18013_s21 + $0x1a8] sm:$0xff] %vm367_vm0, %v8615_v35 }
 0xaa3   : > { %9040 = vst.msk [vmem:[%s18013_s21 + $0x1a0] sm:$0xff] %vm367_vm0, %v8610_v11  ;;  %v11779_v19 = vpop.f32.mrb[30].mxu0 }
 0xaa4   : > { %v8625_v32 = vadd.f32 %v11779_v19, %v18005_v20  ;;  %v8619_v23 = vpop.f32.mrb[31].mxu0  ;;  %v11866_v3 = vpop.f32.mrb[202].mxu1 }
 0xaa5   : > { %v8620_v56 = vadd.f32 %v18005_v20, %v8619_v23  ;;  %v8915_v14 = vadd.f32 %v11866_v3, %v18005_v20  ;;  %v8909_v33 = vpop.f32.mrb[203].mxu1 }
 0xaa6   : > { %9043 = vst.msk [vmem:[%s18013_s21 + $0x1b8] sm:$0xff] %vm367_vm0, %v8625_v32  ;;  %v8910_v52 = vadd.f32 %v18005_v20, %v8909_v33 }
 0xaa7   : > { %9042 = vst.msk [vmem:[%s18013_s21 + $0x1b0] sm:$0xff] %vm367_vm0, %v8620_v56  ;;  %9101 = vst.msk [vmem:[%s18013_s21 + $0x388] sm:$0xff] %vm367_vm0, %v8915_v14  ;;  %v11782_v59 = vpop.f32.mrb[32].mxu0 }
 0xaa8   : > { %9100 = vst.msk [vmem:[%s18013_s21 + $0x380] sm:$0xff] %vm367_vm0, %v8910_v52  ;;  %v8635_v8 = vadd.f32 %v11782_v59, %v18005_v20  ;;  %v8629_v55 = vpop.f32.mrb[33].mxu0  ;;  %v11869_v50 = vpop.f32.mrb[204].mxu1 }
 0xaa9   : > { %v8630_v28 = vadd.f32 %v18005_v20, %v8629_v55  ;;  %v8925_v45 = vadd.f32 %v11869_v50, %v18005_v20  ;;  %v8919_v39 = vpop.f32.mrb[205].mxu1 }
 0xaaa   : > { %9045 = vst.msk [vmem:[%s18013_s21 + $0x1c8] sm:$0xff] %vm367_vm0, %v8635_v8  ;;  %v8920_v63 = vadd.f32 %v18005_v20, %v8919_v39 }
 0xaab   : > { %9044 = vst.msk [vmem:[%s18013_s21 + $0x1c0] sm:$0xff] %vm367_vm0, %v8630_v28  ;;  %9103 = vst.msk [vmem:[%s18013_s21 + $0x398] sm:$0xff] %vm367_vm0, %v8925_v45  ;;  %v11785_v58 = vpop.f32.mrb[34].mxu0 }
 0xaac   : > { %9102 = vst.msk [vmem:[%s18013_s21 + $0x390] sm:$0xff] %vm367_vm0, %v8920_v63  ;;  %v8645_v31 = vadd.f32 %v11785_v58, %v18005_v20  ;;  %v8639_v5 = vpop.f32.mrb[35].mxu0  ;;  %v11872_v6 = vpop.f32.mrb[206].mxu1 }
 0xaad   : > { %v8640_v15 = vadd.f32 %v18005_v20, %v8639_v5  ;;  %v8935_v44 = vadd.f32 %v11872_v6, %v18005_v20  ;;  %v8929_v10 = vpop.f32.mrb[207].mxu1 }
 0xaae   : > { %9047 = vst.msk [vmem:[%s18013_s21 + $0x1d8] sm:$0xff] %vm367_vm0, %v8645_v31  ;;  %v8930_v27 = vadd.f32 %v18005_v20, %v8929_v10 }
 0xaaf   : > { %9046 = vst.msk [vmem:[%s18013_s21 + $0x1d0] sm:$0xff] %vm367_vm0, %v8640_v15  ;;  %9105 = vst.msk [vmem:[%s18013_s21 + $0x3a8] sm:$0xff] %vm367_vm0, %v8935_v44  ;;  %v11788_v49 = vpop.f32.mrb[36].mxu0 }
 0xab0   : > { %9104 = vst.msk [vmem:[%s18013_s21 + $0x3a0] sm:$0xff] %vm367_vm0, %v8930_v27  ;;  %v8655_v4 = vadd.f32 %v11788_v49, %v18005_v20  ;;  %v8649_v30 = vpop.f32.mrb[37].mxu0  ;;  %v11875_v47 = vpop.f32.mrb[208].mxu1 }
 0xab1   : > { %v8650_v42 = vadd.f32 %v18005_v20, %v8649_v30  ;;  %v8945_v12 = vadd.f32 %v11875_v47, %v18005_v20  ;;  %v8939_v36 = vpop.f32.mrb[209].mxu1 }
 0xab2   : > { %9049 = vst.msk [vmem:[%s18013_s21 + $0x1e8] sm:$0xff] %vm367_vm0, %v8655_v4  ;;  %v8940_v1 = vadd.f32 %v18005_v20, %v8939_v36 }
 0xab3   : > { %9048 = vst.msk [vmem:[%s18013_s21 + $0x1e0] sm:$0xff] %vm367_vm0, %v8650_v42  ;;  %9107 = vst.msk [vmem:[%s18013_s21 + $0x3b8] sm:$0xff] %vm367_vm0, %v8945_v12 }
 0xab4   : > { %9106 = vst.msk [vmem:[%s18013_s21 + $0x3b0] sm:$0xff] %vm367_vm0, %v8940_v1 }
 0xae5   : > { %v11878_v24 = vpop.f32.mrb[210].mxu1 }
 0xae6   : > { %v8955_v57 = vadd.f32 %v11878_v24, %v18005_v20  ;;  %v8949_v62 = vpop.f32.mrb[211].mxu1 }
 0xae7   : > { %v8950_v22 = vadd.f32 %v18005_v20, %v8949_v62 }
 0xae8   : > { %9109 = vst.msk [vmem:[%s18013_s21 + $0x3c8] sm:$0xff] %vm367_vm0, %v8955_v57 }
 0xae9   : > { %9108 = vst.msk [vmem:[%s18013_s21 + $0x3c0] sm:$0xff] %vm367_vm0, %v8950_v22  ;;  %v11881_v46 = vpop.f32.mrb[212].mxu1 }
 0xaea   : > { %v8965_v61 = vadd.f32 %v11881_v46, %v18005_v20  ;;  %v8959_v43 = vpop.f32.mrb[213].mxu1 }
 0xaeb   : > { %v8960_v16 = vadd.f32 %v18005_v20, %v8959_v43 }
 0xaec   : > { %9111 = vst.msk [vmem:[%s18013_s21 + $0x3d8] sm:$0xff] %vm367_vm0, %v8965_v61 }
 0xaed   : > { %9110 = vst.msk [vmem:[%s18013_s21 + $0x3d0] sm:$0xff] %vm367_vm0, %v8960_v16  ;;  %v11884_v60 = vpop.f32.mrb[214].mxu1 }
 0xaee   : > { %v8975_v40 = vadd.f32 %v11884_v60, %v18005_v20  ;;  %v8969_v17 = vpop.f32.mrb[215].mxu1 }
 0xaef   : > { %v8970_v38 = vadd.f32 %v18005_v20, %v8969_v17 }
 0xaf0   : > { %9113 = vst.msk [vmem:[%s18013_s21 + $0x3e8] sm:$0xff] %vm367_vm0, %v8975_v40 }
 0xaf1   : > { %9112 = vst.msk [vmem:[%s18013_s21 + $0x3e0] sm:$0xff] %vm367_vm0, %v8970_v38 }
 0xb09   : > { %v11887_v13 = vpop.f32.mrb[216].mxu1 }
 0xb0a   : > { %v8985_v48 = vadd.f32 %v11887_v13, %v18005_v20  ;;  %v8979_v29 = vpop.f32.mrb[217].mxu1 }
 0xb0b   : > { %v8980_v53 = vadd.f32 %v18005_v20, %v8979_v29 }
 0xb0c   : > { %9115 = vst.msk [vmem:[%s18013_s21 + $0x3f8] sm:$0xff] %vm367_vm0, %v8985_v48 }
 0xb0d   : > { %9114 = vst.msk [vmem:[%s18013_s21 + $0x3f0] sm:$0xff] %vm367_vm0, %v8980_v53 }
 0xb0e PF: > { %s15_s18 = sadd.s32 1, %s13707_s18  }
 0xb0f   : > { %p12_p4 = scmp.ge.s32.totalorder %s15_s18, 4  }
 0xb11   :  { %14 = sbr.rel (!%p12_p4) target bundleno = 1 (0x1), region = 70 }

</bundles_post_ra>
